<compile_context>
chip_gen: v5e
topology: v5e:2x2
jax: 0.10.0
libtpu: 0.0.40
codegen_flags: <defaults>
</compile_context>

<pallas_src>
import jax
import jax.numpy as jnp
from jax import lax
from jax.experimental import pallas as pl
from jax.experimental.pallas import tpu as pltpu

# ---------------- configuration (scaled-down ResNet-50-shaped backbone) ----------------
SEQ_LENGTH = 4                      # module's SEQ_LENGTH (args.seq)
NUM_SEQS   = 2                      # number of sequences in the batch
IMG        = 64                     # PyTorch module uses 224
STEM_W     = 8                      # ResNet-50 uses 64
PLANES     = (8, 16, 32, 64)        # ResNet-50 uses (64, 128, 256, 512)
BLOCKS     = (1, 1, 1, 1)           # ResNet-50 uses (3, 4, 6, 3); scaled for the small run
STRIDES    = (1, 2, 2, 2)
EXPANSION  = 4
FEAT_DIM   = PLANES[-1] * EXPANSION # plays the role of 2048
HIDDEN     = 64                     # plays the role of the LSTM hidden size 512
BN_EPS     = 1e-5

_VMEM = pl.BlockSpec(memory_space=pltpu.MemorySpace.VMEM)


def _round_up(x, m):
    return ((x + m - 1) // m) * m


def _choose_tile(dim, candidates):
    for c in candidates:
        if dim % c == 0:
            return c
    return dim  # full-extent block (always legal)


def _choose_tm(m):
    # Prefer >=2 row tiles of >=256 (engages both TensorCores on v7x) but never shrink
    # below ~256 just to split — per-step overhead dominates on single-TC v5e/v6e.
    for c in (512, 256):
        if m % c == 0 and m >= 2 * c:
            return c
    return _choose_tile(m, (512, 256, 128, 64, 32, 16, 8))


# ======================================================================================
# Fused matmul kernel: (A @ B) * scale + shift [+ residual] [-> ReLU / per-col ReLU]
# ======================================================================================

def _epilogue(acc, aux, r, relu_mode):
    # aux rows: 0 = scale, 1 = shift, (2 = per-column relu mask when relu_mode=="cols").
    y = acc * aux[0:1, :] + aux[1:2, :]
    if r is not None:
        y = y + r.astype(jnp.float32)
    if relu_mode == "all":
        y = jnp.maximum(y, 0.0)
    elif relu_mode == "cols":
        y = jnp.where(aux[2:3, :] > 0.0, jnp.maximum(y, 0.0), y)
    return y


def _make_single_k_kernel(relu_mode, has_residual):
    # Fast path: the whole contraction fits one k tile -> no f32 scratch, no zero-init,
    # no accumulate RMW, no pl.when — one dot, one fused store.
    if has_residual:
        def kernel(a_ref, b_ref, aux_ref, r_ref, o_ref):
            acc = jnp.dot(a_ref[...], b_ref[...], preferred_element_type=jnp.float32)
            o_ref[...] = _epilogue(acc, aux_ref[...], r_ref[...],
                                   relu_mode).astype(o_ref.dtype)
    else:
        def kernel(a_ref, b_ref, aux_ref, o_ref):
            acc = jnp.dot(a_ref[...], b_ref[...], preferred_element_type=jnp.float32)
            o_ref[...] = _epilogue(acc, aux_ref[...], None,
                                   relu_mode).astype(o_ref.dtype)
    return kernel


def _make_multi_k_kernel(relu_mode, has_residual):
    def accum(a_ref, b_ref, acc_ref):
        @pl.when(pl.program_id(2) == 0)
        def _():
            acc_ref[...] = jnp.zeros_like(acc_ref)
        acc_ref[...] += jnp.dot(a_ref[...], b_ref[...],
                                preferred_element_type=jnp.float32)

    if has_residual:
        def kernel(a_ref, b_ref, aux_ref, r_ref, o_ref, acc_ref):
            accum(a_ref, b_ref, acc_ref)

            @pl.when(pl.program_id(2) == pl.num_programs(2) - 1)
            def _():
                o_ref[...] = _epilogue(acc_ref[...], aux_ref[...], r_ref[...],
                                       relu_mode).astype(o_ref.dtype)
    else:
        def kernel(a_ref, b_ref, aux_ref, o_ref, acc_ref):
            accum(a_ref, b_ref, acc_ref)

            @pl.when(pl.program_id(2) == pl.num_programs(2) - 1)
            def _():
                o_ref[...] = _epilogue(acc_ref[...], aux_ref[...], None,
                                       relu_mode).astype(o_ref.dtype)
    return kernel


def fused_matmul(a, b, scale, shift, residual=None, relu=False, out_dtype=jnp.bfloat16):
    """act((a @ b) * scale + shift [+ residual]) with bf16 operands / f32 accumulation.

    a: (M, K), b: (K, N); scale/shift: length-N f32; residual: (M, N) or None.
    relu: False | True | length-N float mask (per-column ReLU).
    """
    M, K = a.shape
    K2, N = b.shape
    assert K == K2
    a = a.astype(jnp.bfloat16)
    b = b.astype(jnp.bfloat16)

    relu_is_mask = not isinstance(relu, bool)
    rows = [jnp.asarray(scale, jnp.float32).reshape(1, N),
            jnp.asarray(shift, jnp.float32).reshape(1, N)]
    if relu_is_mask:
        rows.append(jnp.asarray(relu, jnp.float32).reshape(1, N))
        relu_mode = "cols"
    else:
        relu_mode = "all" if relu else "none"
    aux = jnp.concatenate(rows, axis=0)           # (2 or 3, N) single f32 operand
    R = aux.shape[0]

    if residual is not None:
        residual = residual.astype(jnp.bfloat16)

    # bf16 sublane packing: keep the contraction dim a multiple of 16 (zero padding
    # contributes nothing to the accumulation).  Only hits the stem / earliest convs.
    if K % 16 != 0:
        Kp = _round_up(K, 16)
        a = jnp.pad(a, ((0, 0), (0, Kp - K)))
        b = jnp.pad(b, ((0, Kp - K), (0, 0)))
        K = Kp

    Mp = M
    if M % 8 != 0:                                # never hit at these shapes; safety net
        Mp = _round_up(M, 8)
        a = jnp.pad(a, ((0, Mp - M), (0, 0)))
        if residual is not None:
            residual = jnp.pad(residual, ((0, Mp - M), (0, 0)))

    tm = _choose_tm(Mp)
    tn = _choose_tile(N, (256, 128))              # falls back to full-extent N
    tk = K if K <= 1024 else _choose_tile(K, (512, 256, 128))

    single_k = (K // tk) == 1
    if single_k:
        grid = (Mp // tm, N // tn)
        in_specs = [
            pl.BlockSpec((tm, tk), lambda i, j: (i, 0)),
            pl.BlockSpec((tk, tn), lambda i, j: (0, j)),
            pl.BlockSpec((R, tn), lambda i, j: (0, j)),
        ]
        out_spec = pl.BlockSpec((tm, tn), lambda i, j: (i, j))
        args = [a, b, aux]
        if residual is not None:
            in_specs.append(pl.BlockSpec((tm, tn), lambda i, j: (i, j)))
            args.append(residual)
        kernel = _make_single_k_kernel(relu_mode, residual is not None)
        scratch = []
        dims = ("parallel", "parallel")
    else:
        grid = (Mp // tm, N // tn, K // tk)
        in_specs = [
            pl.BlockSpec((tm, tk), lambda i, j, k: (i, k)),
            pl.BlockSpec((tk, tn), lambda i, j, k: (k, j)),
            pl.BlockSpec((R, tn), lambda i, j, k: (0, j)),
        ]
        out_spec = pl.BlockSpec((tm, tn), lambda i, j, k: (i, j))
        args = [a, b, aux]
        if residual is not None:
            in_specs.append(pl.BlockSpec((tm, tn), lambda i, j, k: (i, j)))
            args.append(residual)
        kernel = _make_multi_k_kernel(relu_mode, residual is not None)
        scratch = [pltpu.VMEM((tm, tn), jnp.float32)]
        dims = ("parallel", "parallel", "arbitrary")

    out = pl.pallas_call(
        kernel,
        out_shape=jax.ShapeDtypeStruct((Mp, N), out_dtype),
        grid_spec=pltpu.PrefetchScalarGridSpec(
            num_scalar_prefetch=0,
            grid=grid,
            in_specs=in_specs,
            out_specs=out_spec,
            scratch_shapes=scratch),
        compiler_params=pltpu.CompilerParams(dimension_semantics=dims),
    )(*args)
    return out[:M] if Mp != M else out


# ======================================================================================
# Conv / pool / LSTM building blocks
# ======================================================================================

def conv_bn(x, w, scale, shift, stride, pad, relu, residual=None,
            out_dtype=jnp.bfloat16):
    """NHWC conv (im2col glue) + fused Pallas matmul with BN affine / residual / ReLU."""
    N, H, W, Cin = x.shape
    kh, kw, _, Cout = w.shape
    OH = (H + 2 * pad - kh) // stride + 1
    OW = (W + 2 * pad - kw) // stride + 1
    if kh == 1 and kw == 1 and pad == 0:
        xs = x[:, ::stride, ::stride, :] if stride != 1 else x
        a = xs.reshape(N * OH * OW, Cin)
    else:
        # TODO(synk): im2col still materializes kh*kw shifted copies in HBM (stem + each
        #             3x3 conv); a true implicit-GEMM (taps as a reduction grid axis
        #             reading the padded activation via manual DMA / Element offsets)
        #             remains future work.
        xp = jnp.pad(x, ((0, 0), (pad, pad), (pad, pad), (0, 0)))
        cols = [xp[:, ki:ki + stride * (OH - 1) + 1:stride,
                   kj:kj + stride * (OW - 1) + 1:stride, :]
                for ki in range(kh) for kj in range(kw)]
        a = jnp.concatenate(cols, axis=-1).reshape(N * OH * OW, kh * kw * Cin)
    b = w.reshape(kh * kw * Cin, Cout)
    r = residual.reshape(N * OH * OW, Cout) if residual is not None else None
    y = fused_matmul(a, b, scale, shift, residual=r, relu=relu, out_dtype=out_dtype)
    return y.reshape(N, OH, OW, Cout)


def maxpool_3x3_s2(x):
    # TODO(synk): overlapping strided pooling windows don't map onto rectangular
    #             BlockSpec tiles without manual DMA; one fused XLA reduce_window pass.
    init = jnp.array(-jnp.inf, dtype=x.dtype)
    return lax.reduce_window(x, init, lax.max,
                             window_dimensions=(1, 3, 3, 1),
                             window_strides=(1, 2, 2, 1),
                             padding=((0, 0), (1, 1), (1, 1), (0, 0)))


def _sigmoid(z):
    # Numerically stable sigmoid via tanh (EUP path; no overflow for large |z|).
    return 0.5 * (jnp.tanh(0.5 * z) + 1.0)


def _lstm_recurrence_kernel(g_ref, whh_ref, h_ref):
    # g_ref: (T, B, 4H) f32 precomputed x @ W_ih + b_ih + b_hh; whh_ref: (H, 4H) bf16.
    # Only the final hidden state is emitted: forward() returns y[SEQ-1::SEQ] == h_T.
    T, B, _ = g_ref.shape
    H = whh_ref.shape[0]
    h = jnp.zeros((B, H), jnp.float32)
    c = jnp.zeros((B, H), jnp.float32)
    for t in range(T):  # static unroll (T == SEQ_LENGTH, small & fixed)
        gates = g_ref[t] + jnp.dot(h.astype(jnp.bfloat16), whh_ref[...],
                                   preferred_element_type=jnp.float32)
        i = _sigmoid(gates[:, 0 * H:1 * H])          # PyTorch gate order: i, f, g, o
        f = _sigmoid(gates[:, 1 * H:2 * H])
        g = jnp.tanh(gates[:, 2 * H:3 * H])
        o = _sigmoid(gates[:, 3 * H:4 * H])
        c = f * c + i * g
        h = o * jnp.tanh(c)
    h_ref[...] = h


def lstm_head(feat_map, p):
    """Global-avg-pool + LSTM + last-step selection.

    feat_map: (n_frames, h, w, FEAT_DIM) final backbone activation (bf16).
    Avg pool is folded exactly into the input projection:
        mean_hw(x) @ W_ih == x.reshape(n, hw*C) @ vstack([W_ih]*hw)   (1/hw in f32 scale)
    Returns (NUM_SEQS, HIDDEN): the last timestep's hidden state per sequence,
    i.e. y.view(-1, HIDDEN)[SEQ_LENGTH-1::SEQ_LENGTH].
    """
    n_frames, h, w, c = feat_map.shape
    hw = h * w
    B = n_frames // SEQ_LENGTH
    H = HIDDEN
    a = feat_map.reshape(n_frames, hw * c)                          # hw-major, C-minor
    w_rep = jnp.concatenate([p['w_ih']] * hw, axis=0)               # (hw*C, 4H) bf16
    gates = fused_matmul(
        a, w_rep,
        scale=jnp.full((4 * H,), 1.0 / hw, jnp.float32),            # the avg-pool 1/hw
        shift=(p['b_ih'] + p['b_hh']).reshape(4 * H),
        relu=False, out_dtype=jnp.float32)                          # (n_frames, 4H)
    g = jnp.transpose(gates.reshape(B, SEQ_LENGTH, 4 * H), (1, 0, 2))  # (T, B, 4H)
    h_last = pl.pallas_call(
        _lstm_recurrence_kernel,
        out_shape=jax.ShapeDtypeStruct((B, H), jnp.float32),
        in_specs=[_VMEM, _VMEM],
        out_specs=_VMEM,
    )(g, p['w_hh'])
    return h_last


# ======================================================================================
# Parameter construction (deterministic synthetic init — no checkpoint loading)
# ======================================================================================

class _KeyGen:
    def __init__(self, key):
        self.key = key

    def __call__(self):
        self.key, sub = jax.random.split(self.key)
        return sub


def conv_init(kg, k, cin, cout):
    std = (2.0 / (k * k * cin)) ** 0.5
    w = std * jax.random.normal(kg(), (k, k, cin, cout), jnp.float32)
    return w.astype(jnp.bfloat16)


def bn_init(kg, c):
    # TODO(synk): eval-mode BatchNorm only — running stats folded into a per-channel
    #             affine that is applied inside the matmul epilogue (f32).
    gamma = 1.0 + 0.1 * jax.random.normal(kg(), (c,), jnp.float32)
    beta = 0.1 * jax.random.normal(kg(), (c,), jnp.float32)
    mean = 0.1 * jax.random.normal(kg(), (c,), jnp.float32)
    var = 1.0 + 0.1 * jax.random.uniform(kg(), (c,), jnp.float32)
    scale = gamma / jnp.sqrt(var + BN_EPS)
    shift = beta - mean * scale
    return (scale.reshape(1, c), shift.reshape(1, c))


def bottleneck_init(kg, cin, planes, stride):
    p = {
        'stride': stride,
        'conv1_w': conv_init(kg, 1, cin, planes),
        'bn1': bn_init(kg, planes),
        'conv2_w': conv_init(kg, 3, planes, planes),
        'bn2': bn_init(kg, planes),
        'conv3_w': conv_init(kg, 1, planes, planes * EXPANSION),
        'bn3': bn_init(kg, planes * EXPANSION),
    }
    if stride != 1 or cin != planes * EXPANSION:
        p['down_w'] = conv_init(kg, 1, cin, planes * EXPANSION)
        p['down_bn'] = bn_init(kg, planes * EXPANSION)
    return p


def build_params(key):
    kg = _KeyGen(key)
    params = {
        'conv1_w': conv_init(kg, 7, 3, STEM_W),
        'bn1': bn_init(kg, STEM_W),
    }
    layers = []
    cin = STEM_W
    for planes, nblocks, stride in zip(PLANES, BLOCKS, STRIDES):
        blocks = []
        for b in range(nblocks):
            s = stride if b == 0 else 1
            blocks.append(bottleneck_init(kg, cin, planes, s))
            cin = planes * EXPANSION
        layers.append(blocks)
    params['layers'] = layers
    # nn.LSTM(FEAT, HIDDEN, batch_first=True), xavier_normal_ on the weight matrices.
    std_ih = (2.0 / (FEAT_DIM + 4 * HIDDEN)) ** 0.5
    std_hh = (2.0 / (HIDDEN + 4 * HIDDEN)) ** 0.5
    params['lstm'] = {
        'w_ih': (std_ih * jax.random.normal(kg(), (FEAT_DIM, 4 * HIDDEN),
                                            jnp.float32)).astype(jnp.bfloat16),
        'w_hh': (std_hh * jax.random.normal(kg(), (HIDDEN, 4 * HIDDEN),
                                            jnp.float32)).astype(jnp.bfloat16),
        'b_ih': 0.01 * jax.random.normal(kg(), (4 * HIDDEN,), jnp.float32),
        'b_hh': 0.01 * jax.random.normal(kg(), (4 * HIDDEN,), jnp.float32),
    }
    return params


# ======================================================================================
# Forward pass (mirrors resnet_lstm_LFB.forward)
# ======================================================================================

def bottleneck(x, p):
    N, H, W, Cin = x.shape
    planes = p['conv1_w'].shape[-1]
    stride = p['stride']
    if 'down_w' in p:
        # Fuse conv1 (1x1 + ReLU) and the 1x1 downsample (no ReLU) into ONE matmul over
        # all spatial positions (per-column ReLU mask in the epilogue); the downsample's
        # stride is applied afterwards by row subsampling.
        w_cat = jnp.concatenate([p['conv1_w'].reshape(Cin, planes),
                                 p['down_w'].reshape(Cin, planes * EXPANSION)], axis=1)
        s1, t1 = p['bn1']
        sd, td = p['down_bn']
        scale_cat = jnp.concatenate([s1.reshape(-1), sd.reshape(-1)])
        shift_cat = jnp.concatenate([t1.reshape(-1), td.reshape(-1)])
        relu_mask = jnp.concatenate([jnp.ones((planes,), jnp.float32),
                                     jnp.zeros((planes * EXPANSION,), jnp.float32)])
        a = x.reshape(N * H * W, Cin)
        y = fused_matmul(a, w_cat, scale_cat, shift_cat, relu=relu_mask)
        y = y.reshape(N, H, W, planes + planes * EXPANSION)
        out = y[..., :planes]                         # conv1 output (already ReLU'd)
        identity = y[..., planes:]                    # downsample output (no ReLU)
        if stride != 1:
            identity = identity[:, ::stride, ::stride, :]
    else:
        identity = x
        out = conv_bn(x, p['conv1_w'], *p['bn1'], stride=1, pad=0, relu=True)
    out = conv_bn(out, p['conv2_w'], *p['bn2'], stride=stride, pad=1, relu=True)
    # conv3 + BN + residual add + ReLU all fused in one kernel epilogue.
    out = conv_bn(out, p['conv3_w'], *p['bn3'], stride=1, pad=0, relu=True,
                  residual=identity)
    return out


def resnet_lstm_lfb_forward(x, params):
    # x: (NUM_SEQS, SEQ_LENGTH, 3, IMG, IMG) — PyTorch NCHW frames.
    x = x.reshape(-1, 3, IMG, IMG)                           # x.view(-1, 3, 224, 224)
    x = jnp.transpose(x, (0, 2, 3, 1)).astype(jnp.bfloat16)  # NCHW -> NHWC, bf16
    # ---- self.share: conv1 / bn1 / relu / maxpool / layer1..4 / avgpool ----
    s, t = params['bn1']
    x = conv_bn(x, params['conv1_w'], s, t, stride=2, pad=3, relu=True)
    x = maxpool_3x3_s2(x)
    for layer in params['layers']:
        for blk in layer:
            x = bottleneck(x, blk)
    # ---- avgpool (folded into the LSTM input projection) + LSTM + y[SEQ-1::SEQ] ----
    return lstm_head(x, params['lstm'])                      # (NUM_SEQS, HIDDEN)


if __name__ == "__main__":
    key = jax.random.PRNGKey(0)
    pkey, xkey = jax.random.split(key)
    params = build_params(pkey)
    x = jax.random.normal(xkey, (NUM_SEQS, SEQ_LENGTH, 3, IMG, IMG), jnp.float32)

    fwd = jax.jit(lambda inp: resnet_lstm_lfb_forward(inp, params))
    y = fwd(x)
    jax.block_until_ready(y)
    assert y.shape == (NUM_SEQS, HIDDEN), y.shape
    assert bool(jnp.all(jnp.isfinite(y)))
    print("KERNEL_OK")
</pallas_src>

<mosaic_0001>
module attributes {stable_mosaic.version = 11 : i64} {
  func.func @kernel(%arg0: i32, %arg1: i32, %arg2: memref<512x160xbf16, #tpu.memory_space<vmem>>, %arg3: memref<160x8xbf16, #tpu.memory_space<vmem>>, %arg4: memref<2x8xf32, #tpu.memory_space<vmem>>, %arg5: memref<512x8xbf16, #tpu.memory_space<vmem>>) attributes {dimension_semantics = [#tpu.dimension_semantics<parallel>, #tpu.dimension_semantics<parallel>], iteration_bounds = array<i64: 16, 1>, scalar_prefetch = 0 : i64, scratch_operands = 0 : i64, tpu.core_type = #tpu.core_type<tc>, window_params = [{transform_indices = @transform_0, window_bounds = array<i64: 512, 160>}, {transform_indices = @transform_1, window_bounds = array<i64: 160, 8>}, {transform_indices = @transform_2, window_bounds = array<i64: 2, 8>}, {transform_indices = @transform_3, window_bounds = array<i64: 512, 8>}]} {
    %c0 = arith.constant 0 : index
    %c0_0 = arith.constant 0 : index
    %0 = vector.load %arg2[%c0, %c0_0] : memref<512x160xbf16, #tpu.memory_space<vmem>>, vector<512x160xbf16>
    %c0_1 = arith.constant 0 : index
    %c0_2 = arith.constant 0 : index
    %1 = vector.load %arg3[%c0_1, %c0_2] : memref<160x8xbf16, #tpu.memory_space<vmem>>, vector<160x8xbf16>
    %cst = arith.constant dense<0.000000e+00> : vector<512x8xf32>
    %2 = tpu.matmul %0, %1, %cst {dimension_numbers = #tpu.dot_dimension_numbers<[1], [0], [0], [1], [0, 0, 1, 1], [], []>} : vector<512x160xbf16>, vector<160x8xbf16>, vector<512x8xf32> -> vector<512x8xf32>
    %c0_3 = arith.constant 0 : index
    %c0_4 = arith.constant 0 : index
    %3 = vector.load %arg4[%c0_3, %c0_4] : memref<2x8xf32, #tpu.memory_space<vmem>>, vector<2x8xf32>
    %4 = vector.extract_strided_slice %3 {offsets = [0, 0], sizes = [1, 8], strides = [1, 1]} : vector<2x8xf32> to vector<1x8xf32>
    %5 = vector.broadcast %4 : vector<1x8xf32> to vector<512x8xf32>
    %6 = arith.mulf %2, %5 : vector<512x8xf32>
    %7 = vector.extract_strided_slice %3 {offsets = [1, 0], sizes = [1, 8], strides = [1, 1]} : vector<2x8xf32> to vector<1x8xf32>
    %8 = vector.broadcast %7 : vector<1x8xf32> to vector<512x8xf32>
    %9 = arith.addf %6, %8 : vector<512x8xf32>
    %cst_5 = arith.constant 0.000000e+00 : f32
    %10 = vector.broadcast %cst_5 : f32 to vector<512x8xf32>
    %11 = arith.maximumf %9, %10 : vector<512x8xf32>
    %12 = arith.truncf %11 : vector<512x8xf32> to vector<512x8xbf16>
    %c0_6 = arith.constant 0 : index
    %c0_7 = arith.constant 0 : index
    %13 = vector.load %arg5[%c0_6, %c0_7] : memref<512x8xbf16, #tpu.memory_space<vmem>>, vector<512x8xbf16>
    tpu.vector_store %arg5[%c0_6, %c0_7], %12 {strides = array<i32>} : memref<512x8xbf16, #tpu.memory_space<vmem>>, vector<512x8xbf16>,
    return
  }
  func.func @transform_0(%arg0: i32, %arg1: i32) -> (i32, i32) {
    %c0_i32 = arith.constant 0 : i32
    %c0_i32_0 = arith.constant 0 : i32
    return %arg0, %c0_i32 : i32, i32
  }
  func.func @transform_1(%arg0: i32, %arg1: i32) -> (i32, i32) {
    %c0_i32 = arith.constant 0 : i32
    %c0_i32_0 = arith.constant 0 : i32
    return %c0_i32, %arg1 : i32, i32
  }
  func.func @transform_2(%arg0: i32, %arg1: i32) -> (i32, i32) {
    %c0_i32 = arith.constant 0 : i32
    %c0_i32_0 = arith.constant 0 : i32
    return %c0_i32, %arg1 : i32, i32
  }
  func.func @transform_3(%arg0: i32, %arg1: i32) -> (i32, i32) {
    %c0_i32 = arith.constant 0 : i32
    return %arg0, %arg1 : i32, i32
  }
}

module attributes {stable_mosaic.version = 11 : i64} {
  func.func @kernel(%arg0: i32, %arg1: i32, %arg2: memref<512x16xbf16, #tpu.memory_space<vmem>>, %arg3: memref<16x40xbf16, #tpu.memory_space<vmem>>, %arg4: memref<3x40xf32, #tpu.memory_space<vmem>>, %arg5: memref<512x40xbf16, #tpu.memory_space<vmem>>) attributes {dimension_semantics = [#tpu.dimension_semantics<parallel>, #tpu.dimension_semantics<parallel>], iteration_bounds = array<i64: 4, 1>, scalar_prefetch = 0 : i64, scratch_operands = 0 : i64, tpu.core_type = #tpu.core_type<tc>, window_params = [{transform_indices = @transform_0, window_bounds = array<i64: 512, 16>}, {transform_indices = @transform_1, window_bounds = array<i64: 16, 40>}, {transform_indices = @transform_2, window_bounds = array<i64: 3, 40>}, {transform_indices = @transform_3, window_bounds = array<i64: 512, 40>}]} {
    %c0 = arith.constant 0 : index
    %c0_0 = arith.constant 0 : index
    %0 = vector.load %arg2[%c0, %c0_0] : memref<512x16xbf16, #tpu.memory_space<vmem>>, vector<512x16xbf16>
    %c0_1 = arith.constant 0 : index
    %c0_2 = arith.constant 0 : index
    %1 = vector.load %arg3[%c0_1, %c0_2] : memref<16x40xbf16, #tpu.memory_space<vmem>>, vector<16x40xbf16>
    %cst = arith.constant dense<0.000000e+00> : vector<512x40xf32>
    %2 = tpu.matmul %0, %1, %cst {dimension_numbers = #tpu.dot_dimension_numbers<[1], [0], [0], [1], [0, 0, 1, 1], [], []>} : vector<512x16xbf16>, vector<16x40xbf16>, vector<512x40xf32> -> vector<512x40xf32>
    %c0_3 = arith.constant 0 : index
    %c0_4 = arith.constant 0 : index
    %3 = vector.load %arg4[%c0_3, %c0_4] : memref<3x40xf32, #tpu.memory_space<vmem>>, vector<3x40xf32>
    %4 = vector.extract_strided_slice %3 {offsets = [0, 0], sizes = [1, 40], strides = [1, 1]} : vector<3x40xf32> to vector<1x40xf32>
    %5 = vector.broadcast %4 : vector<1x40xf32> to vector<512x40xf32>
    %6 = arith.mulf %2, %5 : vector<512x40xf32>
    %7 = vector.extract_strided_slice %3 {offsets = [1, 0], sizes = [1, 40], strides = [1, 1]} : vector<3x40xf32> to vector<1x40xf32>
    %8 = vector.broadcast %7 : vector<1x40xf32> to vector<512x40xf32>
    %9 = arith.addf %6, %8 : vector<512x40xf32>
    %10 = vector.extract_strided_slice %3 {offsets = [2, 0], sizes = [1, 40], strides = [1, 1]} : vector<3x40xf32> to vector<1x40xf32>
    %cst_5 = arith.constant 0.000000e+00 : f32
    %11 = vector.broadcast %cst_5 : f32 to vector<1x40xf32>
    %12 = arith.cmpf ogt, %10, %11 : vector<1x40xf32>
    %cst_6 = arith.constant 0.000000e+00 : f32
    %13 = vector.broadcast %cst_6 : f32 to vector<512x40xf32>
    %14 = arith.maximumf %9, %13 : vector<512x40xf32>
    %15 = vector.shape_cast %12 : vector<1x40xi1> to vector<1x40xi1>
    %16 = vector.broadcast %15 : vector<1x40xi1> to vector<512x40xi1>
    %17 = arith.select %16, %14, %9 : vector<512x40xi1>, vector<512x40xf32>
    %18 = arith.truncf %17 : vector<512x40xf32> to vector<512x40xbf16>
    %c0_7 = arith.constant 0 : index
    %c0_8 = arith.constant 0 : index
    %19 = vector.load %arg5[%c0_7, %c0_8] : memref<512x40xbf16, #tpu.memory_space<vmem>>, vector<512x40xbf16>
    tpu.vector_store %arg5[%c0_7, %c0_8], %18 {strides = array<i32>} : memref<512x40xbf16, #tpu.memory_space<vmem>>, vector<512x40xbf16>,
    return
  }
  func.func @transform_0(%arg0: i32, %arg1: i32) -> (i32, i32) {
    %c0_i32 = arith.constant 0 : i32
    %c0_i32_0 = arith.constant 0 : i32
    return %arg0, %c0_i32 : i32, i32
  }
  func.func @transform_1(%arg0: i32, %arg1: i32) -> (i32, i32) {
    %c0_i32 = arith.constant 0 : i32
    %c0_i32_0 = arith.constant 0 : i32
    return %c0_i32, %arg1 : i32, i32
  }
  func.func @transform_2(%arg0: i32, %arg1: i32) -> (i32, i32) {
    %c0_i32 = arith.constant 0 : i32
    %c0_i32_0 = arith.constant 0 : i32
    return %c0_i32, %arg1 : i32, i32
  }
  func.func @transform_3(%arg0: i32, %arg1: i32) -> (i32, i32) {
    %c0_i32 = arith.constant 0 : i32
    return %arg0, %arg1 : i32, i32
  }
}

module attributes {stable_mosaic.version = 11 : i64} {
  func.func @kernel(%arg0: i32, %arg1: i32, %arg2: memref<512x80xbf16, #tpu.memory_space<vmem>>, %arg3: memref<80x8xbf16, #tpu.memory_space<vmem>>, %arg4: memref<2x8xf32, #tpu.memory_space<vmem>>, %arg5: memref<512x8xbf16, #tpu.memory_space<vmem>>) attributes {dimension_semantics = [#tpu.dimension_semantics<parallel>, #tpu.dimension_semantics<parallel>], iteration_bounds = array<i64: 4, 1>, scalar_prefetch = 0 : i64, scratch_operands = 0 : i64, tpu.core_type = #tpu.core_type<tc>, window_params = [{transform_indices = @transform_0, window_bounds = array<i64: 512, 80>}, {transform_indices = @transform_1, window_bounds = array<i64: 80, 8>}, {transform_indices = @transform_2, window_bounds = array<i64: 2, 8>}, {transform_indices = @transform_3, window_bounds = array<i64: 512, 8>}]} {
    %c0 = arith.constant 0 : index
    %c0_0 = arith.constant 0 : index
    %0 = vector.load %arg2[%c0, %c0_0] : memref<512x80xbf16, #tpu.memory_space<vmem>>, vector<512x80xbf16>
    %c0_1 = arith.constant 0 : index
    %c0_2 = arith.constant 0 : index
    %1 = vector.load %arg3[%c0_1, %c0_2] : memref<80x8xbf16, #tpu.memory_space<vmem>>, vector<80x8xbf16>
    %cst = arith.constant dense<0.000000e+00> : vector<512x8xf32>
    %2 = tpu.matmul %0, %1, %cst {dimension_numbers = #tpu.dot_dimension_numbers<[1], [0], [0], [1], [0, 0, 1, 1], [], []>} : vector<512x80xbf16>, vector<80x8xbf16>, vector<512x8xf32> -> vector<512x8xf32>
    %c0_3 = arith.constant 0 : index
    %c0_4 = arith.constant 0 : index
    %3 = vector.load %arg4[%c0_3, %c0_4] : memref<2x8xf32, #tpu.memory_space<vmem>>, vector<2x8xf32>
    %4 = vector.extract_strided_slice %3 {offsets = [0, 0], sizes = [1, 8], strides = [1, 1]} : vector<2x8xf32> to vector<1x8xf32>
    %5 = vector.broadcast %4 : vector<1x8xf32> to vector<512x8xf32>
    %6 = arith.mulf %2, %5 : vector<512x8xf32>
    %7 = vector.extract_strided_slice %3 {offsets = [1, 0], sizes = [1, 8], strides = [1, 1]} : vector<2x8xf32> to vector<1x8xf32>
    %8 = vector.broadcast %7 : vector<1x8xf32> to vector<512x8xf32>
    %9 = arith.addf %6, %8 : vector<512x8xf32>
    %cst_5 = arith.constant 0.000000e+00 : f32
    %10 = vector.broadcast %cst_5 : f32 to vector<512x8xf32>
    %11 = arith.maximumf %9, %10 : vector<512x8xf32>
    %12 = arith.truncf %11 : vector<512x8xf32> to vector<512x8xbf16>
    %c0_6 = arith.constant 0 : index
    %c0_7 = arith.constant 0 : index
    %13 = vector.load %arg5[%c0_6, %c0_7] : memref<512x8xbf16, #tpu.memory_space<vmem>>, vector<512x8xbf16>
    tpu.vector_store %arg5[%c0_6, %c0_7], %12 {strides = array<i32>} : memref<512x8xbf16, #tpu.memory_space<vmem>>, vector<512x8xbf16>,
    return
  }
  func.func @transform_0(%arg0: i32, %arg1: i32) -> (i32, i32) {
    %c0_i32 = arith.constant 0 : i32
    %c0_i32_0 = arith.constant 0 : i32
    return %arg0, %c0_i32 : i32, i32
  }
  func.func @transform_1(%arg0: i32, %arg1: i32) -> (i32, i32) {
    %c0_i32 = arith.constant 0 : i32
    %c0_i32_0 = arith.constant 0 : i32
    return %c0_i32, %arg1 : i32, i32
  }
  func.func @transform_2(%arg0: i32, %arg1: i32) -> (i32, i32) {
    %c0_i32 = arith.constant 0 : i32
    %c0_i32_0 = arith.constant 0 : i32
    return %c0_i32, %arg1 : i32, i32
  }
  func.func @transform_3(%arg0: i32, %arg1: i32) -> (i32, i32) {
    %c0_i32 = arith.constant 0 : i32
    return %arg0, %arg1 : i32, i32
  }
}

module attributes {stable_mosaic.version = 11 : i64} {
  func.func @kernel(%arg0: i32, %arg1: i32, %arg2: memref<512x16xbf16, #tpu.memory_space<vmem>>, %arg3: memref<16x32xbf16, #tpu.memory_space<vmem>>, %arg4: memref<2x32xf32, #tpu.memory_space<vmem>>, %arg5: memref<512x32xbf16, #tpu.memory_space<vmem>>, %arg6: memref<512x32xbf16, #tpu.memory_space<vmem>>) attributes {dimension_semantics = [#tpu.dimension_semantics<parallel>, #tpu.dimension_semantics<parallel>], iteration_bounds = array<i64: 4, 1>, scalar_prefetch = 0 : i64, scratch_operands = 0 : i64, tpu.core_type = #tpu.core_type<tc>, window_params = [{transform_indices = @transform_0, window_bounds = array<i64: 512, 16>}, {transform_indices = @transform_1, window_bounds = array<i64: 16, 32>}, {transform_indices = @transform_2, window_bounds = array<i64: 2, 32>}, {transform_indices = @transform_3, window_bounds = array<i64: 512, 32>}, {transform_indices = @transform_4, window_bounds = array<i64: 512, 32>}]} {
    %c0 = arith.constant 0 : index
    %c0_0 = arith.constant 0 : index
    %0 = vector.load %arg2[%c0, %c0_0] : memref<512x16xbf16, #tpu.memory_space<vmem>>, vector<512x16xbf16>
    %c0_1 = arith.constant 0 : index
    %c0_2 = arith.constant 0 : index
    %1 = vector.load %arg3[%c0_1, %c0_2] : memref<16x32xbf16, #tpu.memory_space<vmem>>, vector<16x32xbf16>
    %cst = arith.constant dense<0.000000e+00> : vector<512x32xf32>
    %2 = tpu.matmul %0, %1, %cst {dimension_numbers = #tpu.dot_dimension_numbers<[1], [0], [0], [1], [0, 0, 1, 1], [], []>} : vector<512x16xbf16>, vector<16x32xbf16>, vector<512x32xf32> -> vector<512x32xf32>
    %c0_3 = arith.constant 0 : index
    %c0_4 = arith.constant 0 : index
    %3 = vector.load %arg4[%c0_3, %c0_4] : memref<2x32xf32, #tpu.memory_space<vmem>>, vector<2x32xf32>
    %c0_5 = arith.constant 0 : index
    %c0_6 = arith.constant 0 : index
    %4 = vector.load %arg5[%c0_5, %c0_6] : memref<512x32xbf16, #tpu.memory_space<vmem>>, vector<512x32xbf16>
    %5 = vector.extract_strided_slice %3 {offsets = [0, 0], sizes = [1, 32], strides = [1, 1]} : vector<2x32xf32> to vector<1x32xf32>
    %6 = vector.broadcast %5 : vector<1x32xf32> to vector<512x32xf32>
    %7 = arith.mulf %2, %6 : vector<512x32xf32>
    %8 = vector.extract_strided_slice %3 {offsets = [1, 0], sizes = [1, 32], strides = [1, 1]} : vector<2x32xf32> to vector<1x32xf32>
    %9 = vector.broadcast %8 : vector<1x32xf32> to vector<512x32xf32>
    %10 = arith.addf %7, %9 : vector<512x32xf32>
    %11 = arith.extf %4 : vector<512x32xbf16> to vector<512x32xf32>
    %12 = arith.addf %10, %11 : vector<512x32xf32>
    %cst_7 = arith.constant 0.000000e+00 : f32
    %13 = vector.broadcast %cst_7 : f32 to vector<512x32xf32>
    %14 = arith.maximumf %12, %13 : vector<512x32xf32>
    %15 = arith.truncf %14 : vector<512x32xf32> to vector<512x32xbf16>
    %c0_8 = arith.constant 0 : index
    %c0_9 = arith.constant 0 : index
    %16 = vector.load %arg6[%c0_8, %c0_9] : memref<512x32xbf16, #tpu.memory_space<vmem>>, vector<512x32xbf16>
    tpu.vector_store %arg6[%c0_8, %c0_9], %15 {strides = array<i32>} : memref<512x32xbf16, #tpu.memory_space<vmem>>, vector<512x32xbf16>,
    return
  }
  func.func @transform_0(%arg0: i32, %arg1: i32) -> (i32, i32) {
    %c0_i32 = arith.constant 0 : i32
    %c0_i32_0 = arith.constant 0 : i32
    return %arg0, %c0_i32 : i32, i32
  }
  func.func @transform_1(%arg0: i32, %arg1: i32) -> (i32, i32) {
    %c0_i32 = arith.constant 0 : i32
    %c0_i32_0 = arith.constant 0 : i32
    return %c0_i32, %arg1 : i32, i32
  }
  func.func @transform_2(%arg0: i32, %arg1: i32) -> (i32, i32) {
    %c0_i32 = arith.constant 0 : i32
    %c0_i32_0 = arith.constant 0 : i32
    return %c0_i32, %arg1 : i32, i32
  }
  func.func @transform_3(%arg0: i32, %arg1: i32) -> (i32, i32) {
    %c0_i32 = arith.constant 0 : i32
    return %arg0, %arg1 : i32, i32
  }
  func.func @transform_4(%arg0: i32, %arg1: i32) -> (i32, i32) {
    %c0_i32 = arith.constant 0 : i32
    return %arg0, %arg1 : i32, i32
  }
}

module attributes {stable_mosaic.version = 11 : i64} {
  func.func @kernel(%arg0: i32, %arg1: i32, %arg2: memref<512x32xbf16, #tpu.memory_space<vmem>>, %arg3: memref<32x80xbf16, #tpu.memory_space<vmem>>, %arg4: memref<3x80xf32, #tpu.memory_space<vmem>>, %arg5: memref<512x80xbf16, #tpu.memory_space<vmem>>) attributes {dimension_semantics = [#tpu.dimension_semantics<parallel>, #tpu.dimension_semantics<parallel>], iteration_bounds = array<i64: 4, 1>, scalar_prefetch = 0 : i64, scratch_operands = 0 : i64, tpu.core_type = #tpu.core_type<tc>, window_params = [{transform_indices = @transform_0, window_bounds = array<i64: 512, 32>}, {transform_indices = @transform_1, window_bounds = array<i64: 32, 80>}, {transform_indices = @transform_2, window_bounds = array<i64: 3, 80>}, {transform_indices = @transform_3, window_bounds = array<i64: 512, 80>}]} {
    %c0 = arith.constant 0 : index
    %c0_0 = arith.constant 0 : index
    %0 = vector.load %arg2[%c0, %c0_0] : memref<512x32xbf16, #tpu.memory_space<vmem>>, vector<512x32xbf16>
    %c0_1 = arith.constant 0 : index
    %c0_2 = arith.constant 0 : index
    %1 = vector.load %arg3[%c0_1, %c0_2] : memref<32x80xbf16, #tpu.memory_space<vmem>>, vector<32x80xbf16>
    %cst = arith.constant dense<0.000000e+00> : vector<512x80xf32>
    %2 = tpu.matmul %0, %1, %cst {dimension_numbers = #tpu.dot_dimension_numbers<[1], [0], [0], [1], [0, 0, 1, 1], [], []>} : vector<512x32xbf16>, vector<32x80xbf16>, vector<512x80xf32> -> vector<512x80xf32>
    %c0_3 = arith.constant 0 : index
    %c0_4 = arith.constant 0 : index
    %3 = vector.load %arg4[%c0_3, %c0_4] : memref<3x80xf32, #tpu.memory_space<vmem>>, vector<3x80xf32>
    %4 = vector.extract_strided_slice %3 {offsets = [0, 0], sizes = [1, 80], strides = [1, 1]} : vector<3x80xf32> to vector<1x80xf32>
    %5 = vector.broadcast %4 : vector<1x80xf32> to vector<512x80xf32>
    %6 = arith.mulf %2, %5 : vector<512x80xf32>
    %7 = vector.extract_strided_slice %3 {offsets = [1, 0], sizes = [1, 80], strides = [1, 1]} : vector<3x80xf32> to vector<1x80xf32>
    %8 = vector.broadcast %7 : vector<1x80xf32> to vector<512x80xf32>
    %9 = arith.addf %6, %8 : vector<512x80xf32>
    %10 = vector.extract_strided_slice %3 {offsets = [2, 0], sizes = [1, 80], strides = [1, 1]} : vector<3x80xf32> to vector<1x80xf32>
    %cst_5 = arith.constant 0.000000e+00 : f32
    %11 = vector.broadcast %cst_5 : f32 to vector<1x80xf32>
    %12 = arith.cmpf ogt, %10, %11 : vector<1x80xf32>
    %cst_6 = arith.constant 0.000000e+00 : f32
    %13 = vector.broadcast %cst_6 : f32 to vector<512x80xf32>
    %14 = arith.maximumf %9, %13 : vector<512x80xf32>
    %15 = vector.shape_cast %12 : vector<1x80xi1> to vector<1x80xi1>
    %16 = vector.broadcast %15 : vector<1x80xi1> to vector<512x80xi1>
    %17 = arith.select %16, %14, %9 : vector<512x80xi1>, vector<512x80xf32>
    %18 = arith.truncf %17 : vector<512x80xf32> to vector<512x80xbf16>
    %c0_7 = arith.constant 0 : index
    %c0_8 = arith.constant 0 : index
    %19 = vector.load %arg5[%c0_7, %c0_8] : memref<512x80xbf16, #tpu.memory_space<vmem>>, vector<512x80xbf16>
    tpu.vector_store %arg5[%c0_7, %c0_8], %18 {strides = array<i32>} : memref<512x80xbf16, #tpu.memory_space<vmem>>, vector<512x80xbf16>,
    return
  }
  func.func @transform_0(%arg0: i32, %arg1: i32) -> (i32, i32) {
    %c0_i32 = arith.constant 0 : i32
    %c0_i32_0 = arith.constant 0 : i32
    return %arg0, %c0_i32 : i32, i32
  }
  func.func @transform_1(%arg0: i32, %arg1: i32) -> (i32, i32) {
    %c0_i32 = arith.constant 0 : i32
    %c0_i32_0 = arith.constant 0 : i32
    return %c0_i32, %arg1 : i32, i32
  }
  func.func @transform_2(%arg0: i32, %arg1: i32) -> (i32, i32) {
    %c0_i32 = arith.constant 0 : i32
    %c0_i32_0 = arith.constant 0 : i32
    return %c0_i32, %arg1 : i32, i32
  }
  func.func @transform_3(%arg0: i32, %arg1: i32) -> (i32, i32) {
    %c0_i32 = arith.constant 0 : i32
    return %arg0, %arg1 : i32, i32
  }
}

module attributes {stable_mosaic.version = 11 : i64} {
  func.func @kernel(%arg0: i32, %arg1: i32, %arg2: memref<256x144xbf16, #tpu.memory_space<vmem>>, %arg3: memref<144x16xbf16, #tpu.memory_space<vmem>>, %arg4: memref<2x16xf32, #tpu.memory_space<vmem>>, %arg5: memref<256x16xbf16, #tpu.memory_space<vmem>>) attributes {dimension_semantics = [#tpu.dimension_semantics<parallel>, #tpu.dimension_semantics<parallel>], iteration_bounds = array<i64: 2, 1>, scalar_prefetch = 0 : i64, scratch_operands = 0 : i64, tpu.core_type = #tpu.core_type<tc>, window_params = [{transform_indices = @transform_0, window_bounds = array<i64: 256, 144>}, {transform_indices = @transform_1, window_bounds = array<i64: 144, 16>}, {transform_indices = @transform_2, window_bounds = array<i64: 2, 16>}, {transform_indices = @transform_3, window_bounds = array<i64: 256, 16>}]} {
    %c0 = arith.constant 0 : index
    %c0_0 = arith.constant 0 : index
    %0 = vector.load %arg2[%c0, %c0_0] : memref<256x144xbf16, #tpu.memory_space<vmem>>, vector<256x144xbf16>
    %c0_1 = arith.constant 0 : index
    %c0_2 = arith.constant 0 : index
    %1 = vector.load %arg3[%c0_1, %c0_2] : memref<144x16xbf16, #tpu.memory_space<vmem>>, vector<144x16xbf16>
    %cst = arith.constant dense<0.000000e+00> : vector<256x16xf32>
    %2 = tpu.matmul %0, %1, %cst {dimension_numbers = #tpu.dot_dimension_numbers<[1], [0], [0], [1], [0, 0, 1, 1], [], []>} : vector<256x144xbf16>, vector<144x16xbf16>, vector<256x16xf32> -> vector<256x16xf32>
    %c0_3 = arith.constant 0 : index
    %c0_4 = arith.constant 0 : index
    %3 = vector.load %arg4[%c0_3, %c0_4] : memref<2x16xf32, #tpu.memory_space<vmem>>, vector<2x16xf32>
    %4 = vector.extract_strided_slice %3 {offsets = [0, 0], sizes = [1, 16], strides = [1, 1]} : vector<2x16xf32> to vector<1x16xf32>
    %5 = vector.broadcast %4 : vector<1x16xf32> to vector<256x16xf32>
    %6 = arith.mulf %2, %5 : vector<256x16xf32>
    %7 = vector.extract_strided_slice %3 {offsets = [1, 0], sizes = [1, 16], strides = [1, 1]} : vector<2x16xf32> to vector<1x16xf32>
    %8 = vector.broadcast %7 : vector<1x16xf32> to vector<256x16xf32>
    %9 = arith.addf %6, %8 : vector<256x16xf32>
    %cst_5 = arith.constant 0.000000e+00 : f32
    %10 = vector.broadcast %cst_5 : f32 to vector<256x16xf32>
    %11 = arith.maximumf %9, %10 : vector<256x16xf32>
    %12 = arith.truncf %11 : vector<256x16xf32> to vector<256x16xbf16>
    %c0_6 = arith.constant 0 : index
    %c0_7 = arith.constant 0 : index
    %13 = vector.load %arg5[%c0_6, %c0_7] : memref<256x16xbf16, #tpu.memory_space<vmem>>, vector<256x16xbf16>
    tpu.vector_store %arg5[%c0_6, %c0_7], %12 {strides = array<i32>} : memref<256x16xbf16, #tpu.memory_space<vmem>>, vector<256x16xbf16>,
    return
  }
  func.func @transform_0(%arg0: i32, %arg1: i32) -> (i32, i32) {
    %c0_i32 = arith.constant 0 : i32
    %c0_i32_0 = arith.constant 0 : i32
    return %arg0, %c0_i32 : i32, i32
  }
  func.func @transform_1(%arg0: i32, %arg1: i32) -> (i32, i32) {
    %c0_i32 = arith.constant 0 : i32
    %c0_i32_0 = arith.constant 0 : i32
    return %c0_i32, %arg1 : i32, i32
  }
  func.func @transform_2(%arg0: i32, %arg1: i32) -> (i32, i32) {
    %c0_i32 = arith.constant 0 : i32
    %c0_i32_0 = arith.constant 0 : i32
    return %c0_i32, %arg1 : i32, i32
  }
  func.func @transform_3(%arg0: i32, %arg1: i32) -> (i32, i32) {
    %c0_i32 = arith.constant 0 : i32
    return %arg0, %arg1 : i32, i32
  }
}

module attributes {stable_mosaic.version = 11 : i64} {
  func.func @kernel(%arg0: i32, %arg1: i32, %arg2: memref<256x64xbf16, #tpu.memory_space<vmem>>, %arg3: memref<64x160xbf16, #tpu.memory_space<vmem>>, %arg4: memref<3x160xf32, #tpu.memory_space<vmem>>, %arg5: memref<256x160xbf16, #tpu.memory_space<vmem>>) attributes {dimension_semantics = [#tpu.dimension_semantics<parallel>, #tpu.dimension_semantics<parallel>], iteration_bounds = array<i64: 2, 1>, scalar_prefetch = 0 : i64, scratch_operands = 0 : i64, tpu.core_type = #tpu.core_type<tc>, window_params = [{transform_indices = @transform_0, window_bounds = array<i64: 256, 64>}, {transform_indices = @transform_1, window_bounds = array<i64: 64, 160>}, {transform_indices = @transform_2, window_bounds = array<i64: 3, 160>}, {transform_indices = @transform_3, window_bounds = array<i64: 256, 160>}]} {
    %c0 = arith.constant 0 : index
    %c0_0 = arith.constant 0 : index
    %0 = vector.load %arg2[%c0, %c0_0] : memref<256x64xbf16, #tpu.memory_space<vmem>>, vector<256x64xbf16>
    %c0_1 = arith.constant 0 : index
    %c0_2 = arith.constant 0 : index
    %1 = vector.load %arg3[%c0_1, %c0_2] : memref<64x160xbf16, #tpu.memory_space<vmem>>, vector<64x160xbf16>
    %cst = arith.constant dense<0.000000e+00> : vector<256x160xf32>
    %2 = tpu.matmul %0, %1, %cst {dimension_numbers = #tpu.dot_dimension_numbers<[1], [0], [0], [1], [0, 0, 1, 1], [], []>} : vector<256x64xbf16>, vector<64x160xbf16>, vector<256x160xf32> -> vector<256x160xf32>
    %c0_3 = arith.constant 0 : index
    %c0_4 = arith.constant 0 : index
    %3 = vector.load %arg4[%c0_3, %c0_4] : memref<3x160xf32, #tpu.memory_space<vmem>>, vector<3x160xf32>
    %4 = vector.extract_strided_slice %3 {offsets = [0, 0], sizes = [1, 160], strides = [1, 1]} : vector<3x160xf32> to vector<1x160xf32>
    %5 = vector.broadcast %4 : vector<1x160xf32> to vector<256x160xf32>
    %6 = arith.mulf %2, %5 : vector<256x160xf32>
    %7 = vector.extract_strided_slice %3 {offsets = [1, 0], sizes = [1, 160], strides = [1, 1]} : vector<3x160xf32> to vector<1x160xf32>
    %8 = vector.broadcast %7 : vector<1x160xf32> to vector<256x160xf32>
    %9 = arith.addf %6, %8 : vector<256x160xf32>
    %10 = vector.extract_strided_slice %3 {offsets = [2, 0], sizes = [1, 160], strides = [1, 1]} : vector<3x160xf32> to vector<1x160xf32>
    %cst_5 = arith.constant 0.000000e+00 : f32
    %11 = vector.broadcast %cst_5 : f32 to vector<1x160xf32>
    %12 = arith.cmpf ogt, %10, %11 : vector<1x160xf32>
    %cst_6 = arith.constant 0.000000e+00 : f32
    %13 = vector.broadcast %cst_6 : f32 to vector<256x160xf32>
    %14 = arith.maximumf %9, %13 : vector<256x160xf32>
    %15 = vector.shape_cast %12 : vector<1x160xi1> to vector<1x160xi1>
    %16 = vector.broadcast %15 : vector<1x160xi1> to vector<256x160xi1>
    %17 = arith.select %16, %14, %9 : vector<256x160xi1>, vector<256x160xf32>
    %18 = arith.truncf %17 : vector<256x160xf32> to vector<256x160xbf16>
    %c0_7 = arith.constant 0 : index
    %c0_8 = arith.constant 0 : index
    %19 = vector.load %arg5[%c0_7, %c0_8] : memref<256x160xbf16, #tpu.memory_space<vmem>>, vector<256x160xbf16>
    tpu.vector_store %arg5[%c0_7, %c0_8], %18 {strides = array<i32>} : memref<256x160xbf16, #tpu.memory_space<vmem>>, vector<256x160xbf16>,
    return
  }
  func.func @transform_0(%arg0: i32, %arg1: i32) -> (i32, i32) {
    %c0_i32 = arith.constant 0 : i32
    %c0_i32_0 = arith.constant 0 : i32
    return %arg0, %c0_i32 : i32, i32
  }
  func.func @transform_1(%arg0: i32, %arg1: i32) -> (i32, i32) {
    %c0_i32 = arith.constant 0 : i32
    %c0_i32_0 = arith.constant 0 : i32
    return %c0_i32, %arg1 : i32, i32
  }
  func.func @transform_2(%arg0: i32, %arg1: i32) -> (i32, i32) {
    %c0_i32 = arith.constant 0 : i32
    %c0_i32_0 = arith.constant 0 : i32
    return %c0_i32, %arg1 : i32, i32
  }
  func.func @transform_3(%arg0: i32, %arg1: i32) -> (i32, i32) {
    %c0_i32 = arith.constant 0 : i32
    return %arg0, %arg1 : i32, i32
  }
}

module attributes {stable_mosaic.version = 11 : i64} {
  func.func @kernel(%arg0: i32, %arg1: i32, %arg2: memref<256x16xbf16, #tpu.memory_space<vmem>>, %arg3: memref<16x64xbf16, #tpu.memory_space<vmem>>, %arg4: memref<2x64xf32, #tpu.memory_space<vmem>>, %arg5: memref<256x64xbf16, #tpu.memory_space<vmem>>, %arg6: memref<256x64xbf16, #tpu.memory_space<vmem>>) attributes {dimension_semantics = [#tpu.dimension_semantics<parallel>, #tpu.dimension_semantics<parallel>], iteration_bounds = array<i64: 2, 1>, scalar_prefetch = 0 : i64, scratch_operands = 0 : i64, tpu.core_type = #tpu.core_type<tc>, window_params = [{transform_indices = @transform_0, window_bounds = array<i64: 256, 16>}, {transform_indices = @transform_1, window_bounds = array<i64: 16, 64>}, {transform_indices = @transform_2, window_bounds = array<i64: 2, 64>}, {transform_indices = @transform_3, window_bounds = array<i64: 256, 64>}, {transform_indices = @transform_4, window_bounds = array<i64: 256, 64>}]} {
    %c0 = arith.constant 0 : index
    %c0_0 = arith.constant 0 : index
    %0 = vector.load %arg2[%c0, %c0_0] : memref<256x16xbf16, #tpu.memory_space<vmem>>, vector<256x16xbf16>
    %c0_1 = arith.constant 0 : index
    %c0_2 = arith.constant 0 : index
    %1 = vector.load %arg3[%c0_1, %c0_2] : memref<16x64xbf16, #tpu.memory_space<vmem>>, vector<16x64xbf16>
    %cst = arith.constant dense<0.000000e+00> : vector<256x64xf32>
    %2 = tpu.matmul %0, %1, %cst {dimension_numbers = #tpu.dot_dimension_numbers<[1], [0], [0], [1], [0, 0, 1, 1], [], []>} : vector<256x16xbf16>, vector<16x64xbf16>, vector<256x64xf32> -> vector<256x64xf32>
    %c0_3 = arith.constant 0 : index
    %c0_4 = arith.constant 0 : index
    %3 = vector.load %arg4[%c0_3, %c0_4] : memref<2x64xf32, #tpu.memory_space<vmem>>, vector<2x64xf32>
    %c0_5 = arith.constant 0 : index
    %c0_6 = arith.constant 0 : index
    %4 = vector.load %arg5[%c0_5, %c0_6] : memref<256x64xbf16, #tpu.memory_space<vmem>>, vector<256x64xbf16>
    %5 = vector.extract_strided_slice %3 {offsets = [0, 0], sizes = [1, 64], strides = [1, 1]} : vector<2x64xf32> to vector<1x64xf32>
    %6 = vector.broadcast %5 : vector<1x64xf32> to vector<256x64xf32>
    %7 = arith.mulf %2, %6 : vector<256x64xf32>
    %8 = vector.extract_strided_slice %3 {offsets = [1, 0], sizes = [1, 64], strides = [1, 1]} : vector<2x64xf32> to vector<1x64xf32>
    %9 = vector.broadcast %8 : vector<1x64xf32> to vector<256x64xf32>
    %10 = arith.addf %7, %9 : vector<256x64xf32>
    %11 = arith.extf %4 : vector<256x64xbf16> to vector<256x64xf32>
    %12 = arith.addf %10, %11 : vector<256x64xf32>
    %cst_7 = arith.constant 0.000000e+00 : f32
    %13 = vector.broadcast %cst_7 : f32 to vector<256x64xf32>
    %14 = arith.maximumf %12, %13 : vector<256x64xf32>
    %15 = arith.truncf %14 : vector<256x64xf32> to vector<256x64xbf16>
    %c0_8 = arith.constant 0 : index
    %c0_9 = arith.constant 0 : index
    %16 = vector.load %arg6[%c0_8, %c0_9] : memref<256x64xbf16, #tpu.memory_space<vmem>>, vector<256x64xbf16>
    tpu.vector_store %arg6[%c0_8, %c0_9], %15 {strides = array<i32>} : memref<256x64xbf16, #tpu.memory_space<vmem>>, vector<256x64xbf16>,
    return
  }
  func.func @transform_0(%arg0: i32, %arg1: i32) -> (i32, i32) {
    %c0_i32 = arith.constant 0 : i32
    %c0_i32_0 = arith.constant 0 : i32
    return %arg0, %c0_i32 : i32, i32
  }
  func.func @transform_1(%arg0: i32, %arg1: i32) -> (i32, i32) {
    %c0_i32 = arith.constant 0 : i32
    %c0_i32_0 = arith.constant 0 : i32
    return %c0_i32, %arg1 : i32, i32
  }
  func.func @transform_2(%arg0: i32, %arg1: i32) -> (i32, i32) {
    %c0_i32 = arith.constant 0 : i32
    %c0_i32_0 = arith.constant 0 : i32
    return %c0_i32, %arg1 : i32, i32
  }
  func.func @transform_3(%arg0: i32, %arg1: i32) -> (i32, i32) {
    %c0_i32 = arith.constant 0 : i32
    return %arg0, %arg1 : i32, i32
  }
  func.func @transform_4(%arg0: i32, %arg1: i32) -> (i32, i32) {
    %c0_i32 = arith.constant 0 : i32
    return %arg0, %arg1 : i32, i32
  }
}

module attributes {stable_mosaic.version = 11 : i64} {
  func.func @kernel(%arg0: i32, %arg1: i32, %arg2: memref<128x288xbf16, #tpu.memory_space<vmem>>, %arg3: memref<288x32xbf16, #tpu.memory_space<vmem>>, %arg4: memref<2x32xf32, #tpu.memory_space<vmem>>, %arg5: memref<128x32xbf16, #tpu.memory_space<vmem>>) attributes {dimension_semantics = [#tpu.dimension_semantics<parallel>, #tpu.dimension_semantics<parallel>], iteration_bounds = array<i64: 1, 1>, scalar_prefetch = 0 : i64, scratch_operands = 0 : i64, tpu.core_type = #tpu.core_type<tc>, window_params = [{transform_indices = @transform_0, window_bounds = array<i64: 128, 288>}, {transform_indices = @transform_1, window_bounds = array<i64: 288, 32>}, {transform_indices = @transform_2, window_bounds = array<i64: 2, 32>}, {transform_indices = @transform_3, window_bounds = array<i64: 128, 32>}]} {
    %c0 = arith.constant 0 : index
    %c0_0 = arith.constant 0 : index
    %0 = vector.load %arg2[%c0, %c0_0] : memref<128x288xbf16, #tpu.memory_space<vmem>>, vector<128x288xbf16>
    %c0_1 = arith.constant 0 : index
    %c0_2 = arith.constant 0 : index
    %1 = vector.load %arg3[%c0_1, %c0_2] : memref<288x32xbf16, #tpu.memory_space<vmem>>, vector<288x32xbf16>
    %cst = arith.constant dense<0.000000e+00> : vector<128x32xf32>
    %2 = tpu.matmul %0, %1, %cst {dimension_numbers = #tpu.dot_dimension_numbers<[1], [0], [0], [1], [0, 0, 1, 1], [], []>} : vector<128x288xbf16>, vector<288x32xbf16>, vector<128x32xf32> -> vector<128x32xf32>
    %c0_3 = arith.constant 0 : index
    %c0_4 = arith.constant 0 : index
    %3 = vector.load %arg4[%c0_3, %c0_4] : memref<2x32xf32, #tpu.memory_space<vmem>>, vector<2x32xf32>
    %4 = vector.extract_strided_slice %3 {offsets = [0, 0], sizes = [1, 32], strides = [1, 1]} : vector<2x32xf32> to vector<1x32xf32>
    %5 = vector.broadcast %4 : vector<1x32xf32> to vector<128x32xf32>
    %6 = arith.mulf %2, %5 : vector<128x32xf32>
    %7 = vector.extract_strided_slice %3 {offsets = [1, 0], sizes = [1, 32], strides = [1, 1]} : vector<2x32xf32> to vector<1x32xf32>
    %8 = vector.broadcast %7 : vector<1x32xf32> to vector<128x32xf32>
    %9 = arith.addf %6, %8 : vector<128x32xf32>
    %cst_5 = arith.constant 0.000000e+00 : f32
    %10 = vector.broadcast %cst_5 : f32 to vector<128x32xf32>
    %11 = arith.maximumf %9, %10 : vector<128x32xf32>
    %12 = arith.truncf %11 : vector<128x32xf32> to vector<128x32xbf16>
    %c0_6 = arith.constant 0 : index
    %c0_7 = arith.constant 0 : index
    %13 = vector.load %arg5[%c0_6, %c0_7] : memref<128x32xbf16, #tpu.memory_space<vmem>>, vector<128x32xbf16>
    tpu.vector_store %arg5[%c0_6, %c0_7], %12 {strides = array<i32>} : memref<128x32xbf16, #tpu.memory_space<vmem>>, vector<128x32xbf16>,
    return
  }
  func.func @transform_0(%arg0: i32, %arg1: i32) -> (i32, i32) {
    %c0_i32 = arith.constant 0 : i32
    %c0_i32_0 = arith.constant 0 : i32
    return %arg0, %c0_i32 : i32, i32
  }
  func.func @transform_1(%arg0: i32, %arg1: i32) -> (i32, i32) {
    %c0_i32 = arith.constant 0 : i32
    %c0_i32_0 = arith.constant 0 : i32
    return %c0_i32, %arg1 : i32, i32
  }
  func.func @transform_2(%arg0: i32, %arg1: i32) -> (i32, i32) {
    %c0_i32 = arith.constant 0 : i32
    %c0_i32_0 = arith.constant 0 : i32
    return %c0_i32, %arg1 : i32, i32
  }
  func.func @transform_3(%arg0: i32, %arg1: i32) -> (i32, i32) {
    %c0_i32 = arith.constant 0 : i32
    return %arg0, %arg1 : i32, i32
  }
}

module attributes {stable_mosaic.version = 11 : i64} {
  func.func @kernel(%arg0: i32, %arg1: i32, %arg2: memref<128x32xbf16, #tpu.memory_space<vmem>>, %arg3: memref<32x128xbf16, #tpu.memory_space<vmem>>, %arg4: memref<2x128xf32, #tpu.memory_space<vmem>>, %arg5: memref<128x128xbf16, #tpu.memory_space<vmem>>, %arg6: memref<128x128xbf16, #tpu.memory_space<vmem>>) attributes {dimension_semantics = [#tpu.dimension_semantics<parallel>, #tpu.dimension_semantics<parallel>], iteration_bounds = array<i64: 1, 1>, scalar_prefetch = 0 : i64, scratch_operands = 0 : i64, tpu.core_type = #tpu.core_type<tc>, window_params = [{transform_indices = @transform_0, window_bounds = array<i64: 128, 32>}, {transform_indices = @transform_1, window_bounds = array<i64: 32, 128>}, {transform_indices = @transform_2, window_bounds = array<i64: 2, 128>}, {transform_indices = @transform_3, window_bounds = array<i64: 128, 128>}, {transform_indices = @transform_4, window_bounds = array<i64: 128, 128>}]} {
    %c0 = arith.constant 0 : index
    %c0_0 = arith.constant 0 : index
    %0 = vector.load %arg2[%c0, %c0_0] : memref<128x32xbf16, #tpu.memory_space<vmem>>, vector<128x32xbf16>
    %c0_1 = arith.constant 0 : index
    %c0_2 = arith.constant 0 : index
    %1 = vector.load %arg3[%c0_1, %c0_2] : memref<32x128xbf16, #tpu.memory_space<vmem>>, vector<32x128xbf16>
    %cst = arith.constant dense<0.000000e+00> : vector<128x128xf32>
    %2 = tpu.matmul %0, %1, %cst {dimension_numbers = #tpu.dot_dimension_numbers<[1], [0], [0], [1], [0, 0, 1, 1], [], []>} : vector<128x32xbf16>, vector<32x128xbf16>, vector<128x128xf32> -> vector<128x128xf32>
    %c0_3 = arith.constant 0 : index
    %c0_4 = arith.constant 0 : index
    %3 = vector.load %arg4[%c0_3, %c0_4] : memref<2x128xf32, #tpu.memory_space<vmem>>, vector<2x128xf32>
    %c0_5 = arith.constant 0 : index
    %c0_6 = arith.constant 0 : index
    %4 = vector.load %arg5[%c0_5, %c0_6] : memref<128x128xbf16, #tpu.memory_space<vmem>>, vector<128x128xbf16>
    %5 = vector.extract_strided_slice %3 {offsets = [0, 0], sizes = [1, 128], strides = [1, 1]} : vector<2x128xf32> to vector<1x128xf32>
    %6 = vector.broadcast %5 : vector<1x128xf32> to vector<128x128xf32>
    %7 = arith.mulf %2, %6 : vector<128x128xf32>
    %8 = vector.extract_strided_slice %3 {offsets = [1, 0], sizes = [1, 128], strides = [1, 1]} : vector<2x128xf32> to vector<1x128xf32>
    %9 = vector.broadcast %8 : vector<1x128xf32> to vector<128x128xf32>
    %10 = arith.addf %7, %9 : vector<128x128xf32>
    %11 = arith.extf %4 : vector<128x128xbf16> to vector<128x128xf32>
    %12 = arith.addf %10, %11 : vector<128x128xf32>
    %cst_7 = arith.constant 0.000000e+00 : f32
    %13 = vector.broadcast %cst_7 : f32 to vector<128x128xf32>
    %14 = arith.maximumf %12, %13 : vector<128x128xf32>
    %15 = arith.truncf %14 : vector<128x128xf32> to vector<128x128xbf16>
    %c0_8 = arith.constant 0 : index
    %c0_9 = arith.constant 0 : index
    %16 = vector.load %arg6[%c0_8, %c0_9] : memref<128x128xbf16, #tpu.memory_space<vmem>>, vector<128x128xbf16>
    tpu.vector_store %arg6[%c0_8, %c0_9], %15 {strides = array<i32>} : memref<128x128xbf16, #tpu.memory_space<vmem>>, vector<128x128xbf16>,
    return
  }
  func.func @transform_0(%arg0: i32, %arg1: i32) -> (i32, i32) {
    %c0_i32 = arith.constant 0 : i32
    %c0_i32_0 = arith.constant 0 : i32
    return %arg0, %c0_i32 : i32, i32
  }
  func.func @transform_1(%arg0: i32, %arg1: i32) -> (i32, i32) {
    %c0_i32 = arith.constant 0 : i32
    %c0_i32_0 = arith.constant 0 : i32
    return %c0_i32, %arg1 : i32, i32
  }
  func.func @transform_2(%arg0: i32, %arg1: i32) -> (i32, i32) {
    %c0_i32 = arith.constant 0 : i32
    %c0_i32_0 = arith.constant 0 : i32
    return %c0_i32, %arg1 : i32, i32
  }
  func.func @transform_3(%arg0: i32, %arg1: i32) -> (i32, i32) {
    %c0_i32 = arith.constant 0 : i32
    return %arg0, %arg1 : i32, i32
  }
  func.func @transform_4(%arg0: i32, %arg1: i32) -> (i32, i32) {
    %c0_i32 = arith.constant 0 : i32
    return %arg0, %arg1 : i32, i32
  }
}

module attributes {stable_mosaic.version = 11 : i64} {
  func.func @kernel(%arg0: i32, %arg1: i32, %arg2: memref<128x128xbf16, #tpu.memory_space<vmem>>, %arg3: memref<128x320xbf16, #tpu.memory_space<vmem>>, %arg4: memref<3x320xf32, #tpu.memory_space<vmem>>, %arg5: memref<128x320xbf16, #tpu.memory_space<vmem>>) attributes {dimension_semantics = [#tpu.dimension_semantics<parallel>, #tpu.dimension_semantics<parallel>], iteration_bounds = array<i64: 1, 1>, scalar_prefetch = 0 : i64, scratch_operands = 0 : i64, tpu.core_type = #tpu.core_type<tc>, window_params = [{transform_indices = @transform_0, window_bounds = array<i64: 128, 128>}, {transform_indices = @transform_1, window_bounds = array<i64: 128, 320>}, {transform_indices = @transform_2, window_bounds = array<i64: 3, 320>}, {transform_indices = @transform_3, window_bounds = array<i64: 128, 320>}]} {
    %c0 = arith.constant 0 : index
    %c0_0 = arith.constant 0 : index
    %0 = vector.load %arg2[%c0, %c0_0] : memref<128x128xbf16, #tpu.memory_space<vmem>>, vector<128x128xbf16>
    %c0_1 = arith.constant 0 : index
    %c0_2 = arith.constant 0 : index
    %1 = vector.load %arg3[%c0_1, %c0_2] : memref<128x320xbf16, #tpu.memory_space<vmem>>, vector<128x320xbf16>
    %cst = arith.constant dense<0.000000e+00> : vector<128x320xf32>
    %2 = tpu.matmul %0, %1, %cst {dimension_numbers = #tpu.dot_dimension_numbers<[1], [0], [0], [1], [0, 0, 1, 1], [], []>} : vector<128x128xbf16>, vector<128x320xbf16>, vector<128x320xf32> -> vector<128x320xf32>
    %c0_3 = arith.constant 0 : index
    %c0_4 = arith.constant 0 : index
    %3 = vector.load %arg4[%c0_3, %c0_4] : memref<3x320xf32, #tpu.memory_space<vmem>>, vector<3x320xf32>
    %4 = vector.extract_strided_slice %3 {offsets = [0, 0], sizes = [1, 320], strides = [1, 1]} : vector<3x320xf32> to vector<1x320xf32>
    %5 = vector.broadcast %4 : vector<1x320xf32> to vector<128x320xf32>
    %6 = arith.mulf %2, %5 : vector<128x320xf32>
    %7 = vector.extract_strided_slice %3 {offsets = [1, 0], sizes = [1, 320], strides = [1, 1]} : vector<3x320xf32> to vector<1x320xf32>
    %8 = vector.broadcast %7 : vector<1x320xf32> to vector<128x320xf32>
    %9 = arith.addf %6, %8 : vector<128x320xf32>
    %10 = vector.extract_strided_slice %3 {offsets = [2, 0], sizes = [1, 320], strides = [1, 1]} : vector<3x320xf32> to vector<1x320xf32>
    %cst_5 = arith.constant 0.000000e+00 : f32
    %11 = vector.broadcast %cst_5 : f32 to vector<1x320xf32>
    %12 = arith.cmpf ogt, %10, %11 : vector<1x320xf32>
    %cst_6 = arith.constant 0.000000e+00 : f32
    %13 = vector.broadcast %cst_6 : f32 to vector<128x320xf32>
    %14 = arith.maximumf %9, %13 : vector<128x320xf32>
    %15 = vector.shape_cast %12 : vector<1x320xi1> to vector<1x320xi1>
    %16 = vector.broadcast %15 : vector<1x320xi1> to vector<128x320xi1>
    %17 = arith.select %16, %14, %9 : vector<128x320xi1>, vector<128x320xf32>
    %18 = arith.truncf %17 : vector<128x320xf32> to vector<128x320xbf16>
    %c0_7 = arith.constant 0 : index
    %c0_8 = arith.constant 0 : index
    %19 = vector.load %arg5[%c0_7, %c0_8] : memref<128x320xbf16, #tpu.memory_space<vmem>>, vector<128x320xbf16>
    tpu.vector_store %arg5[%c0_7, %c0_8], %18 {strides = array<i32>} : memref<128x320xbf16, #tpu.memory_space<vmem>>, vector<128x320xbf16>,
    return
  }
  func.func @transform_0(%arg0: i32, %arg1: i32) -> (i32, i32) {
    %c0_i32 = arith.constant 0 : i32
    %c0_i32_0 = arith.constant 0 : i32
    return %arg0, %c0_i32 : i32, i32
  }
  func.func @transform_1(%arg0: i32, %arg1: i32) -> (i32, i32) {
    %c0_i32 = arith.constant 0 : i32
    %c0_i32_0 = arith.constant 0 : i32
    return %c0_i32, %arg1 : i32, i32
  }
  func.func @transform_2(%arg0: i32, %arg1: i32) -> (i32, i32) {
    %c0_i32 = arith.constant 0 : i32
    %c0_i32_0 = arith.constant 0 : i32
    return %c0_i32, %arg1 : i32, i32
  }
  func.func @transform_3(%arg0: i32, %arg1: i32) -> (i32, i32) {
    %c0_i32 = arith.constant 0 : i32
    return %arg0, %arg1 : i32, i32
  }
}

module attributes {stable_mosaic.version = 11 : i64} {
  func.func @kernel(%arg0: i32, %arg1: i32, %arg2: memref<32x576xbf16, #tpu.memory_space<vmem>>, %arg3: memref<576x64xbf16, #tpu.memory_space<vmem>>, %arg4: memref<2x64xf32, #tpu.memory_space<vmem>>, %arg5: memref<32x64xbf16, #tpu.memory_space<vmem>>) attributes {dimension_semantics = [#tpu.dimension_semantics<parallel>, #tpu.dimension_semantics<parallel>], iteration_bounds = array<i64: 1, 1>, scalar_prefetch = 0 : i64, scratch_operands = 0 : i64, tpu.core_type = #tpu.core_type<tc>, window_params = [{transform_indices = @transform_0, window_bounds = array<i64: 32, 576>}, {transform_indices = @transform_1, window_bounds = array<i64: 576, 64>}, {transform_indices = @transform_2, window_bounds = array<i64: 2, 64>}, {transform_indices = @transform_3, window_bounds = array<i64: 32, 64>}]} {
    %c0 = arith.constant 0 : index
    %c0_0 = arith.constant 0 : index
    %0 = vector.load %arg2[%c0, %c0_0] : memref<32x576xbf16, #tpu.memory_space<vmem>>, vector<32x576xbf16>
    %c0_1 = arith.constant 0 : index
    %c0_2 = arith.constant 0 : index
    %1 = vector.load %arg3[%c0_1, %c0_2] : memref<576x64xbf16, #tpu.memory_space<vmem>>, vector<576x64xbf16>
    %cst = arith.constant dense<0.000000e+00> : vector<32x64xf32>
    %2 = tpu.matmul %0, %1, %cst {dimension_numbers = #tpu.dot_dimension_numbers<[1], [0], [0], [1], [0, 0, 1, 1], [], []>} : vector<32x576xbf16>, vector<576x64xbf16>, vector<32x64xf32> -> vector<32x64xf32>
    %c0_3 = arith.constant 0 : index
    %c0_4 = arith.constant 0 : index
    %3 = vector.load %arg4[%c0_3, %c0_4] : memref<2x64xf32, #tpu.memory_space<vmem>>, vector<2x64xf32>
    %4 = vector.extract_strided_slice %3 {offsets = [0, 0], sizes = [1, 64], strides = [1, 1]} : vector<2x64xf32> to vector<1x64xf32>
    %5 = vector.broadcast %4 : vector<1x64xf32> to vector<32x64xf32>
    %6 = arith.mulf %2, %5 : vector<32x64xf32>
    %7 = vector.extract_strided_slice %3 {offsets = [1, 0], sizes = [1, 64], strides = [1, 1]} : vector<2x64xf32> to vector<1x64xf32>
    %8 = vector.broadcast %7 : vector<1x64xf32> to vector<32x64xf32>
    %9 = arith.addf %6, %8 : vector<32x64xf32>
    %cst_5 = arith.constant 0.000000e+00 : f32
    %10 = vector.broadcast %cst_5 : f32 to vector<32x64xf32>
    %11 = arith.maximumf %9, %10 : vector<32x64xf32>
    %12 = arith.truncf %11 : vector<32x64xf32> to vector<32x64xbf16>
    %c0_6 = arith.constant 0 : index
    %c0_7 = arith.constant 0 : index
    %13 = vector.load %arg5[%c0_6, %c0_7] : memref<32x64xbf16, #tpu.memory_space<vmem>>, vector<32x64xbf16>
    tpu.vector_store %arg5[%c0_6, %c0_7], %12 {strides = array<i32>} : memref<32x64xbf16, #tpu.memory_space<vmem>>, vector<32x64xbf16>,
    return
  }
  func.func @transform_0(%arg0: i32, %arg1: i32) -> (i32, i32) {
    %c0_i32 = arith.constant 0 : i32
    %c0_i32_0 = arith.constant 0 : i32
    return %arg0, %c0_i32 : i32, i32
  }
  func.func @transform_1(%arg0: i32, %arg1: i32) -> (i32, i32) {
    %c0_i32 = arith.constant 0 : i32
    %c0_i32_0 = arith.constant 0 : i32
    return %c0_i32, %arg1 : i32, i32
  }
  func.func @transform_2(%arg0: i32, %arg1: i32) -> (i32, i32) {
    %c0_i32 = arith.constant 0 : i32
    %c0_i32_0 = arith.constant 0 : i32
    return %c0_i32, %arg1 : i32, i32
  }
  func.func @transform_3(%arg0: i32, %arg1: i32) -> (i32, i32) {
    %c0_i32 = arith.constant 0 : i32
    return %arg0, %arg1 : i32, i32
  }
}

module attributes {stable_mosaic.version = 11 : i64} {
  func.func @kernel(%arg0: i32, %arg1: i32, %arg2: memref<32x64xbf16, #tpu.memory_space<vmem>>, %arg3: memref<64x256xbf16, #tpu.memory_space<vmem>>, %arg4: memref<2x256xf32, #tpu.memory_space<vmem>>, %arg5: memref<32x256xbf16, #tpu.memory_space<vmem>>, %arg6: memref<32x256xbf16, #tpu.memory_space<vmem>>) attributes {dimension_semantics = [#tpu.dimension_semantics<parallel>, #tpu.dimension_semantics<parallel>], iteration_bounds = array<i64: 1, 1>, scalar_prefetch = 0 : i64, scratch_operands = 0 : i64, tpu.core_type = #tpu.core_type<tc>, window_params = [{transform_indices = @transform_0, window_bounds = array<i64: 32, 64>}, {transform_indices = @transform_1, window_bounds = array<i64: 64, 256>}, {transform_indices = @transform_2, window_bounds = array<i64: 2, 256>}, {transform_indices = @transform_3, window_bounds = array<i64: 32, 256>}, {transform_indices = @transform_4, window_bounds = array<i64: 32, 256>}]} {
    %c0 = arith.constant 0 : index
    %c0_0 = arith.constant 0 : index
    %0 = vector.load %arg2[%c0, %c0_0] : memref<32x64xbf16, #tpu.memory_space<vmem>>, vector<32x64xbf16>
    %c0_1 = arith.constant 0 : index
    %c0_2 = arith.constant 0 : index
    %1 = vector.load %arg3[%c0_1, %c0_2] : memref<64x256xbf16, #tpu.memory_space<vmem>>, vector<64x256xbf16>
    %cst = arith.constant dense<0.000000e+00> : vector<32x256xf32>
    %2 = tpu.matmul %0, %1, %cst {dimension_numbers = #tpu.dot_dimension_numbers<[1], [0], [0], [1], [0, 0, 1, 1], [], []>} : vector<32x64xbf16>, vector<64x256xbf16>, vector<32x256xf32> -> vector<32x256xf32>
    %c0_3 = arith.constant 0 : index
    %c0_4 = arith.constant 0 : index
    %3 = vector.load %arg4[%c0_3, %c0_4] : memref<2x256xf32, #tpu.memory_space<vmem>>, vector<2x256xf32>
    %c0_5 = arith.constant 0 : index
    %c0_6 = arith.constant 0 : index
    %4 = vector.load %arg5[%c0_5, %c0_6] : memref<32x256xbf16, #tpu.memory_space<vmem>>, vector<32x256xbf16>
    %5 = vector.extract_strided_slice %3 {offsets = [0, 0], sizes = [1, 256], strides = [1, 1]} : vector<2x256xf32> to vector<1x256xf32>
    %6 = vector.broadcast %5 : vector<1x256xf32> to vector<32x256xf32>
    %7 = arith.mulf %2, %6 : vector<32x256xf32>
    %8 = vector.extract_strided_slice %3 {offsets = [1, 0], sizes = [1, 256], strides = [1, 1]} : vector<2x256xf32> to vector<1x256xf32>
    %9 = vector.broadcast %8 : vector<1x256xf32> to vector<32x256xf32>
    %10 = arith.addf %7, %9 : vector<32x256xf32>
    %11 = arith.extf %4 : vector<32x256xbf16> to vector<32x256xf32>
    %12 = arith.addf %10, %11 : vector<32x256xf32>
    %cst_7 = arith.constant 0.000000e+00 : f32
    %13 = vector.broadcast %cst_7 : f32 to vector<32x256xf32>
    %14 = arith.maximumf %12, %13 : vector<32x256xf32>
    %15 = arith.truncf %14 : vector<32x256xf32> to vector<32x256xbf16>
    %c0_8 = arith.constant 0 : index
    %c0_9 = arith.constant 0 : index
    %16 = vector.load %arg6[%c0_8, %c0_9] : memref<32x256xbf16, #tpu.memory_space<vmem>>, vector<32x256xbf16>
    tpu.vector_store %arg6[%c0_8, %c0_9], %15 {strides = array<i32>} : memref<32x256xbf16, #tpu.memory_space<vmem>>, vector<32x256xbf16>,
    return
  }
  func.func @transform_0(%arg0: i32, %arg1: i32) -> (i32, i32) {
    %c0_i32 = arith.constant 0 : i32
    %c0_i32_0 = arith.constant 0 : i32
    return %arg0, %c0_i32 : i32, i32
  }
  func.func @transform_1(%arg0: i32, %arg1: i32) -> (i32, i32) {
    %c0_i32 = arith.constant 0 : i32
    %c0_i32_0 = arith.constant 0 : i32
    return %c0_i32, %arg1 : i32, i32
  }
  func.func @transform_2(%arg0: i32, %arg1: i32) -> (i32, i32) {
    %c0_i32 = arith.constant 0 : i32
    %c0_i32_0 = arith.constant 0 : i32
    return %c0_i32, %arg1 : i32, i32
  }
  func.func @transform_3(%arg0: i32, %arg1: i32) -> (i32, i32) {
    %c0_i32 = arith.constant 0 : i32
    return %arg0, %arg1 : i32, i32
  }
  func.func @transform_4(%arg0: i32, %arg1: i32) -> (i32, i32) {
    %c0_i32 = arith.constant 0 : i32
    return %arg0, %arg1 : i32, i32
  }
}

module attributes {stable_mosaic.version = 11 : i64} {
  func.func @kernel(%arg0: i32, %arg1: i32, %arg2: memref<8x1024xbf16, #tpu.memory_space<vmem>>, %arg3: memref<1024x256xbf16, #tpu.memory_space<vmem>>, %arg4: memref<2x256xf32, #tpu.memory_space<vmem>>, %arg5: memref<8x256xf32, #tpu.memory_space<vmem>>) attributes {dimension_semantics = [#tpu.dimension_semantics<parallel>, #tpu.dimension_semantics<parallel>], iteration_bounds = array<i64: 1, 1>, scalar_prefetch = 0 : i64, scratch_operands = 0 : i64, tpu.core_type = #tpu.core_type<tc>, window_params = [{transform_indices = @transform_0, window_bounds = array<i64: 8, 1024>}, {transform_indices = @transform_1, window_bounds = array<i64: 1024, 256>}, {transform_indices = @transform_2, window_bounds = array<i64: 2, 256>}, {transform_indices = @transform_3, window_bounds = array<i64: 8, 256>}]} {
    %c0 = arith.constant 0 : index
    %c0_0 = arith.constant 0 : index
    %0 = vector.load %arg2[%c0, %c0_0] : memref<8x1024xbf16, #tpu.memory_space<vmem>>, vector<8x1024xbf16>
    %c0_1 = arith.constant 0 : index
    %c0_2 = arith.constant 0 : index
    %1 = vector.load %arg3[%c0_1, %c0_2] : memref<1024x256xbf16, #tpu.memory_space<vmem>>, vector<1024x256xbf16>
    %cst = arith.constant dense<0.000000e+00> : vector<8x256xf32>
    %2 = tpu.matmul %0, %1, %cst {dimension_numbers = #tpu.dot_dimension_numbers<[1], [0], [0], [1], [0, 0, 1, 1], [], []>} : vector<8x1024xbf16>, vector<1024x256xbf16>, vector<8x256xf32> -> vector<8x256xf32>
    %c0_3 = arith.constant 0 : index
    %c0_4 = arith.constant 0 : index
    %3 = vector.load %arg4[%c0_3, %c0_4] : memref<2x256xf32, #tpu.memory_space<vmem>>, vector<2x256xf32>
    %4 = vector.extract_strided_slice %3 {offsets = [0, 0], sizes = [1, 256], strides = [1, 1]} : vector<2x256xf32> to vector<1x256xf32>
    %5 = vector.broadcast %4 : vector<1x256xf32> to vector<8x256xf32>
    %6 = arith.mulf %2, %5 : vector<8x256xf32>
    %7 = vector.extract_strided_slice %3 {offsets = [1, 0], sizes = [1, 256], strides = [1, 1]} : vector<2x256xf32> to vector<1x256xf32>
    %8 = vector.broadcast %7 : vector<1x256xf32> to vector<8x256xf32>
    %9 = arith.addf %6, %8 : vector<8x256xf32>
    %c0_5 = arith.constant 0 : index
    %c0_6 = arith.constant 0 : index
    %10 = vector.load %arg5[%c0_5, %c0_6] : memref<8x256xf32, #tpu.memory_space<vmem>>, vector<8x256xf32>
    tpu.vector_store %arg5[%c0_5, %c0_6], %9 {strides = array<i32>} : memref<8x256xf32, #tpu.memory_space<vmem>>, vector<8x256xf32>,
    return
  }
  func.func @transform_0(%arg0: i32, %arg1: i32) -> (i32, i32) {
    %c0_i32 = arith.constant 0 : i32
    %c0_i32_0 = arith.constant 0 : i32
    return %arg0, %c0_i32 : i32, i32
  }
  func.func @transform_1(%arg0: i32, %arg1: i32) -> (i32, i32) {
    %c0_i32 = arith.constant 0 : i32
    %c0_i32_0 = arith.constant 0 : i32
    return %c0_i32, %arg1 : i32, i32
  }
  func.func @transform_2(%arg0: i32, %arg1: i32) -> (i32, i32) {
    %c0_i32 = arith.constant 0 : i32
    %c0_i32_0 = arith.constant 0 : i32
    return %c0_i32, %arg1 : i32, i32
  }
  func.func @transform_3(%arg0: i32, %arg1: i32) -> (i32, i32) {
    %c0_i32 = arith.constant 0 : i32
    return %arg0, %arg1 : i32, i32
  }
}

module attributes {stable_mosaic.version = 11 : i64} {
  func.func @_lstm_recurrence_kernel(%arg0: memref<4x2x256xf32, #tpu.memory_space<vmem>>, %arg1: memref<64x256xbf16, #tpu.memory_space<vmem>>, %arg2: memref<2x64xf32, #tpu.memory_space<vmem>>) attributes {dimension_semantics = [], scalar_prefetch = 0 : i64, scratch_operands = 0 : i64, tpu.core_type = #tpu.core_type<tc>} {
    %cst = arith.constant 0.000000e+00 : f32
    %0 = vector.broadcast %cst : f32 to vector<2x64xf32>
    %cst_0 = arith.constant 0.000000e+00 : f32
    %1 = vector.broadcast %cst_0 : f32 to vector<2x64xf32>
    %c0 = arith.constant 0 : index
    %c0_1 = arith.constant 0 : index
    %c0_2 = arith.constant 0 : index
    %2 = vector.load %arg0[%c0, %c0_1, %c0_2] : memref<4x2x256xf32, #tpu.memory_space<vmem>>, vector<1x2x256xf32>
    %3 = vector.shape_cast %2 : vector<1x2x256xf32> to vector<2x256xf32>
    %4 = arith.truncf %0 : vector<2x64xf32> to vector<2x64xbf16>
    %c0_3 = arith.constant 0 : index
    %c0_4 = arith.constant 0 : index
    %5 = vector.load %arg1[%c0_3, %c0_4] : memref<64x256xbf16, #tpu.memory_space<vmem>>, vector<64x256xbf16>
    %cst_5 = arith.constant dense<0.000000e+00> : vector<2x256xf32>
    %6 = tpu.matmul %4, %5, %cst_5 {dimension_numbers = #tpu.dot_dimension_numbers<[1], [0], [0], [1], [0, 0, 1, 1], [], []>} : vector<2x64xbf16>, vector<64x256xbf16>, vector<2x256xf32> -> vector<2x256xf32>
    %7 = arith.addf %3, %6 : vector<2x256xf32>
    %8 = vector.extract_strided_slice %7 {offsets = [0, 0], sizes = [2, 64], strides = [1, 1]} : vector<2x256xf32> to vector<2x64xf32>
    %cst_6 = arith.constant 5.000000e-01 : f32
    %9 = vector.broadcast %cst_6 : f32 to vector<2x64xf32>
    %10 = arith.mulf %9, %8 : vector<2x64xf32>
    %11 = math.tanh %10 : vector<2x64xf32>
    %cst_7 = arith.constant 1.000000e+00 : f32
    %12 = vector.broadcast %cst_7 : f32 to vector<2x64xf32>
    %13 = arith.addf %11, %12 : vector<2x64xf32>
    %cst_8 = arith.constant 5.000000e-01 : f32
    %14 = vector.broadcast %cst_8 : f32 to vector<2x64xf32>
    %15 = arith.mulf %14, %13 : vector<2x64xf32>
    %16 = vector.extract_strided_slice %7 {offsets = [0, 64], sizes = [2, 64], strides = [1, 1]} : vector<2x256xf32> to vector<2x64xf32>
    %cst_9 = arith.constant 5.000000e-01 : f32
    %17 = vector.broadcast %cst_9 : f32 to vector<2x64xf32>
    %18 = arith.mulf %17, %16 : vector<2x64xf32>
    %19 = math.tanh %18 : vector<2x64xf32>
    %cst_10 = arith.constant 1.000000e+00 : f32
    %20 = vector.broadcast %cst_10 : f32 to vector<2x64xf32>
    %21 = arith.addf %19, %20 : vector<2x64xf32>
    %cst_11 = arith.constant 5.000000e-01 : f32
    %22 = vector.broadcast %cst_11 : f32 to vector<2x64xf32>
    %23 = arith.mulf %22, %21 : vector<2x64xf32>
    %24 = vector.extract_strided_slice %7 {offsets = [0, 128], sizes = [2, 64], strides = [1, 1]} : vector<2x256xf32> to vector<2x64xf32>
    %25 = math.tanh %24 : vector<2x64xf32>
    %26 = vector.extract_strided_slice %7 {offsets = [0, 192], sizes = [2, 64], strides = [1, 1]} : vector<2x256xf32> to vector<2x64xf32>
    %cst_12 = arith.constant 5.000000e-01 : f32
    %27 = vector.broadcast %cst_12 : f32 to vector<2x64xf32>
    %28 = arith.mulf %27, %26 : vector<2x64xf32>
    %29 = math.tanh %28 : vector<2x64xf32>
    %cst_13 = arith.constant 1.000000e+00 : f32
    %30 = vector.broadcast %cst_13 : f32 to vector<2x64xf32>
    %31 = arith.addf %29, %30 : vector<2x64xf32>
    %cst_14 = arith.constant 5.000000e-01 : f32
    %32 = vector.broadcast %cst_14 : f32 to vector<2x64xf32>
    %33 = arith.mulf %32, %31 : vector<2x64xf32>
    %34 = arith.mulf %23, %1 : vector<2x64xf32>
    %35 = arith.mulf %15, %25 : vector<2x64xf32>
    %36 = arith.addf %34, %35 : vector<2x64xf32>
    %37 = math.tanh %36 : vector<2x64xf32>
    %38 = arith.mulf %33, %37 : vector<2x64xf32>
    %c1 = arith.constant 1 : index
    %c0_15 = arith.constant 0 : index
    %c0_16 = arith.constant 0 : index
    %39 = vector.load %arg0[%c1, %c0_15, %c0_16] : memref<4x2x256xf32, #tpu.memory_space<vmem>>, vector<1x2x256xf32>
    %40 = vector.shape_cast %39 : vector<1x2x256xf32> to vector<2x256xf32>
    %41 = arith.truncf %38 : vector<2x64xf32> to vector<2x64xbf16>
    %c0_17 = arith.constant 0 : index
    %c0_18 = arith.constant 0 : index
    %42 = vector.load %arg1[%c0_17, %c0_18] : memref<64x256xbf16, #tpu.memory_space<vmem>>, vector<64x256xbf16>
    %cst_19 = arith.constant dense<0.000000e+00> : vector<2x256xf32>
    %43 = tpu.matmul %41, %42, %cst_19 {dimension_numbers = #tpu.dot_dimension_numbers<[1], [0], [0], [1], [0, 0, 1, 1], [], []>} : vector<2x64xbf16>, vector<64x256xbf16>, vector<2x256xf32> -> vector<2x256xf32>
    %44 = arith.addf %40, %43 : vector<2x256xf32>
    %45 = vector.extract_strided_slice %44 {offsets = [0, 0], sizes = [2, 64], strides = [1, 1]} : vector<2x256xf32> to vector<2x64xf32>
    %cst_20 = arith.constant 5.000000e-01 : f32
    %46 = vector.broadcast %cst_20 : f32 to vector<2x64xf32>
    %47 = arith.mulf %46, %45 : vector<2x64xf32>
    %48 = math.tanh %47 : vector<2x64xf32>
    %cst_21 = arith.constant 1.000000e+00 : f32
    %49 = vector.broadcast %cst_21 : f32 to vector<2x64xf32>
    %50 = arith.addf %48, %49 : vector<2x64xf32>
    %cst_22 = arith.constant 5.000000e-01 : f32
    %51 = vector.broadcast %cst_22 : f32 to vector<2x64xf32>
    %52 = arith.mulf %51, %50 : vector<2x64xf32>
    %53 = vector.extract_strided_slice %44 {offsets = [0, 64], sizes = [2, 64], strides = [1, 1]} : vector<2x256xf32> to vector<2x64xf32>
    %cst_23 = arith.constant 5.000000e-01 : f32
    %54 = vector.broadcast %cst_23 : f32 to vector<2x64xf32>
    %55 = arith.mulf %54, %53 : vector<2x64xf32>
    %56 = math.tanh %55 : vector<2x64xf32>
    %cst_24 = arith.constant 1.000000e+00 : f32
    %57 = vector.broadcast %cst_24 : f32 to vector<2x64xf32>
    %58 = arith.addf %56, %57 : vector<2x64xf32>
    %cst_25 = arith.constant 5.000000e-01 : f32
    %59 = vector.broadcast %cst_25 : f32 to vector<2x64xf32>
    %60 = arith.mulf %59, %58 : vector<2x64xf32>
    %61 = vector.extract_strided_slice %44 {offsets = [0, 128], sizes = [2, 64], strides = [1, 1]} : vector<2x256xf32> to vector<2x64xf32>
    %62 = math.tanh %61 : vector<2x64xf32>
    %63 = vector.extract_strided_slice %44 {offsets = [0, 192], sizes = [2, 64], strides = [1, 1]} : vector<2x256xf32> to vector<2x64xf32>
    %cst_26 = arith.constant 5.000000e-01 : f32
    %64 = vector.broadcast %cst_26 : f32 to vector<2x64xf32>
    %65 = arith.mulf %64, %63 : vector<2x64xf32>
    %66 = math.tanh %65 : vector<2x64xf32>
    %cst_27 = arith.constant 1.000000e+00 : f32
    %67 = vector.broadcast %cst_27 : f32 to vector<2x64xf32>
    %68 = arith.addf %66, %67 : vector<2x64xf32>
    %cst_28 = arith.constant 5.000000e-01 : f32
    %69 = vector.broadcast %cst_28 : f32 to vector<2x64xf32>
    %70 = arith.mulf %69, %68 : vector<2x64xf32>
    %71 = arith.mulf %60, %36 : vector<2x64xf32>
    %72 = arith.mulf %52, %62 : vector<2x64xf32>
    %73 = arith.addf %71, %72 : vector<2x64xf32>
    %74 = math.tanh %73 : vector<2x64xf32>
    %75 = arith.mulf %70, %74 : vector<2x64xf32>
    %c2 = arith.constant 2 : index
    %c0_29 = arith.constant 0 : index
    %c0_30 = arith.constant 0 : index
    %76 = vector.load %arg0[%c2, %c0_29, %c0_30] : memref<4x2x256xf32, #tpu.memory_space<vmem>>, vector<1x2x256xf32>
    %77 = vector.shape_cast %76 : vector<1x2x256xf32> to vector<2x256xf32>
    %78 = arith.truncf %75 : vector<2x64xf32> to vector<2x64xbf16>
    %c0_31 = arith.constant 0 : index
    %c0_32 = arith.constant 0 : index
    %79 = vector.load %arg1[%c0_31, %c0_32] : memref<64x256xbf16, #tpu.memory_space<vmem>>, vector<64x256xbf16>
    %cst_33 = arith.constant dense<0.000000e+00> : vector<2x256xf32>
    %80 = tpu.matmul %78, %79, %cst_33 {dimension_numbers = #tpu.dot_dimension_numbers<[1], [0], [0], [1], [0, 0, 1, 1], [], []>} : vector<2x64xbf16>, vector<64x256xbf16>, vector<2x256xf32> -> vector<2x256xf32>
    %81 = arith.addf %77, %80 : vector<2x256xf32>
    %82 = vector.extract_strided_slice %81 {offsets = [0, 0], sizes = [2, 64], strides = [1, 1]} : vector<2x256xf32> to vector<2x64xf32>
    %cst_34 = arith.constant 5.000000e-01 : f32
    %83 = vector.broadcast %cst_34 : f32 to vector<2x64xf32>
    %84 = arith.mulf %83, %82 : vector<2x64xf32>
    %85 = math.tanh %84 : vector<2x64xf32>
    %cst_35 = arith.constant 1.000000e+00 : f32
    %86 = vector.broadcast %cst_35 : f32 to vector<2x64xf32>
    %87 = arith.addf %85, %86 : vector<2x64xf32>
    %cst_36 = arith.constant 5.000000e-01 : f32
    %88 = vector.broadcast %cst_36 : f32 to vector<2x64xf32>
    %89 = arith.mulf %88, %87 : vector<2x64xf32>
    %90 = vector.extract_strided_slice %81 {offsets = [0, 64], sizes = [2, 64], strides = [1, 1]} : vector<2x256xf32> to vector<2x64xf32>
    %cst_37 = arith.constant 5.000000e-01 : f32
    %91 = vector.broadcast %cst_37 : f32 to vector<2x64xf32>
    %92 = arith.mulf %91, %90 : vector<2x64xf32>
    %93 = math.tanh %92 : vector<2x64xf32>
    %cst_38 = arith.constant 1.000000e+00 : f32
    %94 = vector.broadcast %cst_38 : f32 to vector<2x64xf32>
    %95 = arith.addf %93, %94 : vector<2x64xf32>
    %cst_39 = arith.constant 5.000000e-01 : f32
    %96 = vector.broadcast %cst_39 : f32 to vector<2x64xf32>
    %97 = arith.mulf %96, %95 : vector<2x64xf32>
    %98 = vector.extract_strided_slice %81 {offsets = [0, 128], sizes = [2, 64], strides = [1, 1]} : vector<2x256xf32> to vector<2x64xf32>
    %99 = math.tanh %98 : vector<2x64xf32>
    %100 = vector.extract_strided_slice %81 {offsets = [0, 192], sizes = [2, 64], strides = [1, 1]} : vector<2x256xf32> to vector<2x64xf32>
    %cst_40 = arith.constant 5.000000e-01 : f32
    %101 = vector.broadcast %cst_40 : f32 to vector<2x64xf32>
    %102 = arith.mulf %101, %100 : vector<2x64xf32>
    %103 = math.tanh %102 : vector<2x64xf32>
    %cst_41 = arith.constant 1.000000e+00 : f32
    %104 = vector.broadcast %cst_41 : f32 to vector<2x64xf32>
    %105 = arith.addf %103, %104 : vector<2x64xf32>
    %cst_42 = arith.constant 5.000000e-01 : f32
    %106 = vector.broadcast %cst_42 : f32 to vector<2x64xf32>
    %107 = arith.mulf %106, %105 : vector<2x64xf32>
    %108 = arith.mulf %97, %73 : vector<2x64xf32>
    %109 = arith.mulf %89, %99 : vector<2x64xf32>
    %110 = arith.addf %108, %109 : vector<2x64xf32>
    %111 = math.tanh %110 : vector<2x64xf32>
    %112 = arith.mulf %107, %111 : vector<2x64xf32>
    %c3 = arith.constant 3 : index
    %c0_43 = arith.constant 0 : index
    %c0_44 = arith.constant 0 : index
    %113 = vector.load %arg0[%c3, %c0_43, %c0_44] : memref<4x2x256xf32, #tpu.memory_space<vmem>>, vector<1x2x256xf32>
    %114 = vector.shape_cast %113 : vector<1x2x256xf32> to vector<2x256xf32>
    %115 = arith.truncf %112 : vector<2x64xf32> to vector<2x64xbf16>
    %c0_45 = arith.constant 0 : index
    %c0_46 = arith.constant 0 : index
    %116 = vector.load %arg1[%c0_45, %c0_46] : memref<64x256xbf16, #tpu.memory_space<vmem>>, vector<64x256xbf16>
    %cst_47 = arith.constant dense<0.000000e+00> : vector<2x256xf32>
    %117 = tpu.matmul %115, %116, %cst_47 {dimension_numbers = #tpu.dot_dimension_numbers<[1], [0], [0], [1], [0, 0, 1, 1], [], []>} : vector<2x64xbf16>, vector<64x256xbf16>, vector<2x256xf32> -> vector<2x256xf32>
    %118 = arith.addf %114, %117 : vector<2x256xf32>
    %119 = vector.extract_strided_slice %118 {offsets = [0, 0], sizes = [2, 64], strides = [1, 1]} : vector<2x256xf32> to vector<2x64xf32>
    %cst_48 = arith.constant 5.000000e-01 : f32
    %120 = vector.broadcast %cst_48 : f32 to vector<2x64xf32>
    %121 = arith.mulf %120, %119 : vector<2x64xf32>
    %122 = math.tanh %121 : vector<2x64xf32>
    %cst_49 = arith.constant 1.000000e+00 : f32
    %123 = vector.broadcast %cst_49 : f32 to vector<2x64xf32>
    %124 = arith.addf %122, %123 : vector<2x64xf32>
    %cst_50 = arith.constant 5.000000e-01 : f32
    %125 = vector.broadcast %cst_50 : f32 to vector<2x64xf32>
    %126 = arith.mulf %125, %124 : vector<2x64xf32>
    %127 = vector.extract_strided_slice %118 {offsets = [0, 64], sizes = [2, 64], strides = [1, 1]} : vector<2x256xf32> to vector<2x64xf32>
    %cst_51 = arith.constant 5.000000e-01 : f32
    %128 = vector.broadcast %cst_51 : f32 to vector<2x64xf32>
    %129 = arith.mulf %128, %127 : vector<2x64xf32>
    %130 = math.tanh %129 : vector<2x64xf32>
    %cst_52 = arith.constant 1.000000e+00 : f32
    %131 = vector.broadcast %cst_52 : f32 to vector<2x64xf32>
    %132 = arith.addf %130, %131 : vector<2x64xf32>
    %cst_53 = arith.constant 5.000000e-01 : f32
    %133 = vector.broadcast %cst_53 : f32 to vector<2x64xf32>
    %134 = arith.mulf %133, %132 : vector<2x64xf32>
    %135 = vector.extract_strided_slice %118 {offsets = [0, 128], sizes = [2, 64], strides = [1, 1]} : vector<2x256xf32> to vector<2x64xf32>
    %136 = math.tanh %135 : vector<2x64xf32>
    %137 = vector.extract_strided_slice %118 {offsets = [0, 192], sizes = [2, 64], strides = [1, 1]} : vector<2x256xf32> to vector<2x64xf32>
    %cst_54 = arith.constant 5.000000e-01 : f32
    %138 = vector.broadcast %cst_54 : f32 to vector<2x64xf32>
    %139 = arith.mulf %138, %137 : vector<2x64xf32>
    %140 = math.tanh %139 : vector<2x64xf32>
    %cst_55 = arith.constant 1.000000e+00 : f32
    %141 = vector.broadcast %cst_55 : f32 to vector<2x64xf32>
    %142 = arith.addf %140, %141 : vector<2x64xf32>
    %cst_56 = arith.constant 5.000000e-01 : f32
    %143 = vector.broadcast %cst_56 : f32 to vector<2x64xf32>
    %144 = arith.mulf %143, %142 : vector<2x64xf32>
    %145 = arith.mulf %134, %110 : vector<2x64xf32>
    %146 = arith.mulf %126, %136 : vector<2x64xf32>
    %147 = arith.addf %145, %146 : vector<2x64xf32>
    %148 = math.tanh %147 : vector<2x64xf32>
    %149 = arith.mulf %144, %148 : vector<2x64xf32>
    %c0_57 = arith.constant 0 : index
    %c0_58 = arith.constant 0 : index
    %150 = vector.load %arg2[%c0_57, %c0_58] : memref<2x64xf32, #tpu.memory_space<vmem>>, vector<2x64xf32>
    tpu.vector_store %arg2[%c0_57, %c0_58], %149 {strides = array<i32>} : memref<2x64xf32, #tpu.memory_space<vmem>>, vector<2x64xf32>,
    return
  }
}

</mosaic_0001>

<bundles_post_ra>
// kernel: _lambda_.16
= control target key start
LH: loop header
LB: loop body
LE: loop exit
PB: predicated region body
PF: predicated region fallthrough
CT: control target
= control target key end

     0   :  { %s1507_s12 = smov 0   ;;  %s1509_s13 = smov 0   ;;  %s2013_s0 = inlined_call_operand.vmem [shape: bf16[2048,16], index: 0, kind: input, shape index: {}]   ;;  %s2014_s1 = inlined_call_operand.vmem [shape: bf16[16,40], index: 1, kind: input, shape index: {}]   ;;  %s2015_s2 = inlined_call_operand.vmem [shape: f32[3,40], index: 2, kind: input, shape index: {}]   ;;  %s2016_s3 = inlined_call_operand.vmem [shape: bf16[2048,40], index: 3, kind: output, shape index: {}]  }
   0x1   :  { %s1511_s14 = smov 0  }
   0x2 LB: > { %s25_s15 = sadd.s32 1, %s1480_s13  ;;  %p1230_p0 = scmp.ge.s32.totalorder %s1484_s14, 1  ;;  %s1484_s14 = sphi %s1511_s14, %s13_s14   ;;  %s1480_s13 = sphi %s1509_s13, %s2020_s13   ;;  %s1476_s12 = sphi %s1507_s12, %s2019_s12  }
   0x3   : > { %p27_p1 = scmp.ge.s32.totalorder %s25_s15, 4  ;;  %p170_p2 = scmp.lt.s32.totalorder %s1484_s14, 5 }
   0x5   : > { %s2022_s15 = smov (%p27_p1, %s25_s15), 0  ;;  %p171_p3 = pnand %p1230_p0, %p170_p2 }
   0x6   : > { %s1231_s18 = sshll.u32 (!%p171_p3), %s1476_s12, 6 }
   0x7   : > { %174 = sbr.rel (%p171_p3) target bundleno = 281 (0x119), region = 32  ;;  %p206_p4 = scmp.lt.s32.totalorder (!%p171_p3), %s1231_s18, 255 }
   0xc   : > { %v1433_v0 = vld [vmem:[%s2014_s1] sm:$0xff]  ;;  %s2024_s18 = smov (!%p206_p4, %s1231_s18), 255  ;;  %vm461_vm0 = vcmask 130048   ;;  %v1486_v35 = vmov 0   ;;  %vm1054_vm3 = vcmask 322560  }
   0xd   : > { %565 = vmatpush.bf16.msra.mxu0 %v1433_v0  ;;  %1434 = vmatpush.bf16.msra.mxu1 %v1433_v0  ;;  %s1232_s19 = sshll.u32 %s2024_s18, 2  ;;  %v727_v33 = vld [vmem:[%s2015_s2] sm:$0x7] }
   0xe   : > { %1435 = vmatpush.bf16.msra.mxu2 %v1433_v0  ;;  %1436 = vmatpush.bf16.msra.mxu3 %v1433_v0  ;;  %s1536_s22 = scalar_lea.vmem %s2013_s0, %s1232_s19  ;;  %vm858_vm1 = vcmp.gt.f32.partialorder %v727_v33, 0.0  ;;  %v1605_v34 = vperm.slane %v727_v33, 0  ;;  %v1607_v37 = vperm.slane %v727_v33, 1  ;;  %s1622_s27 = scalar_lea.vmem %s2016_s3, %s1232_s19 }
   0xf   : > { %v1401_v1 = vld [vmem:[%s1536_s22] sm:$0xff]  ;;  %v1402_v5 = vld [vmem:[%s1536_s22 + $0x8] sm:$0xff]  ;;  %v1403_v9 = vld [vmem:[%s1536_s22 + $0x10] sm:$0xff]  ;;  %v923_v36 = vsel %vm858_vm1, 1, %v1486_v35 }
  0x10   : > { %v1409_v2 = vld [vmem:[%s1536_s22 + $0x40] sm:$0xff]  ;;  %1367 = vmatmul.msk.bf16.vlgmr.msra.gmra.mxu0 %vm461_vm0, %v1401_v1  ;;  %v1410_v6 = vld [vmem:[%s1536_s22 + $0x48] sm:$0xff]  ;;  %v1411_v10 = vld [vmem:[%s1536_s22 + $0x50] sm:$0xff]  ;;  %v924_v39 = vperm.slane %v923_v36, 2 }
  0x11   : > { %v1417_v3 = vld [vmem:[%s1536_s22 + $0x80] sm:$0xff]  ;;  %1375 = vmatmul.msk.bf16.vlgmr.msra.gmra.mxu1 %vm461_vm0, %v1409_v2  ;;  %v1418_v7 = vld [vmem:[%s1536_s22 + $0x88] sm:$0xff]  ;;  %v1419_v11 = vld [vmem:[%s1536_s22 + $0x90] sm:$0xff] }
  0x12   : > { %v1425_v4 = vld [vmem:[%s1536_s22 + $0xc0] sm:$0xff]  ;;  %1383 = vmatmul.msk.bf16.vlgmr.msra.gmra.mxu2 %vm461_vm0, %v1417_v3  ;;  %v1426_v8 = vld [vmem:[%s1536_s22 + $0xc8] sm:$0xff]  ;;  %v1427_v12 = vld [vmem:[%s1536_s22 + $0xd0] sm:$0xff]  ;;  %vm1613_vm2 = vcmp.eq.s32.totalorder %v924_v39, 1 }
  0x13   : > { %1391 = vmatmul.msk.bf16.vlgmr.msra.gmra.mxu3 %vm461_vm0, %v1425_v4  ;;  %v1404_v13 = vld [vmem:[%s1536_s22 + $0x18] sm:$0xff]  ;;  %v1405_v17 = vld [vmem:[%s1536_s22 + $0x20] sm:$0xff]  ;;  %v1406_v21 = vld [vmem:[%s1536_s22 + $0x28] sm:$0xff] }
  0x14   : > { %v1412_v14 = vld [vmem:[%s1536_s22 + $0x58] sm:$0xff]  ;;  %v1413_v18 = vld [vmem:[%s1536_s22 + $0x60] sm:$0xff]  ;;  %v1414_v22 = vld [vmem:[%s1536_s22 + $0x68] sm:$0xff] }
  0x15   : > { %v1420_v15 = vld [vmem:[%s1536_s22 + $0x98] sm:$0xff]  ;;  %v1421_v19 = vld [vmem:[%s1536_s22 + $0xa0] sm:$0xff]  ;;  %v1422_v23 = vld [vmem:[%s1536_s22 + $0xa8] sm:$0xff] }
  0x16   : > { %v1428_v16 = vld [vmem:[%s1536_s22 + $0xd8] sm:$0xff]  ;;  %v1429_v20 = vld [vmem:[%s1536_s22 + $0xe0] sm:$0xff]  ;;  %v1430_v24 = vld [vmem:[%s1536_s22 + $0xe8] sm:$0xff] }
  0x17   : > { %v1407_v25 = vld [vmem:[%s1536_s22 + $0x30] sm:$0xff]  ;;  %v1408_v29 = vld [vmem:[%s1536_s22 + $0x38] sm:$0xff] }
  0x18   : > { %v1415_v26 = vld [vmem:[%s1536_s22 + $0x70] sm:$0xff]  ;;  %v1416_v30 = vld [vmem:[%s1536_s22 + $0x78] sm:$0xff] }
  0x19   : > { %v1423_v27 = vld [vmem:[%s1536_s22 + $0xb0] sm:$0xff]  ;;  %v1424_v31 = vld [vmem:[%s1536_s22 + $0xb8] sm:$0xff] }
  0x1a   : > { %v1431_v28 = vld [vmem:[%s1536_s22 + $0xf0] sm:$0xff]  ;;  %v1432_v32 = vld [vmem:[%s1536_s22 + $0xf8] sm:$0xff] }
  0x20   : > { %1368 = vmatmul.msk.bf16.gmra.mxu0 %vm461_vm0, %v1402_v5 }
  0x21   : > { %1376 = vmatmul.msk.bf16.gmra.mxu1 %vm461_vm0, %v1410_v6 }
  0x22   : > { %1384 = vmatmul.msk.bf16.gmra.mxu2 %vm461_vm0, %v1418_v7 }
  0x23   : > { %1392 = vmatmul.msk.bf16.gmra.mxu3 %vm461_vm0, %v1426_v8 }
  0x30   : > { %1369 = vmatmul.msk.bf16.gmra.mxu0 %vm461_vm0, %v1403_v9 }
  0x31   : > { %1377 = vmatmul.msk.bf16.gmra.mxu1 %vm461_vm0, %v1411_v10 }
  0x32   : > { %1385 = vmatmul.msk.bf16.gmra.mxu2 %vm461_vm0, %v1419_v11 }
  0x33   : > { %1393 = vmatmul.msk.bf16.gmra.mxu3 %vm461_vm0, %v1427_v12 }
  0x40   : > { %1370 = vmatmul.msk.bf16.gmra.mxu0 %vm461_vm0, %v1404_v13 }
  0x41   : > { %1378 = vmatmul.msk.bf16.gmra.mxu1 %vm461_vm0, %v1412_v14 }
  0x42   : > { %1386 = vmatmul.msk.bf16.gmra.mxu2 %vm461_vm0, %v1420_v15 }
  0x43   : > { %1394 = vmatmul.msk.bf16.gmra.mxu3 %vm461_vm0, %v1428_v16 }
  0x50   : > { %1371 = vmatmul.msk.bf16.gmra.mxu0 %vm461_vm0, %v1405_v17 }
  0x51   : > { %1379 = vmatmul.msk.bf16.gmra.mxu1 %vm461_vm0, %v1413_v18 }
  0x52   : > { %1387 = vmatmul.msk.bf16.gmra.mxu2 %vm461_vm0, %v1421_v19 }
  0x53   : > { %1395 = vmatmul.msk.bf16.gmra.mxu3 %vm461_vm0, %v1429_v20 }
  0x60   : > { %1372 = vmatmul.msk.bf16.gmra.mxu0 %vm461_vm0, %v1406_v21 }
  0x61   : > { %1380 = vmatmul.msk.bf16.gmra.mxu1 %vm461_vm0, %v1414_v22 }
  0x62   : > { %1388 = vmatmul.msk.bf16.gmra.mxu2 %vm461_vm0, %v1422_v23 }
  0x63   : > { %1396 = vmatmul.msk.bf16.gmra.mxu3 %vm461_vm0, %v1430_v24 }
  0x70   : > { %1373 = vmatmul.msk.bf16.gmra.mxu0 %vm461_vm0, %v1407_v25 }
  0x71   : > { %1381 = vmatmul.msk.bf16.gmra.mxu1 %vm461_vm0, %v1415_v26 }
  0x72   : > { %1389 = vmatmul.msk.bf16.gmra.mxu2 %vm461_vm0, %v1423_v27 }
  0x73   : > { %1397 = vmatmul.msk.bf16.gmra.mxu3 %vm461_vm0, %v1431_v28 }
  0x80   : > { %1374 = vmatmul.msk.bf16.gmra.mxu0 %vm461_vm0, %v1408_v29 }
  0x81   : > { %1382 = vmatmul.msk.bf16.gmra.mxu1 %vm461_vm0, %v1416_v30 }
  0x82   : > { %1390 = vmatmul.msk.bf16.gmra.mxu2 %vm461_vm0, %v1424_v31 }
  0x83   : > { %1398 = vmatmul.msk.bf16.gmra.mxu3 %vm461_vm0, %v1432_v32 }
  0x8d   : > { %v567_v38 = vpop.f32.mrf.mxu0 }
  0x8e   : > { %v607_v40 = vpop.f32.mrf.mxu1  ;;  %v729_v41 = vmul.f32 %v1605_v34, %v567_v38 }
  0x8f   : > { %v745_v42 = vmul.f32 %v1605_v34, %v607_v40 }
  0x90   : > { %v794_v43 = vadd.f32 %v1607_v37, %v729_v41 }
  0x91   : > { %v810_v44 = vadd.f32 %v1607_v37, %v745_v42 }
  0x92   : > { %v859_v46 = vmax.f32 %v794_v43, 0.0 }
  0x93   : > { %v875_v47 = vmax.f32 %v810_v44, 0.0 }
  0x94   : > { %v926_v48 = vsel %vm1613_vm2, %v859_v46, %v794_v43 }
  0x95   : > { %v942_v49 = vsel %vm1613_vm2, %v875_v47, %v810_v44  ;;  %v647_v50 = vpop.f32.mrf.mxu2  ;;  %v990_v52 = vpack.c.bf16 %v926_v48, %v926_v48  ;;  %v569_v56 = vpop.f32.mrf.mxu0 }
  0x96   : > { %v687_v51 = vpop.f32.mrf.mxu3  ;;  %v1006_v53 = vpack.c.bf16 %v942_v49, %v942_v49  ;;  %v761_v54 = vmul.f32 %v1605_v34, %v647_v50  ;;  %v609_v57 = vpop.f32.mrf.mxu1  ;;  %v730_v58 = vmul.f32 %v1605_v34, %v569_v56 }
  0x97   : > { %v777_v55 = vmul.f32 %v1605_v34, %v687_v51  ;;  %v746_v59 = vmul.f32 %v1605_v34, %v609_v57  ;;  %1055 = vst.msk [vmem:[%s1622_s27] sm:$0xf] %vm1054_vm3, %v990_v52 }
  0x98   : > { %v826_v60 = vadd.f32 %v1607_v37, %v761_v54  ;;  %1071 = vst.msk [vmem:[%s1622_s27 + $0x40] sm:$0xf] %vm1054_vm3, %v1006_v53  ;;  %v795_v62 = vadd.f32 %v1607_v37, %v730_v58 }
  0x99   : > { %v842_v61 = vadd.f32 %v1607_v37, %v777_v55  ;;  %v811_v63 = vadd.f32 %v1607_v37, %v746_v59 }
  0x9a   : > { %v891_v0 = vmax.f32 %v826_v60, 0.0  ;;  %v860_v2 = vmax.f32 %v795_v62, 0.0 }
  0x9b   : > { %v907_v1 = vmax.f32 %v842_v61, 0.0  ;;  %v876_v3 = vmax.f32 %v811_v63, 0.0 }
  0x9c   : > { %v958_v4 = vsel %vm1613_vm2, %v891_v0, %v826_v60  ;;  %v927_v8 = vsel %vm1613_vm2, %v860_v2, %v795_v62 }
  0x9d   : > { %v974_v5 = vsel %vm1613_vm2, %v907_v1, %v842_v61  ;;  %v1022_v6 = vpack.c.bf16 %v958_v4, %v958_v4  ;;  %v943_v9 = vsel %vm1613_vm2, %v876_v3, %v811_v63  ;;  %v649_v10 = vpop.f32.mrf.mxu2  ;;  %v991_v12 = vpack.c.bf16 %v927_v8, %v927_v8  ;;  %v572_v16 = vpop.f32.mrf.mxu0 }
  0x9e   : > { %v1038_v7 = vpack.c.bf16 %v974_v5, %v974_v5  ;;  %v689_v11 = vpop.f32.mrf.mxu3  ;;  %v1007_v13 = vpack.c.bf16 %v943_v9, %v943_v9  ;;  %v762_v14 = vmul.f32 %v1605_v34, %v649_v10  ;;  %v612_v17 = vpop.f32.mrf.mxu1  ;;  %v731_v18 = vmul.f32 %v1605_v34, %v572_v16 }
  0x9f   : > { %v778_v15 = vmul.f32 %v1605_v34, %v689_v11  ;;  %1087 = vst.msk [vmem:[%s1622_s27 + $0x80] sm:$0xf] %vm1054_vm3, %v1022_v6  ;;  %v747_v19 = vmul.f32 %v1605_v34, %v612_v17 }
  0xa0   : > { %1103 = vst.msk [vmem:[%s1622_s27 + $0xc0] sm:$0xf] %vm1054_vm3, %v1038_v7  ;;  %v827_v20 = vadd.f32 %v1607_v37, %v762_v14  ;;  %v796_v22 = vadd.f32 %v1607_v37, %v731_v18 }
  0xa1   : > { %v843_v21 = vadd.f32 %v1607_v37, %v778_v15  ;;  %1056 = vst.msk [vmem:[%s1622_s27 + $0x4] sm:$0xf] %vm1054_vm3, %v991_v12  ;;  %v812_v23 = vadd.f32 %v1607_v37, %v747_v19 }
  0xa2   : > { %1072 = vst.msk [vmem:[%s1622_s27 + $0x44] sm:$0xf] %vm1054_vm3, %v1007_v13  ;;  %v892_v24 = vmax.f32 %v827_v20, 0.0  ;;  %v861_v26 = vmax.f32 %v796_v22, 0.0 }
  0xa3   : > { %v908_v25 = vmax.f32 %v843_v21, 0.0  ;;  %v877_v27 = vmax.f32 %v812_v23, 0.0 }
  0xa4   : > { %v959_v28 = vsel %vm1613_vm2, %v892_v24, %v827_v20  ;;  %v928_v32 = vsel %vm1613_vm2, %v861_v26, %v796_v22 }
  0xa5   : > { %v975_v29 = vsel %vm1613_vm2, %v908_v25, %v843_v21  ;;  %v1023_v30 = vpack.c.bf16 %v959_v28, %v959_v28  ;;  %v944_v33 = vsel %vm1613_vm2, %v877_v27, %v812_v23  ;;  %v652_v35 = vpop.f32.mrf.mxu2  ;;  %v992_v38 = vpack.c.bf16 %v928_v32, %v928_v32  ;;  %v574_v42 = vpop.f32.mrf.mxu0 }
  0xa6   : > { %v1039_v31 = vpack.c.bf16 %v975_v29, %v975_v29  ;;  %v692_v36 = vpop.f32.mrf.mxu3  ;;  %v1008_v39 = vpack.c.bf16 %v944_v33, %v944_v33  ;;  %v763_v40 = vmul.f32 %v1605_v34, %v652_v35  ;;  %v614_v43 = vpop.f32.mrf.mxu1  ;;  %v732_v44 = vmul.f32 %v1605_v34, %v574_v42 }
  0xa7   : > { %v779_v41 = vmul.f32 %v1605_v34, %v692_v36  ;;  %1088 = vst.msk [vmem:[%s1622_s27 + $0x84] sm:$0xf] %vm1054_vm3, %v1023_v30  ;;  %v748_v46 = vmul.f32 %v1605_v34, %v614_v43 }
  0xa8   : > { %1104 = vst.msk [vmem:[%s1622_s27 + $0xc4] sm:$0xf] %vm1054_vm3, %v1039_v31  ;;  %v828_v47 = vadd.f32 %v1607_v37, %v763_v40  ;;  %v797_v49 = vadd.f32 %v1607_v37, %v732_v44 }
  0xa9   : > { %v844_v48 = vadd.f32 %v1607_v37, %v779_v41  ;;  %1057 = vst.msk [vmem:[%s1622_s27 + $0x8] sm:$0xf] %vm1054_vm3, %v992_v38  ;;  %v813_v50 = vadd.f32 %v1607_v37, %v748_v46 }
  0xaa   : > { %1073 = vst.msk [vmem:[%s1622_s27 + $0x48] sm:$0xf] %vm1054_vm3, %v1008_v39  ;;  %v893_v51 = vmax.f32 %v828_v47, 0.0  ;;  %v862_v53 = vmax.f32 %v797_v49, 0.0 }
  0xab   : > { %v909_v52 = vmax.f32 %v844_v48, 0.0  ;;  %v878_v54 = vmax.f32 %v813_v50, 0.0 }
  0xac   : > { %v960_v55 = vsel %vm1613_vm2, %v893_v51, %v828_v47  ;;  %v929_v59 = vsel %vm1613_vm2, %v862_v53, %v797_v49 }
  0xad   : > { %v976_v56 = vsel %vm1613_vm2, %v909_v52, %v844_v48  ;;  %v1024_v57 = vpack.c.bf16 %v960_v55, %v960_v55  ;;  %v945_v60 = vsel %vm1613_vm2, %v878_v54, %v813_v50  ;;  %v654_v61 = vpop.f32.mrf.mxu2  ;;  %v993_v63 = vpack.c.bf16 %v929_v59, %v929_v59  ;;  %v577_v3 = vpop.f32.mrf.mxu0 }
  0xae   : > { %v1040_v58 = vpack.c.bf16 %v976_v56, %v976_v56  ;;  %v694_v62 = vpop.f32.mrf.mxu3  ;;  %v1009_v0 = vpack.c.bf16 %v945_v60, %v945_v60  ;;  %v764_v1 = vmul.f32 %v1605_v34, %v654_v61  ;;  %v617_v4 = vpop.f32.mrf.mxu1  ;;  %v733_v5 = vmul.f32 %v1605_v34, %v577_v3 }
  0xaf   : > { %v780_v2 = vmul.f32 %v1605_v34, %v694_v62  ;;  %1089 = vst.msk [vmem:[%s1622_s27 + $0x88] sm:$0xf] %vm1054_vm3, %v1024_v57  ;;  %v749_v6 = vmul.f32 %v1605_v34, %v617_v4 }
  0xb0   : > { %1105 = vst.msk [vmem:[%s1622_s27 + $0xc8] sm:$0xf] %vm1054_vm3, %v1040_v58  ;;  %v829_v7 = vadd.f32 %v1607_v37, %v764_v1  ;;  %v798_v9 = vadd.f32 %v1607_v37, %v733_v5 }
  0xb1   : > { %v845_v8 = vadd.f32 %v1607_v37, %v780_v2  ;;  %1058 = vst.msk [vmem:[%s1622_s27 + $0xc] sm:$0xf] %vm1054_vm3, %v993_v63  ;;  %v814_v10 = vadd.f32 %v1607_v37, %v749_v6 }
  0xb2   : > { %1074 = vst.msk [vmem:[%s1622_s27 + $0x4c] sm:$0xf] %vm1054_vm3, %v1009_v0  ;;  %v894_v11 = vmax.f32 %v829_v7, 0.0  ;;  %v863_v13 = vmax.f32 %v798_v9, 0.0 }
  0xb3   : > { %v910_v12 = vmax.f32 %v845_v8, 0.0  ;;  %v879_v14 = vmax.f32 %v814_v10, 0.0 }
  0xb4   : > { %v961_v15 = vsel %vm1613_vm2, %v894_v11, %v829_v7  ;;  %v930_v19 = vsel %vm1613_vm2, %v863_v13, %v798_v9 }
  0xb5   : > { %v977_v16 = vsel %vm1613_vm2, %v910_v12, %v845_v8  ;;  %v1025_v17 = vpack.c.bf16 %v961_v15, %v961_v15  ;;  %v946_v20 = vsel %vm1613_vm2, %v879_v14, %v814_v10  ;;  %v657_v21 = vpop.f32.mrf.mxu2  ;;  %v994_v23 = vpack.c.bf16 %v930_v19, %v930_v19  ;;  %v579_v27 = vpop.f32.mrf.mxu0 }
  0xb6   : > { %v1041_v18 = vpack.c.bf16 %v977_v16, %v977_v16  ;;  %v697_v22 = vpop.f32.mrf.mxu3  ;;  %v1010_v24 = vpack.c.bf16 %v946_v20, %v946_v20  ;;  %v765_v25 = vmul.f32 %v1605_v34, %v657_v21  ;;  %v619_v28 = vpop.f32.mrf.mxu1  ;;  %v734_v29 = vmul.f32 %v1605_v34, %v579_v27 }
  0xb7   : > { %v781_v26 = vmul.f32 %v1605_v34, %v697_v22  ;;  %1090 = vst.msk [vmem:[%s1622_s27 + $0x8c] sm:$0xf] %vm1054_vm3, %v1025_v17  ;;  %v750_v30 = vmul.f32 %v1605_v34, %v619_v28 }
  0xb8   : > { %1106 = vst.msk [vmem:[%s1622_s27 + $0xcc] sm:$0xf] %vm1054_vm3, %v1041_v18  ;;  %v830_v31 = vadd.f32 %v1607_v37, %v765_v25  ;;  %v799_v33 = vadd.f32 %v1607_v37, %v734_v29 }
  0xb9   : > { %v846_v32 = vadd.f32 %v1607_v37, %v781_v26  ;;  %1059 = vst.msk [vmem:[%s1622_s27 + $0x10] sm:$0xf] %vm1054_vm3, %v994_v23  ;;  %v815_v35 = vadd.f32 %v1607_v37, %v750_v30 }
  0xba   : > { %1075 = vst.msk [vmem:[%s1622_s27 + $0x50] sm:$0xf] %vm1054_vm3, %v1010_v24  ;;  %v895_v36 = vmax.f32 %v830_v31, 0.0  ;;  %v864_v39 = vmax.f32 %v799_v33, 0.0 }
  0xbb   : > { %v911_v38 = vmax.f32 %v846_v32, 0.0  ;;  %v880_v40 = vmax.f32 %v815_v35, 0.0 }
  0xbc   : > { %v962_v41 = vsel %vm1613_vm2, %v895_v36, %v830_v31  ;;  %v931_v46 = vsel %vm1613_vm2, %v864_v39, %v799_v33 }
  0xbd   : > { %v978_v42 = vsel %vm1613_vm2, %v911_v38, %v846_v32  ;;  %v1026_v43 = vpack.c.bf16 %v962_v41, %v962_v41  ;;  %v947_v47 = vsel %vm1613_vm2, %v880_v40, %v815_v35  ;;  %v659_v48 = vpop.f32.mrf.mxu2  ;;  %v995_v50 = vpack.c.bf16 %v931_v46, %v931_v46  ;;  %v582_v54 = vpop.f32.mrf.mxu0 }
  0xbe   : > { %v1042_v44 = vpack.c.bf16 %v978_v42, %v978_v42  ;;  %v699_v49 = vpop.f32.mrf.mxu3  ;;  %v1011_v51 = vpack.c.bf16 %v947_v47, %v947_v47  ;;  %v766_v52 = vmul.f32 %v1605_v34, %v659_v48  ;;  %v622_v55 = vpop.f32.mrf.mxu1  ;;  %v735_v56 = vmul.f32 %v1605_v34, %v582_v54 }
  0xbf   : > { %v782_v53 = vmul.f32 %v1605_v34, %v699_v49  ;;  %1091 = vst.msk [vmem:[%s1622_s27 + $0x90] sm:$0xf] %vm1054_vm3, %v1026_v43  ;;  %v751_v57 = vmul.f32 %v1605_v34, %v622_v55 }
  0xc0   : > { %1107 = vst.msk [vmem:[%s1622_s27 + $0xd0] sm:$0xf] %vm1054_vm3, %v1042_v44  ;;  %v831_v58 = vadd.f32 %v1607_v37, %v766_v52  ;;  %v800_v60 = vadd.f32 %v1607_v37, %v735_v56 }
  0xc1   : > { %v847_v59 = vadd.f32 %v1607_v37, %v782_v53  ;;  %1060 = vst.msk [vmem:[%s1622_s27 + $0x14] sm:$0xf] %vm1054_vm3, %v995_v50  ;;  %v816_v61 = vadd.f32 %v1607_v37, %v751_v57 }
  0xc2   : > { %1076 = vst.msk [vmem:[%s1622_s27 + $0x54] sm:$0xf] %vm1054_vm3, %v1011_v51  ;;  %v896_v62 = vmax.f32 %v831_v58, 0.0  ;;  %v865_v0 = vmax.f32 %v800_v60, 0.0 }
  0xc3   : > { %v912_v63 = vmax.f32 %v847_v59, 0.0  ;;  %v881_v1 = vmax.f32 %v816_v61, 0.0 }
  0xc4   : > { %v963_v2 = vsel %vm1613_vm2, %v896_v62, %v831_v58  ;;  %v932_v6 = vsel %vm1613_vm2, %v865_v0, %v800_v60 }
  0xc5   : > { %v979_v3 = vsel %vm1613_vm2, %v912_v63, %v847_v59  ;;  %v1027_v4 = vpack.c.bf16 %v963_v2, %v963_v2  ;;  %v948_v7 = vsel %vm1613_vm2, %v881_v1, %v816_v61  ;;  %v662_v8 = vpop.f32.mrf.mxu2  ;;  %v996_v10 = vpack.c.bf16 %v932_v6, %v932_v6  ;;  %v584_v14 = vpop.f32.mrf.mxu0 }
  0xc6   : > { %v1043_v5 = vpack.c.bf16 %v979_v3, %v979_v3  ;;  %v702_v9 = vpop.f32.mrf.mxu3  ;;  %v1012_v11 = vpack.c.bf16 %v948_v7, %v948_v7  ;;  %v767_v12 = vmul.f32 %v1605_v34, %v662_v8  ;;  %v624_v15 = vpop.f32.mrf.mxu1  ;;  %v736_v16 = vmul.f32 %v1605_v34, %v584_v14 }
  0xc7   : > { %v783_v13 = vmul.f32 %v1605_v34, %v702_v9  ;;  %1092 = vst.msk [vmem:[%s1622_s27 + $0x94] sm:$0xf] %vm1054_vm3, %v1027_v4  ;;  %v752_v17 = vmul.f32 %v1605_v34, %v624_v15 }
  0xc8   : > { %1108 = vst.msk [vmem:[%s1622_s27 + $0xd4] sm:$0xf] %vm1054_vm3, %v1043_v5  ;;  %v832_v18 = vadd.f32 %v1607_v37, %v767_v12  ;;  %v801_v20 = vadd.f32 %v1607_v37, %v736_v16 }
  0xc9   : > { %v848_v19 = vadd.f32 %v1607_v37, %v783_v13  ;;  %1061 = vst.msk [vmem:[%s1622_s27 + $0x18] sm:$0xf] %vm1054_vm3, %v996_v10  ;;  %v817_v21 = vadd.f32 %v1607_v37, %v752_v17 }
  0xca   : > { %1077 = vst.msk [vmem:[%s1622_s27 + $0x58] sm:$0xf] %vm1054_vm3, %v1012_v11  ;;  %v897_v22 = vmax.f32 %v832_v18, 0.0  ;;  %v866_v24 = vmax.f32 %v801_v20, 0.0 }
  0xcb   : > { %v913_v23 = vmax.f32 %v848_v19, 0.0  ;;  %v882_v25 = vmax.f32 %v817_v21, 0.0 }
  0xcc   : > { %v964_v26 = vsel %vm1613_vm2, %v897_v22, %v832_v18  ;;  %v933_v30 = vsel %vm1613_vm2, %v866_v24, %v801_v20 }
  0xcd   : > { %v980_v27 = vsel %vm1613_vm2, %v913_v23, %v848_v19  ;;  %v1028_v28 = vpack.c.bf16 %v964_v26, %v964_v26  ;;  %v949_v31 = vsel %vm1613_vm2, %v882_v25, %v817_v21  ;;  %v664_v32 = vpop.f32.mrf.mxu2  ;;  %v997_v35 = vpack.c.bf16 %v933_v30, %v933_v30  ;;  %v587_v40 = vpop.f32.mrf.mxu0 }
  0xce   : > { %v1044_v29 = vpack.c.bf16 %v980_v27, %v980_v27  ;;  %v704_v33 = vpop.f32.mrf.mxu3  ;;  %v1013_v36 = vpack.c.bf16 %v949_v31, %v949_v31  ;;  %v768_v38 = vmul.f32 %v1605_v34, %v664_v32  ;;  %v627_v41 = vpop.f32.mrf.mxu1  ;;  %v737_v42 = vmul.f32 %v1605_v34, %v587_v40 }
  0xcf   : > { %v784_v39 = vmul.f32 %v1605_v34, %v704_v33  ;;  %1093 = vst.msk [vmem:[%s1622_s27 + $0x98] sm:$0xf] %vm1054_vm3, %v1028_v28  ;;  %v753_v43 = vmul.f32 %v1605_v34, %v627_v41 }
  0xd0   : > { %1109 = vst.msk [vmem:[%s1622_s27 + $0xd8] sm:$0xf] %vm1054_vm3, %v1044_v29  ;;  %v833_v44 = vadd.f32 %v1607_v37, %v768_v38  ;;  %v802_v47 = vadd.f32 %v1607_v37, %v737_v42 }
  0xd1   : > { %v849_v46 = vadd.f32 %v1607_v37, %v784_v39  ;;  %1062 = vst.msk [vmem:[%s1622_s27 + $0x1c] sm:$0xf] %vm1054_vm3, %v997_v35  ;;  %v818_v48 = vadd.f32 %v1607_v37, %v753_v43 }
  0xd2   : > { %1078 = vst.msk [vmem:[%s1622_s27 + $0x5c] sm:$0xf] %vm1054_vm3, %v1013_v36  ;;  %v898_v49 = vmax.f32 %v833_v44, 0.0  ;;  %v867_v51 = vmax.f32 %v802_v47, 0.0 }
  0xd3   : > { %v914_v50 = vmax.f32 %v849_v46, 0.0  ;;  %v883_v52 = vmax.f32 %v818_v48, 0.0 }
  0xd4   : > { %v965_v53 = vsel %vm1613_vm2, %v898_v49, %v833_v44  ;;  %v934_v57 = vsel %vm1613_vm2, %v867_v51, %v802_v47 }
  0xd5   : > { %v981_v54 = vsel %vm1613_vm2, %v914_v50, %v849_v46  ;;  %v1029_v55 = vpack.c.bf16 %v965_v53, %v965_v53  ;;  %v950_v58 = vsel %vm1613_vm2, %v883_v52, %v818_v48  ;;  %v667_v59 = vpop.f32.mrf.mxu2  ;;  %v998_v61 = vpack.c.bf16 %v934_v57, %v934_v57  ;;  %v589_v1 = vpop.f32.mrf.mxu0 }
  0xd6   : > { %v1045_v56 = vpack.c.bf16 %v981_v54, %v981_v54  ;;  %v707_v60 = vpop.f32.mrf.mxu3  ;;  %v1014_v62 = vpack.c.bf16 %v950_v58, %v950_v58  ;;  %v769_v63 = vmul.f32 %v1605_v34, %v667_v59  ;;  %v629_v2 = vpop.f32.mrf.mxu1  ;;  %v738_v3 = vmul.f32 %v1605_v34, %v589_v1 }
  0xd7   : > { %v785_v0 = vmul.f32 %v1605_v34, %v707_v60  ;;  %1094 = vst.msk [vmem:[%s1622_s27 + $0x9c] sm:$0xf] %vm1054_vm3, %v1029_v55  ;;  %v754_v4 = vmul.f32 %v1605_v34, %v629_v2 }
  0xd8   : > { %1110 = vst.msk [vmem:[%s1622_s27 + $0xdc] sm:$0xf] %vm1054_vm3, %v1045_v56  ;;  %v834_v5 = vadd.f32 %v1607_v37, %v769_v63  ;;  %v803_v7 = vadd.f32 %v1607_v37, %v738_v3 }
  0xd9   : > { %v850_v6 = vadd.f32 %v1607_v37, %v785_v0  ;;  %1063 = vst.msk [vmem:[%s1622_s27 + $0x20] sm:$0xf] %vm1054_vm3, %v998_v61  ;;  %v819_v8 = vadd.f32 %v1607_v37, %v754_v4 }
  0xda   : > { %1079 = vst.msk [vmem:[%s1622_s27 + $0x60] sm:$0xf] %vm1054_vm3, %v1014_v62  ;;  %v899_v9 = vmax.f32 %v834_v5, 0.0  ;;  %v868_v11 = vmax.f32 %v803_v7, 0.0 }
  0xdb   : > { %v915_v10 = vmax.f32 %v850_v6, 0.0  ;;  %v884_v12 = vmax.f32 %v819_v8, 0.0 }
  0xdc   : > { %v966_v13 = vsel %vm1613_vm2, %v899_v9, %v834_v5  ;;  %v935_v17 = vsel %vm1613_vm2, %v868_v11, %v803_v7 }
  0xdd   : > { %v982_v14 = vsel %vm1613_vm2, %v915_v10, %v850_v6  ;;  %v1030_v15 = vpack.c.bf16 %v966_v13, %v966_v13  ;;  %v951_v18 = vsel %vm1613_vm2, %v884_v12, %v819_v8  ;;  %v669_v19 = vpop.f32.mrf.mxu2  ;;  %v999_v21 = vpack.c.bf16 %v935_v17, %v935_v17  ;;  %v592_v25 = vpop.f32.mrf.mxu0 }
  0xde   : > { %v1046_v16 = vpack.c.bf16 %v982_v14, %v982_v14  ;;  %v709_v20 = vpop.f32.mrf.mxu3  ;;  %v1015_v22 = vpack.c.bf16 %v951_v18, %v951_v18  ;;  %v770_v23 = vmul.f32 %v1605_v34, %v669_v19  ;;  %v632_v26 = vpop.f32.mrf.mxu1  ;;  %v739_v27 = vmul.f32 %v1605_v34, %v592_v25 }
  0xdf   : > { %v786_v24 = vmul.f32 %v1605_v34, %v709_v20  ;;  %1095 = vst.msk [vmem:[%s1622_s27 + $0xa0] sm:$0xf] %vm1054_vm3, %v1030_v15  ;;  %v755_v28 = vmul.f32 %v1605_v34, %v632_v26 }
  0xe0   : > { %1111 = vst.msk [vmem:[%s1622_s27 + $0xe0] sm:$0xf] %vm1054_vm3, %v1046_v16  ;;  %v835_v29 = vadd.f32 %v1607_v37, %v770_v23  ;;  %v804_v31 = vadd.f32 %v1607_v37, %v739_v27 }
  0xe1   : > { %v851_v30 = vadd.f32 %v1607_v37, %v786_v24  ;;  %1064 = vst.msk [vmem:[%s1622_s27 + $0x24] sm:$0xf] %vm1054_vm3, %v999_v21  ;;  %v820_v32 = vadd.f32 %v1607_v37, %v755_v28 }
  0xe2   : > { %1080 = vst.msk [vmem:[%s1622_s27 + $0x64] sm:$0xf] %vm1054_vm3, %v1015_v22  ;;  %v900_v33 = vmax.f32 %v835_v29, 0.0  ;;  %v869_v36 = vmax.f32 %v804_v31, 0.0 }
  0xe3   : > { %v916_v35 = vmax.f32 %v851_v30, 0.0  ;;  %v885_v38 = vmax.f32 %v820_v32, 0.0 }
  0xe4   : > { %v967_v39 = vsel %vm1613_vm2, %v900_v33, %v835_v29  ;;  %v936_v43 = vsel %vm1613_vm2, %v869_v36, %v804_v31 }
  0xe5   : > { %v983_v40 = vsel %vm1613_vm2, %v916_v35, %v851_v30  ;;  %v1031_v41 = vpack.c.bf16 %v967_v39, %v967_v39  ;;  %v952_v44 = vsel %vm1613_vm2, %v885_v38, %v820_v32  ;;  %v672_v46 = vpop.f32.mrf.mxu2  ;;  %v1000_v48 = vpack.c.bf16 %v936_v43, %v936_v43  ;;  %v594_v52 = vpop.f32.mrf.mxu0 }
  0xe6   : > { %v1047_v42 = vpack.c.bf16 %v983_v40, %v983_v40  ;;  %v712_v47 = vpop.f32.mrf.mxu3  ;;  %v1016_v49 = vpack.c.bf16 %v952_v44, %v952_v44  ;;  %v771_v50 = vmul.f32 %v1605_v34, %v672_v46  ;;  %v634_v53 = vpop.f32.mrf.mxu1  ;;  %v740_v54 = vmul.f32 %v1605_v34, %v594_v52 }
  0xe7   : > { %v787_v51 = vmul.f32 %v1605_v34, %v712_v47  ;;  %1096 = vst.msk [vmem:[%s1622_s27 + $0xa4] sm:$0xf] %vm1054_vm3, %v1031_v41  ;;  %v756_v55 = vmul.f32 %v1605_v34, %v634_v53 }
  0xe8   : > { %1112 = vst.msk [vmem:[%s1622_s27 + $0xe4] sm:$0xf] %vm1054_vm3, %v1047_v42  ;;  %v836_v56 = vadd.f32 %v1607_v37, %v771_v50  ;;  %v805_v58 = vadd.f32 %v1607_v37, %v740_v54 }
  0xe9   : > { %v852_v57 = vadd.f32 %v1607_v37, %v787_v51  ;;  %1065 = vst.msk [vmem:[%s1622_s27 + $0x28] sm:$0xf] %vm1054_vm3, %v1000_v48  ;;  %v821_v59 = vadd.f32 %v1607_v37, %v756_v55 }
  0xea   : > { %1081 = vst.msk [vmem:[%s1622_s27 + $0x68] sm:$0xf] %vm1054_vm3, %v1016_v49  ;;  %v901_v60 = vmax.f32 %v836_v56, 0.0  ;;  %v870_v62 = vmax.f32 %v805_v58, 0.0 }
  0xeb   : > { %v917_v61 = vmax.f32 %v852_v57, 0.0  ;;  %v886_v63 = vmax.f32 %v821_v59, 0.0 }
  0xec   : > { %v968_v0 = vsel %vm1613_vm2, %v901_v60, %v836_v56  ;;  %v937_v4 = vsel %vm1613_vm2, %v870_v62, %v805_v58 }
  0xed   : > { %v984_v1 = vsel %vm1613_vm2, %v917_v61, %v852_v57  ;;  %v1032_v2 = vpack.c.bf16 %v968_v0, %v968_v0  ;;  %v953_v5 = vsel %vm1613_vm2, %v886_v63, %v821_v59  ;;  %v674_v6 = vpop.f32.mrf.mxu2  ;;  %v1001_v8 = vpack.c.bf16 %v937_v4, %v937_v4  ;;  %v597_v12 = vpop.f32.mrf.mxu0 }
  0xee   : > { %v1048_v3 = vpack.c.bf16 %v984_v1, %v984_v1  ;;  %v714_v7 = vpop.f32.mrf.mxu3  ;;  %v1017_v9 = vpack.c.bf16 %v953_v5, %v953_v5  ;;  %v772_v10 = vmul.f32 %v1605_v34, %v674_v6  ;;  %v637_v13 = vpop.f32.mrf.mxu1  ;;  %v741_v14 = vmul.f32 %v1605_v34, %v597_v12 }
  0xef   : > { %v788_v11 = vmul.f32 %v1605_v34, %v714_v7  ;;  %1097 = vst.msk [vmem:[%s1622_s27 + $0xa8] sm:$0xf] %vm1054_vm3, %v1032_v2  ;;  %v757_v15 = vmul.f32 %v1605_v34, %v637_v13 }
  0xf0   : > { %1113 = vst.msk [vmem:[%s1622_s27 + $0xe8] sm:$0xf] %vm1054_vm3, %v1048_v3  ;;  %v837_v16 = vadd.f32 %v1607_v37, %v772_v10  ;;  %v806_v18 = vadd.f32 %v1607_v37, %v741_v14 }
  0xf1   : > { %v853_v17 = vadd.f32 %v1607_v37, %v788_v11  ;;  %1066 = vst.msk [vmem:[%s1622_s27 + $0x2c] sm:$0xf] %vm1054_vm3, %v1001_v8  ;;  %v822_v19 = vadd.f32 %v1607_v37, %v757_v15 }
  0xf2   : > { %1082 = vst.msk [vmem:[%s1622_s27 + $0x6c] sm:$0xf] %vm1054_vm3, %v1017_v9  ;;  %v902_v20 = vmax.f32 %v837_v16, 0.0  ;;  %v871_v22 = vmax.f32 %v806_v18, 0.0 }
  0xf3   : > { %v918_v21 = vmax.f32 %v853_v17, 0.0  ;;  %v887_v23 = vmax.f32 %v822_v19, 0.0 }
  0xf4   : > { %v969_v24 = vsel %vm1613_vm2, %v902_v20, %v837_v16  ;;  %v938_v28 = vsel %vm1613_vm2, %v871_v22, %v806_v18 }
  0xf5   : > { %v985_v25 = vsel %vm1613_vm2, %v918_v21, %v853_v17  ;;  %v1033_v26 = vpack.c.bf16 %v969_v24, %v969_v24  ;;  %v954_v29 = vsel %vm1613_vm2, %v887_v23, %v822_v19  ;;  %v677_v30 = vpop.f32.mrf.mxu2  ;;  %v1002_v32 = vpack.c.bf16 %v938_v28, %v938_v28  ;;  %v599_v38 = vpop.f32.mrf.mxu0 }
  0xf6   : > { %v1049_v27 = vpack.c.bf16 %v985_v25, %v985_v25  ;;  %v717_v31 = vpop.f32.mrf.mxu3  ;;  %v1018_v33 = vpack.c.bf16 %v954_v29, %v954_v29  ;;  %v773_v35 = vmul.f32 %v1605_v34, %v677_v30  ;;  %v639_v39 = vpop.f32.mrf.mxu1  ;;  %v742_v40 = vmul.f32 %v1605_v34, %v599_v38 }
  0xf7   : > { %v789_v36 = vmul.f32 %v1605_v34, %v717_v31  ;;  %1098 = vst.msk [vmem:[%s1622_s27 + $0xac] sm:$0xf] %vm1054_vm3, %v1033_v26  ;;  %v758_v41 = vmul.f32 %v1605_v34, %v639_v39 }
  0xf8   : > { %1114 = vst.msk [vmem:[%s1622_s27 + $0xec] sm:$0xf] %vm1054_vm3, %v1049_v27  ;;  %v838_v42 = vadd.f32 %v1607_v37, %v773_v35  ;;  %v807_v44 = vadd.f32 %v1607_v37, %v742_v40 }
  0xf9   : > { %v854_v43 = vadd.f32 %v1607_v37, %v789_v36  ;;  %1067 = vst.msk [vmem:[%s1622_s27 + $0x30] sm:$0xf] %vm1054_vm3, %v1002_v32  ;;  %v823_v46 = vadd.f32 %v1607_v37, %v758_v41 }
  0xfa   : > { %1083 = vst.msk [vmem:[%s1622_s27 + $0x70] sm:$0xf] %vm1054_vm3, %v1018_v33  ;;  %v903_v47 = vmax.f32 %v838_v42, 0.0  ;;  %v872_v49 = vmax.f32 %v807_v44, 0.0 }
  0xfb   : > { %v919_v48 = vmax.f32 %v854_v43, 0.0  ;;  %v888_v50 = vmax.f32 %v823_v46, 0.0 }
  0xfc   : > { %v970_v51 = vsel %vm1613_vm2, %v903_v47, %v838_v42  ;;  %v939_v55 = vsel %vm1613_vm2, %v872_v49, %v807_v44 }
  0xfd   : > { %v986_v52 = vsel %vm1613_vm2, %v919_v48, %v854_v43  ;;  %v1034_v53 = vpack.c.bf16 %v970_v51, %v970_v51  ;;  %v955_v56 = vsel %vm1613_vm2, %v888_v50, %v823_v46  ;;  %v679_v57 = vpop.f32.mrf.mxu2  ;;  %v1003_v59 = vpack.c.bf16 %v939_v55, %v939_v55  ;;  %v602_v63 = vpop.f32.mrf.mxu0 }
  0xfe   : > { %v1050_v54 = vpack.c.bf16 %v986_v52, %v986_v52  ;;  %v719_v58 = vpop.f32.mrf.mxu3  ;;  %v1019_v60 = vpack.c.bf16 %v955_v56, %v955_v56  ;;  %v774_v61 = vmul.f32 %v1605_v34, %v679_v57  ;;  %v642_v0 = vpop.f32.mrf.mxu1  ;;  %v743_v1 = vmul.f32 %v1605_v34, %v602_v63 }
  0xff   : > { %v790_v62 = vmul.f32 %v1605_v34, %v719_v58  ;;  %1099 = vst.msk [vmem:[%s1622_s27 + $0xb0] sm:$0xf] %vm1054_vm3, %v1034_v53  ;;  %v759_v2 = vmul.f32 %v1605_v34, %v642_v0 }
 0x100   : > { %1115 = vst.msk [vmem:[%s1622_s27 + $0xf0] sm:$0xf] %vm1054_vm3, %v1050_v54  ;;  %v839_v3 = vadd.f32 %v1607_v37, %v774_v61  ;;  %v808_v5 = vadd.f32 %v1607_v37, %v743_v1 }
 0x101   : > { %v855_v4 = vadd.f32 %v1607_v37, %v790_v62  ;;  %1068 = vst.msk [vmem:[%s1622_s27 + $0x34] sm:$0xf] %vm1054_vm3, %v1003_v59  ;;  %v824_v6 = vadd.f32 %v1607_v37, %v759_v2 }
 0x102   : > { %1084 = vst.msk [vmem:[%s1622_s27 + $0x74] sm:$0xf] %vm1054_vm3, %v1019_v60  ;;  %v904_v7 = vmax.f32 %v839_v3, 0.0  ;;  %v873_v9 = vmax.f32 %v808_v5, 0.0 }
 0x103   : > { %v920_v8 = vmax.f32 %v855_v4, 0.0  ;;  %v889_v10 = vmax.f32 %v824_v6, 0.0 }
 0x104   : > { %v971_v11 = vsel %vm1613_vm2, %v904_v7, %v839_v3  ;;  %v940_v15 = vsel %vm1613_vm2, %v873_v9, %v808_v5 }
 0x105   : > { %v987_v12 = vsel %vm1613_vm2, %v920_v8, %v855_v4  ;;  %v1035_v13 = vpack.c.bf16 %v971_v11, %v971_v11  ;;  %v956_v16 = vsel %vm1613_vm2, %v889_v10, %v824_v6  ;;  %v682_v17 = vpop.f32.mrf.mxu2  ;;  %v1004_v19 = vpack.c.bf16 %v940_v15, %v940_v15  ;;  %v604_v23 = vpop.f32.mrf.mxu0 }
 0x106   : > { %v1051_v14 = vpack.c.bf16 %v987_v12, %v987_v12  ;;  %v722_v18 = vpop.f32.mrf.mxu3  ;;  %v1020_v20 = vpack.c.bf16 %v956_v16, %v956_v16  ;;  %v775_v21 = vmul.f32 %v1605_v34, %v682_v17  ;;  %v644_v24 = vpop.f32.mrf.mxu1  ;;  %v744_v25 = vmul.f32 %v1605_v34, %v604_v23 }
 0x107   : > { %v791_v22 = vmul.f32 %v1605_v34, %v722_v18  ;;  %1100 = vst.msk [vmem:[%s1622_s27 + $0xb4] sm:$0xf] %vm1054_vm3, %v1035_v13  ;;  %v760_v26 = vmul.f32 %v1605_v34, %v644_v24 }
 0x108   : > { %1116 = vst.msk [vmem:[%s1622_s27 + $0xf4] sm:$0xf] %vm1054_vm3, %v1051_v14  ;;  %v840_v27 = vadd.f32 %v1607_v37, %v775_v21  ;;  %v809_v29 = vadd.f32 %v1607_v37, %v744_v25 }
 0x109   : > { %v856_v28 = vadd.f32 %v1607_v37, %v791_v22  ;;  %1069 = vst.msk [vmem:[%s1622_s27 + $0x38] sm:$0xf] %vm1054_vm3, %v1004_v19  ;;  %v825_v30 = vadd.f32 %v1607_v37, %v760_v26 }
 0x10a   : > { %1085 = vst.msk [vmem:[%s1622_s27 + $0x78] sm:$0xf] %vm1054_vm3, %v1020_v20  ;;  %v905_v31 = vmax.f32 %v840_v27, 0.0  ;;  %v874_v33 = vmax.f32 %v809_v29, 0.0 }
 0x10b   : > { %v921_v32 = vmax.f32 %v856_v28, 0.0  ;;  %v890_v35 = vmax.f32 %v825_v30, 0.0 }
 0x10c   : > { %v972_v36 = vsel %vm1613_vm2, %v905_v31, %v840_v27  ;;  %v941_v41 = vsel %vm1613_vm2, %v874_v33, %v809_v29 }
 0x10d   : > { %v988_v38 = vsel %vm1613_vm2, %v921_v32, %v856_v28  ;;  %v1036_v39 = vpack.c.bf16 %v972_v36, %v972_v36  ;;  %v957_v42 = vsel %vm1613_vm2, %v890_v35, %v825_v30  ;;  %v684_v43 = vpop.f32.mrf.mxu2  ;;  %v1005_v46 = vpack.c.bf16 %v941_v41, %v941_v41 }
 0x10e   : > { %v1052_v40 = vpack.c.bf16 %v988_v38, %v988_v38  ;;  %v724_v44 = vpop.f32.mrf.mxu3  ;;  %v1021_v47 = vpack.c.bf16 %v957_v42, %v957_v42  ;;  %v776_v48 = vmul.f32 %v1605_v34, %v684_v43 }
 0x10f   : > { %v792_v49 = vmul.f32 %v1605_v34, %v724_v44  ;;  %1101 = vst.msk [vmem:[%s1622_s27 + $0xb8] sm:$0xf] %vm1054_vm3, %v1036_v39 }
 0x110   : > { %1117 = vst.msk [vmem:[%s1622_s27 + $0xf8] sm:$0xf] %vm1054_vm3, %v1052_v40  ;;  %v841_v50 = vadd.f32 %v1607_v37, %v776_v48 }
 0x111   : > { %v857_v51 = vadd.f32 %v1607_v37, %v792_v49  ;;  %1070 = vst.msk [vmem:[%s1622_s27 + $0x3c] sm:$0xf] %vm1054_vm3, %v1005_v46 }
 0x112   : > { %1086 = vst.msk [vmem:[%s1622_s27 + $0x7c] sm:$0xf] %vm1054_vm3, %v1021_v47  ;;  %v906_v52 = vmax.f32 %v841_v50, 0.0 }
 0x113   : > { %v922_v53 = vmax.f32 %v857_v51, 0.0 }
 0x114   : > { %v973_v54 = vsel %vm1613_vm2, %v906_v52, %v841_v50 }
 0x115   : > { %v989_v34 = vsel %vm1613_vm2, %v922_v53, %v857_v51  ;;  %v1037_v55 = vpack.c.bf16 %v973_v54, %v973_v54 }
 0x116   : > { %v1053_v56 = vpack.c.bf16 %v989_v34, %v989_v34 }
 0x117   : > { %1102 = vst.msk [vmem:[%s1622_s27 + $0xbc] sm:$0xf] %vm1054_vm3, %v1037_v55 }
 0x118   : > { %1118 = vst.msk [vmem:[%s1622_s27 + $0xfc] sm:$0xf] %vm1054_vm3, %v1053_v56 }
 0x119 PF: > { %s13_s14 = sadd.s32 1, %s1484_s14   ;;  %s2019_s12 = smov %s1480_s13 }
 0x11a   : > { %p10_p5 = scmp.ge.s32.totalorder %s13_s14, 6   ;;  %s2020_s13 = smov %s2022_s15 }
 0x11c   :  { %12 = sbr.rel (!%p10_p5) target bundleno = 2 (0x2), region = 68 }

// kernel: _lambda_.15
= control target key start
LH: loop header
LB: loop body
LE: loop exit
PB: predicated region body
PF: predicated region fallthrough
CT: control target
= control target key end

     0   :  { %s2023_s12 = smov 0   ;;  %s2025_s13 = smov 0   ;;  %s2595_s0 = inlined_call_operand.vmem [shape: bf16[8192,160], index: 0, kind: input, shape index: {}]   ;;  %s2596_s1 = inlined_call_operand.vmem [shape: bf16[160,8], index: 1, kind: input, shape index: {}]   ;;  %s2597_s2 = inlined_call_operand.vmem [shape: f32[2,8], index: 2, kind: input, shape index: {}]   ;;  %s2598_s3 = inlined_call_operand.vmem [shape: bf16[8192,8], index: 3, kind: output, shape index: {}]  }
   0x1   :  { %s2027_s14 = smov 0  }
   0x2 LB: > { %s25_s15 = sadd.s32 1, %s1997_s13  ;;  %p1534_p0 = scmp.ge.s32.totalorder %s2001_s14, 1  ;;  %s2001_s14 = sphi %s2027_s14, %s13_s14   ;;  %s1997_s13 = sphi %s2025_s13, %s2600_s13   ;;  %s1993_s12 = sphi %s2023_s12, %s2599_s12  }
   0x3   : > { %p27_p1 = scmp.ge.s32.totalorder %s25_s15, 16  ;;  %p171_p2 = scmp.lt.s32.totalorder %s2001_s14, 17 }
   0x5   : > { %s2602_s15 = smov (%p27_p1, %s25_s15), 0  ;;  %p172_p3 = pnand %p1534_p0, %p171_p2 }
   0x6   : > { %s1535_s20 = sshll.u32 (!%p172_p3), %s1993_s12, 6 }
   0x7   : > { %175 = sbr.rel (%p172_p3) target bundleno = 436 (0x1b4), region = 32  ;;  %p208_p4 = scmp.lt.s32.totalorder (!%p172_p3), %s1535_s20, 1023 }
   0xc   : > { %v1942_v0 = vld [vmem:[%s2596_s1 + $0x38] sm:$0xff]  ;;  %v1944_v1 = vld [vmem:[%s2596_s1 + $0x48] sm:$0xff]  ;;  %v1941_v2 = vld [vmem:[%s2596_s1 + $0x30] sm:$0xff]  ;;  %s2604_s20 = smov (!%p208_p4, %s1535_s20), 1023  ;;  %vm664_vm0 = vcmask 261120   ;;  %vm1358_vm1 = vcmask 60416  }
   0xd   : > { %761 = vmatpush.bf16.msra.mxu0 %v1942_v0  ;;  %1945 = vmatpush.bf16.msra.mxu2 %v1942_v0  ;;  %v1943_v3 = vld [vmem:[%s2596_s1 + $0x40] sm:$0xff]  ;;  %s1870_s25 = sshll.u32 %s2604_s20, 3  ;;  %v1940_v4 = vld [vmem:[%s2596_s1 + $0x28] sm:$0xff]  ;;  %v1938_v12 = vld [vmem:[%s2596_s1 + $0x18] sm:$0xff]  ;;  %s1539_s19 = sshll.u32 %s2604_s20, 2 }
   0xe   : > { %936 = vmatpush.bf16.msra.mxu1 %v1944_v1  ;;  %1953 = vmatpush.bf16.msra.mxu3 %v1944_v1  ;;  %s2059_s28 = scalar_lea.vmem %s2595_s0, %s1870_s25  ;;  %v1939_v8 = vld [vmem:[%s2596_s1 + $0x20] sm:$0xff]  ;;  %v1937_v13 = vld [vmem:[%s2596_s1 + $0x10] sm:$0xff]  ;;  %v1936_v17 = vld [vmem:[%s2596_s1 + $0x8] sm:$0xff]  ;;  %s2198_s23 = scalar_lea.vmem %s2598_s3, %s1539_s19 }
   0xf   : > { %v1871_v5 = vld [vmem:[%s2059_s28 + $0x4] sm:$0xf]  ;;  %v1544_v6 = vld [vmem:[%s2059_s28 + $0x8] sm:$0xf0]  ;;  %v1905_v9 = vld [vmem:[%s2059_s28 + $0x114] sm:$0xf] }
  0x10   : > { %v1547_v7 = vor.u32 %v1871_v5, %v1544_v6  ;;  %v1680_v10 = vld [vmem:[%s2059_s28 + $0x118] sm:$0xf0]  ;;  %v1873_v14 = vld [vmem:[%s2059_s28 + $0x14] sm:$0xf]  ;;  %v1907_v18 = vld [vmem:[%s2059_s28 + $0x124] sm:$0xf] }
  0x11   : > { %762 = vmatpush.bf16.msra.mxu0 %v1941_v2  ;;  %1946 = vmatpush.bf16.msra.mxu2 %v1941_v2  ;;  %v1683_v11 = vor.u32 %v1905_v9, %v1680_v10  ;;  %v1552_v15 = vld [vmem:[%s2059_s28 + $0x18] sm:$0xf0]  ;;  %v1688_v19 = vld [vmem:[%s2059_s28 + $0x128] sm:$0xf0]  ;;  %v1935_v21 = vld [vmem:[%s2596_s1] sm:$0xff] }
  0x12   : > { %937 = vmatpush.bf16.msra.mxu1 %v1943_v3  ;;  %1954 = vmatpush.bf16.msra.mxu3 %v1943_v3  ;;  %v1555_v16 = vor.u32 %v1873_v14, %v1552_v15  ;;  %v1691_v20 = vor.u32 %v1907_v18, %v1688_v19  ;;  %v1542_v22 = vld [vmem:[%s2059_s28] sm:$0xf]  ;;  %v1872_v23 = vld [vmem:[%s2059_s28 + $0x4] sm:$0xf0]  ;;  %v1875_v28 = vld [vmem:[%s2059_s28 + $0x24] sm:$0xf] }
  0x13   : > { %v1670_v24 = vld [vmem:[%s2059_s28 + $0x100] sm:$0xf]  ;;  %v1904_v25 = vld [vmem:[%s2059_s28 + $0x104] sm:$0xf0]  ;;  %v1543_v26 = vor.u32 %v1872_v23, %v1542_v22  ;;  %v1560_v29 = vld [vmem:[%s2059_s28 + $0x28] sm:$0xf0] }
  0x14   : > { %v1671_v27 = vor.u32 %v1904_v25, %v1670_v24  ;;  %v1563_v30 = vor.u32 %v1875_v28, %v1560_v29  ;;  %v1909_v31 = vld [vmem:[%s2059_s28 + $0x134] sm:$0xf]  ;;  %v1696_v32 = vld [vmem:[%s2059_s28 + $0x138] sm:$0xf0]  ;;  %v1550_v34 = vld [vmem:[%s2059_s28 + $0x10] sm:$0xf] }
  0x15   : > { %1836 = vmatmul.msk.bf16.vlgmr.msra.gmra.mxu1 %vm664_vm0, %v1547_v7  ;;  %763 = vmatpush.bf16.msra.mxu0 %v1940_v4  ;;  %v1699_v33 = vor.u32 %v1909_v31, %v1696_v32  ;;  %v1874_v35 = vld [vmem:[%s2059_s28 + $0x14] sm:$0xf0]  ;;  %v1678_v36 = vld [vmem:[%s2059_s28 + $0x110] sm:$0xf]  ;;  %v1877_v40 = vld [vmem:[%s2059_s28 + $0x34] sm:$0xf] }
  0x16   : > { %1947 = vmatpush.bf16.msra.mxu2 %v1940_v4  ;;  %1853 = vmatmul.msk.bf16.vlgmr.msra.gmra.mxu3 %vm664_vm0, %v1683_v11  ;;  %v1906_v37 = vld [vmem:[%s2059_s28 + $0x114] sm:$0xf0]  ;;  %v1551_v38 = vor.u32 %v1874_v35, %v1550_v34  ;;  %v1568_v41 = vld [vmem:[%s2059_s28 + $0x38] sm:$0xf0]  ;;  %v1911_v43 = vld [vmem:[%s2059_s28 + $0x144] sm:$0xf] }
  0x17   : > { %v1679_v39 = vor.u32 %v1906_v37, %v1678_v36  ;;  %v1571_v42 = vor.u32 %v1877_v40, %v1568_v41  ;;  %v1704_v44 = vld [vmem:[%s2059_s28 + $0x148] sm:$0xf0]  ;;  %v1558_v46 = vld [vmem:[%s2059_s28 + $0x20] sm:$0xf]  ;;  %v1876_v47 = vld [vmem:[%s2059_s28 + $0x24] sm:$0xf0] }
  0x18   : > { %v1707_v45 = vor.u32 %v1911_v43, %v1704_v44  ;;  %v1686_v48 = vld [vmem:[%s2059_s28 + $0x120] sm:$0xf]  ;;  %v1908_v49 = vld [vmem:[%s2059_s28 + $0x124] sm:$0xf0]  ;;  %v1559_v50 = vor.u32 %v1876_v47, %v1558_v46  ;;  %v1879_v52 = vld [vmem:[%s2059_s28 + $0x44] sm:$0xf] }
  0x19   : > { %764 = vmatpush.bf16.msra.mxu0 %v1939_v8  ;;  %v1687_v51 = vor.u32 %v1908_v49, %v1686_v48  ;;  %v1576_v53 = vld [vmem:[%s2059_s28 + $0x48] sm:$0xf0]  ;;  %v1913_v55 = vld [vmem:[%s2059_s28 + $0x154] sm:$0xf]  ;;  %v1712_v56 = vld [vmem:[%s2059_s28 + $0x158] sm:$0xf0] }
  0x1a   : > { %1948 = vmatpush.bf16.msra.mxu2 %v1939_v8  ;;  %v1579_v54 = vor.u32 %v1879_v52, %v1576_v53  ;;  %v1715_v57 = vor.u32 %v1913_v55, %v1712_v56  ;;  %v1566_v58 = vld [vmem:[%s2059_s28 + $0x30] sm:$0xf]  ;;  %v1878_v59 = vld [vmem:[%s2059_s28 + $0x34] sm:$0xf0]  ;;  %v1881_v0 = vld [vmem:[%s2059_s28 + $0x54] sm:$0xf] }
  0x1b   : > { %v1694_v60 = vld [vmem:[%s2059_s28 + $0x130] sm:$0xf]  ;;  %v1910_v61 = vld [vmem:[%s2059_s28 + $0x134] sm:$0xf0]  ;;  %v1567_v62 = vor.u32 %v1878_v59, %v1566_v58  ;;  %v1584_v1 = vld [vmem:[%s2059_s28 + $0x58] sm:$0xf0] }
  0x1c   : > { %v1695_v63 = vor.u32 %v1910_v61, %v1694_v60  ;;  %v1587_v2 = vor.u32 %v1881_v0, %v1584_v1  ;;  %v1915_v3 = vld [vmem:[%s2059_s28 + $0x164] sm:$0xf]  ;;  %v1720_v4 = vld [vmem:[%s2059_s28 + $0x168] sm:$0xf0]  ;;  %v1574_v6 = vld [vmem:[%s2059_s28 + $0x40] sm:$0xf] }
  0x1d   : > { %765 = vmatpush.bf16.msra.mxu0 %v1938_v12  ;;  %v1723_v5 = vor.u32 %v1915_v3, %v1720_v4  ;;  %v1880_v7 = vld [vmem:[%s2059_s28 + $0x44] sm:$0xf0]  ;;  %v1702_v8 = vld [vmem:[%s2059_s28 + $0x140] sm:$0xf]  ;;  %v1917_v15 = vld [vmem:[%s2059_s28 + $0x174] sm:$0xf] }
  0x1e   : > { %1949 = vmatpush.bf16.msra.mxu2 %v1938_v12  ;;  %v1912_v9 = vld [vmem:[%s2059_s28 + $0x144] sm:$0xf0]  ;;  %v1575_v10 = vor.u32 %v1880_v7, %v1574_v6  ;;  %v1883_v12 = vld [vmem:[%s2059_s28 + $0x64] sm:$0xf]  ;;  %v1582_v18 = vld [vmem:[%s2059_s28 + $0x50] sm:$0xf] }
  0x1f   : > { %v1703_v11 = vor.u32 %v1912_v9, %v1702_v8  ;;  %v1882_v19 = vld [vmem:[%s2059_s28 + $0x54] sm:$0xf0]  ;;  %v1885_v24 = vld [vmem:[%s2059_s28 + $0x74] sm:$0xf]  ;;  %v1600_v25 = vld [vmem:[%s2059_s28 + $0x78] sm:$0xf0] }
  0x20   : > { %v1583_v22 = vor.u32 %v1882_v19, %v1582_v18  ;;  %v1736_v28 = vld [vmem:[%s2059_s28 + $0x188] sm:$0xf0]  ;;  %v1884_v31 = vld [vmem:[%s2059_s28 + $0x64] sm:$0xf0]  ;;  %v1718_v32 = vld [vmem:[%s2059_s28 + $0x160] sm:$0xf] }
  0x21   : > { %766 = vmatpush.bf16.msra.mxu0 %v1937_v13  ;;  %v1887_v36 = vld [vmem:[%s2059_s28 + $0x84] sm:$0xf]  ;;  %v1608_v37 = vld [vmem:[%s2059_s28 + $0x88] sm:$0xf0]  ;;  %v1921_v40 = vld [vmem:[%s2059_s28 + $0x194] sm:$0xf] }
  0x22   : > { %1950 = vmatpush.bf16.msra.mxu2 %v1937_v13  ;;  %v1592_v13 = vld [vmem:[%s2059_s28 + $0x68] sm:$0xf0]  ;;  %v1744_v41 = vld [vmem:[%s2059_s28 + $0x198] sm:$0xf0]  ;;  %v1598_v43 = vld [vmem:[%s2059_s28 + $0x70] sm:$0xf] }
  0x23   : > { %v1595_v14 = vor.u32 %v1883_v12, %v1592_v13  ;;  %v1886_v44 = vld [vmem:[%s2059_s28 + $0x74] sm:$0xf0]  ;;  %v1616_v52 = vld [vmem:[%s2059_s28 + $0x98] sm:$0xf0]  ;;  %v1923_v55 = vld [vmem:[%s2059_s28 + $0x1a4] sm:$0xf] }
  0x24   : > { %v1918_v46 = vld [vmem:[%s2059_s28 + $0x174] sm:$0xf0]  ;;  %v1599_v47 = vor.u32 %v1886_v44, %v1598_v43  ;;  %v1752_v56 = vld [vmem:[%s2059_s28 + $0x1a8] sm:$0xf0]  ;;  %v1099_v59 = vld [vmem:[%s2597_s2] sm:$0x3] }
  0x25   : > { %1837 = vmatmul.msk.bf16.gmra.mxu1 %vm664_vm0, %v1555_v16  ;;  %767 = vmatpush.bf16.msra.mxu0 %v1936_v17  ;;  %v1728_v16 = vld [vmem:[%s2059_s28 + $0x178] sm:$0xf0]  ;;  %v1755_v58 = vor.u32 %v1923_v55, %v1752_v56  ;;  %v1606_v60 = vld [vmem:[%s2059_s28 + $0x80] sm:$0xf]  ;;  %v1888_v61 = vld [vmem:[%s2059_s28 + $0x84] sm:$0xf0] }
  0x26   : > { %1951 = vmatpush.bf16.msra.mxu2 %v1936_v17  ;;  %1854 = vmatmul.msk.bf16.gmra.mxu3 %vm664_vm0, %v1691_v20  ;;  %v1731_v17 = vor.u32 %v1917_v15, %v1728_v16  ;;  %v1710_v20 = vld [vmem:[%s2059_s28 + $0x150] sm:$0xf]  ;;  %v2181_v0 = vperm.slane %v1099_v59, 0  ;;  %v1607_v1 = vor.u32 %v1888_v61, %v1606_v60  ;;  %v1925_v19 = vld [vmem:[%s2059_s28 + $0x1b4] sm:$0xf] }
  0x27   : > { %v1750_v61 = vld [vmem:[%s2059_s28 + $0x1a0] sm:$0xf] }
  0x29   : > { %768 = vmatpush.bf16.msra.mxu0 %v1935_v21 }
  0x2a   : > { %1952 = vmatpush.bf16.msra.mxu2 %v1935_v21  ;;  %v1914_v21 = vld [vmem:[%s2059_s28 + $0x154] sm:$0xf0] }
  0x2b   : > { %v1711_v23 = vor.u32 %v1914_v21, %v1710_v20  ;;  %v1760_v20 = vld [vmem:[%s2059_s28 + $0x1b8] sm:$0xf0] }
  0x2c   : > { %769 = vmatmul.bf16.vlgmr.msra.gmra.mxu0 %v1543_v26  ;;  %v1603_v26 = vor.u32 %v1885_v24, %v1600_v25  ;;  %v1614_v24 = vld [vmem:[%s2059_s28 + $0x90] sm:$0xf]  ;;  %v1890_v25 = vld [vmem:[%s2059_s28 + $0x94] sm:$0xf0] }
  0x2d   : > { %849 = vmatmul.bf16.vlgmr.msra.gmra.mxu2 %v1671_v27  ;;  %v1919_v27 = vld [vmem:[%s2059_s28 + $0x184] sm:$0xf] }
  0x2e   : > { %v1739_v29 = vor.u32 %v1919_v27, %v1736_v28  ;;  %v1742_v27 = vld [vmem:[%s2059_s28 + $0x190] sm:$0xf]  ;;  %v1922_v28 = vld [vmem:[%s2059_s28 + $0x194] sm:$0xf0] }
  0x35   : > { %1838 = vmatmul.msk.bf16.gmra.mxu1 %vm664_vm0, %v1563_v30  ;;  %v1590_v30 = vld [vmem:[%s2059_s28 + $0x60] sm:$0xf] }
  0x36   : > { %1855 = vmatmul.msk.bf16.gmra.mxu3 %vm664_vm0, %v1699_v33  ;;  %v1916_v33 = vld [vmem:[%s2059_s28 + $0x164] sm:$0xf0]  ;;  %v1591_v34 = vor.u32 %v1884_v31, %v1590_v30  ;;  %v1615_v31 = vor.u32 %v1890_v25, %v1614_v24 }
  0x37   : > { %v1719_v35 = vor.u32 %v1916_v33, %v1718_v32  ;;  %v1743_v33 = vor.u32 %v1922_v28, %v1742_v27 }
  0x3c   : > { %774 = vmatmul.bf16.gmra.mxu0 %v1551_v38  ;;  %v1611_v38 = vor.u32 %v1887_v36, %v1608_v37 }
  0x3d   : > { %854 = vmatmul.bf16.gmra.mxu2 %v1679_v39 }
  0x45   : > { %1839 = vmatmul.msk.bf16.gmra.mxu1 %vm664_vm0, %v1571_v42  ;;  %v1747_v42 = vor.u32 %v1921_v40, %v1744_v41  ;;  %v1893_v40 = vld [vmem:[%s2059_s28 + $0xb4] sm:$0xf]  ;;  %v1632_v41 = vld [vmem:[%s2059_s28 + $0xb8] sm:$0xf0] }
  0x46   : > { %1856 = vmatmul.msk.bf16.gmra.mxu3 %vm664_vm0, %v1707_v45  ;;  %v1726_v45 = vld [vmem:[%s2059_s28 + $0x170] sm:$0xf] }
  0x47   : > { %v1727_v48 = vor.u32 %v1918_v46, %v1726_v45  ;;  %v1635_v46 = vor.u32 %v1893_v40, %v1632_v41  ;;  %v1894_v40 = vld [vmem:[%s2059_s28 + $0xb4] sm:$0xf0] }
  0x4c   : > { %779 = vmatmul.bf16.gmra.mxu0 %v1559_v50 }
  0x4d   : > { %859 = vmatmul.bf16.gmra.mxu2 %v1687_v51  ;;  %v1889_v51 = vld [vmem:[%s2059_s28 + $0x94] sm:$0xf] }
  0x4e   : > { %v1619_v53 = vor.u32 %v1889_v51, %v1616_v52  ;;  %v1927_v51 = vld [vmem:[%s2059_s28 + $0x1c4] sm:$0xf]  ;;  %v1768_v52 = vld [vmem:[%s2059_s28 + $0x1c8] sm:$0xf0] }
  0x55   : > { %1840 = vmatmul.msk.bf16.gmra.mxu1 %vm664_vm0, %v1579_v54 }
  0x56   : > { %1857 = vmatmul.msk.bf16.gmra.mxu3 %vm664_vm0, %v1715_v57 }
  0x5c   : > { %784 = vmatmul.bf16.gmra.mxu0 %v1567_v62  ;;  %v1734_v62 = vld [vmem:[%s2059_s28 + $0x180] sm:$0xf] }
  0x5d   : > { %864 = vmatmul.bf16.gmra.mxu2 %v1695_v63  ;;  %v1920_v63 = vld [vmem:[%s2059_s28 + $0x184] sm:$0xf0] }
  0x5e   : > { %v1735_v3 = vor.u32 %v1920_v63, %v1734_v62  ;;  %v1924_v62 = vld [vmem:[%s2059_s28 + $0x1a4] sm:$0xf0] }
  0x65   : > { %1841 = vmatmul.msk.bf16.gmra.mxu1 %vm664_vm0, %v1587_v2 }
  0x66   : > { %1858 = vmatmul.msk.bf16.gmra.mxu3 %vm664_vm0, %v1723_v5  ;;  %v2184_v5 = vperm.slane %v1099_v59, 1  ;;  %v1892_v59 = vld [vmem:[%s2059_s28 + $0xa4] sm:$0xf0] }
  0x6c   : > { %789 = vmatmul.bf16.gmra.mxu0 %v1575_v10  ;;  %v1891_v10 = vld [vmem:[%s2059_s28 + $0xa4] sm:$0xf] }
  0x6d   : > { %869 = vmatmul.bf16.gmra.mxu2 %v1703_v11  ;;  %v1624_v11 = vld [vmem:[%s2059_s28 + $0xa8] sm:$0xf0] }
  0x6e   : > { %v1627_v15 = vor.u32 %v1891_v10, %v1624_v11 }
  0x75   : > { %1842 = vmatmul.msk.bf16.gmra.mxu1 %vm664_vm0, %v1595_v14 }
  0x76   : > { %1859 = vmatmul.msk.bf16.gmra.mxu3 %vm664_vm0, %v1731_v17 }
  0x7c   : > { %794 = vmatmul.bf16.gmra.mxu0 %v1583_v22 }
  0x7d   : > { %874 = vmatmul.bf16.gmra.mxu2 %v1711_v23  ;;  %v1763_v23 = vor.u32 %v1925_v19, %v1760_v20  ;;  %v1640_v19 = vld [vmem:[%s2059_s28 + $0xc8] sm:$0xf0] }
  0x85   : > { %1843 = vmatmul.msk.bf16.gmra.mxu1 %vm664_vm0, %v1603_v26 }
  0x86   : > { %1860 = vmatmul.msk.bf16.gmra.mxu3 %vm664_vm0, %v1739_v29 }
  0x8c   : > { %799 = vmatmul.bf16.gmra.mxu0 %v1591_v34 }
  0x8d   : > { %879 = vmatmul.bf16.gmra.mxu2 %v1719_v35 }
  0x92   : > { %v939_v39 = vpop.f32.mrf.mxu1 }
  0x95   : > { %1844 = vmatmul.msk.bf16.gmra.mxu1 %vm664_vm0, %v1611_v38 }
  0x96   : > { %1861 = vmatmul.msk.bf16.gmra.mxu3 %vm664_vm0, %v1747_v42 }
  0x99   : > { %v2165_v50 = vpop.f32.mrf.mxu3 }
  0x9a   : > { %v941_v49 = vpop.f32.mrf.mxu1 }
  0x9c   : > { %804 = vmatmul.bf16.gmra.mxu0 %v1599_v47 }
  0x9d   : > { %884 = vmatmul.bf16.gmra.mxu2 %v1727_v48 }
  0xa1   : > { %v2171_v57 = vpop.f32.mrf.mxu3 }
  0xa2   : > { %v944_v54 = vpop.f32.mrf.mxu1 }
  0xa5   : > { %1845 = vmatmul.msk.bf16.gmra.mxu1 %vm664_vm0, %v1619_v53 }
  0xa6   : > { %1862 = vmatmul.msk.bf16.gmra.mxu3 %vm664_vm0, %v1755_v58  ;;  %v1622_v58 = vld [vmem:[%s2059_s28 + $0xa0] sm:$0xf] }
  0xa9   : > { %v770_v2 = vpop.f32.mrf.mxu0  ;;  %v2186_v7 = vpop.f32.mrf.mxu3 }
  0xaa   : > { %v940_v4 = vadd.f32 %v939_v39, %v770_v2  ;;  %v946_v6 = vpop.f32.mrf.mxu1 }
  0xac   : > { %v1101_v8 = vmul.f32 %v2181_v0, %v940_v4  ;;  %809 = vmatmul.bf16.gmra.mxu0 %v1607_v1 }
  0xad   : > { %889 = vmatmul.bf16.gmra.mxu2 %v1735_v3  ;;  %v1623_v3 = vor.u32 %v1892_v59, %v1622_v58 }
  0xae   : > { %v1166_v9 = vadd.f32 %v2184_v5, %v1101_v8 }
  0xb0   : > { %v1230_v12 = vmax.f32 %v1166_v9, 0.0  ;;  %v2193_v13 = vpop.f32.mrf.mxu2  ;;  %v1751_v9 = vor.u32 %v1924_v62, %v1750_v61  ;;  %v1897_v61 = vld [vmem:[%s2059_s28 + $0xd4] sm:$0xf]  ;;  %v1648_v62 = vld [vmem:[%s2059_s28 + $0xd8] sm:$0xf0] }
  0xb1   : > { %v772_v14 = vpop.f32.mrf.mxu0  ;;  %v2202_v21 = vpop.f32.mrf.mxu3 }
  0xb2   : > { %v1294_v16 = vpack.c.bf16 %v1230_v12, %v1230_v12  ;;  %v942_v17 = vadd.f32 %v941_v49, %v772_v14  ;;  %v949_v18 = vpop.f32.mrf.mxu1 }
  0xb4   : > { %1359 = vst.msk [vmem:[%s2198_s23] sm:$0xf] %vm1358_vm1, %v1294_v16  ;;  %v1102_v22 = vmul.f32 %v2181_v0, %v942_v17 }
  0xb5   : > { %1846 = vmatmul.msk.bf16.gmra.mxu1 %vm664_vm0, %v1627_v15 }
  0xb6   : > { %v1167_v26 = vadd.f32 %v2184_v5, %v1102_v22  ;;  %1863 = vmatmul.msk.bf16.gmra.mxu3 %vm664_vm0, %v1763_v23 }
  0xb8   : > { %v1231_v29 = vmax.f32 %v1167_v26, 0.0  ;;  %v2213_v30 = vpop.f32.mrf.mxu2 }
  0xb9   : > { %v775_v32 = vpop.f32.mrf.mxu0  ;;  %v2216_v37 = vpop.f32.mrf.mxu3 }
  0xba   : > { %v1295_v34 = vpack.c.bf16 %v1231_v29, %v1231_v29  ;;  %v945_v35 = vadd.f32 %v944_v54, %v775_v32  ;;  %v951_v36 = vpop.f32.mrf.mxu1  ;;  %v1929_v32 = vld [vmem:[%s2059_s28 + $0x1d4] sm:$0xf] }
  0xbc   : > { %1360 = vst.msk [vmem:[%s2198_s23 + $0x4] sm:$0xf] %vm1358_vm1, %v1295_v34  ;;  %v1103_v38 = vmul.f32 %v2181_v0, %v945_v35  ;;  %814 = vmatmul.bf16.gmra.mxu0 %v1615_v31 }
  0xbd   : > { %894 = vmatmul.bf16.gmra.mxu2 %v1743_v33  ;;  %v1776_v33 = vld [vmem:[%s2059_s28 + $0x1d8] sm:$0xf0] }
  0xbe   : > { %v1168_v39 = vadd.f32 %v2184_v5, %v1103_v38  ;;  %v1779_v38 = vor.u32 %v1929_v32, %v1776_v33 }
  0xc0   : > { %v1232_v42 = vmax.f32 %v1168_v39, 0.0  ;;  %v855_v43 = vpop.f32.mrf.mxu2 }
  0xc1   : > { %v1025_v44 = vadd.f32 %v2165_v50, %v855_v43  ;;  %v777_v45 = vpop.f32.mrf.mxu0  ;;  %v2230_v54 = vpop.f32.mrf.mxu3  ;;  %v1771_v50 = vor.u32 %v1927_v51, %v1768_v52  ;;  %v1926_v43 = vld [vmem:[%s2059_s28 + $0x1b4] sm:$0xf0] }
  0xc2   : > { %v1296_v47 = vpack.c.bf16 %v1232_v42, %v1232_v42  ;;  %v947_v48 = vadd.f32 %v946_v6, %v777_v45  ;;  %v2225_v49 = vpop.f32.mrf.mxu1  ;;  %v1758_v42 = vld [vmem:[%s2059_s28 + $0x1b0] sm:$0xf] }
  0xc3   : > { %v1135_v53 = vmul.f32 %v2181_v0, %v1025_v44 }
  0xc4   : > { %1361 = vst.msk [vmem:[%s2198_s23 + $0x8] sm:$0xf] %vm1358_vm1, %v1296_v47  ;;  %v1104_v55 = vmul.f32 %v2181_v0, %v947_v48 }
  0xc5   : > { %v1200_v56 = vadd.f32 %v2184_v5, %v1135_v53  ;;  %1847 = vmatmul.msk.bf16.gmra.mxu1 %vm664_vm0, %v1635_v46  ;;  %v1759_v53 = vor.u32 %v1926_v43, %v1758_v42  ;;  %v1899_v42 = vld [vmem:[%s2059_s28 + $0xe4] sm:$0xf]  ;;  %v1656_v43 = vld [vmem:[%s2059_s28 + $0xe8] sm:$0xf0] }
  0xc6   : > { %v1169_v60 = vadd.f32 %v2184_v5, %v1104_v55  ;;  %1864 = vmatmul.msk.bf16.gmra.mxu3 %vm664_vm0, %v1771_v50 }
  0xc7   : > { %v1264_v63 = vmax.f32 %v1200_v56, 0.0 }
  0xc8   : > { %v1233_v1 = vmax.f32 %v1169_v60, 0.0  ;;  %v857_v2 = vpop.f32.mrf.mxu2 }
  0xc9   : > { %v1328_v4 = vpack.c.bf16 %v1264_v63, %v1264_v63  ;;  %v1027_v6 = vadd.f32 %v2171_v57, %v857_v2  ;;  %v780_v8 = vpop.f32.mrf.mxu0  ;;  %v2249_v15 = vpop.f32.mrf.mxu3 }
  0xca   : > { %v1297_v10 = vpack.c.bf16 %v1233_v1, %v1233_v1  ;;  %v950_v11 = vadd.f32 %v949_v18, %v780_v8  ;;  %v2244_v12 = vpop.f32.mrf.mxu1  ;;  %v1895_v18 = vld [vmem:[%s2059_s28 + $0xc4] sm:$0xf]  ;;  %v1651_v8 = vor.u32 %v1897_v61, %v1648_v62 }
  0xcb   : > { %1393 = vst.msk [vmem:[%s2198_s23 + $0x88] sm:$0xf] %vm1358_vm1, %v1328_v4  ;;  %v1136_v14 = vmul.f32 %v2181_v0, %v1027_v6  ;;  %v1643_v27 = vor.u32 %v1895_v18, %v1640_v19 }
  0xcc   : > { %1362 = vst.msk [vmem:[%s2198_s23 + $0xc] sm:$0xf] %vm1358_vm1, %v1297_v10  ;;  %v1105_v16 = vmul.f32 %v2181_v0, %v950_v11  ;;  %819 = vmatmul.bf16.gmra.mxu0 %v1623_v3 }
  0xcd   : > { %v1201_v57 = vadd.f32 %v2184_v5, %v1136_v14  ;;  %899 = vmatmul.bf16.gmra.mxu2 %v1751_v9  ;;  %v1931_v14 = vld [vmem:[%s2059_s28 + $0x1e4] sm:$0xf] }
  0xce   : > { %v1170_v17 = vadd.f32 %v2184_v5, %v1105_v16  ;;  %v1784_v16 = vld [vmem:[%s2059_s28 + $0x1e8] sm:$0xf0] }
  0xcf   : > { %v1265_v20 = vmax.f32 %v1201_v57, 0.0  ;;  %v1787_v18 = vor.u32 %v1931_v14, %v1784_v16 }
  0xd0   : > { %v1234_v22 = vmax.f32 %v1170_v17, 0.0  ;;  %v860_v23 = vpop.f32.mrf.mxu2 }
  0xd1   : > { %v1329_v24 = vpack.c.bf16 %v1265_v20, %v1265_v20  ;;  %v1030_v25 = vadd.f32 %v2186_v7, %v860_v23  ;;  %v782_v26 = vpop.f32.mrf.mxu0  ;;  %v2266_v35 = vpop.f32.mrf.mxu3  ;;  %v1896_v20 = vld [vmem:[%s2059_s28 + $0xc4] sm:$0xf0]  ;;  %v1766_v23 = vld [vmem:[%s2059_s28 + $0x1c0] sm:$0xf] }
  0xd2   : > { %v1298_v28 = vpack.c.bf16 %v1234_v22, %v1234_v22  ;;  %v952_v29 = vadd.f32 %v951_v36, %v782_v26  ;;  %v2259_v31 = vpop.f32.mrf.mxu1  ;;  %v1630_v36 = vld [vmem:[%s2059_s28 + $0xb0] sm:$0xf] }
  0xd3   : > { %1394 = vst.msk [vmem:[%s2198_s23 + $0x8c] sm:$0xf] %vm1358_vm1, %v1329_v24  ;;  %v1137_v34 = vmul.f32 %v2181_v0, %v1030_v25  ;;  %v1631_v47 = vor.u32 %v1894_v40, %v1630_v36  ;;  %v1928_v24 = vld [vmem:[%s2059_s28 + $0x1c4] sm:$0xf0] }
  0xd4   : > { %1363 = vst.msk [vmem:[%s2198_s23 + $0x10] sm:$0xf] %vm1358_vm1, %v1298_v28  ;;  %v1106_v7 = vmul.f32 %v2181_v0, %v952_v29 }
  0xd5   : > { %v1202_v39 = vadd.f32 %v2184_v5, %v1137_v34  ;;  %1848 = vmatmul.msk.bf16.gmra.mxu1 %vm664_vm0, %v1643_v27  ;;  %v1767_v34 = vor.u32 %v1928_v24, %v1766_v23  ;;  %v1901_v23 = vld [vmem:[%s2059_s28 + $0xf4] sm:$0xf] }
  0xd6   : > { %v1171_v41 = vadd.f32 %v2184_v5, %v1106_v7  ;;  %1865 = vmatmul.msk.bf16.gmra.mxu3 %vm664_vm0, %v1779_v38 }
  0xd7   : > { %v1266_v44 = vmax.f32 %v1202_v39, 0.0 }
  0xd8   : > { %v1235_v45 = vmax.f32 %v1171_v41, 0.0  ;;  %v862_v46 = vpop.f32.mrf.mxu2 }
  0xd9   : > { %v1330_v48 = vpack.c.bf16 %v1266_v44, %v1266_v44  ;;  %v1032_v51 = vadd.f32 %v2202_v21, %v862_v46  ;;  %v785_v52 = vpop.f32.mrf.mxu0  ;;  %v2286_v59 = vpop.f32.mrf.mxu3 }
  0xda   : > { %v1299_v55 = vpack.c.bf16 %v1235_v45, %v1235_v45  ;;  %v955_v50 = vadd.f32 %v2225_v49, %v785_v52  ;;  %v2281_v56 = vpop.f32.mrf.mxu1  ;;  %v1659_v52 = vor.u32 %v1899_v42, %v1656_v43  ;;  %v1932_v43 = vld [vmem:[%s2059_s28 + $0x1e4] sm:$0xf0] }
  0xdb   : > { %1395 = vst.msk [vmem:[%s2198_s23 + $0x90] sm:$0xf] %vm1358_vm1, %v1330_v48  ;;  %v1138_v58 = vmul.f32 %v2181_v0, %v1032_v51 }
  0xdc   : > { %1364 = vst.msk [vmem:[%s2198_s23 + $0x14] sm:$0xf] %vm1358_vm1, %v1299_v55  ;;  %v1107_v60 = vmul.f32 %v2181_v0, %v955_v50  ;;  %824 = vmatmul.bf16.gmra.mxu0 %v1631_v47 }
  0xdd   : > { %v1203_v21 = vadd.f32 %v2184_v5, %v1138_v58  ;;  %904 = vmatmul.bf16.gmra.mxu2 %v1759_v53  ;;  %v1933_v58 = vld [vmem:[%s2059_s28 + $0x1f4] sm:$0xf] }
  0xde   : > { %v1172_v49 = vadd.f32 %v2184_v5, %v1107_v60  ;;  %v1792_v60 = vld [vmem:[%s2059_s28 + $0x1f8] sm:$0xf0] }
  0xdf   : > { %v1267_v63 = vmax.f32 %v1203_v21, 0.0  ;;  %v1795_v61 = vor.u32 %v1933_v58, %v1792_v60 }
  0xe0   : > { %v1236_v1 = vmax.f32 %v1172_v49, 0.0  ;;  %v865_v2 = vpop.f32.mrf.mxu2 }
  0xe1   : > { %v1331_v3 = vpack.c.bf16 %v1267_v63, %v1267_v63  ;;  %v1035_v4 = vadd.f32 %v2216_v37, %v865_v2  ;;  %v787_v6 = vpop.f32.mrf.mxu0  ;;  %v2304_v17 = vpop.f32.mrf.mxu3  ;;  %v1898_v63 = vld [vmem:[%s2059_s28 + $0xd4] sm:$0xf0]  ;;  %v1774_v2 = vld [vmem:[%s2059_s28 + $0x1d0] sm:$0xf] }
  0xe2   : > { %v1300_v9 = vpack.c.bf16 %v1236_v1, %v1236_v1  ;;  %v957_v10 = vadd.f32 %v2244_v12, %v787_v6  ;;  %v2297_v11 = vpop.f32.mrf.mxu1  ;;  %v1638_v12 = vld [vmem:[%s2059_s28 + $0xc0] sm:$0xf] }
  0xe3   : > { %1396 = vst.msk [vmem:[%s2198_s23 + $0x94] sm:$0xf] %vm1358_vm1, %v1331_v3  ;;  %v1139_v57 = vmul.f32 %v2181_v0, %v1035_v4  ;;  %v1639_v28 = vor.u32 %v1896_v20, %v1638_v12  ;;  %v1930_v3 = vld [vmem:[%s2059_s28 + $0x1d4] sm:$0xf0] }
  0xe4   : > { %1365 = vst.msk [vmem:[%s2198_s23 + $0x18] sm:$0xf] %vm1358_vm1, %v1300_v9  ;;  %v1108_v37 = vmul.f32 %v2181_v0, %v957_v10 }
  0xe5   : > { %v1204_v19 = vadd.f32 %v2184_v5, %v1139_v57  ;;  %1849 = vmatmul.msk.bf16.gmra.mxu1 %vm664_vm0, %v1651_v8  ;;  %v1775_v57 = vor.u32 %v1930_v3, %v1774_v2 }
  0xe6   : > { %v1173_v22 = vadd.f32 %v2184_v5, %v1108_v37  ;;  %1866 = vmatmul.msk.bf16.gmra.mxu3 %vm664_vm0, %v1787_v18 }
  0xe7   : > { %v1268_v25 = vmax.f32 %v1204_v19, 0.0 }
  0xe8   : > { %v1237_v26 = vmax.f32 %v1173_v22, 0.0  ;;  %v867_v27 = vpop.f32.mrf.mxu2 }
  0xe9   : > { %v1332_v29 = vpack.c.bf16 %v1268_v25, %v1268_v25  ;;  %v1037_v32 = vadd.f32 %v2230_v54, %v867_v27  ;;  %v790_v33 = vpop.f32.mrf.mxu0  ;;  %v2324_v40 = vpop.f32.mrf.mxu3 }
  0xea   : > { %v1301_v7 = vpack.c.bf16 %v1237_v26, %v1237_v26  ;;  %v960_v38 = vadd.f32 %v2259_v31, %v790_v33  ;;  %v2319_v39 = vpop.f32.mrf.mxu1 }
  0xeb   : > { %1397 = vst.msk [vmem:[%s2198_s23 + $0x98] sm:$0xf] %vm1358_vm1, %v1332_v29  ;;  %v1140_v36 = vmul.f32 %v2181_v0, %v1037_v32 }
  0xec   : > { %1366 = vst.msk [vmem:[%s2198_s23 + $0x1c] sm:$0xf] %vm1358_vm1, %v1301_v7  ;;  %v1109_v41 = vmul.f32 %v2181_v0, %v960_v38  ;;  %829 = vmatmul.bf16.gmra.mxu0 %v1639_v28 }
  0xed   : > { %v1205_v54 = vadd.f32 %v2184_v5, %v1140_v36  ;;  %909 = vmatmul.bf16.gmra.mxu2 %v1767_v34 }
  0xee   : > { %v1174_v31 = vadd.f32 %v2184_v5, %v1109_v41 }
  0xef   : > { %v1269_v44 = vmax.f32 %v1205_v54, 0.0 }
  0xf0   : > { %v1238_v45 = vmax.f32 %v1174_v31, 0.0  ;;  %v870_v46 = vpop.f32.mrf.mxu2  ;;  %v1900_v31 = vld [vmem:[%s2059_s28 + $0xe4] sm:$0xf0] }
  0xf1   : > { %v1333_v47 = vpack.c.bf16 %v1269_v44, %v1269_v44  ;;  %v1040_v48 = vadd.f32 %v2249_v15, %v870_v46  ;;  %v792_v51 = vpop.f32.mrf.mxu0  ;;  %v2345_v49 = vpop.f32.mrf.mxu3 }
  0xf2   : > { %v1302_v53 = vpack.c.bf16 %v1238_v45, %v1238_v45  ;;  %v962_v55 = vadd.f32 %v2281_v56, %v792_v51  ;;  %v2335_v50 = vpop.f32.mrf.mxu1  ;;  %v1646_v56 = vld [vmem:[%s2059_s28 + $0xd0] sm:$0xf] }
  0xf3   : > { %1398 = vst.msk [vmem:[%s2198_s23 + $0x9c] sm:$0xf] %vm1358_vm1, %v1333_v47  ;;  %v1141_v21 = vmul.f32 %v2181_v0, %v1040_v48  ;;  %v1647_v9 = vor.u32 %v1898_v63, %v1646_v56  ;;  %v1903_v56 = vld [vmem:[%s2059_s28 + $0x104] sm:$0xf]  ;;  %v1672_v63 = vld [vmem:[%s2059_s28 + $0x108] sm:$0xf0] }
  0xf4   : > { %1367 = vst.msk [vmem:[%s2198_s23 + $0x20] sm:$0xf] %vm1358_vm1, %v1302_v53  ;;  %v1110_v15 = vmul.f32 %v2181_v0, %v962_v55 }
  0xf5   : > { %v1206_v62 = vadd.f32 %v2184_v5, %v1141_v21  ;;  %1850 = vmatmul.msk.bf16.gmra.mxu1 %vm664_vm0, %v1659_v52 }
  0xf6   : > { %v1175_v1 = vadd.f32 %v2184_v5, %v1110_v15  ;;  %1867 = vmatmul.msk.bf16.gmra.mxu3 %vm664_vm0, %v1795_v61 }
  0xf7   : > { %v1270_v4 = vmax.f32 %v1206_v62, 0.0 }
  0xf8   : > { %v1239_v6 = vmax.f32 %v1175_v1, 0.0  ;;  %v872_v8 = vpop.f32.mrf.mxu2 }
  0xf9   : > { %v1334_v10 = vpack.c.bf16 %v1270_v4, %v1270_v4  ;;  %v1042_v14 = vadd.f32 %v2266_v35, %v872_v8  ;;  %v795_v16 = vpop.f32.mrf.mxu0  ;;  %v2369_v24 = vpop.f32.mrf.mxu3  ;;  %v1675_v8 = vor.u32 %v1903_v56, %v1672_v63 }
  0xfa   : > { %v1303_v37 = vpack.c.bf16 %v1239_v6, %v1239_v6  ;;  %v965_v18 = vadd.f32 %v2297_v11, %v795_v16  ;;  %v2357_v19 = vpop.f32.mrf.mxu1  ;;  %v1664_v11 = vld [vmem:[%s2059_s28 + $0xf8] sm:$0xf0] }
  0xfb   : > { %1399 = vst.msk [vmem:[%s2198_s23 + $0xa0] sm:$0xf] %vm1358_vm1, %v1334_v10  ;;  %v1142_v12 = vmul.f32 %v2181_v0, %v1042_v14  ;;  %v1667_v33 = vor.u32 %v1901_v23, %v1664_v11 }
  0xfc   : > { %1368 = vst.msk [vmem:[%s2198_s23 + $0x24] sm:$0xf] %vm1358_vm1, %v1303_v37  ;;  %v1111_v20 = vmul.f32 %v2181_v0, %v965_v18  ;;  %834 = vmatmul.bf16.gmra.mxu0 %v1647_v9  ;;  %v1662_v18 = vld [vmem:[%s2059_s28 + $0xf0] sm:$0xf] }
  0xfd   : > { %v1207_v22 = vadd.f32 %v2184_v5, %v1142_v12  ;;  %914 = vmatmul.bf16.gmra.mxu2 %v1775_v57  ;;  %v1902_v12 = vld [vmem:[%s2059_s28 + $0xf4] sm:$0xf0] }
  0xfe   : > { %v1176_v35 = vadd.f32 %v2184_v5, %v1111_v20  ;;  %v1790_v20 = vld [vmem:[%s2059_s28 + $0x1f0] sm:$0xf] }
  0xff   : > { %v1271_v25 = vmax.f32 %v1207_v22, 0.0  ;;  %v1934_v22 = vld [vmem:[%s2059_s28 + $0x1f4] sm:$0xf0] }
 0x100   : > { %v1240_v26 = vmax.f32 %v1176_v35, 0.0  ;;  %v875_v27 = vpop.f32.mrf.mxu2 }
 0x101   : > { %v1335_v28 = vpack.c.bf16 %v1271_v25, %v1271_v25  ;;  %v1045_v29 = vadd.f32 %v2286_v59, %v875_v27  ;;  %v797_v32 = vpop.f32.mrf.mxu0  ;;  %v1654_v59 = vld [vmem:[%s2059_s28 + $0xe0] sm:$0xf]  ;;  %v2388_v48 = vpop.f32.mrf.mxu3  ;;  %v1663_v25 = vor.u32 %v1902_v12, %v1662_v18 }
 0x102   : > { %v1304_v34 = vpack.c.bf16 %v1240_v26, %v1240_v26  ;;  %v967_v7 = vadd.f32 %v2319_v39, %v797_v32  ;;  %v2373_v38 = vpop.f32.mrf.mxu1  ;;  %v1782_v39 = vld [vmem:[%s2059_s28 + $0x1e0] sm:$0xf]  ;;  %v1655_v47 = vor.u32 %v1900_v31, %v1654_v59 }
 0x103   : > { %1400 = vst.msk [vmem:[%s2198_s23 + $0xa4] sm:$0xf] %vm1358_vm1, %v1335_v28  ;;  %v1143_v36 = vmul.f32 %v2181_v0, %v1045_v29  ;;  %v1783_v55 = vor.u32 %v1932_v43, %v1782_v39  ;;  %v1791_v29 = vor.u32 %v1934_v22, %v1790_v20 }
 0x104   : > { %1369 = vst.msk [vmem:[%s2198_s23 + $0x28] sm:$0xf] %vm1358_vm1, %v1304_v34  ;;  %v1112_v41 = vmul.f32 %v2181_v0, %v967_v7 }
 0x105   : > { %v1208_v54 = vadd.f32 %v2184_v5, %v1143_v36  ;;  %1851 = vmatmul.msk.bf16.gmra.mxu1 %vm664_vm0, %v1667_v33 }
 0x106   : > { %v1177_v42 = vadd.f32 %v2184_v5, %v1112_v41 }
 0x107   : > { %v1272_v44 = vmax.f32 %v1208_v54, 0.0 }
 0x108   : > { %v1241_v45 = vmax.f32 %v1177_v42, 0.0  ;;  %v877_v46 = vpop.f32.mrf.mxu2 }
 0x109   : > { %v1336_v51 = vpack.c.bf16 %v1272_v44, %v1272_v44  ;;  %v1047_v52 = vadd.f32 %v2304_v17, %v877_v46  ;;  %v800_v53 = vpop.f32.mrf.mxu0  ;;  %v2404_v16 = vpop.f32.mrf.mxu3 }
 0x10a   : > { %v1305_v58 = vpack.c.bf16 %v1241_v45, %v1241_v45  ;;  %v970_v60 = vadd.f32 %v2335_v50, %v800_v53  ;;  %v976_v21 = vpop.f32.mrf.mxu1 }
 0x10b   : > { %1401 = vst.msk [vmem:[%s2198_s23 + $0xa8] sm:$0xf] %vm1358_vm1, %v1336_v51  ;;  %v1144_v15 = vmul.f32 %v2181_v0, %v1047_v52 }
 0x10c   : > { %1370 = vst.msk [vmem:[%s2198_s23 + $0x2c] sm:$0xf] %vm1358_vm1, %v1305_v58  ;;  %v1113_v61 = vmul.f32 %v2181_v0, %v970_v60  ;;  %839 = vmatmul.bf16.gmra.mxu0 %v1655_v47 }
 0x10d   : > { %v1209_v62 = vadd.f32 %v2184_v5, %v1144_v15  ;;  %919 = vmatmul.bf16.gmra.mxu2 %v1783_v55 }
 0x10e   : > { %v1178_v17 = vadd.f32 %v2184_v5, %v1113_v61 }
 0x10f   : > { %v1273_v50 = vmax.f32 %v1209_v62, 0.0 }
 0x110   : > { %v1242_v1 = vmax.f32 %v1178_v17, 0.0  ;;  %v880_v2 = vpop.f32.mrf.mxu2 }
 0x111   : > { %v1337_v3 = vpack.c.bf16 %v1273_v50, %v1273_v50  ;;  %v1050_v4 = vadd.f32 %v2324_v40, %v880_v2  ;;  %v802_v6 = vpop.f32.mrf.mxu0  ;;  %v1061_v41 = vpop.f32.mrf.mxu3 }
 0x112   : > { %v1306_v9 = vpack.c.bf16 %v1242_v1, %v1242_v1  ;;  %v972_v10 = vadd.f32 %v2357_v19, %v802_v6  ;;  %v979_v14 = vpop.f32.mrf.mxu1 }
 0x113   : > { %1402 = vst.msk [vmem:[%s2198_s23 + $0xac] sm:$0xf] %vm1358_vm1, %v1337_v3  ;;  %v1145_v57 = vmul.f32 %v2181_v0, %v1050_v4 }
 0x114   : > { %1371 = vst.msk [vmem:[%s2198_s23 + $0x30] sm:$0xf] %vm1358_vm1, %v1306_v9  ;;  %v1114_v37 = vmul.f32 %v2181_v0, %v972_v10 }
 0x115   : > { %v1210_v40 = vadd.f32 %v2184_v5, %v1145_v57  ;;  %1852 = vmatmul.msk.bf16.gmra.mxu1 %vm664_vm0, %v1675_v8 }
 0x116   : > { %v1179_v19 = vadd.f32 %v2184_v5, %v1114_v37 }
 0x117   : > { %v1274_v35 = vmax.f32 %v1210_v40, 0.0 }
 0x118   : > { %v1243_v23 = vmax.f32 %v1179_v19, 0.0  ;;  %v882_v11 = vpop.f32.mrf.mxu2 }
 0x119   : > { %v1338_v26 = vpack.c.bf16 %v1274_v35, %v1274_v35  ;;  %v1052_v27 = vadd.f32 %v2345_v49, %v882_v11  ;;  %v805_v28 = vpop.f32.mrf.mxu0  ;;  %v1064_v55 = vpop.f32.mrf.mxu3 }
 0x11a   : > { %v1307_v32 = vpack.c.bf16 %v1243_v23, %v1243_v23  ;;  %v975_v33 = vadd.f32 %v2373_v38, %v805_v28  ;;  %v981_v34 = vpop.f32.mrf.mxu1 }
 0x11b   : > { %1403 = vst.msk [vmem:[%s2198_s23 + $0xb0] sm:$0xf] %vm1358_vm1, %v1338_v26  ;;  %v1146_v7 = vmul.f32 %v2181_v0, %v1052_v27 }
 0x11c   : > { %1372 = vst.msk [vmem:[%s2198_s23 + $0x34] sm:$0xf] %vm1358_vm1, %v1307_v32  ;;  %v1115_v36 = vmul.f32 %v2181_v0, %v975_v33  ;;  %844 = vmatmul.bf16.gmra.mxu0 %v1663_v25 }
 0x11d   : > { %v1211_v49 = vadd.f32 %v2184_v5, %v1146_v7  ;;  %924 = vmatmul.bf16.gmra.mxu2 %v1791_v29 }
 0x11e   : > { %v1180_v54 = vadd.f32 %v2184_v5, %v1115_v36 }
 0x11f   : > { %v1275_v59 = vmax.f32 %v1211_v49, 0.0 }
 0x120   : > { %v1244_v38 = vmax.f32 %v1180_v54, 0.0  ;;  %v885_v31 = vpop.f32.mrf.mxu2 }
 0x121   : > { %v1339_v42 = vpack.c.bf16 %v1275_v59, %v1275_v59  ;;  %v1055_v39 = vadd.f32 %v2369_v24, %v885_v31  ;;  %v807_v43 = vpop.f32.mrf.mxu0  ;;  %v1066_v6 = vpop.f32.mrf.mxu3 }
 0x122   : > { %v1308_v44 = vpack.c.bf16 %v1244_v38, %v1244_v38  ;;  %v977_v45 = vadd.f32 %v976_v21, %v807_v43  ;;  %v984_v46 = vpop.f32.mrf.mxu1 }
 0x123   : > { %1404 = vst.msk [vmem:[%s2198_s23 + $0xb4] sm:$0xf] %vm1358_vm1, %v1339_v42  ;;  %v1147_v47 = vmul.f32 %v2181_v0, %v1055_v39 }
 0x124   : > { %1373 = vst.msk [vmem:[%s2198_s23 + $0x38] sm:$0xf] %vm1358_vm1, %v1308_v44  ;;  %v1116_v51 = vmul.f32 %v2181_v0, %v977_v45 }
 0x125   : > { %v1212_v52 = vadd.f32 %v2184_v5, %v1147_v47 }
 0x126   : > { %v1181_v53 = vadd.f32 %v2184_v5, %v1116_v51 }
 0x127   : > { %v1276_v24 = vmax.f32 %v1212_v52, 0.0 }
 0x128   : > { %v1245_v58 = vmax.f32 %v1181_v53, 0.0  ;;  %v887_v60 = vpop.f32.mrf.mxu2 }
 0x129   : > { %v1340_v21 = vpack.c.bf16 %v1276_v24, %v1276_v24  ;;  %v1057_v15 = vadd.f32 %v2388_v48, %v887_v60  ;;  %v810_v61 = vpop.f32.mrf.mxu0  ;;  %v1069_v28 = vpop.f32.mrf.mxu3 }
 0x12a   : > { %v1309_v62 = vpack.c.bf16 %v1245_v58, %v1245_v58  ;;  %v980_v17 = vadd.f32 %v979_v14, %v810_v61  ;;  %v986_v56 = vpop.f32.mrf.mxu1 }
 0x12b   : > { %1405 = vst.msk [vmem:[%s2198_s23 + $0xb8] sm:$0xf] %vm1358_vm1, %v1340_v21  ;;  %v1148_v63 = vmul.f32 %v2181_v0, %v1057_v15 }
 0x12c   : > { %1374 = vst.msk [vmem:[%s2198_s23 + $0x3c] sm:$0xf] %vm1358_vm1, %v1309_v62  ;;  %v1117_v50 = vmul.f32 %v2181_v0, %v980_v17 }
 0x12d   : > { %v1213_v1 = vadd.f32 %v2184_v5, %v1148_v63 }
 0x12e   : > { %v1182_v2 = vadd.f32 %v2184_v5, %v1117_v50 }
 0x12f   : > { %v1277_v3 = vmax.f32 %v1213_v1, 0.0 }
 0x130   : > { %v1246_v48 = vmax.f32 %v1182_v2, 0.0  ;;  %v890_v4 = vpop.f32.mrf.mxu2 }
 0x131   : > { %v1341_v8 = vpack.c.bf16 %v1277_v3, %v1277_v3  ;;  %v1060_v9 = vadd.f32 %v2404_v16, %v890_v4  ;;  %v812_v10 = vpop.f32.mrf.mxu0  ;;  %v1071_v44 = vpop.f32.mrf.mxu3 }
 0x132   : > { %v1310_v14 = vpack.c.bf16 %v1246_v48, %v1246_v48  ;;  %v982_v57 = vadd.f32 %v981_v34, %v812_v10  ;;  %v989_v37 = vpop.f32.mrf.mxu1 }
 0x133   : > { %1406 = vst.msk [vmem:[%s2198_s23 + $0xbc] sm:$0xf] %vm1358_vm1, %v1341_v8  ;;  %v1149_v40 = vmul.f32 %v2181_v0, %v1060_v9 }
 0x134   : > { %1375 = vst.msk [vmem:[%s2198_s23 + $0x40] sm:$0xf] %vm1358_vm1, %v1310_v14  ;;  %v1118_v18 = vmul.f32 %v2181_v0, %v982_v57 }
 0x135   : > { %v1214_v12 = vadd.f32 %v2184_v5, %v1149_v40 }
 0x136   : > { %v1183_v19 = vadd.f32 %v2184_v5, %v1118_v18 }
 0x137   : > { %v1278_v20 = vmax.f32 %v1214_v12, 0.0 }
 0x138   : > { %v1247_v16 = vmax.f32 %v1183_v19, 0.0  ;;  %v892_v22 = vpop.f32.mrf.mxu2 }
 0x139   : > { %v1342_v35 = vpack.c.bf16 %v1278_v20, %v1278_v20  ;;  %v1062_v23 = vadd.f32 %v1061_v41, %v892_v22  ;;  %v815_v11 = vpop.f32.mrf.mxu0 }
 0x13a   : > { %v1311_v25 = vpack.c.bf16 %v1247_v16, %v1247_v16  ;;  %v985_v26 = vadd.f32 %v984_v46, %v815_v11  ;;  %v991_v27 = vpop.f32.mrf.mxu1 }
 0x13b   : > { %1407 = vst.msk [vmem:[%s2198_s23 + $0xc0] sm:$0xf] %vm1358_vm1, %v1342_v35  ;;  %v1150_v29 = vmul.f32 %v2181_v0, %v1062_v23 }
 0x13c   : > { %1376 = vst.msk [vmem:[%s2198_s23 + $0x44] sm:$0xf] %vm1358_vm1, %v1311_v25  ;;  %v1119_v32 = vmul.f32 %v2181_v0, %v985_v26 }
 0x13d   : > { %v1215_v33 = vadd.f32 %v2184_v5, %v1150_v29 }
 0x13e   : > { %v1184_v34 = vadd.f32 %v2184_v5, %v1119_v32 }
 0x13f   : > { %v1279_v7 = vmax.f32 %v1215_v33, 0.0 }
 0x140   : > { %v1248_v36 = vmax.f32 %v1184_v34, 0.0  ;;  %v895_v41 = vpop.f32.mrf.mxu2 }
 0x141   : > { %v1343_v49 = vpack.c.bf16 %v1279_v7, %v1279_v7  ;;  %v1065_v54 = vadd.f32 %v1064_v55, %v895_v41  ;;  %v817_v59 = vpop.f32.mrf.mxu0 }
 0x142   : > { %v1312_v38 = vpack.c.bf16 %v1248_v36, %v1248_v36  ;;  %v987_v31 = vadd.f32 %v986_v56, %v817_v59  ;;  %v994_v42 = vpop.f32.mrf.mxu1  ;;  %v1074_v56 = vpop.f32.mrf.mxu3 }
 0x143   : > { %1408 = vst.msk [vmem:[%s2198_s23 + $0xc4] sm:$0xf] %vm1358_vm1, %v1343_v49  ;;  %v1151_v39 = vmul.f32 %v2181_v0, %v1065_v54 }
 0x144   : > { %1377 = vst.msk [vmem:[%s2198_s23 + $0x48] sm:$0xf] %vm1358_vm1, %v1312_v38  ;;  %v1120_v43 = vmul.f32 %v2181_v0, %v987_v31 }
 0x145   : > { %v1216_v45 = vadd.f32 %v2184_v5, %v1151_v39 }
 0x146   : > { %v1185_v46 = vadd.f32 %v2184_v5, %v1120_v43 }
 0x147   : > { %v1280_v47 = vmax.f32 %v1216_v45, 0.0 }
 0x148   : > { %v1249_v51 = vmax.f32 %v1185_v46, 0.0  ;;  %v897_v52 = vpop.f32.mrf.mxu2 }
 0x149   : > { %v1344_v53 = vpack.c.bf16 %v1280_v47, %v1280_v47  ;;  %v1067_v55 = vadd.f32 %v1066_v6, %v897_v52  ;;  %v820_v24 = vpop.f32.mrf.mxu0 }
 0x14a   : > { %v1313_v58 = vpack.c.bf16 %v1249_v51, %v1249_v51  ;;  %v990_v60 = vadd.f32 %v989_v37, %v820_v24  ;;  %v996_v21 = vpop.f32.mrf.mxu1  ;;  %v1076_v12 = vpop.f32.mrf.mxu3 }
 0x14b   : > { %1409 = vst.msk [vmem:[%s2198_s23 + $0xc8] sm:$0xf] %vm1358_vm1, %v1344_v53  ;;  %v1152_v15 = vmul.f32 %v2181_v0, %v1067_v55 }
 0x14c   : > { %1378 = vst.msk [vmem:[%s2198_s23 + $0x4c] sm:$0xf] %vm1358_vm1, %v1313_v58  ;;  %v1121_v61 = vmul.f32 %v2181_v0, %v990_v60 }
 0x14d   : > { %v1217_v62 = vadd.f32 %v2184_v5, %v1152_v15 }
 0x14e   : > { %v1186_v17 = vadd.f32 %v2184_v5, %v1121_v61 }
 0x14f   : > { %v1281_v63 = vmax.f32 %v1217_v62, 0.0 }
 0x150   : > { %v1250_v50 = vmax.f32 %v1186_v17, 0.0  ;;  %v900_v1 = vpop.f32.mrf.mxu2 }
 0x151   : > { %v1345_v2 = vpack.c.bf16 %v1281_v63, %v1281_v63  ;;  %v1070_v3 = vadd.f32 %v1069_v28, %v900_v1  ;;  %v822_v48 = vpop.f32.mrf.mxu0 }
 0x152   : > { %v1314_v4 = vpack.c.bf16 %v1250_v50, %v1250_v50  ;;  %v992_v6 = vadd.f32 %v991_v27, %v822_v48  ;;  %v999_v8 = vpop.f32.mrf.mxu1  ;;  %v1079_v54 = vpop.f32.mrf.mxu3 }
 0x153   : > { %1410 = vst.msk [vmem:[%s2198_s23 + $0xcc] sm:$0xf] %vm1358_vm1, %v1345_v2  ;;  %v1153_v9 = vmul.f32 %v2181_v0, %v1070_v3 }
 0x154   : > { %1379 = vst.msk [vmem:[%s2198_s23 + $0x50] sm:$0xf] %vm1358_vm1, %v1314_v4  ;;  %v1122_v10 = vmul.f32 %v2181_v0, %v992_v6 }
 0x155   : > { %v1218_v14 = vadd.f32 %v2184_v5, %v1153_v9 }
 0x156   : > { %v1187_v57 = vadd.f32 %v2184_v5, %v1122_v10 }
 0x157   : > { %v1282_v37 = vmax.f32 %v1218_v14, 0.0 }
 0x158   : > { %v1251_v40 = vmax.f32 %v1187_v57, 0.0  ;;  %v902_v18 = vpop.f32.mrf.mxu2 }
 0x159   : > { %v1346_v19 = vpack.c.bf16 %v1282_v37, %v1282_v37  ;;  %v1072_v20 = vadd.f32 %v1071_v44, %v902_v18  ;;  %v825_v16 = vpop.f32.mrf.mxu0 }
 0x15a   : > { %v1315_v22 = vpack.c.bf16 %v1251_v40, %v1251_v40  ;;  %v995_v35 = vadd.f32 %v994_v42, %v825_v16  ;;  %v1001_v23 = vpop.f32.mrf.mxu1  ;;  %v1081_v58 = vpop.f32.mrf.mxu3 }
 0x15b   : > { %1411 = vst.msk [vmem:[%s2198_s23 + $0xd0] sm:$0xf] %vm1358_vm1, %v1346_v19  ;;  %v1154_v11 = vmul.f32 %v2181_v0, %v1072_v20 }
 0x15c   : > { %1380 = vst.msk [vmem:[%s2198_s23 + $0x54] sm:$0xf] %vm1358_vm1, %v1315_v22  ;;  %v1123_v25 = vmul.f32 %v2181_v0, %v995_v35 }
 0x15d   : > { %v1219_v26 = vadd.f32 %v2184_v5, %v1154_v11 }
 0x15e   : > { %v1188_v27 = vadd.f32 %v2184_v5, %v1123_v25 }
 0x15f   : > { %v1283_v28 = vmax.f32 %v1219_v26, 0.0 }
 0x160   : > { %v1252_v29 = vmax.f32 %v1188_v27, 0.0  ;;  %v905_v32 = vpop.f32.mrf.mxu2 }
 0x161   : > { %v1347_v33 = vpack.c.bf16 %v1283_v28, %v1283_v28  ;;  %v1075_v34 = vadd.f32 %v1074_v56, %v905_v32  ;;  %v827_v7 = vpop.f32.mrf.mxu0 }
 0x162   : > { %v1316_v36 = vpack.c.bf16 %v1252_v29, %v1252_v29  ;;  %v997_v41 = vadd.f32 %v996_v21, %v827_v7  ;;  %v1004_v49 = vpop.f32.mrf.mxu1 }
 0x163   : > { %1412 = vst.msk [vmem:[%s2198_s23 + $0xd4] sm:$0xf] %vm1358_vm1, %v1347_v33  ;;  %v1155_v59 = vmul.f32 %v2181_v0, %v1075_v34 }
 0x164   : > { %1381 = vst.msk [vmem:[%s2198_s23 + $0x58] sm:$0xf] %vm1358_vm1, %v1316_v36  ;;  %v1124_v38 = vmul.f32 %v2181_v0, %v997_v41 }
 0x165   : > { %v1220_v31 = vadd.f32 %v2184_v5, %v1155_v59 }
 0x166   : > { %v1189_v42 = vadd.f32 %v2184_v5, %v1124_v38 }
 0x167   : > { %v1284_v39 = vmax.f32 %v1220_v31, 0.0 }
 0x168   : > { %v1253_v43 = vmax.f32 %v1189_v42, 0.0  ;;  %v907_v44 = vpop.f32.mrf.mxu2 }
 0x169   : > { %v1348_v45 = vpack.c.bf16 %v1284_v39, %v1284_v39  ;;  %v1077_v46 = vadd.f32 %v1076_v12, %v907_v44  ;;  %v830_v47 = vpop.f32.mrf.mxu0 }
 0x16a   : > { %v1317_v51 = vpack.c.bf16 %v1253_v43, %v1253_v43  ;;  %v1000_v52 = vadd.f32 %v999_v8, %v830_v47  ;;  %v1006_v53 = vpop.f32.mrf.mxu1  ;;  %v1084_v8 = vpop.f32.mrf.mxu3 }
 0x16b   : > { %1413 = vst.msk [vmem:[%s2198_s23 + $0xd8] sm:$0xf] %vm1358_vm1, %v1348_v45  ;;  %v1156_v55 = vmul.f32 %v2181_v0, %v1077_v46 }
 0x16c   : > { %1382 = vst.msk [vmem:[%s2198_s23 + $0x5c] sm:$0xf] %vm1358_vm1, %v1317_v51  ;;  %v1125_v24 = vmul.f32 %v2181_v0, %v1000_v52 }
 0x16d   : > { %v1221_v60 = vadd.f32 %v2184_v5, %v1156_v55 }
 0x16e   : > { %v1190_v21 = vadd.f32 %v2184_v5, %v1125_v24 }
 0x16f   : > { %v1285_v15 = vmax.f32 %v1221_v60, 0.0 }
 0x170   : > { %v1254_v61 = vmax.f32 %v1190_v21, 0.0  ;;  %v910_v62 = vpop.f32.mrf.mxu2 }
 0x171   : > { %v1349_v17 = vpack.c.bf16 %v1285_v15, %v1285_v15  ;;  %v1080_v56 = vadd.f32 %v1079_v54, %v910_v62  ;;  %v832_v63 = vpop.f32.mrf.mxu0 }
 0x172   : > { %v1318_v50 = vpack.c.bf16 %v1254_v61, %v1254_v61  ;;  %v1002_v1 = vadd.f32 %v1001_v23, %v832_v63  ;;  %v1009_v2 = vpop.f32.mrf.mxu1  ;;  %v1086_v26 = vpop.f32.mrf.mxu3 }
 0x173   : > { %1414 = vst.msk [vmem:[%s2198_s23 + $0xdc] sm:$0xf] %vm1358_vm1, %v1349_v17  ;;  %v1157_v3 = vmul.f32 %v2181_v0, %v1080_v56 }
 0x174   : > { %1383 = vst.msk [vmem:[%s2198_s23 + $0x60] sm:$0xf] %vm1358_vm1, %v1318_v50  ;;  %v1126_v48 = vmul.f32 %v2181_v0, %v1002_v1 }
 0x175   : > { %v1222_v4 = vadd.f32 %v2184_v5, %v1157_v3 }
 0x176   : > { %v1191_v6 = vadd.f32 %v2184_v5, %v1126_v48 }
 0x177   : > { %v1286_v9 = vmax.f32 %v1222_v4, 0.0 }
 0x178   : > { %v1255_v10 = vmax.f32 %v1191_v6, 0.0  ;;  %v912_v14 = vpop.f32.mrf.mxu2 }
 0x179   : > { %v1350_v57 = vpack.c.bf16 %v1286_v9, %v1286_v9  ;;  %v1082_v37 = vadd.f32 %v1081_v58, %v912_v14  ;;  %v835_v40 = vpop.f32.mrf.mxu0 }
 0x17a   : > { %v1319_v18 = vpack.c.bf16 %v1255_v10, %v1255_v10  ;;  %v1005_v12 = vadd.f32 %v1004_v49, %v835_v40  ;;  %v1011_v19 = vpop.f32.mrf.mxu1  ;;  %v1089_v44 = vpop.f32.mrf.mxu3 }
 0x17b   : > { %1415 = vst.msk [vmem:[%s2198_s23 + $0xe0] sm:$0xf] %vm1358_vm1, %v1350_v57  ;;  %v1158_v20 = vmul.f32 %v2181_v0, %v1082_v37 }
 0x17c   : > { %1384 = vst.msk [vmem:[%s2198_s23 + $0x64] sm:$0xf] %vm1358_vm1, %v1319_v18  ;;  %v1127_v16 = vmul.f32 %v2181_v0, %v1005_v12 }
 0x17d   : > { %v1223_v22 = vadd.f32 %v2184_v5, %v1158_v20 }
 0x17e   : > { %v1192_v35 = vadd.f32 %v2184_v5, %v1127_v16 }
 0x17f   : > { %v1287_v23 = vmax.f32 %v1223_v22, 0.0 }
 0x180   : > { %v1256_v11 = vmax.f32 %v1192_v35, 0.0  ;;  %v915_v25 = vpop.f32.mrf.mxu2 }
 0x181   : > { %v1351_v27 = vpack.c.bf16 %v1287_v23, %v1287_v23  ;;  %v1085_v28 = vadd.f32 %v1084_v8, %v915_v25  ;;  %v837_v29 = vpop.f32.mrf.mxu0 }
 0x182   : > { %v1320_v32 = vpack.c.bf16 %v1256_v11, %v1256_v11  ;;  %v1007_v33 = vadd.f32 %v1006_v53, %v837_v29  ;;  %v1014_v34 = vpop.f32.mrf.mxu1  ;;  %v1091_v50 = vpop.f32.mrf.mxu3 }
 0x183   : > { %1416 = vst.msk [vmem:[%s2198_s23 + $0xe4] sm:$0xf] %vm1358_vm1, %v1351_v27  ;;  %v1159_v7 = vmul.f32 %v2181_v0, %v1085_v28 }
 0x184   : > { %1385 = vst.msk [vmem:[%s2198_s23 + $0x68] sm:$0xf] %vm1358_vm1, %v1320_v32  ;;  %v1128_v36 = vmul.f32 %v2181_v0, %v1007_v33 }
 0x185   : > { %v1224_v41 = vadd.f32 %v2184_v5, %v1159_v7 }
 0x186   : > { %v1193_v49 = vadd.f32 %v2184_v5, %v1128_v36 }
 0x187   : > { %v1288_v54 = vmax.f32 %v1224_v41, 0.0 }
 0x188   : > { %v1257_v59 = vmax.f32 %v1193_v49, 0.0  ;;  %v917_v38 = vpop.f32.mrf.mxu2 }
 0x189   : > { %v1352_v31 = vpack.c.bf16 %v1288_v54, %v1288_v54  ;;  %v1087_v42 = vadd.f32 %v1086_v26, %v917_v38  ;;  %v840_v39 = vpop.f32.mrf.mxu0 }
 0x18a   : > { %v1321_v43 = vpack.c.bf16 %v1257_v59, %v1257_v59  ;;  %v1010_v45 = vadd.f32 %v1009_v2, %v840_v39  ;;  %v1016_v46 = vpop.f32.mrf.mxu1  ;;  %v1094_v23 = vpop.f32.mrf.mxu3 }
 0x18b   : > { %1417 = vst.msk [vmem:[%s2198_s23 + $0xe8] sm:$0xf] %vm1358_vm1, %v1352_v31  ;;  %v1160_v47 = vmul.f32 %v2181_v0, %v1087_v42 }
 0x18c   : > { %1386 = vst.msk [vmem:[%s2198_s23 + $0x6c] sm:$0xf] %vm1358_vm1, %v1321_v43  ;;  %v1129_v51 = vmul.f32 %v2181_v0, %v1010_v45 }
 0x18d   : > { %v1225_v52 = vadd.f32 %v2184_v5, %v1160_v47 }
 0x18e   : > { %v1194_v53 = vadd.f32 %v2184_v5, %v1129_v51 }
 0x18f   : > { %v1289_v55 = vmax.f32 %v1225_v52, 0.0 }
 0x190   : > { %v1258_v24 = vmax.f32 %v1194_v53, 0.0  ;;  %v920_v58 = vpop.f32.mrf.mxu2 }
 0x191   : > { %v1353_v60 = vpack.c.bf16 %v1289_v55, %v1289_v55  ;;  %v1090_v21 = vadd.f32 %v1089_v44, %v920_v58  ;;  %v842_v15 = vpop.f32.mrf.mxu0 }
 0x192   : > { %v1322_v61 = vpack.c.bf16 %v1258_v24, %v1258_v24  ;;  %v1012_v62 = vadd.f32 %v1011_v19, %v842_v15  ;;  %v1019_v17 = vpop.f32.mrf.mxu1  ;;  %v1096_v31 = vpop.f32.mrf.mxu3 }
 0x193   : > { %1418 = vst.msk [vmem:[%s2198_s23 + $0xec] sm:$0xf] %vm1358_vm1, %v1353_v60  ;;  %v1161_v56 = vmul.f32 %v2181_v0, %v1090_v21  ;;  %v1020_v63 = vadd.f32 %v1019_v17, %v2193_v13 }
 0x194   : > { %1387 = vst.msk [vmem:[%s2198_s23 + $0x70] sm:$0xf] %vm1358_vm1, %v1322_v61  ;;  %v1130_v1 = vmul.f32 %v2181_v0, %v1012_v62 }
 0x195   : > { %v1226_v2 = vadd.f32 %v2184_v5, %v1161_v56  ;;  %v1133_v3 = vmul.f32 %v2181_v0, %v1020_v63 }
 0x196   : > { %v1195_v48 = vadd.f32 %v2184_v5, %v1130_v1 }
 0x197   : > { %v1290_v4 = vmax.f32 %v1226_v2, 0.0  ;;  %v1198_v6 = vadd.f32 %v2184_v5, %v1133_v3 }
 0x198   : > { %v1259_v8 = vmax.f32 %v1195_v48, 0.0  ;;  %v922_v9 = vpop.f32.mrf.mxu2 }
 0x199   : > { %v1354_v13 = vpack.c.bf16 %v1290_v4, %v1290_v4  ;;  %v1262_v10 = vmax.f32 %v1198_v6, 0.0  ;;  %v1092_v14 = vadd.f32 %v1091_v50, %v922_v9  ;;  %v845_v57 = vpop.f32.mrf.mxu0 }
 0x19a   : > { %v1323_v37 = vpack.c.bf16 %v1259_v8, %v1259_v8  ;;  %v1015_v40 = vadd.f32 %v1014_v34, %v845_v57  ;;  %v1021_v18 = vpop.f32.mrf.mxu1 }
 0x19b   : > { %1419 = vst.msk [vmem:[%s2198_s23 + $0xf0] sm:$0xf] %vm1358_vm1, %v1354_v13  ;;  %v1326_v12 = vpack.c.bf16 %v1262_v10, %v1262_v10  ;;  %v1162_v19 = vmul.f32 %v2181_v0, %v1092_v14  ;;  %v1022_v20 = vadd.f32 %v1021_v18, %v2213_v30 }
 0x19c   : > { %1388 = vst.msk [vmem:[%s2198_s23 + $0x74] sm:$0xf] %vm1358_vm1, %v1323_v37  ;;  %v1131_v16 = vmul.f32 %v2181_v0, %v1015_v40 }
 0x19d   : > { %1391 = vst.msk [vmem:[%s2198_s23 + $0x80] sm:$0xf] %vm1358_vm1, %v1326_v12  ;;  %v1227_v22 = vadd.f32 %v2184_v5, %v1162_v19  ;;  %v1134_v35 = vmul.f32 %v2181_v0, %v1022_v20 }
 0x19e   : > { %v1196_v11 = vadd.f32 %v2184_v5, %v1131_v16 }
 0x19f   : > { %v1291_v25 = vmax.f32 %v1227_v22, 0.0  ;;  %v1199_v26 = vadd.f32 %v2184_v5, %v1134_v35 }
 0x1a0   : > { %v1260_v30 = vmax.f32 %v1196_v11, 0.0  ;;  %v925_v27 = vpop.f32.mrf.mxu2 }
 0x1a1   : > { %v1355_v28 = vpack.c.bf16 %v1291_v25, %v1291_v25  ;;  %v1263_v29 = vmax.f32 %v1199_v26, 0.0  ;;  %v1095_v32 = vadd.f32 %v1094_v23, %v925_v27  ;;  %v847_v33 = vpop.f32.mrf.mxu0 }
 0x1a2   : > { %v1324_v34 = vpack.c.bf16 %v1260_v30, %v1260_v30  ;;  %v1017_v7 = vadd.f32 %v1016_v46, %v847_v33 }
 0x1a3   : > { %1420 = vst.msk [vmem:[%s2198_s23 + $0xf4] sm:$0xf] %vm1358_vm1, %v1355_v28  ;;  %v1327_v36 = vpack.c.bf16 %v1263_v29, %v1263_v29  ;;  %v1163_v41 = vmul.f32 %v2181_v0, %v1095_v32 }
 0x1a4   : > { %1389 = vst.msk [vmem:[%s2198_s23 + $0x78] sm:$0xf] %vm1358_vm1, %v1324_v34  ;;  %v1132_v49 = vmul.f32 %v2181_v0, %v1017_v7 }
 0x1a5   : > { %1392 = vst.msk [vmem:[%s2198_s23 + $0x84] sm:$0xf] %vm1358_vm1, %v1327_v36  ;;  %v1228_v54 = vadd.f32 %v2184_v5, %v1163_v41 }
 0x1a6   : > { %v1197_v59 = vadd.f32 %v2184_v5, %v1132_v49 }
 0x1a7   : > { %v1292_v38 = vmax.f32 %v1228_v54, 0.0 }
 0x1a8   : > { %v1261_v42 = vmax.f32 %v1197_v59, 0.0  ;;  %v927_v39 = vpop.f32.mrf.mxu2 }
 0x1a9   : > { %v1356_v43 = vpack.c.bf16 %v1292_v38, %v1292_v38  ;;  %v1097_v44 = vadd.f32 %v1096_v31, %v927_v39 }
 0x1aa   : > { %v1325_v45 = vpack.c.bf16 %v1261_v42, %v1261_v42 }
 0x1ab   : > { %1421 = vst.msk [vmem:[%s2198_s23 + $0xf8] sm:$0xf] %vm1358_vm1, %v1356_v43  ;;  %v1164_v46 = vmul.f32 %v2181_v0, %v1097_v44 }
 0x1ac   : > { %1390 = vst.msk [vmem:[%s2198_s23 + $0x7c] sm:$0xf] %vm1358_vm1, %v1325_v45 }
 0x1ad   : > { %v1229_v47 = vadd.f32 %v2184_v5, %v1164_v46 }
 0x1af   : > { %v1293_v51 = vmax.f32 %v1229_v47, 0.0 }
 0x1b1   : > { %v1357_v52 = vpack.c.bf16 %v1293_v51, %v1293_v51 }
 0x1b3   : > { %1422 = vst.msk [vmem:[%s2198_s23 + $0xfc] sm:$0xf] %vm1358_vm1, %v1357_v52 }
 0x1b4 PF: > { %s13_s14 = sadd.s32 1, %s2001_s14   ;;  %s2599_s12 = smov %s1997_s13 }
 0x1b5   : > { %p10_p5 = scmp.ge.s32.totalorder %s13_s14, 18   ;;  %s2600_s13 = smov %s2602_s15 }
 0x1b7   :  { %12 = sbr.rel (!%p10_p5) target bundleno = 2 (0x2), region = 68 }

// kernel: _lambda_.17
= control target key start
LH: loop header
LB: loop body
LE: loop exit
PB: predicated region body
PF: predicated region fallthrough
CT: control target
= control target key end

     0   :  { %s1501_s12 = smov 0   ;;  %s1503_s13 = smov 0   ;;  %s1887_s0 = inlined_call_operand.vmem [shape: bf16[2048,80], index: 0, kind: input, shape index: {}]   ;;  %s1888_s1 = inlined_call_operand.vmem [shape: bf16[80,8], index: 1, kind: input, shape index: {}]   ;;  %s1889_s2 = inlined_call_operand.vmem [shape: f32[2,8], index: 2, kind: input, shape index: {}]   ;;  %s1890_s3 = inlined_call_operand.vmem [shape: bf16[2048,8], index: 3, kind: output, shape index: {}]  }
   0x1   :  { %s1505_s14 = smov 0  }
   0x2 LB: > { %s25_s15 = sadd.s32 1, %s1475_s13  ;;  %p1194_p0 = scmp.ge.s32.totalorder %s1479_s14, 1  ;;  %s1479_s14 = sphi %s1505_s14, %s13_s14   ;;  %s1475_s13 = sphi %s1503_s13, %s1892_s13   ;;  %s1471_s12 = sphi %s1501_s12, %s1891_s12  }
   0x3   : > { %p27_p1 = scmp.ge.s32.totalorder %s25_s15, 4  ;;  %p170_p2 = scmp.lt.s32.totalorder %s1479_s14, 5 }
   0x5   : > { %s1894_s15 = smov (%p27_p1, %s25_s15), 0  ;;  %p171_p3 = pnand %p1194_p0, %p170_p2 }
   0x6   : > { %s1195_s18 = sshll.u32 (!%p171_p3), %s1471_s12, 6 }
   0x7   : > { %174 = sbr.rel (%p171_p3) target bundleno = 295 (0x127), region = 32  ;;  %p206_p4 = scmp.lt.s32.totalorder (!%p171_p3), %s1195_s18, 255 }
   0xc   : > { %v1417_v0 = vld [vmem:[%s1888_s1 + $0x20] sm:$0xff]  ;;  %v1416_v1 = vld [vmem:[%s1888_s1 + $0x18] sm:$0xff]  ;;  %v1415_v2 = vld [vmem:[%s1888_s1 + $0x10] sm:$0xff]  ;;  %s1896_s18 = smov (!%p206_p4, %s1195_s18), 255  ;;  %vm493_vm0 = vcmask 654336   ;;  %vm1018_vm1 = vcmask 60416  }
   0xd   : > { %593 = vmatpush.bf16.msra.mxu0 %v1417_v0  ;;  %1418 = vmatpush.bf16.msra.mxu1 %v1417_v0  ;;  %v1414_v3 = vld [vmem:[%s1888_s1 + $0x8] sm:$0xff]  ;;  %s1196_s25 = sshll.u32 %s1896_s18, 2  ;;  %v1413_v4 = vld [vmem:[%s1888_s1] sm:$0xff] }
   0xe   : > { %1419 = vmatpush.bf16.msra.mxu2 %v1417_v0  ;;  %1420 = vmatpush.bf16.msra.mxu3 %v1417_v0  ;;  %s1542_s30 = scalar_lea.vmem %s1887_s0, %s1196_s25  ;;  %v759_v37 = vld [vmem:[%s1889_s2] sm:$0x3]  ;;  %s1624_s8 = scalar_lea.vmem %s1890_s3, %s1196_s25 }
   0xf   : > { %v1381_v5 = vld [vmem:[%s1542_s30] sm:$0xff]  ;;  %v1382_v9 = vld [vmem:[%s1542_s30 + $0x8] sm:$0xff]  ;;  %v1383_v13 = vld [vmem:[%s1542_s30 + $0x10] sm:$0xff]  ;;  %v1611_v38 = vperm.slane %v759_v37, 0  ;;  %v1613_v39 = vperm.slane %v759_v37, 1 }
  0x10   : > { %v1389_v6 = vld [vmem:[%s1542_s30 + $0x40] sm:$0xff]  ;;  %v1390_v10 = vld [vmem:[%s1542_s30 + $0x48] sm:$0xff]  ;;  %v1391_v14 = vld [vmem:[%s1542_s30 + $0x50] sm:$0xff] }
  0x11   : > { %594 = vmatpush.bf16.msra.mxu0 %v1416_v1  ;;  %1421 = vmatpush.bf16.msra.mxu1 %v1416_v1  ;;  %v1397_v7 = vld [vmem:[%s1542_s30 + $0x80] sm:$0xff]  ;;  %v1398_v11 = vld [vmem:[%s1542_s30 + $0x88] sm:$0xff]  ;;  %v1399_v15 = vld [vmem:[%s1542_s30 + $0x90] sm:$0xff] }
  0x12   : > { %1422 = vmatpush.bf16.msra.mxu2 %v1416_v1  ;;  %1423 = vmatpush.bf16.msra.mxu3 %v1416_v1  ;;  %v1405_v8 = vld [vmem:[%s1542_s30 + $0xc0] sm:$0xff]  ;;  %v1406_v12 = vld [vmem:[%s1542_s30 + $0xc8] sm:$0xff]  ;;  %v1407_v16 = vld [vmem:[%s1542_s30 + $0xd0] sm:$0xff] }
  0x13   : > { %v1384_v17 = vld [vmem:[%s1542_s30 + $0x18] sm:$0xff]  ;;  %v1385_v21 = vld [vmem:[%s1542_s30 + $0x20] sm:$0xff]  ;;  %v1386_v25 = vld [vmem:[%s1542_s30 + $0x28] sm:$0xff] }
  0x14   : > { %v1392_v18 = vld [vmem:[%s1542_s30 + $0x58] sm:$0xff]  ;;  %v1393_v22 = vld [vmem:[%s1542_s30 + $0x60] sm:$0xff]  ;;  %v1394_v26 = vld [vmem:[%s1542_s30 + $0x68] sm:$0xff] }
  0x15   : > { %595 = vmatpush.bf16.msra.mxu0 %v1415_v2  ;;  %1424 = vmatpush.bf16.msra.mxu1 %v1415_v2  ;;  %v1400_v19 = vld [vmem:[%s1542_s30 + $0x98] sm:$0xff]  ;;  %v1401_v23 = vld [vmem:[%s1542_s30 + $0xa0] sm:$0xff]  ;;  %v1402_v27 = vld [vmem:[%s1542_s30 + $0xa8] sm:$0xff] }
  0x16   : > { %1425 = vmatpush.bf16.msra.mxu2 %v1415_v2  ;;  %1426 = vmatpush.bf16.msra.mxu3 %v1415_v2  ;;  %v1408_v20 = vld [vmem:[%s1542_s30 + $0xd8] sm:$0xff]  ;;  %v1409_v24 = vld [vmem:[%s1542_s30 + $0xe0] sm:$0xff]  ;;  %v1410_v28 = vld [vmem:[%s1542_s30 + $0xe8] sm:$0xff] }
  0x17   : > { %v1387_v29 = vld [vmem:[%s1542_s30 + $0x30] sm:$0xff]  ;;  %v1388_v33 = vld [vmem:[%s1542_s30 + $0x38] sm:$0xff] }
  0x18   : > { %v1395_v30 = vld [vmem:[%s1542_s30 + $0x70] sm:$0xff]  ;;  %v1396_v34 = vld [vmem:[%s1542_s30 + $0x78] sm:$0xff] }
  0x19   : > { %596 = vmatpush.bf16.msra.mxu0 %v1414_v3  ;;  %1427 = vmatpush.bf16.msra.mxu1 %v1414_v3  ;;  %v1403_v31 = vld [vmem:[%s1542_s30 + $0xb0] sm:$0xff]  ;;  %v1404_v35 = vld [vmem:[%s1542_s30 + $0xb8] sm:$0xff] }
  0x1a   : > { %1428 = vmatpush.bf16.msra.mxu2 %v1414_v3  ;;  %1429 = vmatpush.bf16.msra.mxu3 %v1414_v3  ;;  %v1411_v32 = vld [vmem:[%s1542_s30 + $0xf0] sm:$0xff]  ;;  %v1412_v36 = vld [vmem:[%s1542_s30 + $0xf8] sm:$0xff] }
  0x1d   : > { %597 = vmatpush.bf16.msra.mxu0 %v1413_v4  ;;  %1430 = vmatpush.bf16.msra.mxu1 %v1413_v4 }
  0x1e   : > { %1431 = vmatpush.bf16.msra.mxu2 %v1413_v4  ;;  %1432 = vmatpush.bf16.msra.mxu3 %v1413_v4 }
  0x20   : > { %1347 = vmatmul.msk.bf16.vlgmr.msra.gmra.mxu0 %vm493_vm0, %v1381_v5  ;;  %1355 = vmatmul.msk.bf16.vlgmr.msra.gmra.mxu1 %vm493_vm0, %v1389_v6 }
  0x21   : > { %1363 = vmatmul.msk.bf16.vlgmr.msra.gmra.mxu2 %vm493_vm0, %v1397_v7  ;;  %1371 = vmatmul.msk.bf16.vlgmr.msra.gmra.mxu3 %vm493_vm0, %v1405_v8 }
  0x30   : > { %1348 = vmatmul.msk.bf16.gmra.mxu0 %vm493_vm0, %v1382_v9  ;;  %1356 = vmatmul.msk.bf16.gmra.mxu1 %vm493_vm0, %v1390_v10 }
  0x31   : > { %1364 = vmatmul.msk.bf16.gmra.mxu2 %vm493_vm0, %v1398_v11  ;;  %1372 = vmatmul.msk.bf16.gmra.mxu3 %vm493_vm0, %v1406_v12 }
  0x40   : > { %1349 = vmatmul.msk.bf16.gmra.mxu0 %vm493_vm0, %v1383_v13  ;;  %1357 = vmatmul.msk.bf16.gmra.mxu1 %vm493_vm0, %v1391_v14 }
  0x41   : > { %1365 = vmatmul.msk.bf16.gmra.mxu2 %vm493_vm0, %v1399_v15  ;;  %1373 = vmatmul.msk.bf16.gmra.mxu3 %vm493_vm0, %v1407_v16 }
  0x50   : > { %1350 = vmatmul.msk.bf16.gmra.mxu0 %vm493_vm0, %v1384_v17  ;;  %1358 = vmatmul.msk.bf16.gmra.mxu1 %vm493_vm0, %v1392_v18 }
  0x51   : > { %1366 = vmatmul.msk.bf16.gmra.mxu2 %vm493_vm0, %v1400_v19  ;;  %1374 = vmatmul.msk.bf16.gmra.mxu3 %vm493_vm0, %v1408_v20 }
  0x60   : > { %1351 = vmatmul.msk.bf16.gmra.mxu0 %vm493_vm0, %v1385_v21  ;;  %1359 = vmatmul.msk.bf16.gmra.mxu1 %vm493_vm0, %v1393_v22 }
  0x61   : > { %1367 = vmatmul.msk.bf16.gmra.mxu2 %vm493_vm0, %v1401_v23  ;;  %1375 = vmatmul.msk.bf16.gmra.mxu3 %vm493_vm0, %v1409_v24 }
  0x70   : > { %1352 = vmatmul.msk.bf16.gmra.mxu0 %vm493_vm0, %v1386_v25  ;;  %1360 = vmatmul.msk.bf16.gmra.mxu1 %vm493_vm0, %v1394_v26 }
  0x71   : > { %1368 = vmatmul.msk.bf16.gmra.mxu2 %vm493_vm0, %v1402_v27  ;;  %1376 = vmatmul.msk.bf16.gmra.mxu3 %vm493_vm0, %v1410_v28 }
  0x80   : > { %1353 = vmatmul.msk.bf16.gmra.mxu0 %vm493_vm0, %v1387_v29  ;;  %1361 = vmatmul.msk.bf16.gmra.mxu1 %vm493_vm0, %v1395_v30 }
  0x81   : > { %1369 = vmatmul.msk.bf16.gmra.mxu2 %vm493_vm0, %v1403_v31  ;;  %1377 = vmatmul.msk.bf16.gmra.mxu3 %vm493_vm0, %v1411_v32 }
  0x90   : > { %1354 = vmatmul.msk.bf16.gmra.mxu0 %vm493_vm0, %v1388_v33  ;;  %1362 = vmatmul.msk.bf16.gmra.mxu1 %vm493_vm0, %v1396_v34 }
  0x91   : > { %1370 = vmatmul.msk.bf16.gmra.mxu2 %vm493_vm0, %v1404_v35  ;;  %1378 = vmatmul.msk.bf16.gmra.mxu3 %vm493_vm0, %v1412_v36 }
  0x9d   : > { %v599_v40 = vpop.f32.mrf.mxu0  ;;  %v639_v41 = vpop.f32.mrf.mxu1 }
  0x9e   : > { %v761_v42 = vmul.f32 %v1611_v38, %v599_v40  ;;  %v777_v43 = vmul.f32 %v1611_v38, %v639_v41 }
  0xa0   : > { %v826_v44 = vadd.f32 %v1613_v39, %v761_v42  ;;  %v842_v45 = vadd.f32 %v1613_v39, %v777_v43 }
  0xa2   : > { %v890_v46 = vmax.f32 %v826_v44, 0.0  ;;  %v906_v47 = vmax.f32 %v842_v45, 0.0 }
  0xa4   : > { %v954_v48 = vpack.c.bf16 %v890_v46, %v890_v46  ;;  %v970_v49 = vpack.c.bf16 %v906_v47, %v906_v47  ;;  %v679_v50 = vpop.f32.mrf.mxu2  ;;  %v719_v51 = vpop.f32.mrf.mxu3 }
  0xa5   : > { %v793_v52 = vmul.f32 %v1611_v38, %v679_v50  ;;  %v809_v53 = vmul.f32 %v1611_v38, %v719_v51  ;;  %v601_v54 = vpop.f32.mrf.mxu0  ;;  %v641_v55 = vpop.f32.mrf.mxu1 }
  0xa6   : > { %1019 = vst.msk [vmem:[%s1624_s8] sm:$0xf] %vm1018_vm1, %v954_v48  ;;  %v762_v56 = vmul.f32 %v1611_v38, %v601_v54  ;;  %v778_v57 = vmul.f32 %v1611_v38, %v641_v55 }
  0xa7   : > { %1035 = vst.msk [vmem:[%s1624_s8 + $0x40] sm:$0xf] %vm1018_vm1, %v970_v49  ;;  %v858_v58 = vadd.f32 %v1613_v39, %v793_v52  ;;  %v874_v59 = vadd.f32 %v1613_v39, %v809_v53 }
  0xa8   : > { %v827_v60 = vadd.f32 %v1613_v39, %v762_v56  ;;  %v843_v61 = vadd.f32 %v1613_v39, %v778_v57 }
  0xa9   : > { %v922_v62 = vmax.f32 %v858_v58, 0.0  ;;  %v938_v63 = vmax.f32 %v874_v59, 0.0 }
  0xaa   : > { %v891_v0 = vmax.f32 %v827_v60, 0.0  ;;  %v907_v1 = vmax.f32 %v843_v61, 0.0 }
  0xab   : > { %v986_v2 = vpack.c.bf16 %v922_v62, %v922_v62  ;;  %v1002_v3 = vpack.c.bf16 %v938_v63, %v938_v63 }
  0xac   : > { %v955_v4 = vpack.c.bf16 %v891_v0, %v891_v0  ;;  %v971_v5 = vpack.c.bf16 %v907_v1, %v907_v1  ;;  %v681_v6 = vpop.f32.mrf.mxu2  ;;  %v721_v7 = vpop.f32.mrf.mxu3 }
  0xad   : > { %1051 = vst.msk [vmem:[%s1624_s8 + $0x80] sm:$0xf] %vm1018_vm1, %v986_v2  ;;  %v794_v8 = vmul.f32 %v1611_v38, %v681_v6  ;;  %v810_v9 = vmul.f32 %v1611_v38, %v721_v7  ;;  %v604_v10 = vpop.f32.mrf.mxu0  ;;  %v644_v11 = vpop.f32.mrf.mxu1 }
  0xae   : > { %1067 = vst.msk [vmem:[%s1624_s8 + $0xc0] sm:$0xf] %vm1018_vm1, %v1002_v3  ;;  %v763_v12 = vmul.f32 %v1611_v38, %v604_v10  ;;  %v779_v13 = vmul.f32 %v1611_v38, %v644_v11 }
  0xaf   : > { %1020 = vst.msk [vmem:[%s1624_s8 + $0x4] sm:$0xf] %vm1018_vm1, %v955_v4  ;;  %v859_v14 = vadd.f32 %v1613_v39, %v794_v8  ;;  %v875_v15 = vadd.f32 %v1613_v39, %v810_v9 }
  0xb0   : > { %1036 = vst.msk [vmem:[%s1624_s8 + $0x44] sm:$0xf] %vm1018_vm1, %v971_v5  ;;  %v828_v16 = vadd.f32 %v1613_v39, %v763_v12  ;;  %v844_v17 = vadd.f32 %v1613_v39, %v779_v13 }
  0xb1   : > { %v923_v18 = vmax.f32 %v859_v14, 0.0  ;;  %v939_v19 = vmax.f32 %v875_v15, 0.0 }
  0xb2   : > { %v892_v20 = vmax.f32 %v828_v16, 0.0  ;;  %v908_v21 = vmax.f32 %v844_v17, 0.0 }
  0xb3   : > { %v987_v22 = vpack.c.bf16 %v923_v18, %v923_v18  ;;  %v1003_v23 = vpack.c.bf16 %v939_v19, %v939_v19 }
  0xb4   : > { %v956_v24 = vpack.c.bf16 %v892_v20, %v892_v20  ;;  %v972_v25 = vpack.c.bf16 %v908_v21, %v908_v21  ;;  %v684_v26 = vpop.f32.mrf.mxu2  ;;  %v724_v27 = vpop.f32.mrf.mxu3 }
  0xb5   : > { %1052 = vst.msk [vmem:[%s1624_s8 + $0x84] sm:$0xf] %vm1018_vm1, %v987_v22  ;;  %v795_v28 = vmul.f32 %v1611_v38, %v684_v26  ;;  %v811_v29 = vmul.f32 %v1611_v38, %v724_v27  ;;  %v606_v30 = vpop.f32.mrf.mxu0  ;;  %v646_v31 = vpop.f32.mrf.mxu1 }
  0xb6   : > { %1068 = vst.msk [vmem:[%s1624_s8 + $0xc4] sm:$0xf] %vm1018_vm1, %v1003_v23  ;;  %v764_v32 = vmul.f32 %v1611_v38, %v606_v30  ;;  %v780_v33 = vmul.f32 %v1611_v38, %v646_v31 }
  0xb7   : > { %1021 = vst.msk [vmem:[%s1624_s8 + $0x8] sm:$0xf] %vm1018_vm1, %v956_v24  ;;  %v860_v34 = vadd.f32 %v1613_v39, %v795_v28  ;;  %v876_v35 = vadd.f32 %v1613_v39, %v811_v29 }
  0xb8   : > { %1037 = vst.msk [vmem:[%s1624_s8 + $0x48] sm:$0xf] %vm1018_vm1, %v972_v25  ;;  %v829_v36 = vadd.f32 %v1613_v39, %v764_v32  ;;  %v845_v37 = vadd.f32 %v1613_v39, %v780_v33 }
  0xb9   : > { %v924_v40 = vmax.f32 %v860_v34, 0.0  ;;  %v940_v41 = vmax.f32 %v876_v35, 0.0 }
  0xba   : > { %v893_v42 = vmax.f32 %v829_v36, 0.0  ;;  %v909_v43 = vmax.f32 %v845_v37, 0.0 }
  0xbb   : > { %v988_v44 = vpack.c.bf16 %v924_v40, %v924_v40  ;;  %v1004_v45 = vpack.c.bf16 %v940_v41, %v940_v41 }
  0xbc   : > { %v957_v46 = vpack.c.bf16 %v893_v42, %v893_v42  ;;  %v973_v47 = vpack.c.bf16 %v909_v43, %v909_v43  ;;  %v686_v48 = vpop.f32.mrf.mxu2  ;;  %v726_v49 = vpop.f32.mrf.mxu3 }
  0xbd   : > { %1053 = vst.msk [vmem:[%s1624_s8 + $0x88] sm:$0xf] %vm1018_vm1, %v988_v44  ;;  %v796_v50 = vmul.f32 %v1611_v38, %v686_v48  ;;  %v812_v51 = vmul.f32 %v1611_v38, %v726_v49  ;;  %v609_v52 = vpop.f32.mrf.mxu0  ;;  %v649_v53 = vpop.f32.mrf.mxu1 }
  0xbe   : > { %1069 = vst.msk [vmem:[%s1624_s8 + $0xc8] sm:$0xf] %vm1018_vm1, %v1004_v45  ;;  %v765_v54 = vmul.f32 %v1611_v38, %v609_v52  ;;  %v781_v55 = vmul.f32 %v1611_v38, %v649_v53 }
  0xbf   : > { %1022 = vst.msk [vmem:[%s1624_s8 + $0xc] sm:$0xf] %vm1018_vm1, %v957_v46  ;;  %v861_v56 = vadd.f32 %v1613_v39, %v796_v50  ;;  %v877_v57 = vadd.f32 %v1613_v39, %v812_v51 }
  0xc0   : > { %1038 = vst.msk [vmem:[%s1624_s8 + $0x4c] sm:$0xf] %vm1018_vm1, %v973_v47  ;;  %v830_v58 = vadd.f32 %v1613_v39, %v765_v54  ;;  %v846_v59 = vadd.f32 %v1613_v39, %v781_v55 }
  0xc1   : > { %v925_v60 = vmax.f32 %v861_v56, 0.0  ;;  %v941_v61 = vmax.f32 %v877_v57, 0.0 }
  0xc2   : > { %v894_v62 = vmax.f32 %v830_v58, 0.0  ;;  %v910_v63 = vmax.f32 %v846_v59, 0.0 }
  0xc3   : > { %v989_v0 = vpack.c.bf16 %v925_v60, %v925_v60  ;;  %v1005_v1 = vpack.c.bf16 %v941_v61, %v941_v61 }
  0xc4   : > { %v958_v2 = vpack.c.bf16 %v894_v62, %v894_v62  ;;  %v974_v3 = vpack.c.bf16 %v910_v63, %v910_v63  ;;  %v689_v4 = vpop.f32.mrf.mxu2  ;;  %v729_v5 = vpop.f32.mrf.mxu3 }
  0xc5   : > { %1054 = vst.msk [vmem:[%s1624_s8 + $0x8c] sm:$0xf] %vm1018_vm1, %v989_v0  ;;  %v797_v6 = vmul.f32 %v1611_v38, %v689_v4  ;;  %v813_v7 = vmul.f32 %v1611_v38, %v729_v5  ;;  %v611_v8 = vpop.f32.mrf.mxu0  ;;  %v651_v9 = vpop.f32.mrf.mxu1 }
  0xc6   : > { %1070 = vst.msk [vmem:[%s1624_s8 + $0xcc] sm:$0xf] %vm1018_vm1, %v1005_v1  ;;  %v766_v10 = vmul.f32 %v1611_v38, %v611_v8  ;;  %v782_v11 = vmul.f32 %v1611_v38, %v651_v9 }
  0xc7   : > { %1023 = vst.msk [vmem:[%s1624_s8 + $0x10] sm:$0xf] %vm1018_vm1, %v958_v2  ;;  %v862_v12 = vadd.f32 %v1613_v39, %v797_v6  ;;  %v878_v13 = vadd.f32 %v1613_v39, %v813_v7 }
  0xc8   : > { %1039 = vst.msk [vmem:[%s1624_s8 + $0x50] sm:$0xf] %vm1018_vm1, %v974_v3  ;;  %v831_v14 = vadd.f32 %v1613_v39, %v766_v10  ;;  %v847_v15 = vadd.f32 %v1613_v39, %v782_v11 }
  0xc9   : > { %v926_v16 = vmax.f32 %v862_v12, 0.0  ;;  %v942_v17 = vmax.f32 %v878_v13, 0.0 }
  0xca   : > { %v895_v18 = vmax.f32 %v831_v14, 0.0  ;;  %v911_v19 = vmax.f32 %v847_v15, 0.0 }
  0xcb   : > { %v990_v20 = vpack.c.bf16 %v926_v16, %v926_v16  ;;  %v1006_v21 = vpack.c.bf16 %v942_v17, %v942_v17 }
  0xcc   : > { %v959_v22 = vpack.c.bf16 %v895_v18, %v895_v18  ;;  %v975_v23 = vpack.c.bf16 %v911_v19, %v911_v19  ;;  %v691_v24 = vpop.f32.mrf.mxu2  ;;  %v731_v25 = vpop.f32.mrf.mxu3 }
  0xcd   : > { %1055 = vst.msk [vmem:[%s1624_s8 + $0x90] sm:$0xf] %vm1018_vm1, %v990_v20  ;;  %v798_v26 = vmul.f32 %v1611_v38, %v691_v24  ;;  %v814_v27 = vmul.f32 %v1611_v38, %v731_v25  ;;  %v614_v28 = vpop.f32.mrf.mxu0  ;;  %v654_v29 = vpop.f32.mrf.mxu1 }
  0xce   : > { %1071 = vst.msk [vmem:[%s1624_s8 + $0xd0] sm:$0xf] %vm1018_vm1, %v1006_v21  ;;  %v767_v30 = vmul.f32 %v1611_v38, %v614_v28  ;;  %v783_v31 = vmul.f32 %v1611_v38, %v654_v29 }
  0xcf   : > { %1024 = vst.msk [vmem:[%s1624_s8 + $0x14] sm:$0xf] %vm1018_vm1, %v959_v22  ;;  %v863_v32 = vadd.f32 %v1613_v39, %v798_v26  ;;  %v879_v33 = vadd.f32 %v1613_v39, %v814_v27 }
  0xd0   : > { %1040 = vst.msk [vmem:[%s1624_s8 + $0x54] sm:$0xf] %vm1018_vm1, %v975_v23  ;;  %v832_v34 = vadd.f32 %v1613_v39, %v767_v30  ;;  %v848_v35 = vadd.f32 %v1613_v39, %v783_v31 }
  0xd1   : > { %v927_v36 = vmax.f32 %v863_v32, 0.0  ;;  %v943_v37 = vmax.f32 %v879_v33, 0.0 }
  0xd2   : > { %v896_v40 = vmax.f32 %v832_v34, 0.0  ;;  %v912_v41 = vmax.f32 %v848_v35, 0.0 }
  0xd3   : > { %v991_v42 = vpack.c.bf16 %v927_v36, %v927_v36  ;;  %v1007_v43 = vpack.c.bf16 %v943_v37, %v943_v37 }
  0xd4   : > { %v960_v44 = vpack.c.bf16 %v896_v40, %v896_v40  ;;  %v976_v45 = vpack.c.bf16 %v912_v41, %v912_v41  ;;  %v694_v46 = vpop.f32.mrf.mxu2  ;;  %v734_v47 = vpop.f32.mrf.mxu3 }
  0xd5   : > { %1056 = vst.msk [vmem:[%s1624_s8 + $0x94] sm:$0xf] %vm1018_vm1, %v991_v42  ;;  %v799_v48 = vmul.f32 %v1611_v38, %v694_v46  ;;  %v815_v49 = vmul.f32 %v1611_v38, %v734_v47  ;;  %v616_v50 = vpop.f32.mrf.mxu0  ;;  %v656_v51 = vpop.f32.mrf.mxu1 }
  0xd6   : > { %1072 = vst.msk [vmem:[%s1624_s8 + $0xd4] sm:$0xf] %vm1018_vm1, %v1007_v43  ;;  %v768_v52 = vmul.f32 %v1611_v38, %v616_v50  ;;  %v784_v53 = vmul.f32 %v1611_v38, %v656_v51 }
  0xd7   : > { %1025 = vst.msk [vmem:[%s1624_s8 + $0x18] sm:$0xf] %vm1018_vm1, %v960_v44  ;;  %v864_v54 = vadd.f32 %v1613_v39, %v799_v48  ;;  %v880_v55 = vadd.f32 %v1613_v39, %v815_v49 }
  0xd8   : > { %1041 = vst.msk [vmem:[%s1624_s8 + $0x58] sm:$0xf] %vm1018_vm1, %v976_v45  ;;  %v833_v56 = vadd.f32 %v1613_v39, %v768_v52  ;;  %v849_v57 = vadd.f32 %v1613_v39, %v784_v53 }
  0xd9   : > { %v928_v58 = vmax.f32 %v864_v54, 0.0  ;;  %v944_v59 = vmax.f32 %v880_v55, 0.0 }
  0xda   : > { %v897_v60 = vmax.f32 %v833_v56, 0.0  ;;  %v913_v61 = vmax.f32 %v849_v57, 0.0 }
  0xdb   : > { %v992_v62 = vpack.c.bf16 %v928_v58, %v928_v58  ;;  %v1008_v63 = vpack.c.bf16 %v944_v59, %v944_v59 }
  0xdc   : > { %v961_v0 = vpack.c.bf16 %v897_v60, %v897_v60  ;;  %v977_v1 = vpack.c.bf16 %v913_v61, %v913_v61  ;;  %v696_v2 = vpop.f32.mrf.mxu2  ;;  %v736_v3 = vpop.f32.mrf.mxu3 }
  0xdd   : > { %1057 = vst.msk [vmem:[%s1624_s8 + $0x98] sm:$0xf] %vm1018_vm1, %v992_v62  ;;  %v800_v4 = vmul.f32 %v1611_v38, %v696_v2  ;;  %v816_v5 = vmul.f32 %v1611_v38, %v736_v3  ;;  %v619_v6 = vpop.f32.mrf.mxu0  ;;  %v659_v7 = vpop.f32.mrf.mxu1 }
  0xde   : > { %1073 = vst.msk [vmem:[%s1624_s8 + $0xd8] sm:$0xf] %vm1018_vm1, %v1008_v63  ;;  %v769_v8 = vmul.f32 %v1611_v38, %v619_v6  ;;  %v785_v9 = vmul.f32 %v1611_v38, %v659_v7 }
  0xdf   : > { %1026 = vst.msk [vmem:[%s1624_s8 + $0x1c] sm:$0xf] %vm1018_vm1, %v961_v0  ;;  %v865_v10 = vadd.f32 %v1613_v39, %v800_v4  ;;  %v881_v11 = vadd.f32 %v1613_v39, %v816_v5 }
  0xe0   : > { %1042 = vst.msk [vmem:[%s1624_s8 + $0x5c] sm:$0xf] %vm1018_vm1, %v977_v1  ;;  %v834_v12 = vadd.f32 %v1613_v39, %v769_v8  ;;  %v850_v13 = vadd.f32 %v1613_v39, %v785_v9 }
  0xe1   : > { %v929_v14 = vmax.f32 %v865_v10, 0.0  ;;  %v945_v15 = vmax.f32 %v881_v11, 0.0 }
  0xe2   : > { %v898_v16 = vmax.f32 %v834_v12, 0.0  ;;  %v914_v17 = vmax.f32 %v850_v13, 0.0 }
  0xe3   : > { %v993_v18 = vpack.c.bf16 %v929_v14, %v929_v14  ;;  %v1009_v19 = vpack.c.bf16 %v945_v15, %v945_v15 }
  0xe4   : > { %v962_v20 = vpack.c.bf16 %v898_v16, %v898_v16  ;;  %v978_v21 = vpack.c.bf16 %v914_v17, %v914_v17  ;;  %v699_v22 = vpop.f32.mrf.mxu2  ;;  %v739_v23 = vpop.f32.mrf.mxu3 }
  0xe5   : > { %1058 = vst.msk [vmem:[%s1624_s8 + $0x9c] sm:$0xf] %vm1018_vm1, %v993_v18  ;;  %v801_v24 = vmul.f32 %v1611_v38, %v699_v22  ;;  %v817_v25 = vmul.f32 %v1611_v38, %v739_v23  ;;  %v621_v26 = vpop.f32.mrf.mxu0  ;;  %v661_v27 = vpop.f32.mrf.mxu1 }
  0xe6   : > { %1074 = vst.msk [vmem:[%s1624_s8 + $0xdc] sm:$0xf] %vm1018_vm1, %v1009_v19  ;;  %v770_v28 = vmul.f32 %v1611_v38, %v621_v26  ;;  %v786_v29 = vmul.f32 %v1611_v38, %v661_v27 }
  0xe7   : > { %1027 = vst.msk [vmem:[%s1624_s8 + $0x20] sm:$0xf] %vm1018_vm1, %v962_v20  ;;  %v866_v30 = vadd.f32 %v1613_v39, %v801_v24  ;;  %v882_v31 = vadd.f32 %v1613_v39, %v817_v25 }
  0xe8   : > { %1043 = vst.msk [vmem:[%s1624_s8 + $0x60] sm:$0xf] %vm1018_vm1, %v978_v21  ;;  %v835_v32 = vadd.f32 %v1613_v39, %v770_v28  ;;  %v851_v33 = vadd.f32 %v1613_v39, %v786_v29 }
  0xe9   : > { %v930_v34 = vmax.f32 %v866_v30, 0.0  ;;  %v946_v35 = vmax.f32 %v882_v31, 0.0 }
  0xea   : > { %v899_v36 = vmax.f32 %v835_v32, 0.0  ;;  %v915_v37 = vmax.f32 %v851_v33, 0.0 }
  0xeb   : > { %v994_v40 = vpack.c.bf16 %v930_v34, %v930_v34  ;;  %v1010_v41 = vpack.c.bf16 %v946_v35, %v946_v35 }
  0xec   : > { %v963_v42 = vpack.c.bf16 %v899_v36, %v899_v36  ;;  %v979_v43 = vpack.c.bf16 %v915_v37, %v915_v37  ;;  %v701_v44 = vpop.f32.mrf.mxu2  ;;  %v741_v45 = vpop.f32.mrf.mxu3 }
  0xed   : > { %1059 = vst.msk [vmem:[%s1624_s8 + $0xa0] sm:$0xf] %vm1018_vm1, %v994_v40  ;;  %v802_v46 = vmul.f32 %v1611_v38, %v701_v44  ;;  %v818_v47 = vmul.f32 %v1611_v38, %v741_v45  ;;  %v624_v48 = vpop.f32.mrf.mxu0  ;;  %v664_v49 = vpop.f32.mrf.mxu1 }
  0xee   : > { %1075 = vst.msk [vmem:[%s1624_s8 + $0xe0] sm:$0xf] %vm1018_vm1, %v1010_v41  ;;  %v771_v50 = vmul.f32 %v1611_v38, %v624_v48  ;;  %v787_v51 = vmul.f32 %v1611_v38, %v664_v49 }
  0xef   : > { %1028 = vst.msk [vmem:[%s1624_s8 + $0x24] sm:$0xf] %vm1018_vm1, %v963_v42  ;;  %v867_v52 = vadd.f32 %v1613_v39, %v802_v46  ;;  %v883_v53 = vadd.f32 %v1613_v39, %v818_v47 }
  0xf0   : > { %1044 = vst.msk [vmem:[%s1624_s8 + $0x64] sm:$0xf] %vm1018_vm1, %v979_v43  ;;  %v836_v54 = vadd.f32 %v1613_v39, %v771_v50  ;;  %v852_v55 = vadd.f32 %v1613_v39, %v787_v51 }
  0xf1   : > { %v931_v56 = vmax.f32 %v867_v52, 0.0  ;;  %v947_v57 = vmax.f32 %v883_v53, 0.0 }
  0xf2   : > { %v900_v58 = vmax.f32 %v836_v54, 0.0  ;;  %v916_v59 = vmax.f32 %v852_v55, 0.0 }
  0xf3   : > { %v995_v60 = vpack.c.bf16 %v931_v56, %v931_v56  ;;  %v1011_v61 = vpack.c.bf16 %v947_v57, %v947_v57 }
  0xf4   : > { %v964_v62 = vpack.c.bf16 %v900_v58, %v900_v58  ;;  %v980_v63 = vpack.c.bf16 %v916_v59, %v916_v59  ;;  %v704_v0 = vpop.f32.mrf.mxu2  ;;  %v744_v1 = vpop.f32.mrf.mxu3 }
  0xf5   : > { %1060 = vst.msk [vmem:[%s1624_s8 + $0xa4] sm:$0xf] %vm1018_vm1, %v995_v60  ;;  %v803_v2 = vmul.f32 %v1611_v38, %v704_v0  ;;  %v819_v3 = vmul.f32 %v1611_v38, %v744_v1  ;;  %v626_v4 = vpop.f32.mrf.mxu0  ;;  %v666_v5 = vpop.f32.mrf.mxu1 }
  0xf6   : > { %1076 = vst.msk [vmem:[%s1624_s8 + $0xe4] sm:$0xf] %vm1018_vm1, %v1011_v61  ;;  %v772_v6 = vmul.f32 %v1611_v38, %v626_v4  ;;  %v788_v7 = vmul.f32 %v1611_v38, %v666_v5 }
  0xf7   : > { %1029 = vst.msk [vmem:[%s1624_s8 + $0x28] sm:$0xf] %vm1018_vm1, %v964_v62  ;;  %v868_v8 = vadd.f32 %v1613_v39, %v803_v2  ;;  %v884_v9 = vadd.f32 %v1613_v39, %v819_v3 }
  0xf8   : > { %1045 = vst.msk [vmem:[%s1624_s8 + $0x68] sm:$0xf] %vm1018_vm1, %v980_v63  ;;  %v837_v10 = vadd.f32 %v1613_v39, %v772_v6  ;;  %v853_v11 = vadd.f32 %v1613_v39, %v788_v7 }
  0xf9   : > { %v932_v12 = vmax.f32 %v868_v8, 0.0  ;;  %v948_v13 = vmax.f32 %v884_v9, 0.0 }
  0xfa   : > { %v901_v14 = vmax.f32 %v837_v10, 0.0  ;;  %v917_v15 = vmax.f32 %v853_v11, 0.0 }
  0xfb   : > { %v996_v16 = vpack.c.bf16 %v932_v12, %v932_v12  ;;  %v1012_v17 = vpack.c.bf16 %v948_v13, %v948_v13 }
  0xfc   : > { %v965_v18 = vpack.c.bf16 %v901_v14, %v901_v14  ;;  %v981_v19 = vpack.c.bf16 %v917_v15, %v917_v15  ;;  %v706_v20 = vpop.f32.mrf.mxu2  ;;  %v746_v21 = vpop.f32.mrf.mxu3 }
  0xfd   : > { %1061 = vst.msk [vmem:[%s1624_s8 + $0xa8] sm:$0xf] %vm1018_vm1, %v996_v16  ;;  %v804_v22 = vmul.f32 %v1611_v38, %v706_v20  ;;  %v820_v23 = vmul.f32 %v1611_v38, %v746_v21  ;;  %v629_v24 = vpop.f32.mrf.mxu0  ;;  %v669_v25 = vpop.f32.mrf.mxu1 }
  0xfe   : > { %1077 = vst.msk [vmem:[%s1624_s8 + $0xe8] sm:$0xf] %vm1018_vm1, %v1012_v17  ;;  %v773_v26 = vmul.f32 %v1611_v38, %v629_v24  ;;  %v789_v27 = vmul.f32 %v1611_v38, %v669_v25 }
  0xff   : > { %1030 = vst.msk [vmem:[%s1624_s8 + $0x2c] sm:$0xf] %vm1018_vm1, %v965_v18  ;;  %v869_v28 = vadd.f32 %v1613_v39, %v804_v22  ;;  %v885_v29 = vadd.f32 %v1613_v39, %v820_v23 }
 0x100   : > { %1046 = vst.msk [vmem:[%s1624_s8 + $0x6c] sm:$0xf] %vm1018_vm1, %v981_v19  ;;  %v838_v30 = vadd.f32 %v1613_v39, %v773_v26  ;;  %v854_v31 = vadd.f32 %v1613_v39, %v789_v27 }
 0x101   : > { %v933_v32 = vmax.f32 %v869_v28, 0.0  ;;  %v949_v33 = vmax.f32 %v885_v29, 0.0 }
 0x102   : > { %v902_v34 = vmax.f32 %v838_v30, 0.0  ;;  %v918_v35 = vmax.f32 %v854_v31, 0.0 }
 0x103   : > { %v997_v36 = vpack.c.bf16 %v933_v32, %v933_v32  ;;  %v1013_v37 = vpack.c.bf16 %v949_v33, %v949_v33 }
 0x104   : > { %v966_v40 = vpack.c.bf16 %v902_v34, %v902_v34  ;;  %v982_v41 = vpack.c.bf16 %v918_v35, %v918_v35  ;;  %v709_v42 = vpop.f32.mrf.mxu2  ;;  %v749_v43 = vpop.f32.mrf.mxu3 }
 0x105   : > { %1062 = vst.msk [vmem:[%s1624_s8 + $0xac] sm:$0xf] %vm1018_vm1, %v997_v36  ;;  %v805_v44 = vmul.f32 %v1611_v38, %v709_v42  ;;  %v821_v45 = vmul.f32 %v1611_v38, %v749_v43  ;;  %v631_v46 = vpop.f32.mrf.mxu0  ;;  %v671_v47 = vpop.f32.mrf.mxu1 }
 0x106   : > { %1078 = vst.msk [vmem:[%s1624_s8 + $0xec] sm:$0xf] %vm1018_vm1, %v1013_v37  ;;  %v774_v48 = vmul.f32 %v1611_v38, %v631_v46  ;;  %v790_v49 = vmul.f32 %v1611_v38, %v671_v47 }
 0x107   : > { %1031 = vst.msk [vmem:[%s1624_s8 + $0x30] sm:$0xf] %vm1018_vm1, %v966_v40  ;;  %v870_v50 = vadd.f32 %v1613_v39, %v805_v44  ;;  %v886_v51 = vadd.f32 %v1613_v39, %v821_v45 }
 0x108   : > { %1047 = vst.msk [vmem:[%s1624_s8 + $0x70] sm:$0xf] %vm1018_vm1, %v982_v41  ;;  %v839_v52 = vadd.f32 %v1613_v39, %v774_v48  ;;  %v855_v53 = vadd.f32 %v1613_v39, %v790_v49 }
 0x109   : > { %v934_v54 = vmax.f32 %v870_v50, 0.0  ;;  %v950_v55 = vmax.f32 %v886_v51, 0.0 }
 0x10a   : > { %v903_v56 = vmax.f32 %v839_v52, 0.0  ;;  %v919_v57 = vmax.f32 %v855_v53, 0.0 }
 0x10b   : > { %v998_v58 = vpack.c.bf16 %v934_v54, %v934_v54  ;;  %v1014_v59 = vpack.c.bf16 %v950_v55, %v950_v55 }
 0x10c   : > { %v967_v60 = vpack.c.bf16 %v903_v56, %v903_v56  ;;  %v983_v61 = vpack.c.bf16 %v919_v57, %v919_v57  ;;  %v711_v62 = vpop.f32.mrf.mxu2  ;;  %v751_v63 = vpop.f32.mrf.mxu3 }
 0x10d   : > { %1063 = vst.msk [vmem:[%s1624_s8 + $0xb0] sm:$0xf] %vm1018_vm1, %v998_v58  ;;  %v806_v0 = vmul.f32 %v1611_v38, %v711_v62  ;;  %v822_v1 = vmul.f32 %v1611_v38, %v751_v63  ;;  %v634_v2 = vpop.f32.mrf.mxu0  ;;  %v674_v3 = vpop.f32.mrf.mxu1 }
 0x10e   : > { %1079 = vst.msk [vmem:[%s1624_s8 + $0xf0] sm:$0xf] %vm1018_vm1, %v1014_v59  ;;  %v775_v4 = vmul.f32 %v1611_v38, %v634_v2  ;;  %v791_v5 = vmul.f32 %v1611_v38, %v674_v3 }
 0x10f   : > { %1032 = vst.msk [vmem:[%s1624_s8 + $0x34] sm:$0xf] %vm1018_vm1, %v967_v60  ;;  %v871_v6 = vadd.f32 %v1613_v39, %v806_v0  ;;  %v887_v7 = vadd.f32 %v1613_v39, %v822_v1 }
 0x110   : > { %1048 = vst.msk [vmem:[%s1624_s8 + $0x74] sm:$0xf] %vm1018_vm1, %v983_v61  ;;  %v840_v8 = vadd.f32 %v1613_v39, %v775_v4  ;;  %v856_v9 = vadd.f32 %v1613_v39, %v791_v5 }
 0x111   : > { %v935_v10 = vmax.f32 %v871_v6, 0.0  ;;  %v951_v11 = vmax.f32 %v887_v7, 0.0 }
 0x112   : > { %v904_v12 = vmax.f32 %v840_v8, 0.0  ;;  %v920_v13 = vmax.f32 %v856_v9, 0.0 }
 0x113   : > { %v999_v14 = vpack.c.bf16 %v935_v10, %v935_v10  ;;  %v1015_v15 = vpack.c.bf16 %v951_v11, %v951_v11 }
 0x114   : > { %v968_v16 = vpack.c.bf16 %v904_v12, %v904_v12  ;;  %v984_v17 = vpack.c.bf16 %v920_v13, %v920_v13  ;;  %v714_v18 = vpop.f32.mrf.mxu2  ;;  %v754_v19 = vpop.f32.mrf.mxu3 }
 0x115   : > { %1064 = vst.msk [vmem:[%s1624_s8 + $0xb4] sm:$0xf] %vm1018_vm1, %v999_v14  ;;  %v807_v20 = vmul.f32 %v1611_v38, %v714_v18  ;;  %v823_v21 = vmul.f32 %v1611_v38, %v754_v19  ;;  %v636_v22 = vpop.f32.mrf.mxu0  ;;  %v676_v23 = vpop.f32.mrf.mxu1 }
 0x116   : > { %1080 = vst.msk [vmem:[%s1624_s8 + $0xf4] sm:$0xf] %vm1018_vm1, %v1015_v15  ;;  %v776_v24 = vmul.f32 %v1611_v38, %v636_v22  ;;  %v792_v25 = vmul.f32 %v1611_v38, %v676_v23 }
 0x117   : > { %1033 = vst.msk [vmem:[%s1624_s8 + $0x38] sm:$0xf] %vm1018_vm1, %v968_v16  ;;  %v872_v26 = vadd.f32 %v1613_v39, %v807_v20  ;;  %v888_v27 = vadd.f32 %v1613_v39, %v823_v21 }
 0x118   : > { %1049 = vst.msk [vmem:[%s1624_s8 + $0x78] sm:$0xf] %vm1018_vm1, %v984_v17  ;;  %v841_v28 = vadd.f32 %v1613_v39, %v776_v24  ;;  %v857_v29 = vadd.f32 %v1613_v39, %v792_v25 }
 0x119   : > { %v936_v30 = vmax.f32 %v872_v26, 0.0  ;;  %v952_v31 = vmax.f32 %v888_v27, 0.0 }
 0x11a   : > { %v905_v32 = vmax.f32 %v841_v28, 0.0  ;;  %v921_v33 = vmax.f32 %v857_v29, 0.0 }
 0x11b   : > { %v1000_v34 = vpack.c.bf16 %v936_v30, %v936_v30  ;;  %v1016_v35 = vpack.c.bf16 %v952_v31, %v952_v31 }
 0x11c   : > { %v969_v36 = vpack.c.bf16 %v905_v32, %v905_v32  ;;  %v985_v37 = vpack.c.bf16 %v921_v33, %v921_v33  ;;  %v716_v40 = vpop.f32.mrf.mxu2  ;;  %v756_v41 = vpop.f32.mrf.mxu3 }
 0x11d   : > { %1065 = vst.msk [vmem:[%s1624_s8 + $0xb8] sm:$0xf] %vm1018_vm1, %v1000_v34  ;;  %v808_v42 = vmul.f32 %v1611_v38, %v716_v40  ;;  %v824_v43 = vmul.f32 %v1611_v38, %v756_v41 }
 0x11e   : > { %1081 = vst.msk [vmem:[%s1624_s8 + $0xf8] sm:$0xf] %vm1018_vm1, %v1016_v35 }
 0x11f   : > { %1034 = vst.msk [vmem:[%s1624_s8 + $0x3c] sm:$0xf] %vm1018_vm1, %v969_v36  ;;  %v873_v44 = vadd.f32 %v1613_v39, %v808_v42  ;;  %v889_v45 = vadd.f32 %v1613_v39, %v824_v43 }
 0x120   : > { %1050 = vst.msk [vmem:[%s1624_s8 + $0x7c] sm:$0xf] %vm1018_vm1, %v985_v37 }
 0x121   : > { %v937_v46 = vmax.f32 %v873_v44, 0.0  ;;  %v953_v47 = vmax.f32 %v889_v45, 0.0 }
 0x123   : > { %v1001_v48 = vpack.c.bf16 %v937_v46, %v937_v46  ;;  %v1017_v49 = vpack.c.bf16 %v953_v47, %v953_v47 }
 0x125   : > { %1066 = vst.msk [vmem:[%s1624_s8 + $0xbc] sm:$0xf] %vm1018_vm1, %v1001_v48 }
 0x126   : > { %1082 = vst.msk [vmem:[%s1624_s8 + $0xfc] sm:$0xf] %vm1018_vm1, %v1017_v49 }
 0x127 PF: > { %s13_s14 = sadd.s32 1, %s1479_s14   ;;  %s1891_s12 = smov %s1475_s13 }
 0x128   : > { %p10_p5 = scmp.ge.s32.totalorder %s13_s14, 6   ;;  %s1892_s13 = smov %s1894_s15 }
 0x12a   :  { %12 = sbr.rel (!%p10_p5) target bundleno = 2 (0x2), region = 68 }

// kernel: _lambda_.18
= control target key start
LH: loop header
LB: loop body
LE: loop exit
PB: predicated region body
PF: predicated region fallthrough
CT: control target
= control target key end

     0   :  { %s1870_s15 = smov 0   ;;  %s1872_s16 = smov 0   ;;  %s2391_s0 = inlined_call_operand.vmem [shape: bf16[2048,16], index: 0, kind: input, shape index: {}]   ;;  %s2392_s1 = inlined_call_operand.vmem [shape: bf16[16,32], index: 1, kind: input, shape index: {}]   ;;  %s2393_s2 = inlined_call_operand.vmem [shape: f32[2,32], index: 2, kind: input, shape index: {}]   ;;  %s2394_s3 = inlined_call_operand.vmem [shape: bf16[2048,32], index: 3, kind: input, shape index: {}]   ;;  %s2395_s4 = inlined_call_operand.vmem [shape: bf16[2048,32], index: 4, kind: output, shape index: {}]  }
   0x1   :  { %s1874_s17 = smov 0  }
   0x2 LB: > { %s26_s18 = sadd.s32 1, %s1839_s16  ;;  %p1429_p0 = scmp.ge.s32.totalorder %s1843_s17, 1  ;;  %s1843_s17 = sphi %s1874_s17, %s14_s17   ;;  %s1839_s16 = sphi %s1872_s16, %s2397_s16   ;;  %s1835_s15 = sphi %s1870_s15, %s2396_s15  }
   0x3   : > { %p28_p1 = scmp.ge.s32.totalorder %s26_s18, 4  ;;  %p211_p2 = scmp.lt.s32.totalorder %s1843_s17, 5 }
   0x5   : > { %s2399_s18 = smov (%p28_p1, %s26_s18), 0  ;;  %p212_p3 = pnand %p1429_p0, %p211_p2 }
   0x6   : > { %s1430_s21 = sshll.u32 (!%p212_p3), %s1835_s15, 6 }
   0x7   : > { %215 = sbr.rel (%p212_p3) target bundleno = 282 (0x11a), region = 36  ;;  %p257_p4 = scmp.lt.s32.totalorder (!%p212_p3), %s1430_s21, 255 }
   0xc   : > { %v1634_v0 = vld [vmem:[%s2392_s1] sm:$0xff]  ;;  %s2401_s21 = smov (!%p257_p4, %s1430_s21), 255  ;;  %vm521_vm0 = vcmask 130048   ;;  %vm1238_vm1 = vcmask 257024  }
   0xd   : > { %625 = vmatpush.bf16.msra.mxu0 %v1634_v0  ;;  %1794 = vmatpush.bf16.msra.mxu1 %v1634_v0  ;;  %s1891_s22 = sshll.u32 %s2401_s21, 2  ;;  %v787_v33 = vld [vmem:[%s2393_s2] sm:$0x3] }
   0xe   : > { %1795 = vmatpush.bf16.msra.mxu2 %v1634_v0  ;;  %1796 = vmatpush.bf16.msra.mxu3 %v1634_v0  ;;  %s1897_s25 = scalar_lea.vmem %s2391_s0, %s1891_s22  ;;  %s1970_s30 = scalar_lea.vmem %s2394_s3, %s1891_s22  ;;  %v1972_v34 = vperm.slane %v787_v33, 0  ;;  %v1976_v37 = vperm.slane %v787_v33, 1 }
   0xf   : > { %v1602_v1 = vld [vmem:[%s1897_s25] sm:$0xff]  ;;  %v1603_v5 = vld [vmem:[%s1897_s25 + $0x8] sm:$0xff]  ;;  %v1604_v9 = vld [vmem:[%s1897_s25 + $0x10] sm:$0xff]  ;;  %s1994_s7 = scalar_lea.vmem %s2395_s4, %s1891_s22 }
  0x10   : > { %v1610_v2 = vld [vmem:[%s1897_s25 + $0x40] sm:$0xff]  ;;  %1568 = vmatmul.msk.bf16.vlgmr.msra.gmra.mxu0 %vm521_vm0, %v1602_v1  ;;  %v1611_v6 = vld [vmem:[%s1897_s25 + $0x48] sm:$0xff]  ;;  %v1612_v10 = vld [vmem:[%s1897_s25 + $0x50] sm:$0xff] }
  0x11   : > { %v1618_v3 = vld [vmem:[%s1897_s25 + $0x80] sm:$0xff]  ;;  %1576 = vmatmul.msk.bf16.vlgmr.msra.gmra.mxu1 %vm521_vm0, %v1610_v2  ;;  %v1619_v7 = vld [vmem:[%s1897_s25 + $0x88] sm:$0xff]  ;;  %v1620_v11 = vld [vmem:[%s1897_s25 + $0x90] sm:$0xff] }
  0x12   : > { %v1626_v4 = vld [vmem:[%s1897_s25 + $0xc0] sm:$0xff]  ;;  %1584 = vmatmul.msk.bf16.vlgmr.msra.gmra.mxu2 %vm521_vm0, %v1618_v3  ;;  %v1627_v8 = vld [vmem:[%s1897_s25 + $0xc8] sm:$0xff]  ;;  %v1628_v12 = vld [vmem:[%s1897_s25 + $0xd0] sm:$0xff] }
  0x13   : > { %1592 = vmatmul.msk.bf16.vlgmr.msra.gmra.mxu3 %vm521_vm0, %v1626_v4  ;;  %v1605_v13 = vld [vmem:[%s1897_s25 + $0x18] sm:$0xff]  ;;  %v1606_v17 = vld [vmem:[%s1897_s25 + $0x20] sm:$0xff]  ;;  %v1607_v21 = vld [vmem:[%s1897_s25 + $0x28] sm:$0xff] }
  0x14   : > { %v1613_v14 = vld [vmem:[%s1897_s25 + $0x58] sm:$0xff]  ;;  %v1614_v18 = vld [vmem:[%s1897_s25 + $0x60] sm:$0xff]  ;;  %v1615_v22 = vld [vmem:[%s1897_s25 + $0x68] sm:$0xff] }
  0x15   : > { %v1621_v15 = vld [vmem:[%s1897_s25 + $0x98] sm:$0xff]  ;;  %v1622_v19 = vld [vmem:[%s1897_s25 + $0xa0] sm:$0xff]  ;;  %v1623_v23 = vld [vmem:[%s1897_s25 + $0xa8] sm:$0xff] }
  0x16   : > { %v1629_v16 = vld [vmem:[%s1897_s25 + $0xd8] sm:$0xff]  ;;  %v1630_v20 = vld [vmem:[%s1897_s25 + $0xe0] sm:$0xff]  ;;  %v1631_v24 = vld [vmem:[%s1897_s25 + $0xe8] sm:$0xff] }
  0x17   : > { %v1608_v25 = vld [vmem:[%s1897_s25 + $0x30] sm:$0xff]  ;;  %v1609_v29 = vld [vmem:[%s1897_s25 + $0x38] sm:$0xff]  ;;  %v1636_v35 = vld [vmem:[%s1970_s30] sm:$0xff]  }
  0x18   : > { %v1616_v26 = vld [vmem:[%s1897_s25 + $0x70] sm:$0xff]  ;;  %v1617_v30 = vld [vmem:[%s1897_s25 + $0x78] sm:$0xff]  ;;  %v1770_v36 = vld [vmem:[%s1970_s30 + $0x40] sm:$0xff]   ;;  %v1637_v40 = vunpack.c.l.bf16 %v1636_v35  ;;  %v1638_v59 = vunpack.c.h.bf16 %v1636_v35 }
  0x19   : > { %v1624_v27 = vld [vmem:[%s1897_s25 + $0xb0] sm:$0xff]  ;;  %v1625_v31 = vld [vmem:[%s1897_s25 + $0xb8] sm:$0xff]  ;;  %v1669_v42 = vunpack.c.l.bf16 %v1770_v36  ;;  %v1983_v46 = vld [vmem:[%s1970_s30 + $0x80] sm:$0xff]   ;;  %v1670_v61 = vunpack.c.h.bf16 %v1770_v36 }
  0x1a   : > { %v1632_v28 = vld [vmem:[%s1897_s25 + $0xf0] sm:$0xff]  ;;  %v1633_v32 = vld [vmem:[%s1897_s25 + $0xf8] sm:$0xff]  ;;  %v1986_v47 = vld [vmem:[%s1970_s30 + $0xc0] sm:$0xff]   ;;  %v1701_v53 = vunpack.c.l.bf16 %v1983_v46 }
  0x1b   : > { %v1733_v55 = vunpack.c.l.bf16 %v1986_v47 }
  0x20   : > { %1569 = vmatmul.msk.bf16.gmra.mxu0 %vm521_vm0, %v1603_v5 }
  0x21   : > { %1577 = vmatmul.msk.bf16.gmra.mxu1 %vm521_vm0, %v1611_v6 }
  0x22   : > { %1585 = vmatmul.msk.bf16.gmra.mxu2 %vm521_vm0, %v1619_v7 }
  0x23   : > { %1593 = vmatmul.msk.bf16.gmra.mxu3 %vm521_vm0, %v1627_v8  ;;  %v2009_v8 = vld [vmem:[%s1970_s30 + $0x8] sm:$0xff]  }
  0x30   : > { %1570 = vmatmul.msk.bf16.gmra.mxu0 %vm521_vm0, %v1604_v9  ;;  %v2012_v9 = vld [vmem:[%s1970_s30 + $0x48] sm:$0xff]  }
  0x31   : > { %1578 = vmatmul.msk.bf16.gmra.mxu1 %vm521_vm0, %v1612_v10 }
  0x32   : > { %1586 = vmatmul.msk.bf16.gmra.mxu2 %vm521_vm0, %v1620_v11 }
  0x33   : > { %1594 = vmatmul.msk.bf16.gmra.mxu3 %vm521_vm0, %v1628_v12 }
  0x40   : > { %1571 = vmatmul.msk.bf16.gmra.mxu0 %vm521_vm0, %v1605_v13 }
  0x41   : > { %1579 = vmatmul.msk.bf16.gmra.mxu1 %vm521_vm0, %v1613_v14  ;;  %v1702_v14 = vunpack.c.h.bf16 %v1983_v46 }
  0x42   : > { %1587 = vmatmul.msk.bf16.gmra.mxu2 %vm521_vm0, %v1621_v15  ;;  %v1734_v15 = vunpack.c.h.bf16 %v1986_v47 }
  0x43   : > { %1595 = vmatmul.msk.bf16.gmra.mxu3 %vm521_vm0, %v1629_v16 }
  0x50   : > { %1572 = vmatmul.msk.bf16.gmra.mxu0 %vm521_vm0, %v1606_v17 }
  0x51   : > { %1580 = vmatmul.msk.bf16.gmra.mxu1 %vm521_vm0, %v1614_v18 }
  0x52   : > { %1588 = vmatmul.msk.bf16.gmra.mxu2 %vm521_vm0, %v1622_v19 }
  0x53   : > { %1596 = vmatmul.msk.bf16.gmra.mxu3 %vm521_vm0, %v1630_v20  ;;  %v1641_v20 = vunpack.c.l.bf16 %v2009_v8 }
  0x60   : > { %1573 = vmatmul.msk.bf16.gmra.mxu0 %vm521_vm0, %v1607_v21  ;;  %v1673_v21 = vunpack.c.l.bf16 %v2012_v9 }
  0x61   : > { %1581 = vmatmul.msk.bf16.gmra.mxu1 %vm521_vm0, %v1615_v22 }
  0x62   : > { %1589 = vmatmul.msk.bf16.gmra.mxu2 %vm521_vm0, %v1623_v23 }
  0x63   : > { %1597 = vmatmul.msk.bf16.gmra.mxu3 %vm521_vm0, %v1631_v24 }
  0x70   : > { %1574 = vmatmul.msk.bf16.gmra.mxu0 %vm521_vm0, %v1608_v25 }
  0x71   : > { %1582 = vmatmul.msk.bf16.gmra.mxu1 %vm521_vm0, %v1616_v26 }
  0x72   : > { %1590 = vmatmul.msk.bf16.gmra.mxu2 %vm521_vm0, %v1624_v27 }
  0x73   : > { %1598 = vmatmul.msk.bf16.gmra.mxu3 %vm521_vm0, %v1632_v28 }
  0x80   : > { %1575 = vmatmul.msk.bf16.gmra.mxu0 %vm521_vm0, %v1609_v29 }
  0x81   : > { %1583 = vmatmul.msk.bf16.gmra.mxu1 %vm521_vm0, %v1617_v30 }
  0x82   : > { %1591 = vmatmul.msk.bf16.gmra.mxu2 %vm521_vm0, %v1625_v31 }
  0x83   : > { %1599 = vmatmul.msk.bf16.gmra.mxu3 %vm521_vm0, %v1633_v32 }
  0x8d   : > { %v627_v38 = vpop.f32.mrf.mxu0 }
  0x8e   : > { %v667_v39 = vpop.f32.mrf.mxu1  ;;  %v853_v41 = vmul.f32 %v1972_v34, %v627_v38  ;;  %v2031_v38 = vld [vmem:[%s1970_s30 + $0x88] sm:$0xff]  }
  0x8f   : > { %v869_v43 = vmul.f32 %v1972_v34, %v667_v39  ;;  %v2034_v39 = vld [vmem:[%s1970_s30 + $0xc8] sm:$0xff]   ;;  %v1705_v46 = vunpack.c.l.bf16 %v2031_v38 }
  0x90   : > { %v918_v44 = vadd.f32 %v1976_v37, %v853_v41  ;;  %v1737_v47 = vunpack.c.l.bf16 %v2034_v39 }
  0x91   : > { %v934_v45 = vadd.f32 %v1976_v37, %v869_v43 }
  0x92   : > { %v1046_v48 = vadd.f32 %v1637_v40, %v918_v44 }
  0x93   : > { %v1062_v49 = vadd.f32 %v1669_v42, %v934_v45 }
  0x94   : > { %v1110_v50 = vmax.f32 %v1046_v48, 0.0 }
  0x95   : > { %v1126_v51 = vmax.f32 %v1062_v49, 0.0  ;;  %v707_v52 = vpop.f32.mrf.mxu2  ;;  %v629_v58 = vpop.f32.mrf.mxu0 }
  0x96   : > { %v747_v54 = vpop.f32.mrf.mxu3  ;;  %v885_v56 = vmul.f32 %v1972_v34, %v707_v52  ;;  %v669_v60 = vpop.f32.mrf.mxu1  ;;  %v1174_v62 = vpack.c.bf16 %v1110_v50, %v1110_v50  ;;  %v854_v0 = vmul.f32 %v1972_v34, %v629_v58  ;;  %v1642_v52 = vunpack.c.h.bf16 %v2009_v8 }
  0x97   : > { %v901_v57 = vmul.f32 %v1972_v34, %v747_v54  ;;  %v1190_v63 = vpack.c.bf16 %v1126_v51, %v1126_v51  ;;  %v870_v1 = vmul.f32 %v1972_v34, %v669_v60 }
  0x98   : > { %v950_v2 = vadd.f32 %v1976_v37, %v885_v56  ;;  %1239 = vst.msk [vmem:[%s1994_s7] sm:$0xf] %vm1238_vm1, %v1174_v62  ;;  %v919_v4 = vadd.f32 %v1976_v37, %v854_v0 }
  0x99   : > { %v966_v3 = vadd.f32 %v1976_v37, %v901_v57  ;;  %v935_v5 = vadd.f32 %v1976_v37, %v870_v1  ;;  %1255 = vst.msk [vmem:[%s1994_s7 + $0x40] sm:$0xf] %vm1238_vm1, %v1190_v63 }
  0x9a   : > { %v1078_v6 = vadd.f32 %v1701_v53, %v950_v2  ;;  %v1047_v10 = vadd.f32 %v1638_v59, %v919_v4  ;;  %v1674_v53 = vunpack.c.h.bf16 %v2012_v9 }
  0x9b   : > { %v1094_v7 = vadd.f32 %v1733_v55, %v966_v3  ;;  %v1063_v11 = vadd.f32 %v1670_v61, %v935_v5 }
  0x9c   : > { %v1142_v12 = vmax.f32 %v1078_v6, 0.0  ;;  %v1111_v16 = vmax.f32 %v1047_v10, 0.0  ;;  %v2059_v6 = vld [vmem:[%s1970_s30 + $0x10] sm:$0xff]  }
  0x9d   : > { %v1158_v13 = vmax.f32 %v1094_v7, 0.0  ;;  %v1127_v17 = vmax.f32 %v1063_v11, 0.0  ;;  %v709_v18 = vpop.f32.mrf.mxu2  ;;  %v632_v26 = vpop.f32.mrf.mxu0  ;;  %v2062_v7 = vld [vmem:[%s1970_s30 + $0x50] sm:$0xff]  }
  0x9e   : > { %v749_v19 = vpop.f32.mrf.mxu3  ;;  %v1206_v22 = vpack.c.bf16 %v1142_v12, %v1142_v12  ;;  %v886_v24 = vmul.f32 %v1972_v34, %v709_v18  ;;  %v672_v27 = vpop.f32.mrf.mxu1  ;;  %v1175_v28 = vpack.c.bf16 %v1111_v16, %v1111_v16  ;;  %v855_v30 = vmul.f32 %v1972_v34, %v632_v26 }
  0x9f   : > { %v1222_v23 = vpack.c.bf16 %v1158_v13, %v1158_v13  ;;  %v902_v25 = vmul.f32 %v1972_v34, %v749_v19  ;;  %v1191_v29 = vpack.c.bf16 %v1127_v17, %v1127_v17  ;;  %v871_v31 = vmul.f32 %v1972_v34, %v672_v27 }
  0xa0   : > { %1271 = vst.msk [vmem:[%s1994_s7 + $0x80] sm:$0xf] %vm1238_vm1, %v1206_v22  ;;  %v951_v32 = vadd.f32 %v1976_v37, %v886_v24  ;;  %v920_v35 = vadd.f32 %v1976_v37, %v855_v30  ;;  %v1706_v12 = vunpack.c.h.bf16 %v2031_v38  ;;  %v1738_v13 = vunpack.c.h.bf16 %v2034_v39 }
  0xa1   : > { %v967_v33 = vadd.f32 %v1976_v37, %v902_v25  ;;  %1287 = vst.msk [vmem:[%s1994_s7 + $0xc0] sm:$0xf] %vm1238_vm1, %v1222_v23  ;;  %v936_v36 = vadd.f32 %v1976_v37, %v871_v31  ;;  %v1645_v18 = vunpack.c.l.bf16 %v2059_v6  ;;  %v1677_v19 = vunpack.c.l.bf16 %v2062_v7 }
  0xa2   : > { %1240 = vst.msk [vmem:[%s1994_s7 + $0x4] sm:$0xf] %vm1238_vm1, %v1175_v28  ;;  %v1079_v40 = vadd.f32 %v1702_v14, %v951_v32  ;;  %v1048_v42 = vadd.f32 %v1641_v20, %v920_v35  ;;  %v2083_v35 = vld [vmem:[%s1970_s30 + $0x90] sm:$0xff]  }
  0xa3   : > { %v1095_v41 = vadd.f32 %v1734_v15, %v967_v33  ;;  %1256 = vst.msk [vmem:[%s1994_s7 + $0x44] sm:$0xf] %vm1238_vm1, %v1191_v29  ;;  %v1064_v43 = vadd.f32 %v1673_v21, %v936_v36  ;;  %v2086_v36 = vld [vmem:[%s1970_s30 + $0xd0] sm:$0xff]  }
  0xa4   : > { %v1143_v44 = vmax.f32 %v1079_v40, 0.0  ;;  %v1112_v48 = vmax.f32 %v1048_v42, 0.0 }
  0xa5   : > { %v1159_v45 = vmax.f32 %v1095_v41, 0.0  ;;  %v1128_v49 = vmax.f32 %v1064_v43, 0.0  ;;  %v712_v50 = vpop.f32.mrf.mxu2  ;;  %v634_v58 = vpop.f32.mrf.mxu0 }
  0xa6   : > { %v752_v51 = vpop.f32.mrf.mxu3  ;;  %v1207_v54 = vpack.c.bf16 %v1143_v44, %v1143_v44  ;;  %v887_v56 = vmul.f32 %v1972_v34, %v712_v50  ;;  %v674_v59 = vpop.f32.mrf.mxu1  ;;  %v1176_v60 = vpack.c.bf16 %v1112_v48, %v1112_v48  ;;  %v856_v62 = vmul.f32 %v1972_v34, %v634_v58 }
  0xa7   : > { %v1223_v55 = vpack.c.bf16 %v1159_v45, %v1159_v45  ;;  %v903_v57 = vmul.f32 %v1972_v34, %v752_v51  ;;  %v1192_v61 = vpack.c.bf16 %v1128_v49, %v1128_v49  ;;  %v872_v63 = vmul.f32 %v1972_v34, %v674_v59 }
  0xa8   : > { %1272 = vst.msk [vmem:[%s1994_s7 + $0x84] sm:$0xf] %vm1238_vm1, %v1207_v54  ;;  %v952_v0 = vadd.f32 %v1976_v37, %v887_v56  ;;  %v921_v2 = vadd.f32 %v1976_v37, %v856_v62  ;;  %v1709_v44 = vunpack.c.l.bf16 %v2083_v35  ;;  %v1741_v45 = vunpack.c.l.bf16 %v2086_v36 }
  0xa9   : > { %v968_v1 = vadd.f32 %v1976_v37, %v903_v57  ;;  %1288 = vst.msk [vmem:[%s1994_s7 + $0xc4] sm:$0xf] %vm1238_vm1, %v1223_v55  ;;  %v937_v3 = vadd.f32 %v1976_v37, %v872_v63  ;;  %v1646_v50 = vunpack.c.h.bf16 %v2059_v6  ;;  %v1678_v51 = vunpack.c.h.bf16 %v2062_v7 }
  0xaa   : > { %1241 = vst.msk [vmem:[%s1994_s7 + $0x8] sm:$0xf] %vm1238_vm1, %v1176_v60  ;;  %v1080_v4 = vadd.f32 %v1705_v46, %v952_v0  ;;  %v1049_v8 = vadd.f32 %v1642_v52, %v921_v2 }
  0xab   : > { %v1096_v5 = vadd.f32 %v1737_v47, %v968_v1  ;;  %1257 = vst.msk [vmem:[%s1994_s7 + $0x48] sm:$0xf] %vm1238_vm1, %v1192_v61  ;;  %v1065_v9 = vadd.f32 %v1674_v53, %v937_v3 }
  0xac   : > { %v1144_v10 = vmax.f32 %v1080_v4, 0.0  ;;  %v1113_v14 = vmax.f32 %v1049_v8, 0.0  ;;  %v2111_v4 = vld [vmem:[%s1970_s30 + $0x18] sm:$0xff]  }
  0xad   : > { %v1160_v11 = vmax.f32 %v1096_v5, 0.0  ;;  %v1129_v15 = vmax.f32 %v1065_v9, 0.0  ;;  %v714_v16 = vpop.f32.mrf.mxu2  ;;  %v637_v24 = vpop.f32.mrf.mxu0  ;;  %v2114_v5 = vld [vmem:[%s1970_s30 + $0x58] sm:$0xff]  }
  0xae   : > { %v754_v17 = vpop.f32.mrf.mxu3  ;;  %v1208_v20 = vpack.c.bf16 %v1144_v10, %v1144_v10  ;;  %v888_v22 = vmul.f32 %v1972_v34, %v714_v16  ;;  %v677_v25 = vpop.f32.mrf.mxu1  ;;  %v1177_v26 = vpack.c.bf16 %v1113_v14, %v1113_v14  ;;  %v857_v28 = vmul.f32 %v1972_v34, %v637_v24 }
  0xaf   : > { %v1224_v21 = vpack.c.bf16 %v1160_v11, %v1160_v11  ;;  %v904_v23 = vmul.f32 %v1972_v34, %v754_v17  ;;  %v1193_v27 = vpack.c.bf16 %v1129_v15, %v1129_v15  ;;  %v873_v29 = vmul.f32 %v1972_v34, %v677_v25 }
  0xb0   : > { %1273 = vst.msk [vmem:[%s1994_s7 + $0x88] sm:$0xf] %vm1238_vm1, %v1208_v20  ;;  %v953_v30 = vadd.f32 %v1976_v37, %v888_v22  ;;  %v922_v32 = vadd.f32 %v1976_v37, %v857_v28  ;;  %v1710_v10 = vunpack.c.h.bf16 %v2083_v35  ;;  %v1742_v11 = vunpack.c.h.bf16 %v2086_v36 }
  0xb1   : > { %v969_v31 = vadd.f32 %v1976_v37, %v904_v23  ;;  %1289 = vst.msk [vmem:[%s1994_s7 + $0xc8] sm:$0xf] %vm1238_vm1, %v1224_v21  ;;  %v938_v33 = vadd.f32 %v1976_v37, %v873_v29  ;;  %v1649_v16 = vunpack.c.l.bf16 %v2111_v4  ;;  %v1681_v17 = vunpack.c.l.bf16 %v2114_v5 }
  0xb2   : > { %1242 = vst.msk [vmem:[%s1994_s7 + $0xc] sm:$0xf] %vm1238_vm1, %v1177_v26  ;;  %v1081_v38 = vadd.f32 %v1706_v12, %v953_v30  ;;  %v1050_v40 = vadd.f32 %v1645_v18, %v922_v32  ;;  %v2135_v32 = vld [vmem:[%s1970_s30 + $0x98] sm:$0xff]  }
  0xb3   : > { %v1097_v39 = vadd.f32 %v1738_v13, %v969_v31  ;;  %1258 = vst.msk [vmem:[%s1994_s7 + $0x4c] sm:$0xf] %vm1238_vm1, %v1193_v27  ;;  %v1066_v41 = vadd.f32 %v1677_v19, %v938_v33  ;;  %v2138_v33 = vld [vmem:[%s1970_s30 + $0xd8] sm:$0xff]  }
  0xb4   : > { %v1145_v42 = vmax.f32 %v1081_v38, 0.0  ;;  %v1114_v46 = vmax.f32 %v1050_v40, 0.0 }
  0xb5   : > { %v1161_v43 = vmax.f32 %v1097_v39, 0.0  ;;  %v1130_v47 = vmax.f32 %v1066_v41, 0.0  ;;  %v717_v48 = vpop.f32.mrf.mxu2  ;;  %v639_v56 = vpop.f32.mrf.mxu0 }
  0xb6   : > { %v757_v49 = vpop.f32.mrf.mxu3  ;;  %v1209_v52 = vpack.c.bf16 %v1145_v42, %v1145_v42  ;;  %v889_v54 = vmul.f32 %v1972_v34, %v717_v48  ;;  %v679_v57 = vpop.f32.mrf.mxu1  ;;  %v1178_v58 = vpack.c.bf16 %v1114_v46, %v1114_v46  ;;  %v858_v60 = vmul.f32 %v1972_v34, %v639_v56 }
  0xb7   : > { %v1225_v53 = vpack.c.bf16 %v1161_v43, %v1161_v43  ;;  %v905_v55 = vmul.f32 %v1972_v34, %v757_v49  ;;  %v1194_v59 = vpack.c.bf16 %v1130_v47, %v1130_v47  ;;  %v874_v61 = vmul.f32 %v1972_v34, %v679_v57 }
  0xb8   : > { %1274 = vst.msk [vmem:[%s1994_s7 + $0x8c] sm:$0xf] %vm1238_vm1, %v1209_v52  ;;  %v954_v62 = vadd.f32 %v1976_v37, %v889_v54  ;;  %v923_v0 = vadd.f32 %v1976_v37, %v858_v60  ;;  %v1713_v42 = vunpack.c.l.bf16 %v2135_v32  ;;  %v1745_v43 = vunpack.c.l.bf16 %v2138_v33 }
  0xb9   : > { %v970_v63 = vadd.f32 %v1976_v37, %v905_v55  ;;  %1290 = vst.msk [vmem:[%s1994_s7 + $0xcc] sm:$0xf] %vm1238_vm1, %v1225_v53  ;;  %v939_v1 = vadd.f32 %v1976_v37, %v874_v61  ;;  %v1650_v48 = vunpack.c.h.bf16 %v2111_v4  ;;  %v1682_v49 = vunpack.c.h.bf16 %v2114_v5 }
  0xba   : > { %1243 = vst.msk [vmem:[%s1994_s7 + $0x10] sm:$0xf] %vm1238_vm1, %v1178_v58  ;;  %v1082_v2 = vadd.f32 %v1709_v44, %v954_v62  ;;  %v1051_v6 = vadd.f32 %v1646_v50, %v923_v0 }
  0xbb   : > { %v1098_v3 = vadd.f32 %v1741_v45, %v970_v63  ;;  %1259 = vst.msk [vmem:[%s1994_s7 + $0x50] sm:$0xf] %vm1238_vm1, %v1194_v59  ;;  %v1067_v7 = vadd.f32 %v1678_v51, %v939_v1 }
  0xbc   : > { %v1146_v8 = vmax.f32 %v1082_v2, 0.0  ;;  %v1115_v12 = vmax.f32 %v1051_v6, 0.0  ;;  %v2163_v2 = vld [vmem:[%s1970_s30 + $0x20] sm:$0xff]  }
  0xbd   : > { %v1162_v9 = vmax.f32 %v1098_v3, 0.0  ;;  %v1131_v13 = vmax.f32 %v1067_v7, 0.0  ;;  %v719_v14 = vpop.f32.mrf.mxu2  ;;  %v642_v22 = vpop.f32.mrf.mxu0  ;;  %v2166_v3 = vld [vmem:[%s1970_s30 + $0x60] sm:$0xff]  }
  0xbe   : > { %v759_v15 = vpop.f32.mrf.mxu3  ;;  %v1210_v18 = vpack.c.bf16 %v1146_v8, %v1146_v8  ;;  %v890_v20 = vmul.f32 %v1972_v34, %v719_v14  ;;  %v682_v23 = vpop.f32.mrf.mxu1  ;;  %v1179_v24 = vpack.c.bf16 %v1115_v12, %v1115_v12  ;;  %v859_v26 = vmul.f32 %v1972_v34, %v642_v22 }
  0xbf   : > { %v1226_v19 = vpack.c.bf16 %v1162_v9, %v1162_v9  ;;  %v906_v21 = vmul.f32 %v1972_v34, %v759_v15  ;;  %v1195_v25 = vpack.c.bf16 %v1131_v13, %v1131_v13  ;;  %v875_v27 = vmul.f32 %v1972_v34, %v682_v23 }
  0xc0   : > { %1275 = vst.msk [vmem:[%s1994_s7 + $0x90] sm:$0xf] %vm1238_vm1, %v1210_v18  ;;  %v955_v28 = vadd.f32 %v1976_v37, %v890_v20  ;;  %v924_v30 = vadd.f32 %v1976_v37, %v859_v26  ;;  %v1714_v8 = vunpack.c.h.bf16 %v2135_v32  ;;  %v1746_v9 = vunpack.c.h.bf16 %v2138_v33 }
  0xc1   : > { %v971_v29 = vadd.f32 %v1976_v37, %v906_v21  ;;  %1291 = vst.msk [vmem:[%s1994_s7 + $0xd0] sm:$0xf] %vm1238_vm1, %v1226_v19  ;;  %v940_v31 = vadd.f32 %v1976_v37, %v875_v27  ;;  %v1653_v14 = vunpack.c.l.bf16 %v2163_v2  ;;  %v1685_v15 = vunpack.c.l.bf16 %v2166_v3 }
  0xc2   : > { %1244 = vst.msk [vmem:[%s1994_s7 + $0x14] sm:$0xf] %vm1238_vm1, %v1179_v24  ;;  %v1083_v35 = vadd.f32 %v1710_v10, %v955_v28  ;;  %v1052_v38 = vadd.f32 %v1649_v16, %v924_v30  ;;  %v2187_v30 = vld [vmem:[%s1970_s30 + $0xa0] sm:$0xff]  }
  0xc3   : > { %v1099_v36 = vadd.f32 %v1742_v11, %v971_v29  ;;  %1260 = vst.msk [vmem:[%s1994_s7 + $0x54] sm:$0xf] %vm1238_vm1, %v1195_v25  ;;  %v1068_v39 = vadd.f32 %v1681_v17, %v940_v31  ;;  %v2190_v31 = vld [vmem:[%s1970_s30 + $0xe0] sm:$0xff]  }
  0xc4   : > { %v1147_v40 = vmax.f32 %v1083_v35, 0.0  ;;  %v1116_v44 = vmax.f32 %v1052_v38, 0.0 }
  0xc5   : > { %v1163_v41 = vmax.f32 %v1099_v36, 0.0  ;;  %v1132_v45 = vmax.f32 %v1068_v39, 0.0  ;;  %v722_v46 = vpop.f32.mrf.mxu2  ;;  %v644_v54 = vpop.f32.mrf.mxu0 }
  0xc6   : > { %v762_v47 = vpop.f32.mrf.mxu3  ;;  %v1211_v50 = vpack.c.bf16 %v1147_v40, %v1147_v40  ;;  %v891_v52 = vmul.f32 %v1972_v34, %v722_v46  ;;  %v684_v55 = vpop.f32.mrf.mxu1  ;;  %v1180_v56 = vpack.c.bf16 %v1116_v44, %v1116_v44  ;;  %v860_v58 = vmul.f32 %v1972_v34, %v644_v54 }
  0xc7   : > { %v1227_v51 = vpack.c.bf16 %v1163_v41, %v1163_v41  ;;  %v907_v53 = vmul.f32 %v1972_v34, %v762_v47  ;;  %v1196_v57 = vpack.c.bf16 %v1132_v45, %v1132_v45  ;;  %v876_v59 = vmul.f32 %v1972_v34, %v684_v55 }
  0xc8   : > { %1276 = vst.msk [vmem:[%s1994_s7 + $0x94] sm:$0xf] %vm1238_vm1, %v1211_v50  ;;  %v956_v60 = vadd.f32 %v1976_v37, %v891_v52  ;;  %v925_v62 = vadd.f32 %v1976_v37, %v860_v58  ;;  %v1717_v40 = vunpack.c.l.bf16 %v2187_v30  ;;  %v1749_v41 = vunpack.c.l.bf16 %v2190_v31 }
  0xc9   : > { %v972_v61 = vadd.f32 %v1976_v37, %v907_v53  ;;  %1292 = vst.msk [vmem:[%s1994_s7 + $0xd4] sm:$0xf] %vm1238_vm1, %v1227_v51  ;;  %v941_v63 = vadd.f32 %v1976_v37, %v876_v59  ;;  %v1654_v46 = vunpack.c.h.bf16 %v2163_v2  ;;  %v1686_v47 = vunpack.c.h.bf16 %v2166_v3 }
  0xca   : > { %1245 = vst.msk [vmem:[%s1994_s7 + $0x18] sm:$0xf] %vm1238_vm1, %v1180_v56  ;;  %v1084_v0 = vadd.f32 %v1713_v42, %v956_v60  ;;  %v1053_v4 = vadd.f32 %v1650_v48, %v925_v62 }
  0xcb   : > { %v1100_v1 = vadd.f32 %v1745_v43, %v972_v61  ;;  %1261 = vst.msk [vmem:[%s1994_s7 + $0x58] sm:$0xf] %vm1238_vm1, %v1196_v57  ;;  %v1069_v5 = vadd.f32 %v1682_v49, %v941_v63 }
  0xcc   : > { %v1148_v6 = vmax.f32 %v1084_v0, 0.0  ;;  %v1117_v10 = vmax.f32 %v1053_v4, 0.0  ;;  %v2215_v0 = vld [vmem:[%s1970_s30 + $0x28] sm:$0xff]  }
  0xcd   : > { %v1164_v7 = vmax.f32 %v1100_v1, 0.0  ;;  %v1133_v11 = vmax.f32 %v1069_v5, 0.0  ;;  %v724_v12 = vpop.f32.mrf.mxu2  ;;  %v647_v20 = vpop.f32.mrf.mxu0  ;;  %v2218_v1 = vld [vmem:[%s1970_s30 + $0x68] sm:$0xff]  }
  0xce   : > { %v764_v13 = vpop.f32.mrf.mxu3  ;;  %v1212_v16 = vpack.c.bf16 %v1148_v6, %v1148_v6  ;;  %v892_v18 = vmul.f32 %v1972_v34, %v724_v12  ;;  %v687_v21 = vpop.f32.mrf.mxu1  ;;  %v1181_v22 = vpack.c.bf16 %v1117_v10, %v1117_v10  ;;  %v861_v24 = vmul.f32 %v1972_v34, %v647_v20 }
  0xcf   : > { %v1228_v17 = vpack.c.bf16 %v1164_v7, %v1164_v7  ;;  %v908_v19 = vmul.f32 %v1972_v34, %v764_v13  ;;  %v1197_v23 = vpack.c.bf16 %v1133_v11, %v1133_v11  ;;  %v877_v25 = vmul.f32 %v1972_v34, %v687_v21 }
  0xd0   : > { %1277 = vst.msk [vmem:[%s1994_s7 + $0x98] sm:$0xf] %vm1238_vm1, %v1212_v16  ;;  %v957_v26 = vadd.f32 %v1976_v37, %v892_v18  ;;  %v926_v28 = vadd.f32 %v1976_v37, %v861_v24  ;;  %v1718_v6 = vunpack.c.h.bf16 %v2187_v30  ;;  %v1750_v7 = vunpack.c.h.bf16 %v2190_v31 }
  0xd1   : > { %v973_v27 = vadd.f32 %v1976_v37, %v908_v19  ;;  %1293 = vst.msk [vmem:[%s1994_s7 + $0xd8] sm:$0xf] %vm1238_vm1, %v1228_v17  ;;  %v942_v29 = vadd.f32 %v1976_v37, %v877_v25  ;;  %v1657_v12 = vunpack.c.l.bf16 %v2215_v0  ;;  %v1689_v13 = vunpack.c.l.bf16 %v2218_v1 }
  0xd2   : > { %1246 = vst.msk [vmem:[%s1994_s7 + $0x1c] sm:$0xf] %vm1238_vm1, %v1181_v22  ;;  %v1085_v32 = vadd.f32 %v1714_v8, %v957_v26  ;;  %v1054_v35 = vadd.f32 %v1653_v14, %v926_v28  ;;  %v2239_v28 = vld [vmem:[%s1970_s30 + $0xa8] sm:$0xff]  }
  0xd3   : > { %v1101_v33 = vadd.f32 %v1746_v9, %v973_v27  ;;  %1262 = vst.msk [vmem:[%s1994_s7 + $0x5c] sm:$0xf] %vm1238_vm1, %v1197_v23  ;;  %v1070_v36 = vadd.f32 %v1685_v15, %v942_v29  ;;  %v2242_v29 = vld [vmem:[%s1970_s30 + $0xe8] sm:$0xff]  }
  0xd4   : > { %v1149_v38 = vmax.f32 %v1085_v32, 0.0  ;;  %v1118_v42 = vmax.f32 %v1054_v35, 0.0 }
  0xd5   : > { %v1165_v39 = vmax.f32 %v1101_v33, 0.0  ;;  %v1134_v43 = vmax.f32 %v1070_v36, 0.0  ;;  %v727_v44 = vpop.f32.mrf.mxu2  ;;  %v649_v52 = vpop.f32.mrf.mxu0 }
  0xd6   : > { %v767_v45 = vpop.f32.mrf.mxu3  ;;  %v1213_v48 = vpack.c.bf16 %v1149_v38, %v1149_v38  ;;  %v893_v50 = vmul.f32 %v1972_v34, %v727_v44  ;;  %v689_v53 = vpop.f32.mrf.mxu1  ;;  %v1182_v54 = vpack.c.bf16 %v1118_v42, %v1118_v42  ;;  %v862_v56 = vmul.f32 %v1972_v34, %v649_v52 }
  0xd7   : > { %v1229_v49 = vpack.c.bf16 %v1165_v39, %v1165_v39  ;;  %v909_v51 = vmul.f32 %v1972_v34, %v767_v45  ;;  %v1198_v55 = vpack.c.bf16 %v1134_v43, %v1134_v43  ;;  %v878_v57 = vmul.f32 %v1972_v34, %v689_v53 }
  0xd8   : > { %1278 = vst.msk [vmem:[%s1994_s7 + $0x9c] sm:$0xf] %vm1238_vm1, %v1213_v48  ;;  %v958_v58 = vadd.f32 %v1976_v37, %v893_v50  ;;  %v927_v60 = vadd.f32 %v1976_v37, %v862_v56  ;;  %v1721_v38 = vunpack.c.l.bf16 %v2239_v28  ;;  %v1753_v39 = vunpack.c.l.bf16 %v2242_v29 }
  0xd9   : > { %v974_v59 = vadd.f32 %v1976_v37, %v909_v51  ;;  %1294 = vst.msk [vmem:[%s1994_s7 + $0xdc] sm:$0xf] %vm1238_vm1, %v1229_v49  ;;  %v943_v61 = vadd.f32 %v1976_v37, %v878_v57  ;;  %v1658_v44 = vunpack.c.h.bf16 %v2215_v0  ;;  %v1690_v45 = vunpack.c.h.bf16 %v2218_v1 }
  0xda   : > { %1247 = vst.msk [vmem:[%s1994_s7 + $0x20] sm:$0xf] %vm1238_vm1, %v1182_v54  ;;  %v1086_v62 = vadd.f32 %v1717_v40, %v958_v58  ;;  %v1055_v2 = vadd.f32 %v1654_v46, %v927_v60 }
  0xdb   : > { %v1102_v63 = vadd.f32 %v1749_v41, %v974_v59  ;;  %1263 = vst.msk [vmem:[%s1994_s7 + $0x60] sm:$0xf] %vm1238_vm1, %v1198_v55  ;;  %v1071_v3 = vadd.f32 %v1686_v47, %v943_v61 }
  0xdc   : > { %v1150_v4 = vmax.f32 %v1086_v62, 0.0  ;;  %v1119_v8 = vmax.f32 %v1055_v2, 0.0  ;;  %v2267_v62 = vld [vmem:[%s1970_s30 + $0x30] sm:$0xff]  }
  0xdd   : > { %v1166_v5 = vmax.f32 %v1102_v63, 0.0  ;;  %v1135_v9 = vmax.f32 %v1071_v3, 0.0  ;;  %v729_v10 = vpop.f32.mrf.mxu2  ;;  %v652_v18 = vpop.f32.mrf.mxu0  ;;  %v2270_v63 = vld [vmem:[%s1970_s30 + $0x70] sm:$0xff]  }
  0xde   : > { %v769_v11 = vpop.f32.mrf.mxu3  ;;  %v1214_v14 = vpack.c.bf16 %v1150_v4, %v1150_v4  ;;  %v894_v16 = vmul.f32 %v1972_v34, %v729_v10  ;;  %v692_v19 = vpop.f32.mrf.mxu1  ;;  %v1183_v20 = vpack.c.bf16 %v1119_v8, %v1119_v8  ;;  %v863_v22 = vmul.f32 %v1972_v34, %v652_v18 }
  0xdf   : > { %v1230_v15 = vpack.c.bf16 %v1166_v5, %v1166_v5  ;;  %v910_v17 = vmul.f32 %v1972_v34, %v769_v11  ;;  %v1199_v21 = vpack.c.bf16 %v1135_v9, %v1135_v9  ;;  %v879_v23 = vmul.f32 %v1972_v34, %v692_v19 }
  0xe0   : > { %1279 = vst.msk [vmem:[%s1994_s7 + $0xa0] sm:$0xf] %vm1238_vm1, %v1214_v14  ;;  %v959_v24 = vadd.f32 %v1976_v37, %v894_v16  ;;  %v928_v26 = vadd.f32 %v1976_v37, %v863_v22  ;;  %v1722_v4 = vunpack.c.h.bf16 %v2239_v28  ;;  %v1754_v5 = vunpack.c.h.bf16 %v2242_v29 }
  0xe1   : > { %v975_v25 = vadd.f32 %v1976_v37, %v910_v17  ;;  %1295 = vst.msk [vmem:[%s1994_s7 + $0xe0] sm:$0xf] %vm1238_vm1, %v1230_v15  ;;  %v944_v27 = vadd.f32 %v1976_v37, %v879_v23  ;;  %v1661_v10 = vunpack.c.l.bf16 %v2267_v62  ;;  %v1693_v11 = vunpack.c.l.bf16 %v2270_v63 }
  0xe2   : > { %1248 = vst.msk [vmem:[%s1994_s7 + $0x24] sm:$0xf] %vm1238_vm1, %v1183_v20  ;;  %v1087_v30 = vadd.f32 %v1718_v6, %v959_v24  ;;  %v1056_v32 = vadd.f32 %v1657_v12, %v928_v26  ;;  %v2291_v26 = vld [vmem:[%s1970_s30 + $0xb0] sm:$0xff]  }
  0xe3   : > { %v1103_v31 = vadd.f32 %v1750_v7, %v975_v25  ;;  %1264 = vst.msk [vmem:[%s1994_s7 + $0x64] sm:$0xf] %vm1238_vm1, %v1199_v21  ;;  %v1072_v33 = vadd.f32 %v1689_v13, %v944_v27  ;;  %v2294_v27 = vld [vmem:[%s1970_s30 + $0xf0] sm:$0xff]  }
  0xe4   : > { %v1151_v35 = vmax.f32 %v1087_v30, 0.0  ;;  %v1120_v40 = vmax.f32 %v1056_v32, 0.0 }
  0xe5   : > { %v1167_v36 = vmax.f32 %v1103_v31, 0.0  ;;  %v1136_v41 = vmax.f32 %v1072_v33, 0.0  ;;  %v732_v42 = vpop.f32.mrf.mxu2  ;;  %v654_v50 = vpop.f32.mrf.mxu0 }
  0xe6   : > { %v772_v43 = vpop.f32.mrf.mxu3  ;;  %v1215_v46 = vpack.c.bf16 %v1151_v35, %v1151_v35  ;;  %v895_v48 = vmul.f32 %v1972_v34, %v732_v42  ;;  %v694_v51 = vpop.f32.mrf.mxu1  ;;  %v1184_v52 = vpack.c.bf16 %v1120_v40, %v1120_v40  ;;  %v864_v54 = vmul.f32 %v1972_v34, %v654_v50 }
  0xe7   : > { %v1231_v47 = vpack.c.bf16 %v1167_v36, %v1167_v36  ;;  %v911_v49 = vmul.f32 %v1972_v34, %v772_v43  ;;  %v1200_v53 = vpack.c.bf16 %v1136_v41, %v1136_v41  ;;  %v880_v55 = vmul.f32 %v1972_v34, %v694_v51 }
  0xe8   : > { %1280 = vst.msk [vmem:[%s1994_s7 + $0xa4] sm:$0xf] %vm1238_vm1, %v1215_v46  ;;  %v960_v56 = vadd.f32 %v1976_v37, %v895_v48  ;;  %v929_v58 = vadd.f32 %v1976_v37, %v864_v54  ;;  %v1725_v35 = vunpack.c.l.bf16 %v2291_v26  ;;  %v1757_v36 = vunpack.c.l.bf16 %v2294_v27 }
  0xe9   : > { %v976_v57 = vadd.f32 %v1976_v37, %v911_v49  ;;  %1296 = vst.msk [vmem:[%s1994_s7 + $0xe4] sm:$0xf] %vm1238_vm1, %v1231_v47  ;;  %v945_v59 = vadd.f32 %v1976_v37, %v880_v55  ;;  %v1662_v42 = vunpack.c.h.bf16 %v2267_v62  ;;  %v1694_v43 = vunpack.c.h.bf16 %v2270_v63 }
  0xea   : > { %1249 = vst.msk [vmem:[%s1994_s7 + $0x28] sm:$0xf] %vm1238_vm1, %v1184_v52  ;;  %v1088_v60 = vadd.f32 %v1721_v38, %v960_v56  ;;  %v1057_v0 = vadd.f32 %v1658_v44, %v929_v58 }
  0xeb   : > { %v1104_v61 = vadd.f32 %v1753_v39, %v976_v57  ;;  %1265 = vst.msk [vmem:[%s1994_s7 + $0x68] sm:$0xf] %vm1238_vm1, %v1200_v53  ;;  %v1073_v1 = vadd.f32 %v1690_v45, %v945_v59 }
  0xec   : > { %v1152_v2 = vmax.f32 %v1088_v60, 0.0  ;;  %v1121_v6 = vmax.f32 %v1057_v0, 0.0  ;;  %v2319_v60 = vld [vmem:[%s1970_s30 + $0x38] sm:$0xff]  }
  0xed   : > { %v1168_v3 = vmax.f32 %v1104_v61, 0.0  ;;  %v1137_v7 = vmax.f32 %v1073_v1, 0.0  ;;  %v734_v8 = vpop.f32.mrf.mxu2  ;;  %v657_v16 = vpop.f32.mrf.mxu0  ;;  %v2322_v61 = vld [vmem:[%s1970_s30 + $0x78] sm:$0xff]  }
  0xee   : > { %v774_v9 = vpop.f32.mrf.mxu3  ;;  %v1216_v12 = vpack.c.bf16 %v1152_v2, %v1152_v2  ;;  %v896_v14 = vmul.f32 %v1972_v34, %v734_v8  ;;  %v697_v17 = vpop.f32.mrf.mxu1  ;;  %v1185_v18 = vpack.c.bf16 %v1121_v6, %v1121_v6  ;;  %v865_v20 = vmul.f32 %v1972_v34, %v657_v16 }
  0xef   : > { %v1232_v13 = vpack.c.bf16 %v1168_v3, %v1168_v3  ;;  %v912_v15 = vmul.f32 %v1972_v34, %v774_v9  ;;  %v1201_v19 = vpack.c.bf16 %v1137_v7, %v1137_v7  ;;  %v881_v21 = vmul.f32 %v1972_v34, %v697_v17 }
  0xf0   : > { %1281 = vst.msk [vmem:[%s1994_s7 + $0xa8] sm:$0xf] %vm1238_vm1, %v1216_v12  ;;  %v961_v22 = vadd.f32 %v1976_v37, %v896_v14  ;;  %v930_v24 = vadd.f32 %v1976_v37, %v865_v20  ;;  %v1726_v2 = vunpack.c.h.bf16 %v2291_v26  ;;  %v1758_v3 = vunpack.c.h.bf16 %v2294_v27 }
  0xf1   : > { %v977_v23 = vadd.f32 %v1976_v37, %v912_v15  ;;  %1297 = vst.msk [vmem:[%s1994_s7 + $0xe8] sm:$0xf] %vm1238_vm1, %v1232_v13  ;;  %v946_v25 = vadd.f32 %v1976_v37, %v881_v21  ;;  %v1665_v8 = vunpack.c.l.bf16 %v2319_v60  ;;  %v1697_v9 = vunpack.c.l.bf16 %v2322_v61 }
  0xf2   : > { %1250 = vst.msk [vmem:[%s1994_s7 + $0x2c] sm:$0xf] %vm1238_vm1, %v1185_v18  ;;  %v1089_v28 = vadd.f32 %v1722_v4, %v961_v22  ;;  %v1058_v30 = vadd.f32 %v1661_v10, %v930_v24  ;;  %v1785_v24 = vld [vmem:[%s1970_s30 + $0xb8] sm:$0xff]  }
  0xf3   : > { %v1105_v29 = vadd.f32 %v1754_v5, %v977_v23  ;;  %1266 = vst.msk [vmem:[%s1994_s7 + $0x6c] sm:$0xf] %vm1238_vm1, %v1201_v19  ;;  %v1074_v31 = vadd.f32 %v1693_v11, %v946_v25  ;;  %v1793_v25 = vld [vmem:[%s1970_s30 + $0xf8] sm:$0xff]  }
  0xf4   : > { %v1153_v32 = vmax.f32 %v1089_v28, 0.0  ;;  %v1122_v38 = vmax.f32 %v1058_v30, 0.0 }
  0xf5   : > { %v1169_v33 = vmax.f32 %v1105_v29, 0.0  ;;  %v1138_v39 = vmax.f32 %v1074_v31, 0.0  ;;  %v737_v40 = vpop.f32.mrf.mxu2  ;;  %v659_v48 = vpop.f32.mrf.mxu0 }
  0xf6   : > { %v777_v41 = vpop.f32.mrf.mxu3  ;;  %v1217_v44 = vpack.c.bf16 %v1153_v32, %v1153_v32  ;;  %v897_v46 = vmul.f32 %v1972_v34, %v737_v40  ;;  %v699_v49 = vpop.f32.mrf.mxu1  ;;  %v1186_v50 = vpack.c.bf16 %v1122_v38, %v1122_v38  ;;  %v866_v52 = vmul.f32 %v1972_v34, %v659_v48 }
  0xf7   : > { %v1233_v45 = vpack.c.bf16 %v1169_v33, %v1169_v33  ;;  %v913_v47 = vmul.f32 %v1972_v34, %v777_v41  ;;  %v1202_v51 = vpack.c.bf16 %v1138_v39, %v1138_v39  ;;  %v882_v53 = vmul.f32 %v1972_v34, %v699_v49 }
  0xf8   : > { %1282 = vst.msk [vmem:[%s1994_s7 + $0xac] sm:$0xf] %vm1238_vm1, %v1217_v44  ;;  %v962_v54 = vadd.f32 %v1976_v37, %v897_v46  ;;  %v931_v56 = vadd.f32 %v1976_v37, %v866_v52  ;;  %v1729_v32 = vunpack.c.l.bf16 %v1785_v24  ;;  %v1761_v33 = vunpack.c.l.bf16 %v1793_v25 }
  0xf9   : > { %v978_v55 = vadd.f32 %v1976_v37, %v913_v47  ;;  %1298 = vst.msk [vmem:[%s1994_s7 + $0xec] sm:$0xf] %vm1238_vm1, %v1233_v45  ;;  %v947_v57 = vadd.f32 %v1976_v37, %v882_v53  ;;  %v1666_v40 = vunpack.c.h.bf16 %v2319_v60  ;;  %v1698_v41 = vunpack.c.h.bf16 %v2322_v61 }
  0xfa   : > { %1251 = vst.msk [vmem:[%s1994_s7 + $0x30] sm:$0xf] %vm1238_vm1, %v1186_v50  ;;  %v1090_v58 = vadd.f32 %v1725_v35, %v962_v54  ;;  %v1059_v62 = vadd.f32 %v1662_v42, %v931_v56 }
  0xfb   : > { %v1106_v59 = vadd.f32 %v1757_v36, %v978_v55  ;;  %1267 = vst.msk [vmem:[%s1994_s7 + $0x70] sm:$0xf] %vm1238_vm1, %v1202_v51  ;;  %v1075_v63 = vadd.f32 %v1694_v43, %v947_v57 }
  0xfc   : > { %v1154_v0 = vmax.f32 %v1090_v58, 0.0  ;;  %v1123_v4 = vmax.f32 %v1059_v62, 0.0 }
  0xfd   : > { %v1170_v1 = vmax.f32 %v1106_v59, 0.0  ;;  %v1139_v5 = vmax.f32 %v1075_v63, 0.0  ;;  %v739_v6 = vpop.f32.mrf.mxu2  ;;  %v662_v14 = vpop.f32.mrf.mxu0 }
  0xfe   : > { %v779_v7 = vpop.f32.mrf.mxu3  ;;  %v1218_v10 = vpack.c.bf16 %v1154_v0, %v1154_v0  ;;  %v898_v12 = vmul.f32 %v1972_v34, %v739_v6  ;;  %v702_v15 = vpop.f32.mrf.mxu1  ;;  %v1187_v16 = vpack.c.bf16 %v1123_v4, %v1123_v4  ;;  %v867_v18 = vmul.f32 %v1972_v34, %v662_v14 }
  0xff   : > { %v1234_v11 = vpack.c.bf16 %v1170_v1, %v1170_v1  ;;  %v914_v13 = vmul.f32 %v1972_v34, %v779_v7  ;;  %v1203_v17 = vpack.c.bf16 %v1139_v5, %v1139_v5  ;;  %v883_v19 = vmul.f32 %v1972_v34, %v702_v15 }
 0x100   : > { %1283 = vst.msk [vmem:[%s1994_s7 + $0xb0] sm:$0xf] %vm1238_vm1, %v1218_v10  ;;  %v963_v20 = vadd.f32 %v1976_v37, %v898_v12  ;;  %v932_v22 = vadd.f32 %v1976_v37, %v867_v18  ;;  %v1730_v1 = vunpack.c.h.bf16 %v1785_v24 }
 0x101   : > { %v979_v21 = vadd.f32 %v1976_v37, %v914_v13  ;;  %1299 = vst.msk [vmem:[%s1994_s7 + $0xf0] sm:$0xf] %vm1238_vm1, %v1234_v11  ;;  %v948_v23 = vadd.f32 %v1976_v37, %v883_v19 }
 0x102   : > { %1252 = vst.msk [vmem:[%s1994_s7 + $0x34] sm:$0xf] %vm1238_vm1, %v1187_v16  ;;  %v1091_v26 = vadd.f32 %v1726_v2, %v963_v20  ;;  %v1060_v28 = vadd.f32 %v1665_v8, %v932_v22 }
 0x103   : > { %v1107_v27 = vadd.f32 %v1758_v3, %v979_v21  ;;  %1268 = vst.msk [vmem:[%s1994_s7 + $0x74] sm:$0xf] %vm1238_vm1, %v1203_v17  ;;  %v1076_v29 = vadd.f32 %v1697_v9, %v948_v23  ;;  %v1762_v3 = vunpack.c.h.bf16 %v1793_v25 }
 0x104   : > { %v1155_v30 = vmax.f32 %v1091_v26, 0.0  ;;  %v1124_v35 = vmax.f32 %v1060_v28, 0.0 }
 0x105   : > { %v1171_v31 = vmax.f32 %v1107_v27, 0.0  ;;  %v1140_v36 = vmax.f32 %v1076_v29, 0.0  ;;  %v742_v38 = vpop.f32.mrf.mxu2  ;;  %v664_v46 = vpop.f32.mrf.mxu0 }
 0x106   : > { %v782_v39 = vpop.f32.mrf.mxu3  ;;  %v1219_v42 = vpack.c.bf16 %v1155_v30, %v1155_v30  ;;  %v899_v44 = vmul.f32 %v1972_v34, %v742_v38  ;;  %v704_v47 = vpop.f32.mrf.mxu1  ;;  %v1188_v48 = vpack.c.bf16 %v1124_v35, %v1124_v35  ;;  %v868_v50 = vmul.f32 %v1972_v34, %v664_v46 }
 0x107   : > { %v1235_v43 = vpack.c.bf16 %v1171_v31, %v1171_v31  ;;  %v915_v45 = vmul.f32 %v1972_v34, %v782_v39  ;;  %v1204_v49 = vpack.c.bf16 %v1140_v36, %v1140_v36  ;;  %v884_v51 = vmul.f32 %v1972_v34, %v704_v47 }
 0x108   : > { %1284 = vst.msk [vmem:[%s1994_s7 + $0xb4] sm:$0xf] %vm1238_vm1, %v1219_v42  ;;  %v964_v52 = vadd.f32 %v1976_v37, %v899_v44  ;;  %v933_v54 = vadd.f32 %v1976_v37, %v868_v50 }
 0x109   : > { %v980_v53 = vadd.f32 %v1976_v37, %v915_v45  ;;  %1300 = vst.msk [vmem:[%s1994_s7 + $0xf4] sm:$0xf] %vm1238_vm1, %v1235_v43  ;;  %v949_v55 = vadd.f32 %v1976_v37, %v884_v51 }
 0x10a   : > { %1253 = vst.msk [vmem:[%s1994_s7 + $0x38] sm:$0xf] %vm1238_vm1, %v1188_v48  ;;  %v1092_v56 = vadd.f32 %v1729_v32, %v964_v52  ;;  %v1061_v58 = vadd.f32 %v1666_v40, %v933_v54 }
 0x10b   : > { %v1108_v57 = vadd.f32 %v1761_v33, %v980_v53  ;;  %1269 = vst.msk [vmem:[%s1994_s7 + $0x78] sm:$0xf] %vm1238_vm1, %v1204_v49  ;;  %v1077_v59 = vadd.f32 %v1698_v41, %v949_v55 }
 0x10c   : > { %v1156_v60 = vmax.f32 %v1092_v56, 0.0  ;;  %v1125_v62 = vmax.f32 %v1061_v58, 0.0 }
 0x10d   : > { %v1172_v61 = vmax.f32 %v1108_v57, 0.0  ;;  %v1141_v63 = vmax.f32 %v1077_v59, 0.0  ;;  %v744_v0 = vpop.f32.mrf.mxu2 }
 0x10e   : > { %v784_v2 = vpop.f32.mrf.mxu3  ;;  %v1220_v4 = vpack.c.bf16 %v1156_v60, %v1156_v60  ;;  %v900_v6 = vmul.f32 %v1972_v34, %v744_v0  ;;  %v1189_v8 = vpack.c.bf16 %v1125_v62, %v1125_v62 }
 0x10f   : > { %v1236_v5 = vpack.c.bf16 %v1172_v61, %v1172_v61  ;;  %v916_v7 = vmul.f32 %v1972_v34, %v784_v2  ;;  %v1205_v9 = vpack.c.bf16 %v1141_v63, %v1141_v63 }
 0x110   : > { %1285 = vst.msk [vmem:[%s1994_s7 + $0xb8] sm:$0xf] %vm1238_vm1, %v1220_v4  ;;  %v965_v10 = vadd.f32 %v1976_v37, %v900_v6 }
 0x111   : > { %v981_v11 = vadd.f32 %v1976_v37, %v916_v7  ;;  %1301 = vst.msk [vmem:[%s1994_s7 + $0xf8] sm:$0xf] %vm1238_vm1, %v1236_v5 }
 0x112   : > { %1254 = vst.msk [vmem:[%s1994_s7 + $0x3c] sm:$0xf] %vm1238_vm1, %v1189_v8  ;;  %v1093_v12 = vadd.f32 %v1730_v1, %v965_v10 }
 0x113   : > { %v1109_v13 = vadd.f32 %v1762_v3, %v981_v11  ;;  %1270 = vst.msk [vmem:[%s1994_s7 + $0x7c] sm:$0xf] %vm1238_vm1, %v1205_v9 }
 0x114   : > { %v1157_v14 = vmax.f32 %v1093_v12, 0.0 }
 0x115   : > { %v1173_v15 = vmax.f32 %v1109_v13, 0.0 }
 0x116   : > { %v1221_v34 = vpack.c.bf16 %v1157_v14, %v1157_v14 }
 0x117   : > { %v1237_v16 = vpack.c.bf16 %v1173_v15, %v1173_v15 }
 0x118   : > { %1286 = vst.msk [vmem:[%s1994_s7 + $0xbc] sm:$0xf] %vm1238_vm1, %v1221_v34 }
 0x119   : > { %1302 = vst.msk [vmem:[%s1994_s7 + $0xfc] sm:$0xf] %vm1238_vm1, %v1237_v16 }
 0x11a PF: > { %s14_s17 = sadd.s32 1, %s1843_s17   ;;  %s2396_s15 = smov %s1839_s16 }
 0x11b   : > { %p11_p5 = scmp.ge.s32.totalorder %s14_s17, 6   ;;  %s2397_s16 = smov %s2399_s18 }
 0x11d   :  { %13 = sbr.rel (!%p11_p5) target bundleno = 2 (0x2), region = 75 }

// kernel: _lambda_.19
= control target key start
LH: loop header
LB: loop body
LE: loop exit
PB: predicated region body
PF: predicated region fallthrough
CT: control target
= control target key end

     0   :  { %s1523_s12 = smov 0   ;;  %s1525_s13 = smov 0   ;;  %s2032_s0 = inlined_call_operand.vmem [shape: bf16[2048,32], index: 0, kind: input, shape index: {}]   ;;  %s2033_s1 = inlined_call_operand.vmem [shape: bf16[32,80], index: 1, kind: input, shape index: {}]   ;;  %s2034_s2 = inlined_call_operand.vmem [shape: f32[3,80], index: 2, kind: input, shape index: {}]   ;;  %s2035_s3 = inlined_call_operand.vmem [shape: bf16[2048,80], index: 3, kind: output, shape index: {}]  }
   0x1   :  { %s1527_s14 = smov 0  }
   0x2 LB: > { %s25_s15 = sadd.s32 1, %s1496_s13  ;;  %p1238_p0 = scmp.ge.s32.totalorder %s1500_s14, 1  ;;  %s1500_s14 = sphi %s1527_s14, %s13_s14   ;;  %s1496_s13 = sphi %s1525_s13, %s2039_s13   ;;  %s1492_s12 = sphi %s1523_s12, %s2038_s12  }
   0x3   : > { %p27_p1 = scmp.ge.s32.totalorder %s25_s15, 4  ;;  %p170_p2 = scmp.lt.s32.totalorder %s1500_s14, 5 }
   0x5   : > { %s2041_s15 = smov (%p27_p1, %s25_s15), 0  ;;  %p171_p3 = pnand %p1238_p0, %p170_p2 }
   0x6   : > { %s1239_s18 = sshll.u32 (!%p171_p3), %s1492_s12, 6 }
   0x7   : > { %174 = sbr.rel (%p171_p3) target bundleno = 284 (0x11c), region = 32  ;;  %p206_p4 = scmp.lt.s32.totalorder (!%p171_p3), %s1239_s18, 255 }
   0xc   : > { %v1446_v0 = vld [vmem:[%s2033_s1 + $0x8] sm:$0xff]  ;;  %v1445_v1 = vld [vmem:[%s2033_s1] sm:$0xff]  ;;  %s2043_s18 = smov (!%p206_p4, %s1239_s18), 255  ;;  %vm469_vm0 = vcmask 261120   ;;  %v1502_v36 = vmov 0   ;;  %vm1062_vm3 = vcmask 650240  }
   0xd   : > { %572 = vmatpush.bf16.msra.mxu0 %v1446_v0  ;;  %1447 = vmatpush.bf16.msra.mxu1 %v1446_v0  ;;  %s1240_s21 = sshll.u32 %s2043_s18, 2  ;;  %v735_v34 = vld [vmem:[%s2034_s2] sm:$0x7] }
   0xe   : > { %1448 = vmatpush.bf16.msra.mxu2 %v1446_v0  ;;  %1449 = vmatpush.bf16.msra.mxu3 %v1446_v0  ;;  %s1555_s24 = scalar_lea.vmem %s2032_s0, %s1240_s21  ;;  %vm866_vm1 = vcmp.gt.f32.partialorder %v735_v34, 0.0  ;;  %v1624_v35 = vperm.slane %v735_v34, 0  ;;  %v1626_v38 = vperm.slane %v735_v34, 1  ;;  %s1641_s29 = scalar_lea.vmem %s2035_s3, %s1240_s21 }
   0xf   : > { %v1413_v2 = vld [vmem:[%s1555_s24] sm:$0xff]  ;;  %v1414_v6 = vld [vmem:[%s1555_s24 + $0x8] sm:$0xff]  ;;  %v1415_v10 = vld [vmem:[%s1555_s24 + $0x10] sm:$0xff]  ;;  %v931_v37 = vsel %vm866_vm1, 1, %v1502_v36 }
  0x10   : > { %v1421_v3 = vld [vmem:[%s1555_s24 + $0x40] sm:$0xff]  ;;  %v1422_v7 = vld [vmem:[%s1555_s24 + $0x48] sm:$0xff]  ;;  %v1423_v11 = vld [vmem:[%s1555_s24 + $0x50] sm:$0xff]  ;;  %v932_v40 = vperm.slane %v931_v37, 2 }
  0x11   : > { %573 = vmatpush.bf16.msra.mxu0 %v1445_v1  ;;  %1450 = vmatpush.bf16.msra.mxu1 %v1445_v1  ;;  %v1429_v4 = vld [vmem:[%s1555_s24 + $0x80] sm:$0xff]  ;;  %v1430_v8 = vld [vmem:[%s1555_s24 + $0x88] sm:$0xff]  ;;  %v1431_v12 = vld [vmem:[%s1555_s24 + $0x90] sm:$0xff] }
  0x12   : > { %1451 = vmatpush.bf16.msra.mxu2 %v1445_v1  ;;  %1452 = vmatpush.bf16.msra.mxu3 %v1445_v1  ;;  %v1437_v5 = vld [vmem:[%s1555_s24 + $0xc0] sm:$0xff]  ;;  %v1438_v9 = vld [vmem:[%s1555_s24 + $0xc8] sm:$0xff]  ;;  %v1439_v13 = vld [vmem:[%s1555_s24 + $0xd0] sm:$0xff]  ;;  %vm1632_vm2 = vcmp.eq.s32.totalorder %v932_v40, 1 }
  0x13   : > { %v1416_v14 = vld [vmem:[%s1555_s24 + $0x18] sm:$0xff]  ;;  %v1417_v18 = vld [vmem:[%s1555_s24 + $0x20] sm:$0xff]  ;;  %v1418_v22 = vld [vmem:[%s1555_s24 + $0x28] sm:$0xff] }
  0x14   : > { %1379 = vmatmul.msk.bf16.vlgmr.msra.gmra.mxu0 %vm469_vm0, %v1413_v2  ;;  %1387 = vmatmul.msk.bf16.vlgmr.msra.gmra.mxu1 %vm469_vm0, %v1421_v3  ;;  %v1424_v15 = vld [vmem:[%s1555_s24 + $0x58] sm:$0xff]  ;;  %v1425_v19 = vld [vmem:[%s1555_s24 + $0x60] sm:$0xff]  ;;  %v1426_v23 = vld [vmem:[%s1555_s24 + $0x68] sm:$0xff] }
  0x15   : > { %1395 = vmatmul.msk.bf16.vlgmr.msra.gmra.mxu2 %vm469_vm0, %v1429_v4  ;;  %1403 = vmatmul.msk.bf16.vlgmr.msra.gmra.mxu3 %vm469_vm0, %v1437_v5  ;;  %v1432_v16 = vld [vmem:[%s1555_s24 + $0x98] sm:$0xff]  ;;  %v1433_v20 = vld [vmem:[%s1555_s24 + $0xa0] sm:$0xff]  ;;  %v1434_v24 = vld [vmem:[%s1555_s24 + $0xa8] sm:$0xff] }
  0x16   : > { %v1440_v17 = vld [vmem:[%s1555_s24 + $0xd8] sm:$0xff]  ;;  %v1441_v21 = vld [vmem:[%s1555_s24 + $0xe0] sm:$0xff]  ;;  %v1442_v25 = vld [vmem:[%s1555_s24 + $0xe8] sm:$0xff] }
  0x17   : > { %v1419_v26 = vld [vmem:[%s1555_s24 + $0x30] sm:$0xff]  ;;  %v1420_v30 = vld [vmem:[%s1555_s24 + $0x38] sm:$0xff] }
  0x18   : > { %v1427_v27 = vld [vmem:[%s1555_s24 + $0x70] sm:$0xff]  ;;  %v1428_v31 = vld [vmem:[%s1555_s24 + $0x78] sm:$0xff] }
  0x19   : > { %v1435_v28 = vld [vmem:[%s1555_s24 + $0xb0] sm:$0xff]  ;;  %v1436_v32 = vld [vmem:[%s1555_s24 + $0xb8] sm:$0xff] }
  0x1a   : > { %v1443_v29 = vld [vmem:[%s1555_s24 + $0xf0] sm:$0xff]  ;;  %v1444_v33 = vld [vmem:[%s1555_s24 + $0xf8] sm:$0xff] }
  0x24   : > { %1380 = vmatmul.msk.bf16.gmra.mxu0 %vm469_vm0, %v1414_v6  ;;  %1388 = vmatmul.msk.bf16.gmra.mxu1 %vm469_vm0, %v1422_v7 }
  0x25   : > { %1396 = vmatmul.msk.bf16.gmra.mxu2 %vm469_vm0, %v1430_v8  ;;  %1404 = vmatmul.msk.bf16.gmra.mxu3 %vm469_vm0, %v1438_v9 }
  0x34   : > { %1381 = vmatmul.msk.bf16.gmra.mxu0 %vm469_vm0, %v1415_v10  ;;  %1389 = vmatmul.msk.bf16.gmra.mxu1 %vm469_vm0, %v1423_v11 }
  0x35   : > { %1397 = vmatmul.msk.bf16.gmra.mxu2 %vm469_vm0, %v1431_v12  ;;  %1405 = vmatmul.msk.bf16.gmra.mxu3 %vm469_vm0, %v1439_v13 }
  0x44   : > { %1382 = vmatmul.msk.bf16.gmra.mxu0 %vm469_vm0, %v1416_v14  ;;  %1390 = vmatmul.msk.bf16.gmra.mxu1 %vm469_vm0, %v1424_v15 }
  0x45   : > { %1398 = vmatmul.msk.bf16.gmra.mxu2 %vm469_vm0, %v1432_v16  ;;  %1406 = vmatmul.msk.bf16.gmra.mxu3 %vm469_vm0, %v1440_v17 }
  0x54   : > { %1383 = vmatmul.msk.bf16.gmra.mxu0 %vm469_vm0, %v1417_v18  ;;  %1391 = vmatmul.msk.bf16.gmra.mxu1 %vm469_vm0, %v1425_v19 }
  0x55   : > { %1399 = vmatmul.msk.bf16.gmra.mxu2 %vm469_vm0, %v1433_v20  ;;  %1407 = vmatmul.msk.bf16.gmra.mxu3 %vm469_vm0, %v1441_v21 }
  0x64   : > { %1384 = vmatmul.msk.bf16.gmra.mxu0 %vm469_vm0, %v1418_v22  ;;  %1392 = vmatmul.msk.bf16.gmra.mxu1 %vm469_vm0, %v1426_v23 }
  0x65   : > { %1400 = vmatmul.msk.bf16.gmra.mxu2 %vm469_vm0, %v1434_v24  ;;  %1408 = vmatmul.msk.bf16.gmra.mxu3 %vm469_vm0, %v1442_v25 }
  0x74   : > { %1385 = vmatmul.msk.bf16.gmra.mxu0 %vm469_vm0, %v1419_v26  ;;  %1393 = vmatmul.msk.bf16.gmra.mxu1 %vm469_vm0, %v1427_v27 }
  0x75   : > { %1401 = vmatmul.msk.bf16.gmra.mxu2 %vm469_vm0, %v1435_v28  ;;  %1409 = vmatmul.msk.bf16.gmra.mxu3 %vm469_vm0, %v1443_v29 }
  0x84   : > { %1386 = vmatmul.msk.bf16.gmra.mxu0 %vm469_vm0, %v1420_v30  ;;  %1394 = vmatmul.msk.bf16.gmra.mxu1 %vm469_vm0, %v1428_v31 }
  0x85   : > { %1402 = vmatmul.msk.bf16.gmra.mxu2 %vm469_vm0, %v1436_v32  ;;  %1410 = vmatmul.msk.bf16.gmra.mxu3 %vm469_vm0, %v1444_v33 }
  0x91   : > { %v575_v39 = vpop.f32.mrf.mxu0  ;;  %v615_v41 = vpop.f32.mrf.mxu1 }
  0x92   : > { %v737_v42 = vmul.f32 %v1624_v35, %v575_v39  ;;  %v753_v43 = vmul.f32 %v1624_v35, %v615_v41 }
  0x94   : > { %v802_v44 = vadd.f32 %v1626_v38, %v737_v42  ;;  %v818_v45 = vadd.f32 %v1626_v38, %v753_v43 }
  0x96   : > { %v867_v47 = vmax.f32 %v802_v44, 0.0  ;;  %v883_v48 = vmax.f32 %v818_v45, 0.0 }
  0x98   : > { %v934_v49 = vsel %vm1632_vm2, %v867_v47, %v802_v44  ;;  %v950_v50 = vsel %vm1632_vm2, %v883_v48, %v818_v45  ;;  %v655_v51 = vpop.f32.mrf.mxu2  ;;  %v695_v52 = vpop.f32.mrf.mxu3 }
  0x99   : > { %v998_v53 = vpack.c.bf16 %v934_v49, %v934_v49  ;;  %v1014_v54 = vpack.c.bf16 %v950_v50, %v950_v50  ;;  %v769_v55 = vmul.f32 %v1624_v35, %v655_v51  ;;  %v785_v56 = vmul.f32 %v1624_v35, %v695_v52  ;;  %v577_v57 = vpop.f32.mrf.mxu0  ;;  %v617_v58 = vpop.f32.mrf.mxu1 }
  0x9a   : > { %v738_v59 = vmul.f32 %v1624_v35, %v577_v57  ;;  %v754_v60 = vmul.f32 %v1624_v35, %v617_v58 }
  0x9b   : > { %1063 = vst.msk [vmem:[%s1641_s29] sm:$0xf] %vm1062_vm3, %v998_v53  ;;  %v834_v61 = vadd.f32 %v1626_v38, %v769_v55  ;;  %v850_v62 = vadd.f32 %v1626_v38, %v785_v56 }
  0x9c   : > { %1079 = vst.msk [vmem:[%s1641_s29 + $0x40] sm:$0xf] %vm1062_vm3, %v1014_v54  ;;  %v803_v63 = vadd.f32 %v1626_v38, %v738_v59  ;;  %v819_v0 = vadd.f32 %v1626_v38, %v754_v60 }
  0x9d   : > { %v899_v1 = vmax.f32 %v834_v61, 0.0  ;;  %v915_v2 = vmax.f32 %v850_v62, 0.0 }
  0x9e   : > { %v868_v3 = vmax.f32 %v803_v63, 0.0  ;;  %v884_v4 = vmax.f32 %v819_v0, 0.0 }
  0x9f   : > { %v966_v5 = vsel %vm1632_vm2, %v899_v1, %v834_v61  ;;  %v982_v6 = vsel %vm1632_vm2, %v915_v2, %v850_v62 }
  0xa0   : > { %v1030_v7 = vpack.c.bf16 %v966_v5, %v966_v5  ;;  %v1046_v8 = vpack.c.bf16 %v982_v6, %v982_v6  ;;  %v935_v9 = vsel %vm1632_vm2, %v868_v3, %v803_v63  ;;  %v951_v10 = vsel %vm1632_vm2, %v884_v4, %v819_v0  ;;  %v657_v11 = vpop.f32.mrf.mxu2  ;;  %v697_v12 = vpop.f32.mrf.mxu3 }
  0xa1   : > { %v999_v13 = vpack.c.bf16 %v935_v9, %v935_v9  ;;  %v1015_v14 = vpack.c.bf16 %v951_v10, %v951_v10  ;;  %v770_v15 = vmul.f32 %v1624_v35, %v657_v11  ;;  %v786_v16 = vmul.f32 %v1624_v35, %v697_v12  ;;  %v580_v17 = vpop.f32.mrf.mxu0  ;;  %v620_v18 = vpop.f32.mrf.mxu1 }
  0xa2   : > { %1095 = vst.msk [vmem:[%s1641_s29 + $0x80] sm:$0xf] %vm1062_vm3, %v1030_v7  ;;  %v739_v19 = vmul.f32 %v1624_v35, %v580_v17  ;;  %v755_v20 = vmul.f32 %v1624_v35, %v620_v18 }
  0xa3   : > { %1111 = vst.msk [vmem:[%s1641_s29 + $0xc0] sm:$0xf] %vm1062_vm3, %v1046_v8  ;;  %v835_v21 = vadd.f32 %v1626_v38, %v770_v15  ;;  %v851_v22 = vadd.f32 %v1626_v38, %v786_v16 }
  0xa4   : > { %1064 = vst.msk [vmem:[%s1641_s29 + $0x4] sm:$0xf] %vm1062_vm3, %v999_v13  ;;  %v804_v23 = vadd.f32 %v1626_v38, %v739_v19  ;;  %v820_v24 = vadd.f32 %v1626_v38, %v755_v20 }
  0xa5   : > { %1080 = vst.msk [vmem:[%s1641_s29 + $0x44] sm:$0xf] %vm1062_vm3, %v1015_v14  ;;  %v900_v25 = vmax.f32 %v835_v21, 0.0  ;;  %v916_v26 = vmax.f32 %v851_v22, 0.0 }
  0xa6   : > { %v869_v27 = vmax.f32 %v804_v23, 0.0  ;;  %v885_v28 = vmax.f32 %v820_v24, 0.0 }
  0xa7   : > { %v967_v29 = vsel %vm1632_vm2, %v900_v25, %v835_v21  ;;  %v983_v30 = vsel %vm1632_vm2, %v916_v26, %v851_v22 }
  0xa8   : > { %v1031_v31 = vpack.c.bf16 %v967_v29, %v967_v29  ;;  %v1047_v32 = vpack.c.bf16 %v983_v30, %v983_v30  ;;  %v936_v33 = vsel %vm1632_vm2, %v869_v27, %v804_v23  ;;  %v952_v34 = vsel %vm1632_vm2, %v885_v28, %v820_v24  ;;  %v660_v36 = vpop.f32.mrf.mxu2  ;;  %v700_v37 = vpop.f32.mrf.mxu3 }
  0xa9   : > { %v1000_v39 = vpack.c.bf16 %v936_v33, %v936_v33  ;;  %v1016_v40 = vpack.c.bf16 %v952_v34, %v952_v34  ;;  %v771_v41 = vmul.f32 %v1624_v35, %v660_v36  ;;  %v787_v42 = vmul.f32 %v1624_v35, %v700_v37  ;;  %v582_v43 = vpop.f32.mrf.mxu0  ;;  %v622_v44 = vpop.f32.mrf.mxu1 }
  0xaa   : > { %1096 = vst.msk [vmem:[%s1641_s29 + $0x84] sm:$0xf] %vm1062_vm3, %v1031_v31  ;;  %v740_v45 = vmul.f32 %v1624_v35, %v582_v43  ;;  %v756_v47 = vmul.f32 %v1624_v35, %v622_v44 }
  0xab   : > { %1112 = vst.msk [vmem:[%s1641_s29 + $0xc4] sm:$0xf] %vm1062_vm3, %v1047_v32  ;;  %v836_v48 = vadd.f32 %v1626_v38, %v771_v41  ;;  %v852_v49 = vadd.f32 %v1626_v38, %v787_v42 }
  0xac   : > { %1065 = vst.msk [vmem:[%s1641_s29 + $0x8] sm:$0xf] %vm1062_vm3, %v1000_v39  ;;  %v805_v50 = vadd.f32 %v1626_v38, %v740_v45  ;;  %v821_v51 = vadd.f32 %v1626_v38, %v756_v47 }
  0xad   : > { %1081 = vst.msk [vmem:[%s1641_s29 + $0x48] sm:$0xf] %vm1062_vm3, %v1016_v40  ;;  %v901_v52 = vmax.f32 %v836_v48, 0.0  ;;  %v917_v53 = vmax.f32 %v852_v49, 0.0 }
  0xae   : > { %v870_v54 = vmax.f32 %v805_v50, 0.0  ;;  %v886_v55 = vmax.f32 %v821_v51, 0.0 }
  0xaf   : > { %v968_v56 = vsel %vm1632_vm2, %v901_v52, %v836_v48  ;;  %v984_v57 = vsel %vm1632_vm2, %v917_v53, %v852_v49 }
  0xb0   : > { %v1032_v58 = vpack.c.bf16 %v968_v56, %v968_v56  ;;  %v1048_v59 = vpack.c.bf16 %v984_v57, %v984_v57  ;;  %v937_v60 = vsel %vm1632_vm2, %v870_v54, %v805_v50  ;;  %v953_v61 = vsel %vm1632_vm2, %v886_v55, %v821_v51  ;;  %v662_v62 = vpop.f32.mrf.mxu2  ;;  %v702_v63 = vpop.f32.mrf.mxu3 }
  0xb1   : > { %v1001_v0 = vpack.c.bf16 %v937_v60, %v937_v60  ;;  %v1017_v1 = vpack.c.bf16 %v953_v61, %v953_v61  ;;  %v772_v2 = vmul.f32 %v1624_v35, %v662_v62  ;;  %v788_v3 = vmul.f32 %v1624_v35, %v702_v63  ;;  %v585_v4 = vpop.f32.mrf.mxu0  ;;  %v625_v5 = vpop.f32.mrf.mxu1 }
  0xb2   : > { %1097 = vst.msk [vmem:[%s1641_s29 + $0x88] sm:$0xf] %vm1062_vm3, %v1032_v58  ;;  %v741_v6 = vmul.f32 %v1624_v35, %v585_v4  ;;  %v757_v7 = vmul.f32 %v1624_v35, %v625_v5 }
  0xb3   : > { %1113 = vst.msk [vmem:[%s1641_s29 + $0xc8] sm:$0xf] %vm1062_vm3, %v1048_v59  ;;  %v837_v8 = vadd.f32 %v1626_v38, %v772_v2  ;;  %v853_v9 = vadd.f32 %v1626_v38, %v788_v3 }
  0xb4   : > { %1066 = vst.msk [vmem:[%s1641_s29 + $0xc] sm:$0xf] %vm1062_vm3, %v1001_v0  ;;  %v806_v10 = vadd.f32 %v1626_v38, %v741_v6  ;;  %v822_v11 = vadd.f32 %v1626_v38, %v757_v7 }
  0xb5   : > { %1082 = vst.msk [vmem:[%s1641_s29 + $0x4c] sm:$0xf] %vm1062_vm3, %v1017_v1  ;;  %v902_v12 = vmax.f32 %v837_v8, 0.0  ;;  %v918_v13 = vmax.f32 %v853_v9, 0.0 }
  0xb6   : > { %v871_v14 = vmax.f32 %v806_v10, 0.0  ;;  %v887_v15 = vmax.f32 %v822_v11, 0.0 }
  0xb7   : > { %v969_v16 = vsel %vm1632_vm2, %v902_v12, %v837_v8  ;;  %v985_v17 = vsel %vm1632_vm2, %v918_v13, %v853_v9 }
  0xb8   : > { %v1033_v18 = vpack.c.bf16 %v969_v16, %v969_v16  ;;  %v1049_v19 = vpack.c.bf16 %v985_v17, %v985_v17  ;;  %v938_v20 = vsel %vm1632_vm2, %v871_v14, %v806_v10  ;;  %v954_v21 = vsel %vm1632_vm2, %v887_v15, %v822_v11  ;;  %v665_v22 = vpop.f32.mrf.mxu2  ;;  %v705_v23 = vpop.f32.mrf.mxu3 }
  0xb9   : > { %v1002_v24 = vpack.c.bf16 %v938_v20, %v938_v20  ;;  %v1018_v25 = vpack.c.bf16 %v954_v21, %v954_v21  ;;  %v773_v26 = vmul.f32 %v1624_v35, %v665_v22  ;;  %v789_v27 = vmul.f32 %v1624_v35, %v705_v23  ;;  %v587_v28 = vpop.f32.mrf.mxu0  ;;  %v627_v29 = vpop.f32.mrf.mxu1 }
  0xba   : > { %1098 = vst.msk [vmem:[%s1641_s29 + $0x8c] sm:$0xf] %vm1062_vm3, %v1033_v18  ;;  %v742_v30 = vmul.f32 %v1624_v35, %v587_v28  ;;  %v758_v31 = vmul.f32 %v1624_v35, %v627_v29 }
  0xbb   : > { %1114 = vst.msk [vmem:[%s1641_s29 + $0xcc] sm:$0xf] %vm1062_vm3, %v1049_v19  ;;  %v838_v32 = vadd.f32 %v1626_v38, %v773_v26  ;;  %v854_v33 = vadd.f32 %v1626_v38, %v789_v27 }
  0xbc   : > { %1067 = vst.msk [vmem:[%s1641_s29 + $0x10] sm:$0xf] %vm1062_vm3, %v1002_v24  ;;  %v807_v34 = vadd.f32 %v1626_v38, %v742_v30  ;;  %v823_v36 = vadd.f32 %v1626_v38, %v758_v31 }
  0xbd   : > { %1083 = vst.msk [vmem:[%s1641_s29 + $0x50] sm:$0xf] %vm1062_vm3, %v1018_v25  ;;  %v903_v37 = vmax.f32 %v838_v32, 0.0  ;;  %v919_v39 = vmax.f32 %v854_v33, 0.0 }
  0xbe   : > { %v872_v40 = vmax.f32 %v807_v34, 0.0  ;;  %v888_v41 = vmax.f32 %v823_v36, 0.0 }
  0xbf   : > { %v970_v42 = vsel %vm1632_vm2, %v903_v37, %v838_v32  ;;  %v986_v43 = vsel %vm1632_vm2, %v919_v39, %v854_v33 }
  0xc0   : > { %v1034_v44 = vpack.c.bf16 %v970_v42, %v970_v42  ;;  %v1050_v45 = vpack.c.bf16 %v986_v43, %v986_v43  ;;  %v939_v47 = vsel %vm1632_vm2, %v872_v40, %v807_v34  ;;  %v955_v48 = vsel %vm1632_vm2, %v888_v41, %v823_v36  ;;  %v667_v49 = vpop.f32.mrf.mxu2  ;;  %v707_v50 = vpop.f32.mrf.mxu3 }
  0xc1   : > { %v1003_v51 = vpack.c.bf16 %v939_v47, %v939_v47  ;;  %v1019_v52 = vpack.c.bf16 %v955_v48, %v955_v48  ;;  %v774_v53 = vmul.f32 %v1624_v35, %v667_v49  ;;  %v790_v54 = vmul.f32 %v1624_v35, %v707_v50  ;;  %v590_v55 = vpop.f32.mrf.mxu0  ;;  %v630_v56 = vpop.f32.mrf.mxu1 }
  0xc2   : > { %1099 = vst.msk [vmem:[%s1641_s29 + $0x90] sm:$0xf] %vm1062_vm3, %v1034_v44  ;;  %v743_v57 = vmul.f32 %v1624_v35, %v590_v55  ;;  %v759_v58 = vmul.f32 %v1624_v35, %v630_v56 }
  0xc3   : > { %1115 = vst.msk [vmem:[%s1641_s29 + $0xd0] sm:$0xf] %vm1062_vm3, %v1050_v45  ;;  %v839_v59 = vadd.f32 %v1626_v38, %v774_v53  ;;  %v855_v60 = vadd.f32 %v1626_v38, %v790_v54 }
  0xc4   : > { %1068 = vst.msk [vmem:[%s1641_s29 + $0x14] sm:$0xf] %vm1062_vm3, %v1003_v51  ;;  %v808_v61 = vadd.f32 %v1626_v38, %v743_v57  ;;  %v824_v62 = vadd.f32 %v1626_v38, %v759_v58 }
  0xc5   : > { %1084 = vst.msk [vmem:[%s1641_s29 + $0x54] sm:$0xf] %vm1062_vm3, %v1019_v52  ;;  %v904_v63 = vmax.f32 %v839_v59, 0.0  ;;  %v920_v0 = vmax.f32 %v855_v60, 0.0 }
  0xc6   : > { %v873_v1 = vmax.f32 %v808_v61, 0.0  ;;  %v889_v2 = vmax.f32 %v824_v62, 0.0 }
  0xc7   : > { %v971_v3 = vsel %vm1632_vm2, %v904_v63, %v839_v59  ;;  %v987_v4 = vsel %vm1632_vm2, %v920_v0, %v855_v60 }
  0xc8   : > { %v1035_v5 = vpack.c.bf16 %v971_v3, %v971_v3  ;;  %v1051_v6 = vpack.c.bf16 %v987_v4, %v987_v4  ;;  %v940_v7 = vsel %vm1632_vm2, %v873_v1, %v808_v61  ;;  %v956_v8 = vsel %vm1632_vm2, %v889_v2, %v824_v62  ;;  %v670_v9 = vpop.f32.mrf.mxu2  ;;  %v710_v10 = vpop.f32.mrf.mxu3 }
  0xc9   : > { %v1004_v11 = vpack.c.bf16 %v940_v7, %v940_v7  ;;  %v1020_v12 = vpack.c.bf16 %v956_v8, %v956_v8  ;;  %v775_v13 = vmul.f32 %v1624_v35, %v670_v9  ;;  %v791_v14 = vmul.f32 %v1624_v35, %v710_v10  ;;  %v592_v15 = vpop.f32.mrf.mxu0  ;;  %v632_v16 = vpop.f32.mrf.mxu1 }
  0xca   : > { %1100 = vst.msk [vmem:[%s1641_s29 + $0x94] sm:$0xf] %vm1062_vm3, %v1035_v5  ;;  %v744_v17 = vmul.f32 %v1624_v35, %v592_v15  ;;  %v760_v18 = vmul.f32 %v1624_v35, %v632_v16 }
  0xcb   : > { %1116 = vst.msk [vmem:[%s1641_s29 + $0xd4] sm:$0xf] %vm1062_vm3, %v1051_v6  ;;  %v840_v19 = vadd.f32 %v1626_v38, %v775_v13  ;;  %v856_v20 = vadd.f32 %v1626_v38, %v791_v14 }
  0xcc   : > { %1069 = vst.msk [vmem:[%s1641_s29 + $0x18] sm:$0xf] %vm1062_vm3, %v1004_v11  ;;  %v809_v21 = vadd.f32 %v1626_v38, %v744_v17  ;;  %v825_v22 = vadd.f32 %v1626_v38, %v760_v18 }
  0xcd   : > { %1085 = vst.msk [vmem:[%s1641_s29 + $0x58] sm:$0xf] %vm1062_vm3, %v1020_v12  ;;  %v905_v23 = vmax.f32 %v840_v19, 0.0  ;;  %v921_v24 = vmax.f32 %v856_v20, 0.0 }
  0xce   : > { %v874_v25 = vmax.f32 %v809_v21, 0.0  ;;  %v890_v26 = vmax.f32 %v825_v22, 0.0 }
  0xcf   : > { %v972_v27 = vsel %vm1632_vm2, %v905_v23, %v840_v19  ;;  %v988_v28 = vsel %vm1632_vm2, %v921_v24, %v856_v20 }
  0xd0   : > { %v1036_v29 = vpack.c.bf16 %v972_v27, %v972_v27  ;;  %v1052_v30 = vpack.c.bf16 %v988_v28, %v988_v28  ;;  %v941_v31 = vsel %vm1632_vm2, %v874_v25, %v809_v21  ;;  %v957_v32 = vsel %vm1632_vm2, %v890_v26, %v825_v22  ;;  %v672_v33 = vpop.f32.mrf.mxu2  ;;  %v712_v34 = vpop.f32.mrf.mxu3 }
  0xd1   : > { %v1005_v36 = vpack.c.bf16 %v941_v31, %v941_v31  ;;  %v1021_v37 = vpack.c.bf16 %v957_v32, %v957_v32  ;;  %v776_v39 = vmul.f32 %v1624_v35, %v672_v33  ;;  %v792_v40 = vmul.f32 %v1624_v35, %v712_v34  ;;  %v595_v41 = vpop.f32.mrf.mxu0  ;;  %v635_v42 = vpop.f32.mrf.mxu1 }
  0xd2   : > { %1101 = vst.msk [vmem:[%s1641_s29 + $0x98] sm:$0xf] %vm1062_vm3, %v1036_v29  ;;  %v745_v43 = vmul.f32 %v1624_v35, %v595_v41  ;;  %v761_v44 = vmul.f32 %v1624_v35, %v635_v42 }
  0xd3   : > { %1117 = vst.msk [vmem:[%s1641_s29 + $0xd8] sm:$0xf] %vm1062_vm3, %v1052_v30  ;;  %v841_v45 = vadd.f32 %v1626_v38, %v776_v39  ;;  %v857_v47 = vadd.f32 %v1626_v38, %v792_v40 }
  0xd4   : > { %1070 = vst.msk [vmem:[%s1641_s29 + $0x1c] sm:$0xf] %vm1062_vm3, %v1005_v36  ;;  %v810_v48 = vadd.f32 %v1626_v38, %v745_v43  ;;  %v826_v49 = vadd.f32 %v1626_v38, %v761_v44 }
  0xd5   : > { %1086 = vst.msk [vmem:[%s1641_s29 + $0x5c] sm:$0xf] %vm1062_vm3, %v1021_v37  ;;  %v906_v50 = vmax.f32 %v841_v45, 0.0  ;;  %v922_v51 = vmax.f32 %v857_v47, 0.0 }
  0xd6   : > { %v875_v52 = vmax.f32 %v810_v48, 0.0  ;;  %v891_v53 = vmax.f32 %v826_v49, 0.0 }
  0xd7   : > { %v973_v54 = vsel %vm1632_vm2, %v906_v50, %v841_v45  ;;  %v989_v55 = vsel %vm1632_vm2, %v922_v51, %v857_v47 }
  0xd8   : > { %v1037_v56 = vpack.c.bf16 %v973_v54, %v973_v54  ;;  %v1053_v57 = vpack.c.bf16 %v989_v55, %v989_v55  ;;  %v942_v58 = vsel %vm1632_vm2, %v875_v52, %v810_v48  ;;  %v958_v59 = vsel %vm1632_vm2, %v891_v53, %v826_v49  ;;  %v675_v60 = vpop.f32.mrf.mxu2  ;;  %v715_v61 = vpop.f32.mrf.mxu3 }
  0xd9   : > { %v1006_v62 = vpack.c.bf16 %v942_v58, %v942_v58  ;;  %v1022_v63 = vpack.c.bf16 %v958_v59, %v958_v59  ;;  %v777_v0 = vmul.f32 %v1624_v35, %v675_v60  ;;  %v793_v1 = vmul.f32 %v1624_v35, %v715_v61  ;;  %v597_v2 = vpop.f32.mrf.mxu0  ;;  %v637_v3 = vpop.f32.mrf.mxu1 }
  0xda   : > { %1102 = vst.msk [vmem:[%s1641_s29 + $0x9c] sm:$0xf] %vm1062_vm3, %v1037_v56  ;;  %v746_v4 = vmul.f32 %v1624_v35, %v597_v2  ;;  %v762_v5 = vmul.f32 %v1624_v35, %v637_v3 }
  0xdb   : > { %1118 = vst.msk [vmem:[%s1641_s29 + $0xdc] sm:$0xf] %vm1062_vm3, %v1053_v57  ;;  %v842_v6 = vadd.f32 %v1626_v38, %v777_v0  ;;  %v858_v7 = vadd.f32 %v1626_v38, %v793_v1 }
  0xdc   : > { %1071 = vst.msk [vmem:[%s1641_s29 + $0x20] sm:$0xf] %vm1062_vm3, %v1006_v62  ;;  %v811_v8 = vadd.f32 %v1626_v38, %v746_v4  ;;  %v827_v9 = vadd.f32 %v1626_v38, %v762_v5 }
  0xdd   : > { %1087 = vst.msk [vmem:[%s1641_s29 + $0x60] sm:$0xf] %vm1062_vm3, %v1022_v63  ;;  %v907_v10 = vmax.f32 %v842_v6, 0.0  ;;  %v923_v11 = vmax.f32 %v858_v7, 0.0 }
  0xde   : > { %v876_v12 = vmax.f32 %v811_v8, 0.0  ;;  %v892_v13 = vmax.f32 %v827_v9, 0.0 }
  0xdf   : > { %v974_v14 = vsel %vm1632_vm2, %v907_v10, %v842_v6  ;;  %v990_v15 = vsel %vm1632_vm2, %v923_v11, %v858_v7 }
  0xe0   : > { %v1038_v16 = vpack.c.bf16 %v974_v14, %v974_v14  ;;  %v1054_v17 = vpack.c.bf16 %v990_v15, %v990_v15  ;;  %v943_v18 = vsel %vm1632_vm2, %v876_v12, %v811_v8  ;;  %v959_v19 = vsel %vm1632_vm2, %v892_v13, %v827_v9  ;;  %v677_v20 = vpop.f32.mrf.mxu2  ;;  %v717_v21 = vpop.f32.mrf.mxu3 }
  0xe1   : > { %v1007_v22 = vpack.c.bf16 %v943_v18, %v943_v18  ;;  %v1023_v23 = vpack.c.bf16 %v959_v19, %v959_v19  ;;  %v778_v24 = vmul.f32 %v1624_v35, %v677_v20  ;;  %v794_v25 = vmul.f32 %v1624_v35, %v717_v21  ;;  %v600_v26 = vpop.f32.mrf.mxu0  ;;  %v640_v27 = vpop.f32.mrf.mxu1 }
  0xe2   : > { %1103 = vst.msk [vmem:[%s1641_s29 + $0xa0] sm:$0xf] %vm1062_vm3, %v1038_v16  ;;  %v747_v28 = vmul.f32 %v1624_v35, %v600_v26  ;;  %v763_v29 = vmul.f32 %v1624_v35, %v640_v27 }
  0xe3   : > { %1119 = vst.msk [vmem:[%s1641_s29 + $0xe0] sm:$0xf] %vm1062_vm3, %v1054_v17  ;;  %v843_v30 = vadd.f32 %v1626_v38, %v778_v24  ;;  %v859_v31 = vadd.f32 %v1626_v38, %v794_v25 }
  0xe4   : > { %1072 = vst.msk [vmem:[%s1641_s29 + $0x24] sm:$0xf] %vm1062_vm3, %v1007_v22  ;;  %v812_v32 = vadd.f32 %v1626_v38, %v747_v28  ;;  %v828_v33 = vadd.f32 %v1626_v38, %v763_v29 }
  0xe5   : > { %1088 = vst.msk [vmem:[%s1641_s29 + $0x64] sm:$0xf] %vm1062_vm3, %v1023_v23  ;;  %v908_v34 = vmax.f32 %v843_v30, 0.0  ;;  %v924_v36 = vmax.f32 %v859_v31, 0.0 }
  0xe6   : > { %v877_v37 = vmax.f32 %v812_v32, 0.0  ;;  %v893_v39 = vmax.f32 %v828_v33, 0.0 }
  0xe7   : > { %v975_v40 = vsel %vm1632_vm2, %v908_v34, %v843_v30  ;;  %v991_v41 = vsel %vm1632_vm2, %v924_v36, %v859_v31 }
  0xe8   : > { %v1039_v42 = vpack.c.bf16 %v975_v40, %v975_v40  ;;  %v1055_v43 = vpack.c.bf16 %v991_v41, %v991_v41  ;;  %v944_v44 = vsel %vm1632_vm2, %v877_v37, %v812_v32  ;;  %v960_v45 = vsel %vm1632_vm2, %v893_v39, %v828_v33  ;;  %v680_v47 = vpop.f32.mrf.mxu2  ;;  %v720_v48 = vpop.f32.mrf.mxu3 }
  0xe9   : > { %v1008_v49 = vpack.c.bf16 %v944_v44, %v944_v44  ;;  %v1024_v50 = vpack.c.bf16 %v960_v45, %v960_v45  ;;  %v779_v51 = vmul.f32 %v1624_v35, %v680_v47  ;;  %v795_v52 = vmul.f32 %v1624_v35, %v720_v48  ;;  %v602_v53 = vpop.f32.mrf.mxu0  ;;  %v642_v54 = vpop.f32.mrf.mxu1 }
  0xea   : > { %1104 = vst.msk [vmem:[%s1641_s29 + $0xa4] sm:$0xf] %vm1062_vm3, %v1039_v42  ;;  %v748_v55 = vmul.f32 %v1624_v35, %v602_v53  ;;  %v764_v56 = vmul.f32 %v1624_v35, %v642_v54 }
  0xeb   : > { %1120 = vst.msk [vmem:[%s1641_s29 + $0xe4] sm:$0xf] %vm1062_vm3, %v1055_v43  ;;  %v844_v57 = vadd.f32 %v1626_v38, %v779_v51  ;;  %v860_v58 = vadd.f32 %v1626_v38, %v795_v52 }
  0xec   : > { %1073 = vst.msk [vmem:[%s1641_s29 + $0x28] sm:$0xf] %vm1062_vm3, %v1008_v49  ;;  %v813_v59 = vadd.f32 %v1626_v38, %v748_v55  ;;  %v829_v60 = vadd.f32 %v1626_v38, %v764_v56 }
  0xed   : > { %1089 = vst.msk [vmem:[%s1641_s29 + $0x68] sm:$0xf] %vm1062_vm3, %v1024_v50  ;;  %v909_v61 = vmax.f32 %v844_v57, 0.0  ;;  %v925_v62 = vmax.f32 %v860_v58, 0.0 }
  0xee   : > { %v878_v63 = vmax.f32 %v813_v59, 0.0  ;;  %v894_v0 = vmax.f32 %v829_v60, 0.0 }
  0xef   : > { %v976_v1 = vsel %vm1632_vm2, %v909_v61, %v844_v57  ;;  %v992_v2 = vsel %vm1632_vm2, %v925_v62, %v860_v58 }
  0xf0   : > { %v1040_v3 = vpack.c.bf16 %v976_v1, %v976_v1  ;;  %v1056_v4 = vpack.c.bf16 %v992_v2, %v992_v2  ;;  %v945_v5 = vsel %vm1632_vm2, %v878_v63, %v813_v59  ;;  %v961_v6 = vsel %vm1632_vm2, %v894_v0, %v829_v60  ;;  %v682_v7 = vpop.f32.mrf.mxu2  ;;  %v722_v8 = vpop.f32.mrf.mxu3 }
  0xf1   : > { %v1009_v9 = vpack.c.bf16 %v945_v5, %v945_v5  ;;  %v1025_v10 = vpack.c.bf16 %v961_v6, %v961_v6  ;;  %v780_v11 = vmul.f32 %v1624_v35, %v682_v7  ;;  %v796_v12 = vmul.f32 %v1624_v35, %v722_v8  ;;  %v605_v13 = vpop.f32.mrf.mxu0  ;;  %v645_v14 = vpop.f32.mrf.mxu1 }
  0xf2   : > { %1105 = vst.msk [vmem:[%s1641_s29 + $0xa8] sm:$0xf] %vm1062_vm3, %v1040_v3  ;;  %v749_v15 = vmul.f32 %v1624_v35, %v605_v13  ;;  %v765_v16 = vmul.f32 %v1624_v35, %v645_v14 }
  0xf3   : > { %1121 = vst.msk [vmem:[%s1641_s29 + $0xe8] sm:$0xf] %vm1062_vm3, %v1056_v4  ;;  %v845_v17 = vadd.f32 %v1626_v38, %v780_v11  ;;  %v861_v18 = vadd.f32 %v1626_v38, %v796_v12 }
  0xf4   : > { %1074 = vst.msk [vmem:[%s1641_s29 + $0x2c] sm:$0xf] %vm1062_vm3, %v1009_v9  ;;  %v814_v19 = vadd.f32 %v1626_v38, %v749_v15  ;;  %v830_v20 = vadd.f32 %v1626_v38, %v765_v16 }
  0xf5   : > { %1090 = vst.msk [vmem:[%s1641_s29 + $0x6c] sm:$0xf] %vm1062_vm3, %v1025_v10  ;;  %v910_v21 = vmax.f32 %v845_v17, 0.0  ;;  %v926_v22 = vmax.f32 %v861_v18, 0.0 }
  0xf6   : > { %v879_v23 = vmax.f32 %v814_v19, 0.0  ;;  %v895_v24 = vmax.f32 %v830_v20, 0.0 }
  0xf7   : > { %v977_v25 = vsel %vm1632_vm2, %v910_v21, %v845_v17  ;;  %v993_v26 = vsel %vm1632_vm2, %v926_v22, %v861_v18 }
  0xf8   : > { %v1041_v27 = vpack.c.bf16 %v977_v25, %v977_v25  ;;  %v1057_v28 = vpack.c.bf16 %v993_v26, %v993_v26  ;;  %v946_v29 = vsel %vm1632_vm2, %v879_v23, %v814_v19  ;;  %v962_v30 = vsel %vm1632_vm2, %v895_v24, %v830_v20  ;;  %v685_v31 = vpop.f32.mrf.mxu2  ;;  %v725_v32 = vpop.f32.mrf.mxu3 }
  0xf9   : > { %v1010_v33 = vpack.c.bf16 %v946_v29, %v946_v29  ;;  %v1026_v34 = vpack.c.bf16 %v962_v30, %v962_v30  ;;  %v781_v36 = vmul.f32 %v1624_v35, %v685_v31  ;;  %v797_v37 = vmul.f32 %v1624_v35, %v725_v32  ;;  %v607_v39 = vpop.f32.mrf.mxu0  ;;  %v647_v40 = vpop.f32.mrf.mxu1 }
  0xfa   : > { %1106 = vst.msk [vmem:[%s1641_s29 + $0xac] sm:$0xf] %vm1062_vm3, %v1041_v27  ;;  %v750_v41 = vmul.f32 %v1624_v35, %v607_v39  ;;  %v766_v42 = vmul.f32 %v1624_v35, %v647_v40 }
  0xfb   : > { %1122 = vst.msk [vmem:[%s1641_s29 + $0xec] sm:$0xf] %vm1062_vm3, %v1057_v28  ;;  %v846_v43 = vadd.f32 %v1626_v38, %v781_v36  ;;  %v862_v44 = vadd.f32 %v1626_v38, %v797_v37 }
  0xfc   : > { %1075 = vst.msk [vmem:[%s1641_s29 + $0x30] sm:$0xf] %vm1062_vm3, %v1010_v33  ;;  %v815_v45 = vadd.f32 %v1626_v38, %v750_v41  ;;  %v831_v47 = vadd.f32 %v1626_v38, %v766_v42 }
  0xfd   : > { %1091 = vst.msk [vmem:[%s1641_s29 + $0x70] sm:$0xf] %vm1062_vm3, %v1026_v34  ;;  %v911_v48 = vmax.f32 %v846_v43, 0.0  ;;  %v927_v49 = vmax.f32 %v862_v44, 0.0 }
  0xfe   : > { %v880_v50 = vmax.f32 %v815_v45, 0.0  ;;  %v896_v51 = vmax.f32 %v831_v47, 0.0 }
  0xff   : > { %v978_v52 = vsel %vm1632_vm2, %v911_v48, %v846_v43  ;;  %v994_v53 = vsel %vm1632_vm2, %v927_v49, %v862_v44 }
 0x100   : > { %v1042_v54 = vpack.c.bf16 %v978_v52, %v978_v52  ;;  %v1058_v55 = vpack.c.bf16 %v994_v53, %v994_v53  ;;  %v947_v56 = vsel %vm1632_vm2, %v880_v50, %v815_v45  ;;  %v963_v57 = vsel %vm1632_vm2, %v896_v51, %v831_v47  ;;  %v687_v58 = vpop.f32.mrf.mxu2  ;;  %v727_v59 = vpop.f32.mrf.mxu3 }
 0x101   : > { %v1011_v60 = vpack.c.bf16 %v947_v56, %v947_v56  ;;  %v1027_v61 = vpack.c.bf16 %v963_v57, %v963_v57  ;;  %v782_v62 = vmul.f32 %v1624_v35, %v687_v58  ;;  %v798_v63 = vmul.f32 %v1624_v35, %v727_v59  ;;  %v610_v0 = vpop.f32.mrf.mxu0  ;;  %v650_v1 = vpop.f32.mrf.mxu1 }
 0x102   : > { %1107 = vst.msk [vmem:[%s1641_s29 + $0xb0] sm:$0xf] %vm1062_vm3, %v1042_v54  ;;  %v751_v2 = vmul.f32 %v1624_v35, %v610_v0  ;;  %v767_v3 = vmul.f32 %v1624_v35, %v650_v1 }
 0x103   : > { %1123 = vst.msk [vmem:[%s1641_s29 + $0xf0] sm:$0xf] %vm1062_vm3, %v1058_v55  ;;  %v847_v4 = vadd.f32 %v1626_v38, %v782_v62  ;;  %v863_v5 = vadd.f32 %v1626_v38, %v798_v63 }
 0x104   : > { %1076 = vst.msk [vmem:[%s1641_s29 + $0x34] sm:$0xf] %vm1062_vm3, %v1011_v60  ;;  %v816_v6 = vadd.f32 %v1626_v38, %v751_v2  ;;  %v832_v7 = vadd.f32 %v1626_v38, %v767_v3 }
 0x105   : > { %1092 = vst.msk [vmem:[%s1641_s29 + $0x74] sm:$0xf] %vm1062_vm3, %v1027_v61  ;;  %v912_v8 = vmax.f32 %v847_v4, 0.0  ;;  %v928_v9 = vmax.f32 %v863_v5, 0.0 }
 0x106   : > { %v881_v10 = vmax.f32 %v816_v6, 0.0  ;;  %v897_v11 = vmax.f32 %v832_v7, 0.0 }
 0x107   : > { %v979_v12 = vsel %vm1632_vm2, %v912_v8, %v847_v4  ;;  %v995_v13 = vsel %vm1632_vm2, %v928_v9, %v863_v5 }
 0x108   : > { %v1043_v14 = vpack.c.bf16 %v979_v12, %v979_v12  ;;  %v1059_v15 = vpack.c.bf16 %v995_v13, %v995_v13  ;;  %v948_v16 = vsel %vm1632_vm2, %v881_v10, %v816_v6  ;;  %v964_v17 = vsel %vm1632_vm2, %v897_v11, %v832_v7  ;;  %v690_v18 = vpop.f32.mrf.mxu2  ;;  %v730_v19 = vpop.f32.mrf.mxu3 }
 0x109   : > { %v1012_v20 = vpack.c.bf16 %v948_v16, %v948_v16  ;;  %v1028_v21 = vpack.c.bf16 %v964_v17, %v964_v17  ;;  %v783_v22 = vmul.f32 %v1624_v35, %v690_v18  ;;  %v799_v23 = vmul.f32 %v1624_v35, %v730_v19  ;;  %v612_v24 = vpop.f32.mrf.mxu0  ;;  %v652_v25 = vpop.f32.mrf.mxu1 }
 0x10a   : > { %1108 = vst.msk [vmem:[%s1641_s29 + $0xb4] sm:$0xf] %vm1062_vm3, %v1043_v14  ;;  %v752_v26 = vmul.f32 %v1624_v35, %v612_v24  ;;  %v768_v27 = vmul.f32 %v1624_v35, %v652_v25 }
 0x10b   : > { %1124 = vst.msk [vmem:[%s1641_s29 + $0xf4] sm:$0xf] %vm1062_vm3, %v1059_v15  ;;  %v848_v28 = vadd.f32 %v1626_v38, %v783_v22  ;;  %v864_v29 = vadd.f32 %v1626_v38, %v799_v23 }
 0x10c   : > { %1077 = vst.msk [vmem:[%s1641_s29 + $0x38] sm:$0xf] %vm1062_vm3, %v1012_v20  ;;  %v817_v30 = vadd.f32 %v1626_v38, %v752_v26  ;;  %v833_v31 = vadd.f32 %v1626_v38, %v768_v27 }
 0x10d   : > { %1093 = vst.msk [vmem:[%s1641_s29 + $0x78] sm:$0xf] %vm1062_vm3, %v1028_v21  ;;  %v913_v32 = vmax.f32 %v848_v28, 0.0  ;;  %v929_v33 = vmax.f32 %v864_v29, 0.0 }
 0x10e   : > { %v882_v34 = vmax.f32 %v817_v30, 0.0  ;;  %v898_v36 = vmax.f32 %v833_v31, 0.0 }
 0x10f   : > { %v980_v37 = vsel %vm1632_vm2, %v913_v32, %v848_v28  ;;  %v996_v39 = vsel %vm1632_vm2, %v929_v33, %v864_v29 }
 0x110   : > { %v1044_v40 = vpack.c.bf16 %v980_v37, %v980_v37  ;;  %v1060_v41 = vpack.c.bf16 %v996_v39, %v996_v39  ;;  %v949_v42 = vsel %vm1632_vm2, %v882_v34, %v817_v30  ;;  %v965_v43 = vsel %vm1632_vm2, %v898_v36, %v833_v31  ;;  %v692_v44 = vpop.f32.mrf.mxu2  ;;  %v732_v45 = vpop.f32.mrf.mxu3 }
 0x111   : > { %v1013_v47 = vpack.c.bf16 %v949_v42, %v949_v42  ;;  %v1029_v48 = vpack.c.bf16 %v965_v43, %v965_v43  ;;  %v784_v49 = vmul.f32 %v1624_v35, %v692_v44  ;;  %v800_v50 = vmul.f32 %v1624_v35, %v732_v45 }
 0x112   : > { %1109 = vst.msk [vmem:[%s1641_s29 + $0xb8] sm:$0xf] %vm1062_vm3, %v1044_v40 }
 0x113   : > { %1125 = vst.msk [vmem:[%s1641_s29 + $0xf8] sm:$0xf] %vm1062_vm3, %v1060_v41  ;;  %v849_v51 = vadd.f32 %v1626_v38, %v784_v49  ;;  %v865_v52 = vadd.f32 %v1626_v38, %v800_v50 }
 0x114   : > { %1078 = vst.msk [vmem:[%s1641_s29 + $0x3c] sm:$0xf] %vm1062_vm3, %v1013_v47 }
 0x115   : > { %1094 = vst.msk [vmem:[%s1641_s29 + $0x7c] sm:$0xf] %vm1062_vm3, %v1029_v48  ;;  %v914_v53 = vmax.f32 %v849_v51, 0.0  ;;  %v930_v54 = vmax.f32 %v865_v52, 0.0 }
 0x117   : > { %v981_v55 = vsel %vm1632_vm2, %v914_v53, %v849_v51  ;;  %v997_v35 = vsel %vm1632_vm2, %v930_v54, %v865_v52 }
 0x118   : > { %v1045_v56 = vpack.c.bf16 %v981_v55, %v981_v55  ;;  %v1061_v57 = vpack.c.bf16 %v997_v35, %v997_v35 }
 0x11a   : > { %1110 = vst.msk [vmem:[%s1641_s29 + $0xbc] sm:$0xf] %vm1062_vm3, %v1045_v56 }
 0x11b   : > { %1126 = vst.msk [vmem:[%s1641_s29 + $0xfc] sm:$0xf] %vm1062_vm3, %v1061_v57 }
 0x11c PF: > { %s13_s14 = sadd.s32 1, %s1500_s14   ;;  %s2038_s12 = smov %s1496_s13 }
 0x11d   : > { %p10_p5 = scmp.ge.s32.totalorder %s13_s14, 6   ;;  %s2039_s13 = smov %s2041_s15 }
 0x11f   :  { %12 = sbr.rel (!%p10_p5) target bundleno = 2 (0x2), region = 68 }

// kernel: _lambda_.20
= control target key start
LH: loop header
LB: loop body
LE: loop exit
PB: predicated region body
PF: predicated region fallthrough
CT: control target
= control target key end

     0   :  { %s1289_s12 = smov 0   ;;  %s1291_s13 = smov 0   ;;  %s1578_s0 = inlined_call_operand.vmem [shape: bf16[512,144], index: 0, kind: input, shape index: {}]   ;;  %s1579_s1 = inlined_call_operand.vmem [shape: bf16[144,16], index: 1, kind: input, shape index: {}]   ;;  %s1580_s2 = inlined_call_operand.vmem [shape: f32[2,16], index: 2, kind: input, shape index: {}]   ;;  %s1581_s3 = inlined_call_operand.vmem [shape: bf16[512,16], index: 3, kind: output, shape index: {}]  }
   0x1   :  { %s1293_s14 = smov 0  }
   0x2 LB: > { %s25_s15 = sadd.s32 1, %s1263_s13  ;;  %p982_p0 = scmp.ge.s32.totalorder %s1267_s14, 1  ;;  %s1267_s14 = sphi %s1293_s14, %s13_s14   ;;  %s1263_s13 = sphi %s1291_s13, %s1583_s13   ;;  %s1259_s12 = sphi %s1289_s12, %s1582_s12  }
   0x3   : > { %p27_p1 = scmp.ge.s32.totalorder %s25_s15, 2  ;;  %p171_p2 = scmp.lt.s32.totalorder %s1267_s14, 3 }
   0x5   : > { %s1585_s15 = smov (%p27_p1, %s25_s15), 0  ;;  %p172_p3 = pnand %p982_p0, %p171_p2 }
   0x6   : > { %s983_s20 = sshll.u32 (!%p172_p3), %s1259_s12, 5 }
   0x7   : > { %175 = sbr.rel (%p172_p3) target bundleno = 307 (0x133), region = 32  ;;  %p208_p4 = scmp.lt.s32.totalorder (!%p172_p3), %s983_s20, 63 }
   0xc   : > { %v1210_v0 = vld [vmem:[%s1579_s1 + $0x38] sm:$0xff]  ;;  %v1211_v1 = vld [vmem:[%s1579_s1 + $0x40] sm:$0xff]  ;;  %v1209_v2 = vld [vmem:[%s1579_s1 + $0x30] sm:$0xff]  ;;  %s1587_s20 = smov (!%p208_p4, %s983_s20), 63  ;;  %vm480_vm0 = vcmask 130048   ;;  %vm838_vm1 = vcmask 125952  }
   0xd   : > { %529 = vmatpush.bf16.msra.mxu0 %v1210_v0  ;;  %1212 = vmatpush.bf16.msra.mxu2 %v1210_v0  ;;  %s1170_s23 = sshll.u32 %s1587_s20, 3  ;;  %v1208_v3 = vld [vmem:[%s1579_s1 + $0x28] sm:$0xff]  ;;  %v1207_v7 = vld [vmem:[%s1579_s1 + $0x20] sm:$0xff]  ;;  %v1206_v11 = vld [vmem:[%s1579_s1 + $0x18] sm:$0xff]  ;;  %s987_s17 = sshll.u32 %s1587_s20, 2 }
   0xe   : > { %625 = vmatpush.bf16.msra.mxu1 %v1211_v1  ;;  %1220 = vmatpush.bf16.msra.mxu3 %v1211_v1  ;;  %s1322_s26 = scalar_lea.vmem %s1578_s0, %s1170_s23  ;;  %v1205_v12 = vld [vmem:[%s1579_s1 + $0x10] sm:$0xff]  ;;  %v1204_v16 = vld [vmem:[%s1579_s1 + $0x8] sm:$0xff]  ;;  %v1203_v20 = vld [vmem:[%s1579_s1] sm:$0xff]  ;;  %s1437_s21 = scalar_lea.vmem %s1581_s3, %s987_s17 }
   0xf   : > { %v1171_v4 = vld [vmem:[%s1322_s26 + $0x4] sm:$0xf]  ;;  %v992_v5 = vld [vmem:[%s1322_s26 + $0x8] sm:$0xf0]  ;;  %v1189_v8 = vld [vmem:[%s1322_s26 + $0x94] sm:$0xf] }
  0x10   : > { %v995_v6 = vor.u32 %v1171_v4, %v992_v5  ;;  %v1064_v9 = vld [vmem:[%s1322_s26 + $0x98] sm:$0xf0]  ;;  %v1173_v13 = vld [vmem:[%s1322_s26 + $0x14] sm:$0xf]  ;;  %v1191_v17 = vld [vmem:[%s1322_s26 + $0xa4] sm:$0xf] }
  0x11   : > { %530 = vmatpush.bf16.msra.mxu0 %v1209_v2  ;;  %1213 = vmatpush.bf16.msra.mxu2 %v1209_v2  ;;  %v1067_v10 = vor.u32 %v1189_v8, %v1064_v9  ;;  %v1000_v14 = vld [vmem:[%s1322_s26 + $0x18] sm:$0xf0]  ;;  %v1072_v18 = vld [vmem:[%s1322_s26 + $0xa8] sm:$0xf0]  ;;  %v990_v21 = vld [vmem:[%s1322_s26] sm:$0xf] }
  0x12   : > { %1152 = vmatmul.msk.bf16.vlgmr.msra.gmra.mxu1 %vm480_vm0, %v995_v6  ;;  %v1003_v15 = vor.u32 %v1173_v13, %v1000_v14  ;;  %v1075_v19 = vor.u32 %v1191_v17, %v1072_v18  ;;  %v1172_v22 = vld [vmem:[%s1322_s26 + $0x4] sm:$0xf0]  ;;  %v1054_v23 = vld [vmem:[%s1322_s26 + $0x80] sm:$0xf]  ;;  %v1175_v27 = vld [vmem:[%s1322_s26 + $0x24] sm:$0xf] }
  0x13   : > { %1161 = vmatmul.msk.bf16.vlgmr.msra.gmra.mxu3 %vm480_vm0, %v1067_v10  ;;  %v1188_v24 = vld [vmem:[%s1322_s26 + $0x84] sm:$0xf0]  ;;  %v991_v25 = vor.u32 %v1172_v22, %v990_v21  ;;  %v1008_v28 = vld [vmem:[%s1322_s26 + $0x28] sm:$0xf0]  ;;  %v1193_v30 = vld [vmem:[%s1322_s26 + $0xb4] sm:$0xf] }
  0x14   : > { %v1055_v26 = vor.u32 %v1188_v24, %v1054_v23  ;;  %v1011_v29 = vor.u32 %v1175_v27, %v1008_v28  ;;  %v1080_v31 = vld [vmem:[%s1322_s26 + $0xb8] sm:$0xf0]  ;;  %v998_v33 = vld [vmem:[%s1322_s26 + $0x10] sm:$0xf]  ;;  %v1174_v34 = vld [vmem:[%s1322_s26 + $0x14] sm:$0xf0] }
  0x15   : > { %531 = vmatpush.bf16.msra.mxu0 %v1208_v3  ;;  %1214 = vmatpush.bf16.msra.mxu2 %v1208_v3  ;;  %v1083_v32 = vor.u32 %v1193_v30, %v1080_v31  ;;  %v1062_v35 = vld [vmem:[%s1322_s26 + $0x90] sm:$0xf]  ;;  %v1190_v36 = vld [vmem:[%s1322_s26 + $0x94] sm:$0xf0]  ;;  %v999_v37 = vor.u32 %v1174_v34, %v998_v33  ;;  %v1177_v39 = vld [vmem:[%s1322_s26 + $0x34] sm:$0xf] }
  0x16   : > { %v1063_v38 = vor.u32 %v1190_v36, %v1062_v35  ;;  %v1016_v40 = vld [vmem:[%s1322_s26 + $0x38] sm:$0xf0]  ;;  %v1195_v42 = vld [vmem:[%s1322_s26 + $0xc4] sm:$0xf]  ;;  %v1088_v43 = vld [vmem:[%s1322_s26 + $0xc8] sm:$0xf0] }
  0x17   : > { %v1019_v41 = vor.u32 %v1177_v39, %v1016_v40  ;;  %v1091_v44 = vor.u32 %v1195_v42, %v1088_v43  ;;  %v1006_v45 = vld [vmem:[%s1322_s26 + $0x20] sm:$0xf]  ;;  %v1176_v46 = vld [vmem:[%s1322_s26 + $0x24] sm:$0xf0]  ;;  %v1179_v51 = vld [vmem:[%s1322_s26 + $0x44] sm:$0xf] }
  0x18   : > { %v1070_v47 = vld [vmem:[%s1322_s26 + $0xa0] sm:$0xf]  ;;  %v1192_v48 = vld [vmem:[%s1322_s26 + $0xa4] sm:$0xf0]  ;;  %v1007_v49 = vor.u32 %v1176_v46, %v1006_v45  ;;  %v1024_v52 = vld [vmem:[%s1322_s26 + $0x48] sm:$0xf0] }
  0x19   : > { %532 = vmatpush.bf16.msra.mxu0 %v1207_v7  ;;  %1215 = vmatpush.bf16.msra.mxu2 %v1207_v7  ;;  %v1071_v50 = vor.u32 %v1192_v48, %v1070_v47  ;;  %v1027_v53 = vor.u32 %v1179_v51, %v1024_v52  ;;  %v1197_v54 = vld [vmem:[%s1322_s26 + $0xd4] sm:$0xf]  ;;  %v1096_v55 = vld [vmem:[%s1322_s26 + $0xd8] sm:$0xf0]  ;;  %v1014_v57 = vld [vmem:[%s1322_s26 + $0x30] sm:$0xf] }
  0x1a   : > { %v1099_v56 = vor.u32 %v1197_v54, %v1096_v55  ;;  %v1178_v58 = vld [vmem:[%s1322_s26 + $0x34] sm:$0xf0]  ;;  %v1078_v59 = vld [vmem:[%s1322_s26 + $0xb0] sm:$0xf]  ;;  %v1181_v63 = vld [vmem:[%s1322_s26 + $0x54] sm:$0xf] }
  0x1b   : > { %v1194_v60 = vld [vmem:[%s1322_s26 + $0xb4] sm:$0xf0]  ;;  %v1015_v61 = vor.u32 %v1178_v58, %v1014_v57  ;;  %v1032_v0 = vld [vmem:[%s1322_s26 + $0x58] sm:$0xf0]  ;;  %v1199_v2 = vld [vmem:[%s1322_s26 + $0xe4] sm:$0xf] }
  0x1c   : > { %v1079_v62 = vor.u32 %v1194_v60, %v1078_v59  ;;  %v1035_v1 = vor.u32 %v1181_v63, %v1032_v0  ;;  %v1104_v3 = vld [vmem:[%s1322_s26 + $0xe8] sm:$0xf0]  ;;  %v1022_v5 = vld [vmem:[%s1322_s26 + $0x40] sm:$0xf]  ;;  %v1180_v6 = vld [vmem:[%s1322_s26 + $0x44] sm:$0xf0] }
  0x1d   : > { %533 = vmatpush.bf16.msra.mxu0 %v1206_v11  ;;  %1216 = vmatpush.bf16.msra.mxu2 %v1206_v11  ;;  %v1107_v4 = vor.u32 %v1199_v2, %v1104_v3  ;;  %v1086_v7 = vld [vmem:[%s1322_s26 + $0xc0] sm:$0xf]  ;;  %v1196_v8 = vld [vmem:[%s1322_s26 + $0xc4] sm:$0xf0]  ;;  %v1023_v9 = vor.u32 %v1180_v6, %v1022_v5  ;;  %v1183_v11 = vld [vmem:[%s1322_s26 + $0x64] sm:$0xf] }
  0x1e   : > { %v1087_v10 = vor.u32 %v1196_v8, %v1086_v7  ;;  %v1201_v14 = vld [vmem:[%s1322_s26 + $0xf4] sm:$0xf]  ;;  %v1030_v17 = vld [vmem:[%s1322_s26 + $0x50] sm:$0xf]  ;;  %v1182_v18 = vld [vmem:[%s1322_s26 + $0x54] sm:$0xf0] }
  0x1f   : > { %v1031_v21 = vor.u32 %v1182_v18, %v1030_v17  ;;  %v1185_v23 = vld [vmem:[%s1322_s26 + $0x74] sm:$0xf]  ;;  %v1048_v24 = vld [vmem:[%s1322_s26 + $0x78] sm:$0xf0]  ;;  %v1184_v27 = vld [vmem:[%s1322_s26 + $0x64] sm:$0xf0] }
  0x20   : > { %v1102_v28 = vld [vmem:[%s1322_s26 + $0xe0] sm:$0xf]  ;;  %v1056_v33 = vld [vmem:[%s1322_s26 + $0x88] sm:$0xf0]  ;;  %v1046_v36 = vld [vmem:[%s1322_s26 + $0x70] sm:$0xf] }
  0x21   : > { %534 = vmatpush.bf16.msra.mxu0 %v1205_v12  ;;  %1217 = vmatpush.bf16.msra.mxu2 %v1205_v12  ;;  %v1040_v12 = vld [vmem:[%s1322_s26 + $0x68] sm:$0xf0]  ;;  %v1202_v39 = vld [vmem:[%s1322_s26 + $0xf4] sm:$0xf0] }
  0x22   : > { %1153 = vmatmul.msk.bf16.gmra.mxu1 %vm480_vm0, %v1003_v15  ;;  %v1043_v13 = vor.u32 %v1183_v11, %v1040_v12  ;;  %v1112_v15 = vld [vmem:[%s1322_s26 + $0xf8] sm:$0xf0] }
  0x23   : > { %1162 = vmatmul.msk.bf16.gmra.mxu3 %vm480_vm0, %v1075_v19  ;;  %v1094_v19 = vld [vmem:[%s1322_s26 + $0xd0] sm:$0xf] }
  0x25   : > { %535 = vmatpush.bf16.msra.mxu0 %v1204_v16  ;;  %1218 = vmatpush.bf16.msra.mxu2 %v1204_v16  ;;  %v1115_v16 = vor.u32 %v1201_v14, %v1112_v15 }
  0x29   : > { %536 = vmatpush.bf16.msra.mxu0 %v1203_v20  ;;  %1219 = vmatpush.bf16.msra.mxu2 %v1203_v20  ;;  %v1198_v20 = vld [vmem:[%s1322_s26 + $0xd4] sm:$0xf0] }
  0x2a   : > { %v1095_v22 = vor.u32 %v1198_v20, %v1094_v19 }
  0x2c   : > { %537 = vmatmul.bf16.vlgmr.msra.gmra.mxu0 %v991_v25  ;;  %577 = vmatmul.bf16.vlgmr.msra.gmra.mxu2 %v1055_v26  ;;  %v1051_v25 = vor.u32 %v1185_v23, %v1048_v24  ;;  %v1038_v26 = vld [vmem:[%s1322_s26 + $0x60] sm:$0xf] }
  0x2d   : > { %v1039_v30 = vor.u32 %v1184_v27, %v1038_v26 }
  0x32   : > { %1154 = vmatmul.msk.bf16.gmra.mxu1 %vm480_vm0, %v1011_v29  ;;  %v1200_v29 = vld [vmem:[%s1322_s26 + $0xe4] sm:$0xf0] }
  0x33   : > { %1163 = vmatmul.msk.bf16.gmra.mxu3 %vm480_vm0, %v1083_v32  ;;  %v1103_v31 = vor.u32 %v1200_v29, %v1102_v28  ;;  %v1187_v32 = vld [vmem:[%s1322_s26 + $0x84] sm:$0xf] }
  0x34   : > { %v1059_v34 = vor.u32 %v1187_v32, %v1056_v33 }
  0x3c   : > { %542 = vmatmul.bf16.gmra.mxu0 %v999_v37  ;;  %582 = vmatmul.bf16.gmra.mxu2 %v1063_v38  ;;  %v1186_v37 = vld [vmem:[%s1322_s26 + $0x74] sm:$0xf0]  ;;  %v1110_v38 = vld [vmem:[%s1322_s26 + $0xf0] sm:$0xf] }
  0x3d   : > { %v1047_v40 = vor.u32 %v1186_v37, %v1046_v36 }
  0x42   : > { %1155 = vmatmul.msk.bf16.gmra.mxu1 %vm480_vm0, %v1019_v41  ;;  %v1111_v41 = vor.u32 %v1202_v39, %v1110_v38 }
  0x43   : > { %1164 = vmatmul.msk.bf16.gmra.mxu3 %vm480_vm0, %v1091_v44  ;;  %v707_v44 = vld [vmem:[%s1580_s2] sm:$0x3] }
  0x44   : > { %v1425_v46 = vperm.slane %v707_v44, 0 }
  0x4c   : > { %547 = vmatmul.bf16.gmra.mxu0 %v1007_v49  ;;  %587 = vmatmul.bf16.gmra.mxu2 %v1071_v50  ;;  %v1427_v49 = vperm.slane %v707_v44, 1 }
  0x52   : > { %1156 = vmatmul.msk.bf16.gmra.mxu1 %vm480_vm0, %v1027_v53 }
  0x53   : > { %1165 = vmatmul.msk.bf16.gmra.mxu3 %vm480_vm0, %v1099_v56 }
  0x5c   : > { %552 = vmatmul.bf16.gmra.mxu0 %v1015_v61  ;;  %592 = vmatmul.bf16.gmra.mxu2 %v1079_v62 }
  0x62   : > { %1157 = vmatmul.msk.bf16.gmra.mxu1 %vm480_vm0, %v1035_v1 }
  0x63   : > { %1166 = vmatmul.msk.bf16.gmra.mxu3 %vm480_vm0, %v1107_v4 }
  0x6c   : > { %557 = vmatmul.bf16.gmra.mxu0 %v1023_v9  ;;  %597 = vmatmul.bf16.gmra.mxu2 %v1087_v10 }
  0x72   : > { %1158 = vmatmul.msk.bf16.gmra.mxu1 %vm480_vm0, %v1043_v13 }
  0x73   : > { %1167 = vmatmul.msk.bf16.gmra.mxu3 %vm480_vm0, %v1115_v16 }
  0x7c   : > { %562 = vmatmul.bf16.gmra.mxu0 %v1031_v21  ;;  %602 = vmatmul.bf16.gmra.mxu2 %v1095_v22 }
  0x82   : > { %1159 = vmatmul.msk.bf16.gmra.mxu1 %vm480_vm0, %v1051_v25 }
  0x8c   : > { %567 = vmatmul.bf16.gmra.mxu0 %v1039_v30  ;;  %607 = vmatmul.bf16.gmra.mxu2 %v1103_v31 }
  0x8f   : > { %v627_v35 = vpop.f32.mrf.mxu1 }
  0x92   : > { %1160 = vmatmul.msk.bf16.gmra.mxu1 %vm480_vm0, %v1059_v34 }
  0x96   : > { %v672_v45 = vpop.f32.mrf.mxu3 }
  0x97   : > { %v629_v42 = vpop.f32.mrf.mxu1 }
  0x9c   : > { %572 = vmatmul.bf16.gmra.mxu0 %v1047_v40  ;;  %612 = vmatmul.bf16.gmra.mxu2 %v1111_v41 }
  0x9e   : > { %v674_v55 = vpop.f32.mrf.mxu3 }
  0x9f   : > { %v632_v43 = vpop.f32.mrf.mxu1 }
  0xa6   : > { %v677_v4 = vpop.f32.mrf.mxu3 }
  0xa7   : > { %v634_v50 = vpop.f32.mrf.mxu1 }
  0xa9   : > { %v538_v47 = vpop.f32.mrf.mxu0 }
  0xaa   : > { %v628_v48 = vadd.f32 %v627_v35, %v538_v47 }
  0xac   : > { %v709_v51 = vmul.f32 %v1425_v46, %v628_v48 }
  0xae   : > { %v742_v52 = vadd.f32 %v1427_v49, %v709_v51  ;;  %v679_v16 = vpop.f32.mrf.mxu3 }
  0xaf   : > { %v1432_v54 = vpop.f32.mrf.mxu2  ;;  %v637_v59 = vpop.f32.mrf.mxu1 }
  0xb0   : > { %v774_v53 = vmax.f32 %v742_v52, 0.0 }
  0xb1   : > { %v540_v56 = vpop.f32.mrf.mxu0 }
  0xb2   : > { %v806_v57 = vpack.c.bf16 %v774_v53, %v774_v53  ;;  %v630_v58 = vadd.f32 %v629_v42, %v540_v56 }
  0xb4   : > { %839 = vst.msk [vmem:[%s1437_s21] sm:$0xf] %vm838_vm1, %v806_v57  ;;  %v710_v60 = vmul.f32 %v1425_v46, %v630_v58 }
  0xb6   : > { %v743_v61 = vadd.f32 %v1427_v49, %v710_v60  ;;  %v682_v32 = vpop.f32.mrf.mxu3 }
  0xb7   : > { %v1443_v63 = vpop.f32.mrf.mxu2  ;;  %v639_v3 = vpop.f32.mrf.mxu1 }
  0xb8   : > { %v775_v62 = vmax.f32 %v743_v61, 0.0 }
  0xb9   : > { %v543_v0 = vpop.f32.mrf.mxu0 }
  0xba   : > { %v807_v1 = vpack.c.bf16 %v775_v62, %v775_v62  ;;  %v633_v2 = vadd.f32 %v632_v43, %v543_v0 }
  0xbc   : > { %840 = vst.msk [vmem:[%s1437_s21 + $0x4] sm:$0xf] %vm838_vm1, %v807_v1  ;;  %v711_v5 = vmul.f32 %v1425_v46, %v633_v2 }
  0xbe   : > { %v744_v6 = vadd.f32 %v1427_v49, %v711_v5  ;;  %v684_v51 = vpop.f32.mrf.mxu3 }
  0xbf   : > { %v583_v8 = vpop.f32.mrf.mxu2  ;;  %v642_v13 = vpop.f32.mrf.mxu1 }
  0xc0   : > { %v776_v7 = vmax.f32 %v744_v6, 0.0  ;;  %v673_v9 = vadd.f32 %v672_v45, %v583_v8 }
  0xc1   : > { %v545_v10 = vpop.f32.mrf.mxu0 }
  0xc2   : > { %v808_v11 = vpack.c.bf16 %v776_v7, %v776_v7  ;;  %v635_v12 = vadd.f32 %v634_v50, %v545_v10  ;;  %v727_v14 = vmul.f32 %v1425_v46, %v673_v9 }
  0xc4   : > { %841 = vst.msk [vmem:[%s1437_s21 + $0x8] sm:$0xf] %vm838_vm1, %v808_v11  ;;  %v712_v15 = vmul.f32 %v1425_v46, %v635_v12  ;;  %v760_v17 = vadd.f32 %v1427_v49, %v727_v14 }
  0xc6   : > { %v745_v18 = vadd.f32 %v1427_v49, %v712_v15  ;;  %v792_v19 = vmax.f32 %v760_v17, 0.0  ;;  %v687_v9 = vpop.f32.mrf.mxu3 }
  0xc7   : > { %v585_v21 = vpop.f32.mrf.mxu2  ;;  %v644_v27 = vpop.f32.mrf.mxu1 }
  0xc8   : > { %v777_v20 = vmax.f32 %v745_v18, 0.0  ;;  %v824_v22 = vpack.c.bf16 %v792_v19, %v792_v19  ;;  %v675_v23 = vadd.f32 %v674_v55, %v585_v21 }
  0xc9   : > { %v548_v24 = vpop.f32.mrf.mxu0 }
  0xca   : > { %v809_v25 = vpack.c.bf16 %v777_v20, %v777_v20  ;;  %v638_v26 = vadd.f32 %v637_v59, %v548_v24  ;;  %857 = vst.msk [vmem:[%s1437_s21 + $0x48] sm:$0xf] %vm838_vm1, %v824_v22  ;;  %v728_v28 = vmul.f32 %v1425_v46, %v675_v23 }
  0xcc   : > { %842 = vst.msk [vmem:[%s1437_s21 + $0xc] sm:$0xf] %vm838_vm1, %v809_v25  ;;  %v713_v29 = vmul.f32 %v1425_v46, %v638_v26  ;;  %v761_v30 = vadd.f32 %v1427_v49, %v728_v28 }
  0xce   : > { %v746_v31 = vadd.f32 %v1427_v49, %v713_v29  ;;  %v793_v33 = vmax.f32 %v761_v30, 0.0  ;;  %v689_v25 = vpop.f32.mrf.mxu3 }
  0xcf   : > { %v588_v35 = vpop.f32.mrf.mxu2  ;;  %v647_v41 = vpop.f32.mrf.mxu1 }
  0xd0   : > { %v778_v34 = vmax.f32 %v746_v31, 0.0  ;;  %v825_v36 = vpack.c.bf16 %v793_v33, %v793_v33  ;;  %v678_v37 = vadd.f32 %v677_v4, %v588_v35 }
  0xd1   : > { %v550_v38 = vpop.f32.mrf.mxu0 }
  0xd2   : > { %v810_v39 = vpack.c.bf16 %v778_v34, %v778_v34  ;;  %v640_v40 = vadd.f32 %v639_v3, %v550_v38  ;;  %858 = vst.msk [vmem:[%s1437_s21 + $0x4c] sm:$0xf] %vm838_vm1, %v825_v36  ;;  %v729_v42 = vmul.f32 %v1425_v46, %v678_v37 }
  0xd4   : > { %843 = vst.msk [vmem:[%s1437_s21 + $0x10] sm:$0xf] %vm838_vm1, %v810_v39  ;;  %v714_v43 = vmul.f32 %v1425_v46, %v640_v40  ;;  %v762_v44 = vadd.f32 %v1427_v49, %v729_v42 }
  0xd6   : > { %v747_v45 = vadd.f32 %v1427_v49, %v714_v43  ;;  %v794_v47 = vmax.f32 %v762_v44, 0.0 }
  0xd7   : > { %v590_v50 = vpop.f32.mrf.mxu2  ;;  %v649_v58 = vpop.f32.mrf.mxu1 }
  0xd8   : > { %v779_v48 = vmax.f32 %v747_v45, 0.0  ;;  %v826_v52 = vpack.c.bf16 %v794_v47, %v794_v47  ;;  %v680_v53 = vadd.f32 %v679_v16, %v590_v50 }
  0xd9   : > { %v553_v55 = vpop.f32.mrf.mxu0 }
  0xda   : > { %v811_v56 = vpack.c.bf16 %v779_v48, %v779_v48  ;;  %v643_v57 = vadd.f32 %v642_v13, %v553_v55  ;;  %859 = vst.msk [vmem:[%s1437_s21 + $0x50] sm:$0xf] %vm838_vm1, %v826_v52  ;;  %v730_v59 = vmul.f32 %v1425_v46, %v680_v53 }
  0xdc   : > { %844 = vst.msk [vmem:[%s1437_s21 + $0x14] sm:$0xf] %vm838_vm1, %v811_v56  ;;  %v715_v60 = vmul.f32 %v1425_v46, %v643_v57  ;;  %v763_v61 = vadd.f32 %v1427_v49, %v730_v59 }
  0xde   : > { %v748_v62 = vadd.f32 %v1427_v49, %v715_v60  ;;  %v795_v0 = vmax.f32 %v763_v61, 0.0 }
  0xdf   : > { %v593_v2 = vpop.f32.mrf.mxu2  ;;  %v652_v8 = vpop.f32.mrf.mxu1 }
  0xe0   : > { %v780_v1 = vmax.f32 %v748_v62, 0.0  ;;  %v827_v3 = vpack.c.bf16 %v795_v0, %v795_v0  ;;  %v683_v4 = vadd.f32 %v682_v32, %v593_v2 }
  0xe1   : > { %v555_v5 = vpop.f32.mrf.mxu0 }
  0xe2   : > { %v812_v6 = vpack.c.bf16 %v780_v1, %v780_v1  ;;  %v645_v7 = vadd.f32 %v644_v27, %v555_v5  ;;  %860 = vst.msk [vmem:[%s1437_s21 + $0x54] sm:$0xf] %vm838_vm1, %v827_v3  ;;  %v731_v10 = vmul.f32 %v1425_v46, %v683_v4 }
  0xe4   : > { %845 = vst.msk [vmem:[%s1437_s21 + $0x18] sm:$0xf] %vm838_vm1, %v812_v6  ;;  %v716_v11 = vmul.f32 %v1425_v46, %v645_v7  ;;  %v764_v12 = vadd.f32 %v1427_v49, %v731_v10 }
  0xe6   : > { %v749_v13 = vadd.f32 %v1427_v49, %v716_v11  ;;  %v796_v14 = vmax.f32 %v764_v12, 0.0 }
  0xe7   : > { %v595_v16 = vpop.f32.mrf.mxu2  ;;  %v654_v22 = vpop.f32.mrf.mxu1 }
  0xe8   : > { %v781_v15 = vmax.f32 %v749_v13, 0.0  ;;  %v828_v17 = vpack.c.bf16 %v796_v14, %v796_v14  ;;  %v685_v18 = vadd.f32 %v684_v51, %v595_v16 }
  0xe9   : > { %v558_v19 = vpop.f32.mrf.mxu0 }
  0xea   : > { %v813_v20 = vpack.c.bf16 %v781_v15, %v781_v15  ;;  %v648_v21 = vadd.f32 %v647_v41, %v558_v19  ;;  %861 = vst.msk [vmem:[%s1437_s21 + $0x58] sm:$0xf] %vm838_vm1, %v828_v17  ;;  %v732_v23 = vmul.f32 %v1425_v46, %v685_v18  ;;  %v692_v41 = vpop.f32.mrf.mxu3 }
  0xec   : > { %846 = vst.msk [vmem:[%s1437_s21 + $0x1c] sm:$0xf] %vm838_vm1, %v813_v20  ;;  %v717_v24 = vmul.f32 %v1425_v46, %v648_v21  ;;  %v765_v26 = vadd.f32 %v1427_v49, %v732_v23 }
  0xee   : > { %v750_v27 = vadd.f32 %v1427_v49, %v717_v24  ;;  %v797_v28 = vmax.f32 %v765_v26, 0.0 }
  0xef   : > { %v598_v30 = vpop.f32.mrf.mxu2  ;;  %v657_v36 = vpop.f32.mrf.mxu1 }
  0xf0   : > { %v782_v29 = vmax.f32 %v750_v27, 0.0  ;;  %v829_v31 = vpack.c.bf16 %v797_v28, %v797_v28  ;;  %v688_v32 = vadd.f32 %v687_v9, %v598_v30 }
  0xf1   : > { %v560_v33 = vpop.f32.mrf.mxu0 }
  0xf2   : > { %v814_v34 = vpack.c.bf16 %v782_v29, %v782_v29  ;;  %v650_v35 = vadd.f32 %v649_v58, %v560_v33  ;;  %862 = vst.msk [vmem:[%s1437_s21 + $0x5c] sm:$0xf] %vm838_vm1, %v829_v31  ;;  %v733_v37 = vmul.f32 %v1425_v46, %v688_v32  ;;  %v694_v61 = vpop.f32.mrf.mxu3 }
  0xf4   : > { %847 = vst.msk [vmem:[%s1437_s21 + $0x20] sm:$0xf] %vm838_vm1, %v814_v34  ;;  %v718_v38 = vmul.f32 %v1425_v46, %v650_v35  ;;  %v766_v39 = vadd.f32 %v1427_v49, %v733_v37 }
  0xf6   : > { %v751_v40 = vadd.f32 %v1427_v49, %v718_v38  ;;  %v798_v42 = vmax.f32 %v766_v39, 0.0 }
  0xf7   : > { %v600_v44 = vpop.f32.mrf.mxu2  ;;  %v659_v52 = vpop.f32.mrf.mxu1 }
  0xf8   : > { %v783_v43 = vmax.f32 %v751_v40, 0.0  ;;  %v830_v45 = vpack.c.bf16 %v798_v42, %v798_v42  ;;  %v690_v47 = vadd.f32 %v689_v25, %v600_v44 }
  0xf9   : > { %v563_v48 = vpop.f32.mrf.mxu0 }
  0xfa   : > { %v815_v50 = vpack.c.bf16 %v783_v43, %v783_v43  ;;  %v653_v51 = vadd.f32 %v652_v8, %v563_v48  ;;  %863 = vst.msk [vmem:[%s1437_s21 + $0x60] sm:$0xf] %vm838_vm1, %v830_v45  ;;  %v734_v53 = vmul.f32 %v1425_v46, %v690_v47  ;;  %v697_v16 = vpop.f32.mrf.mxu3 }
  0xfc   : > { %848 = vst.msk [vmem:[%s1437_s21 + $0x24] sm:$0xf] %vm838_vm1, %v815_v50  ;;  %v719_v55 = vmul.f32 %v1425_v46, %v653_v51  ;;  %v767_v56 = vadd.f32 %v1427_v49, %v734_v53 }
  0xfe   : > { %v752_v57 = vadd.f32 %v1427_v49, %v719_v55  ;;  %v799_v58 = vmax.f32 %v767_v56, 0.0 }
  0xff   : > { %v603_v60 = vpop.f32.mrf.mxu2  ;;  %v662_v4 = vpop.f32.mrf.mxu1 }
 0x100   : > { %v784_v59 = vmax.f32 %v752_v57, 0.0  ;;  %v831_v62 = vpack.c.bf16 %v799_v58, %v799_v58  ;;  %v693_v0 = vadd.f32 %v692_v41, %v603_v60 }
 0x101   : > { %v565_v1 = vpop.f32.mrf.mxu0 }
 0x102   : > { %v816_v2 = vpack.c.bf16 %v784_v59, %v784_v59  ;;  %v655_v3 = vadd.f32 %v654_v22, %v565_v1  ;;  %864 = vst.msk [vmem:[%s1437_s21 + $0x64] sm:$0xf] %vm838_vm1, %v831_v62  ;;  %v735_v5 = vmul.f32 %v1425_v46, %v693_v0  ;;  %v699_v34 = vpop.f32.mrf.mxu3 }
 0x104   : > { %849 = vst.msk [vmem:[%s1437_s21 + $0x28] sm:$0xf] %vm838_vm1, %v816_v2  ;;  %v720_v6 = vmul.f32 %v1425_v46, %v655_v3  ;;  %v768_v7 = vadd.f32 %v1427_v49, %v735_v5 }
 0x106   : > { %v753_v8 = vadd.f32 %v1427_v49, %v720_v6  ;;  %v800_v9 = vmax.f32 %v768_v7, 0.0 }
 0x107   : > { %v605_v11 = vpop.f32.mrf.mxu2  ;;  %v664_v18 = vpop.f32.mrf.mxu1 }
 0x108   : > { %v785_v10 = vmax.f32 %v753_v8, 0.0  ;;  %v832_v12 = vpack.c.bf16 %v800_v9, %v800_v9  ;;  %v695_v13 = vadd.f32 %v694_v61, %v605_v11 }
 0x109   : > { %v568_v14 = vpop.f32.mrf.mxu0 }
 0x10a   : > { %v817_v15 = vpack.c.bf16 %v785_v10, %v785_v10  ;;  %v658_v17 = vadd.f32 %v657_v36, %v568_v14  ;;  %865 = vst.msk [vmem:[%s1437_s21 + $0x68] sm:$0xf] %vm838_vm1, %v832_v12  ;;  %v736_v19 = vmul.f32 %v1425_v46, %v695_v13  ;;  %v702_v58 = vpop.f32.mrf.mxu3 }
 0x10c   : > { %850 = vst.msk [vmem:[%s1437_s21 + $0x2c] sm:$0xf] %vm838_vm1, %v817_v15  ;;  %v721_v20 = vmul.f32 %v1425_v46, %v658_v17  ;;  %v769_v21 = vadd.f32 %v1427_v49, %v736_v19 }
 0x10e   : > { %v754_v22 = vadd.f32 %v1427_v49, %v721_v20  ;;  %v801_v23 = vmax.f32 %v769_v21, 0.0 }
 0x10f   : > { %v608_v25 = vpop.f32.mrf.mxu2  ;;  %v667_v31 = vpop.f32.mrf.mxu1 }
 0x110   : > { %v786_v24 = vmax.f32 %v754_v22, 0.0  ;;  %v833_v26 = vpack.c.bf16 %v801_v23, %v801_v23  ;;  %v698_v27 = vadd.f32 %v697_v16, %v608_v25  ;;  %v668_v33 = vadd.f32 %v667_v31, %v1432_v54 }
 0x111   : > { %v570_v28 = vpop.f32.mrf.mxu0 }
 0x112   : > { %v818_v29 = vpack.c.bf16 %v786_v24, %v786_v24  ;;  %v660_v30 = vadd.f32 %v659_v52, %v570_v28  ;;  %866 = vst.msk [vmem:[%s1437_s21 + $0x6c] sm:$0xf] %vm838_vm1, %v833_v26  ;;  %v737_v32 = vmul.f32 %v1425_v46, %v698_v27  ;;  %v725_v37 = vmul.f32 %v1425_v46, %v668_v33  ;;  %v704_v12 = vpop.f32.mrf.mxu3 }
 0x114   : > { %851 = vst.msk [vmem:[%s1437_s21 + $0x30] sm:$0xf] %vm838_vm1, %v818_v29  ;;  %v722_v35 = vmul.f32 %v1425_v46, %v660_v30  ;;  %v770_v36 = vadd.f32 %v1427_v49, %v737_v32  ;;  %v758_v40 = vadd.f32 %v1427_v49, %v725_v37 }
 0x116   : > { %v755_v38 = vadd.f32 %v1427_v49, %v722_v35  ;;  %v802_v39 = vmax.f32 %v770_v36, 0.0  ;;  %v790_v43 = vmax.f32 %v758_v40, 0.0 }
 0x117   : > { %v610_v42 = vpop.f32.mrf.mxu2  ;;  %v669_v50 = vpop.f32.mrf.mxu1 }
 0x118   : > { %v787_v41 = vmax.f32 %v755_v38, 0.0  ;;  %v834_v54 = vpack.c.bf16 %v802_v39, %v802_v39  ;;  %v700_v44 = vadd.f32 %v699_v34, %v610_v42  ;;  %v822_v51 = vpack.c.bf16 %v790_v43, %v790_v43 }
 0x119   : > { %v573_v45 = vpop.f32.mrf.mxu0  ;;  %v670_v53 = vadd.f32 %v669_v50, %v1443_v63 }
 0x11a   : > { %v819_v47 = vpack.c.bf16 %v787_v41, %v787_v41  ;;  %v663_v48 = vadd.f32 %v662_v4, %v573_v45  ;;  %867 = vst.msk [vmem:[%s1437_s21 + $0x70] sm:$0xf] %vm838_vm1, %v834_v54  ;;  %v738_v52 = vmul.f32 %v1425_v46, %v700_v44 }
 0x11b   : > { %855 = vst.msk [vmem:[%s1437_s21 + $0x40] sm:$0xf] %vm838_vm1, %v822_v51  ;;  %v726_v57 = vmul.f32 %v1425_v46, %v670_v53 }
 0x11c   : > { %852 = vst.msk [vmem:[%s1437_s21 + $0x34] sm:$0xf] %vm838_vm1, %v819_v47  ;;  %v723_v55 = vmul.f32 %v1425_v46, %v663_v48  ;;  %v771_v56 = vadd.f32 %v1427_v49, %v738_v52 }
 0x11d   : > { %v759_v61 = vadd.f32 %v1427_v49, %v726_v57 }
 0x11e   : > { %v756_v59 = vadd.f32 %v1427_v49, %v723_v55  ;;  %v803_v60 = vmax.f32 %v771_v56, 0.0 }
 0x11f   : > { %v613_v62 = vpop.f32.mrf.mxu2  ;;  %v791_v1 = vmax.f32 %v759_v61, 0.0 }
 0x120   : > { %v788_v63 = vmax.f32 %v756_v59, 0.0  ;;  %v835_v0 = vpack.c.bf16 %v803_v60, %v803_v60  ;;  %v703_v2 = vadd.f32 %v702_v58, %v613_v62 }
 0x121   : > { %v575_v3 = vpop.f32.mrf.mxu0  ;;  %v823_v6 = vpack.c.bf16 %v791_v1, %v791_v1 }
 0x122   : > { %v820_v4 = vpack.c.bf16 %v788_v63, %v788_v63  ;;  %v665_v5 = vadd.f32 %v664_v18, %v575_v3  ;;  %868 = vst.msk [vmem:[%s1437_s21 + $0x74] sm:$0xf] %vm838_vm1, %v835_v0  ;;  %v739_v7 = vmul.f32 %v1425_v46, %v703_v2 }
 0x123   : > { %856 = vst.msk [vmem:[%s1437_s21 + $0x44] sm:$0xf] %vm838_vm1, %v823_v6 }
 0x124   : > { %853 = vst.msk [vmem:[%s1437_s21 + $0x38] sm:$0xf] %vm838_vm1, %v820_v4  ;;  %v724_v8 = vmul.f32 %v1425_v46, %v665_v5  ;;  %v772_v9 = vadd.f32 %v1427_v49, %v739_v7 }
 0x126   : > { %v757_v10 = vadd.f32 %v1427_v49, %v724_v8  ;;  %v804_v11 = vmax.f32 %v772_v9, 0.0 }
 0x127   : > { %v615_v14 = vpop.f32.mrf.mxu2 }
 0x128   : > { %v789_v13 = vmax.f32 %v757_v10, 0.0  ;;  %v836_v15 = vpack.c.bf16 %v804_v11, %v804_v11  ;;  %v705_v16 = vadd.f32 %v704_v12, %v615_v14 }
 0x12a   : > { %v821_v17 = vpack.c.bf16 %v789_v13, %v789_v13  ;;  %869 = vst.msk [vmem:[%s1437_s21 + $0x78] sm:$0xf] %vm838_vm1, %v836_v15  ;;  %v740_v18 = vmul.f32 %v1425_v46, %v705_v16 }
 0x12c   : > { %854 = vst.msk [vmem:[%s1437_s21 + $0x3c] sm:$0xf] %vm838_vm1, %v821_v17  ;;  %v773_v19 = vadd.f32 %v1427_v49, %v740_v18 }
 0x12e   : > { %v805_v20 = vmax.f32 %v773_v19, 0.0 }
 0x130   : > { %v837_v21 = vpack.c.bf16 %v805_v20, %v805_v20 }
 0x132   : > { %870 = vst.msk [vmem:[%s1437_s21 + $0x7c] sm:$0xf] %vm838_vm1, %v837_v21 }
 0x133 PF: > { %s13_s14 = sadd.s32 1, %s1267_s14   ;;  %s1582_s12 = smov %s1263_s13 }
 0x134   : > { %p10_p5 = scmp.ge.s32.totalorder %s13_s14, 4   ;;  %s1583_s13 = smov %s1585_s15 }
 0x136   :  { %12 = sbr.rel (!%p10_p5) target bundleno = 2 (0x2), region = 68 }

// kernel: _lambda_.22
= control target key start
LH: loop header
LB: loop body
LE: loop exit
PB: predicated region body
PF: predicated region fallthrough
CT: control target
= control target key end

     0   :  { %s1335_s12 = smov 0   ;;  %s1337_s13 = smov 0   ;;  %s1848_s0 = inlined_call_operand.vmem [shape: bf16[512,64], index: 0, kind: input, shape index: {}]   ;;  %s1849_s1 = inlined_call_operand.vmem [shape: bf16[64,160], index: 1, kind: input, shape index: {}]   ;;  %s1850_s2 = inlined_call_operand.vmem [shape: f32[3,160], index: 2, kind: input, shape index: {}]   ;;  %s1851_s3 = inlined_call_operand.vmem [shape: bf16[512,160], index: 3, kind: output, shape index: {}]  }
   0x1   :  { %s1339_s14 = smov 0  }
   0x2 LB: > { %s25_s15 = sadd.s32 1, %s1308_s13  ;;  %p1096_p0 = scmp.ge.s32.totalorder %s1312_s14, 1  ;;  %s1312_s14 = sphi %s1339_s14, %s13_s14   ;;  %s1308_s13 = sphi %s1337_s13, %s1855_s13   ;;  %s1304_s12 = sphi %s1335_s12, %s1854_s12  }
   0x3   : > { %p27_p1 = scmp.ge.s32.totalorder %s25_s15, 2  ;;  %p174_p2 = scmp.lt.s32.totalorder %s1312_s14, 3 }
   0x5   : > { %s1857_s15 = smov (%p27_p1, %s25_s15), 0  ;;  %p175_p3 = pnand %p1096_p0, %p174_p2 }
   0x6   : > { %s1097_s17 = sshll.u32 (!%p175_p3), %s1304_s12, 5 }
   0x7   : > { %178 = sbr.rel (%p175_p3) target bundleno = 293 (0x125), region = 32  ;;  %p214_p4 = scmp.lt.s32.totalorder (!%p175_p3), %s1097_s17, 63 }
   0xc   : > { %v1192_v0 = vld [vmem:[%s1849_s1 + $0x30] sm:$0xf]  ;;  %v1256_v1 = vld [vmem:[%s1849_s1 + $0x34] sm:$0xf0]  ;;  %v1255_v2 = vld [vmem:[%s1849_s1 + $0x34] sm:$0xf] }
   0xd   : > { %v1193_v3 = vor.u32 %v1256_v1, %v1192_v0  ;;  %v1194_v4 = vld [vmem:[%s1849_s1 + $0x38] sm:$0xf0]  ;;  %v1184_v5 = vld [vmem:[%s1849_s1 + $0x20] sm:$0xf]  ;;  %v1254_v6 = vld [vmem:[%s1849_s1 + $0x24] sm:$0xf0] }
   0xe   : > { %v1197_v7 = vor.u32 %v1255_v2, %v1194_v4  ;;  %v1253_v8 = vld [vmem:[%s1849_s1 + $0x24] sm:$0xf]  ;;  %v1186_v9 = vld [vmem:[%s1849_s1 + $0x28] sm:$0xf0]  ;;  %v1185_v10 = vor.u32 %v1254_v6, %v1184_v5  ;;  %v1176_v12 = vld [vmem:[%s1849_s1 + $0x10] sm:$0xf] }
   0xf   : > { %457 = vmatpush.bf16.msra.mxu0 %v1193_v3  ;;  %1257 = vmatpush.bf16.msra.mxu2 %v1193_v3  ;;  %v1189_v11 = vor.u32 %v1253_v8, %v1186_v9  ;;  %v1252_v13 = vld [vmem:[%s1849_s1 + $0x14] sm:$0xf0]  ;;  %v1251_v14 = vld [vmem:[%s1849_s1 + $0x14] sm:$0xf]  ;;  %v1178_v15 = vld [vmem:[%s1849_s1 + $0x18] sm:$0xf0] }
  0x10   : > { %546 = vmatpush.bf16.msra.mxu1 %v1197_v7  ;;  %1261 = vmatpush.bf16.msra.mxu3 %v1197_v7  ;;  %v1177_v16 = vor.u32 %v1252_v13, %v1176_v12  ;;  %v1181_v17 = vor.u32 %v1251_v14, %v1178_v15  ;;  %v1168_v18 = vld [vmem:[%s1849_s1] sm:$0xf]  ;;  %v1250_v19 = vld [vmem:[%s1849_s1 + $0x4] sm:$0xf0]  ;;  %s1859_s17 = smov (!%p214_p4, %s1097_s17), 63  ;;  %vm404_vm0 = vcmask 523264  }
  0x11   : > { %v1249_v20 = vld [vmem:[%s1849_s1 + $0x4] sm:$0xf]  ;;  %v1170_v21 = vld [vmem:[%s1849_s1 + $0x8] sm:$0xf0]  ;;  %s1098_s25 = sshll.u32 %s1859_s17, 2  ;;  %v1169_v22 = vor.u32 %v1250_v19, %v1168_v18  ;;  %v1314_v42 = vmov 0  }
  0x12   : > { %s1410_s28 = scalar_lea.vmem %s1848_s0, %s1098_s25  ;;  %v1173_v23 = vor.u32 %v1249_v20, %v1170_v21  ;;  %v631_v40 = vld [vmem:[%s1850_s2] sm:$0x77]  ;;  %s1232_s4 = sshll.u32 %s1859_s17, 3  ;;  %vm941_vm4 = vcmask 1043456   ;;  %vm942_vm5 = vcmask 261124  }
  0x13   : > { %458 = vmatpush.bf16.msra.mxu0 %v1185_v10  ;;  %1258 = vmatpush.bf16.msra.mxu2 %v1185_v10  ;;  %v1233_v24 = vld [vmem:[%s1410_s28] sm:$0xff]  ;;  %v1234_v26 = vld [vmem:[%s1410_s28 + $0x8] sm:$0xff]  ;;  %v1235_v28 = vld [vmem:[%s1410_s28 + $0x10] sm:$0xff]  ;;  %vm773_vm1 = vcmp.gt.f32.partialorder %v631_v40, 0.0  ;;  %v633_v41 = vperm.slane %v631_v40, 0  ;;  %v634_v44 = vperm.slane %v631_v40, 4  ;;  %s1488_s7 = scalar_lea.vmem %s1851_s3, %s1232_s4 }
  0x14   : > { %547 = vmatpush.bf16.msra.mxu1 %v1189_v11  ;;  %1262 = vmatpush.bf16.msra.mxu3 %v1189_v11  ;;  %v1241_v25 = vld [vmem:[%s1410_s28 + $0x40] sm:$0xff]  ;;  %v1242_v27 = vld [vmem:[%s1410_s28 + $0x48] sm:$0xff]  ;;  %v1243_v29 = vld [vmem:[%s1410_s28 + $0x50] sm:$0xff]  ;;  %v838_v43 = vsel %vm773_vm1, 1, %v1314_v42  ;;  %v703_v45 = vperm.slane %v631_v40, 1  ;;  %v704_v47 = vperm.slane %v631_v40, 5 }
  0x15   : > { %v1236_v30 = vld [vmem:[%s1410_s28 + $0x18] sm:$0xff]  ;;  %v1237_v32 = vld [vmem:[%s1410_s28 + $0x20] sm:$0xff]  ;;  %v1238_v34 = vld [vmem:[%s1410_s28 + $0x28] sm:$0xff]  ;;  %v839_v46 = vperm.slane %v838_v43, 2  ;;  %v1463_v48 = vperm.slane %v633_v41, 0  ;;  %v840_v49 = vperm.slane %v838_v43, 6 }
  0x16   : > { %v1244_v31 = vld [vmem:[%s1410_s28 + $0x58] sm:$0xff]  ;;  %v1245_v33 = vld [vmem:[%s1410_s28 + $0x60] sm:$0xff]  ;;  %v1246_v35 = vld [vmem:[%s1410_s28 + $0x68] sm:$0xff]  ;;  %v1465_v50 = vperm.slane %v634_v44, 0  ;;  %v1467_v51 = vperm.slane %v703_v45, 1  ;;  %v1471_v54 = vperm.slane %v704_v47, 1 }
  0x17   : > { %459 = vmatpush.bf16.msra.mxu0 %v1177_v16  ;;  %1259 = vmatpush.bf16.msra.mxu2 %v1177_v16  ;;  %v1239_v36 = vld [vmem:[%s1410_s28 + $0x30] sm:$0xff]  ;;  %v1240_v38 = vld [vmem:[%s1410_s28 + $0x38] sm:$0xff]  ;;  %v1469_v53 = vperm.slane %v839_v46, 2  ;;  %v1474_v57 = vperm.slane %v840_v49, 2  ;;  %vm1492_vm6 = vmor %vm942_vm5, %vm941_vm4 }
  0x18   : > { %548 = vmatpush.bf16.msra.mxu1 %v1181_v17  ;;  %1263 = vmatpush.bf16.msra.mxu3 %v1181_v17  ;;  %v1247_v37 = vld [vmem:[%s1410_s28 + $0x70] sm:$0xff]  ;;  %v1248_v39 = vld [vmem:[%s1410_s28 + $0x78] sm:$0xff] }
  0x19   : > { %vm843_vm2 = vcmp.eq.s32.totalorder %v1469_v53, 1  ;;  %vm844_vm3 = vcmp.eq.s32.totalorder %v1474_v57, 1 }
  0x1b   : > { %460 = vmatpush.bf16.msra.mxu0 %v1169_v22  ;;  %1260 = vmatpush.bf16.msra.mxu2 %v1169_v22 }
  0x1c   : > { %549 = vmatpush.bf16.msra.mxu1 %v1173_v23  ;;  %1264 = vmatpush.bf16.msra.mxu3 %v1173_v23 }
  0x1e   : > { %1198 = vmatmul.msk.bf16.vlgmr.msra.gmra.mxu0 %vm404_vm0, %v1233_v24  ;;  %1206 = vmatmul.msk.bf16.vlgmr.msra.gmra.mxu2 %vm404_vm0, %v1241_v25 }
  0x1f   : > { %1214 = vmatmul.msk.bf16.vlgmr.msra.gmra.mxu1 %vm404_vm0, %v1233_v24  ;;  %1222 = vmatmul.msk.bf16.vlgmr.msra.gmra.mxu3 %vm404_vm0, %v1241_v25 }
  0x2e   : > { %1199 = vmatmul.msk.bf16.gmra.mxu0 %vm404_vm0, %v1234_v26  ;;  %1207 = vmatmul.msk.bf16.gmra.mxu2 %vm404_vm0, %v1242_v27 }
  0x2f   : > { %1215 = vmatmul.msk.bf16.gmra.mxu1 %vm404_vm0, %v1234_v26  ;;  %1223 = vmatmul.msk.bf16.gmra.mxu3 %vm404_vm0, %v1242_v27 }
  0x3e   : > { %1200 = vmatmul.msk.bf16.gmra.mxu0 %vm404_vm0, %v1235_v28  ;;  %1208 = vmatmul.msk.bf16.gmra.mxu2 %vm404_vm0, %v1243_v29 }
  0x3f   : > { %1216 = vmatmul.msk.bf16.gmra.mxu1 %vm404_vm0, %v1235_v28  ;;  %1224 = vmatmul.msk.bf16.gmra.mxu3 %vm404_vm0, %v1243_v29 }
  0x4e   : > { %1201 = vmatmul.msk.bf16.gmra.mxu0 %vm404_vm0, %v1236_v30  ;;  %1209 = vmatmul.msk.bf16.gmra.mxu2 %vm404_vm0, %v1244_v31 }
  0x4f   : > { %1217 = vmatmul.msk.bf16.gmra.mxu1 %vm404_vm0, %v1236_v30  ;;  %1225 = vmatmul.msk.bf16.gmra.mxu3 %vm404_vm0, %v1244_v31 }
  0x5e   : > { %1202 = vmatmul.msk.bf16.gmra.mxu0 %vm404_vm0, %v1237_v32  ;;  %1210 = vmatmul.msk.bf16.gmra.mxu2 %vm404_vm0, %v1245_v33 }
  0x5f   : > { %1218 = vmatmul.msk.bf16.gmra.mxu1 %vm404_vm0, %v1237_v32  ;;  %1226 = vmatmul.msk.bf16.gmra.mxu3 %vm404_vm0, %v1245_v33 }
  0x6e   : > { %1203 = vmatmul.msk.bf16.gmra.mxu0 %vm404_vm0, %v1238_v34  ;;  %1211 = vmatmul.msk.bf16.gmra.mxu2 %vm404_vm0, %v1246_v35 }
  0x6f   : > { %1219 = vmatmul.msk.bf16.gmra.mxu1 %vm404_vm0, %v1238_v34  ;;  %1227 = vmatmul.msk.bf16.gmra.mxu3 %vm404_vm0, %v1246_v35 }
  0x7e   : > { %1204 = vmatmul.msk.bf16.gmra.mxu0 %vm404_vm0, %v1239_v36  ;;  %1212 = vmatmul.msk.bf16.gmra.mxu2 %vm404_vm0, %v1247_v37 }
  0x7f   : > { %1220 = vmatmul.msk.bf16.gmra.mxu1 %vm404_vm0, %v1239_v36  ;;  %1228 = vmatmul.msk.bf16.gmra.mxu3 %vm404_vm0, %v1247_v37 }
  0x8e   : > { %1205 = vmatmul.msk.bf16.gmra.mxu0 %vm404_vm0, %v1240_v38  ;;  %1213 = vmatmul.msk.bf16.gmra.mxu2 %vm404_vm0, %v1248_v39 }
  0x8f   : > { %1221 = vmatmul.msk.bf16.gmra.mxu1 %vm404_vm0, %v1240_v38  ;;  %1229 = vmatmul.msk.bf16.gmra.mxu3 %vm404_vm0, %v1248_v39 }
  0x9b   : > { %v462_v52 = vpop.f32.mrf.mxu0 }
  0x9c   : > { %v639_v55 = vmul.f32 %v1463_v48, %v462_v52  ;;  %v551_v56 = vpop.f32.mrf.mxu1 }
  0x9d   : > { %v640_v58 = vmul.f32 %v1465_v50, %v551_v56 }
  0x9e   : > { %v709_v59 = vadd.f32 %v1467_v51, %v639_v55 }
  0x9f   : > { %v710_v60 = vadd.f32 %v1471_v54, %v640_v58 }
  0xa0   : > { %v774_v61 = vmax.f32 %v709_v59, 0.0 }
  0xa1   : > { %v775_v62 = vmax.f32 %v710_v60, 0.0  ;;  %v502_v63 = vpop.f32.mrf.mxu2 }
  0xa2   : > { %v845_v0 = vsel %vm843_vm2, %v774_v61, %v709_v59  ;;  %v671_v1 = vmul.f32 %v1463_v48, %v502_v63  ;;  %v591_v2 = vpop.f32.mrf.mxu3 }
  0xa3   : > { %v846_v3 = vsel %vm844_vm3, %v775_v62, %v710_v60  ;;  %v672_v5 = vmul.f32 %v1465_v50, %v591_v2  ;;  %v464_v6 = vpop.f32.mrf.mxu0 }
  0xa4   : > { %v909_v7 = vpack.c.bf16 %v846_v3, %v845_v0  ;;  %v741_v8 = vadd.f32 %v1467_v51, %v671_v1  ;;  %v641_v9 = vmul.f32 %v1463_v48, %v464_v6  ;;  %v553_v10 = vpop.f32.mrf.mxu1 }
  0xa5   : > { %v742_v11 = vadd.f32 %v1471_v54, %v672_v5  ;;  %v642_v12 = vmul.f32 %v1465_v50, %v553_v10 }
  0xa6   : > { %944 = vst.msk [vmem:[%s1488_s7] sm:$0xff] %vm1492_vm6, %v909_v7  ;;  %v806_v13 = vmax.f32 %v741_v8, 0.0  ;;  %v711_v14 = vadd.f32 %v1467_v51, %v641_v9 }
  0xa7   : > { %v807_v15 = vmax.f32 %v742_v11, 0.0  ;;  %v712_v16 = vadd.f32 %v1471_v54, %v642_v12 }
  0xa8   : > { %v877_v17 = vsel %vm843_vm2, %v806_v13, %v741_v8  ;;  %v776_v18 = vmax.f32 %v711_v14, 0.0 }
  0xa9   : > { %v878_v19 = vsel %vm844_vm3, %v807_v15, %v742_v11  ;;  %v777_v20 = vmax.f32 %v712_v16, 0.0  ;;  %v504_v21 = vpop.f32.mrf.mxu2 }
  0xaa   : > { %v925_v22 = vpack.c.bf16 %v878_v19, %v877_v17  ;;  %v847_v23 = vsel %vm843_vm2, %v776_v18, %v711_v14  ;;  %v673_v24 = vmul.f32 %v1463_v48, %v504_v21  ;;  %v593_v25 = vpop.f32.mrf.mxu3 }
  0xab   : > { %v848_v26 = vsel %vm844_vm3, %v777_v20, %v712_v16  ;;  %v674_v27 = vmul.f32 %v1465_v50, %v593_v25  ;;  %v467_v28 = vpop.f32.mrf.mxu0 }
  0xac   : > { %960 = vst.msk [vmem:[%s1488_s7 + $0x80] sm:$0xff] %vm1492_vm6, %v925_v22  ;;  %v910_v29 = vpack.c.bf16 %v848_v26, %v847_v23  ;;  %v743_v30 = vadd.f32 %v1467_v51, %v673_v24  ;;  %v643_v31 = vmul.f32 %v1463_v48, %v467_v28  ;;  %v556_v32 = vpop.f32.mrf.mxu1 }
  0xad   : > { %v744_v33 = vadd.f32 %v1471_v54, %v674_v27  ;;  %v644_v34 = vmul.f32 %v1465_v50, %v556_v32 }
  0xae   : > { %945 = vst.msk [vmem:[%s1488_s7 + $0x8] sm:$0xff] %vm1492_vm6, %v910_v29  ;;  %v808_v35 = vmax.f32 %v743_v30, 0.0  ;;  %v713_v36 = vadd.f32 %v1467_v51, %v643_v31 }
  0xaf   : > { %v809_v37 = vmax.f32 %v744_v33, 0.0  ;;  %v714_v38 = vadd.f32 %v1471_v54, %v644_v34 }
  0xb0   : > { %v879_v39 = vsel %vm843_vm2, %v808_v35, %v743_v30  ;;  %v778_v40 = vmax.f32 %v713_v36, 0.0 }
  0xb1   : > { %v880_v41 = vsel %vm844_vm3, %v809_v37, %v744_v33  ;;  %v779_v42 = vmax.f32 %v714_v38, 0.0  ;;  %v507_v43 = vpop.f32.mrf.mxu2 }
  0xb2   : > { %v926_v44 = vpack.c.bf16 %v880_v41, %v879_v39  ;;  %v849_v45 = vsel %vm843_vm2, %v778_v40, %v713_v36  ;;  %v675_v46 = vmul.f32 %v1463_v48, %v507_v43  ;;  %v596_v47 = vpop.f32.mrf.mxu3 }
  0xb3   : > { %v850_v49 = vsel %vm844_vm3, %v779_v42, %v714_v38  ;;  %v676_v52 = vmul.f32 %v1465_v50, %v596_v47  ;;  %v469_v55 = vpop.f32.mrf.mxu0 }
  0xb4   : > { %961 = vst.msk [vmem:[%s1488_s7 + $0x88] sm:$0xff] %vm1492_vm6, %v926_v44  ;;  %v911_v56 = vpack.c.bf16 %v850_v49, %v849_v45  ;;  %v745_v58 = vadd.f32 %v1467_v51, %v675_v46  ;;  %v645_v59 = vmul.f32 %v1463_v48, %v469_v55  ;;  %v558_v60 = vpop.f32.mrf.mxu1 }
  0xb5   : > { %v746_v61 = vadd.f32 %v1471_v54, %v676_v52  ;;  %v646_v62 = vmul.f32 %v1465_v50, %v558_v60 }
  0xb6   : > { %946 = vst.msk [vmem:[%s1488_s7 + $0x10] sm:$0xff] %vm1492_vm6, %v911_v56  ;;  %v810_v63 = vmax.f32 %v745_v58, 0.0  ;;  %v715_v0 = vadd.f32 %v1467_v51, %v645_v59 }
  0xb7   : > { %v811_v1 = vmax.f32 %v746_v61, 0.0  ;;  %v716_v2 = vadd.f32 %v1471_v54, %v646_v62 }
  0xb8   : > { %v881_v3 = vsel %vm843_vm2, %v810_v63, %v745_v58  ;;  %v780_v5 = vmax.f32 %v715_v0, 0.0 }
  0xb9   : > { %v882_v6 = vsel %vm844_vm3, %v811_v1, %v746_v61  ;;  %v781_v7 = vmax.f32 %v716_v2, 0.0  ;;  %v509_v8 = vpop.f32.mrf.mxu2 }
  0xba   : > { %v927_v9 = vpack.c.bf16 %v882_v6, %v881_v3  ;;  %v851_v10 = vsel %vm843_vm2, %v780_v5, %v715_v0  ;;  %v677_v11 = vmul.f32 %v1463_v48, %v509_v8  ;;  %v598_v12 = vpop.f32.mrf.mxu3 }
  0xbb   : > { %v852_v13 = vsel %vm844_vm3, %v781_v7, %v716_v2  ;;  %v678_v14 = vmul.f32 %v1465_v50, %v598_v12  ;;  %v472_v15 = vpop.f32.mrf.mxu0 }
  0xbc   : > { %962 = vst.msk [vmem:[%s1488_s7 + $0x90] sm:$0xff] %vm1492_vm6, %v927_v9  ;;  %v912_v16 = vpack.c.bf16 %v852_v13, %v851_v10  ;;  %v747_v17 = vadd.f32 %v1467_v51, %v677_v11  ;;  %v647_v18 = vmul.f32 %v1463_v48, %v472_v15  ;;  %v561_v19 = vpop.f32.mrf.mxu1 }
  0xbd   : > { %v748_v20 = vadd.f32 %v1471_v54, %v678_v14  ;;  %v648_v21 = vmul.f32 %v1465_v50, %v561_v19 }
  0xbe   : > { %947 = vst.msk [vmem:[%s1488_s7 + $0x18] sm:$0xff] %vm1492_vm6, %v912_v16  ;;  %v812_v22 = vmax.f32 %v747_v17, 0.0  ;;  %v717_v23 = vadd.f32 %v1467_v51, %v647_v18 }
  0xbf   : > { %v813_v24 = vmax.f32 %v748_v20, 0.0  ;;  %v718_v25 = vadd.f32 %v1471_v54, %v648_v21 }
  0xc0   : > { %v883_v26 = vsel %vm843_vm2, %v812_v22, %v747_v17  ;;  %v782_v27 = vmax.f32 %v717_v23, 0.0 }
  0xc1   : > { %v884_v28 = vsel %vm844_vm3, %v813_v24, %v748_v20  ;;  %v783_v29 = vmax.f32 %v718_v25, 0.0  ;;  %v512_v30 = vpop.f32.mrf.mxu2 }
  0xc2   : > { %v928_v31 = vpack.c.bf16 %v884_v28, %v883_v26  ;;  %v853_v32 = vsel %vm843_vm2, %v782_v27, %v717_v23  ;;  %v679_v33 = vmul.f32 %v1463_v48, %v512_v30  ;;  %v601_v34 = vpop.f32.mrf.mxu3 }
  0xc3   : > { %v854_v35 = vsel %vm844_vm3, %v783_v29, %v718_v25  ;;  %v680_v36 = vmul.f32 %v1465_v50, %v601_v34  ;;  %v474_v37 = vpop.f32.mrf.mxu0 }
  0xc4   : > { %963 = vst.msk [vmem:[%s1488_s7 + $0x98] sm:$0xff] %vm1492_vm6, %v928_v31  ;;  %v913_v38 = vpack.c.bf16 %v854_v35, %v853_v32  ;;  %v749_v39 = vadd.f32 %v1467_v51, %v679_v33  ;;  %v649_v40 = vmul.f32 %v1463_v48, %v474_v37  ;;  %v563_v41 = vpop.f32.mrf.mxu1 }
  0xc5   : > { %v750_v42 = vadd.f32 %v1471_v54, %v680_v36  ;;  %v650_v43 = vmul.f32 %v1465_v50, %v563_v41 }
  0xc6   : > { %948 = vst.msk [vmem:[%s1488_s7 + $0x20] sm:$0xff] %vm1492_vm6, %v913_v38  ;;  %v814_v44 = vmax.f32 %v749_v39, 0.0  ;;  %v719_v45 = vadd.f32 %v1467_v51, %v649_v40 }
  0xc7   : > { %v815_v46 = vmax.f32 %v750_v42, 0.0  ;;  %v720_v47 = vadd.f32 %v1471_v54, %v650_v43 }
  0xc8   : > { %v885_v49 = vsel %vm843_vm2, %v814_v44, %v749_v39  ;;  %v784_v52 = vmax.f32 %v719_v45, 0.0 }
  0xc9   : > { %v886_v55 = vsel %vm844_vm3, %v815_v46, %v750_v42  ;;  %v785_v56 = vmax.f32 %v720_v47, 0.0  ;;  %v514_v58 = vpop.f32.mrf.mxu2 }
  0xca   : > { %v929_v59 = vpack.c.bf16 %v886_v55, %v885_v49  ;;  %v855_v60 = vsel %vm843_vm2, %v784_v52, %v719_v45  ;;  %v681_v61 = vmul.f32 %v1463_v48, %v514_v58  ;;  %v603_v62 = vpop.f32.mrf.mxu3 }
  0xcb   : > { %v856_v63 = vsel %vm844_vm3, %v785_v56, %v720_v47  ;;  %v682_v0 = vmul.f32 %v1465_v50, %v603_v62  ;;  %v477_v1 = vpop.f32.mrf.mxu0 }
  0xcc   : > { %964 = vst.msk [vmem:[%s1488_s7 + $0xa0] sm:$0xff] %vm1492_vm6, %v929_v59  ;;  %v914_v2 = vpack.c.bf16 %v856_v63, %v855_v60  ;;  %v751_v3 = vadd.f32 %v1467_v51, %v681_v61  ;;  %v651_v5 = vmul.f32 %v1463_v48, %v477_v1  ;;  %v566_v6 = vpop.f32.mrf.mxu1 }
  0xcd   : > { %v752_v7 = vadd.f32 %v1471_v54, %v682_v0  ;;  %v652_v8 = vmul.f32 %v1465_v50, %v566_v6 }
  0xce   : > { %949 = vst.msk [vmem:[%s1488_s7 + $0x28] sm:$0xff] %vm1492_vm6, %v914_v2  ;;  %v816_v9 = vmax.f32 %v751_v3, 0.0  ;;  %v721_v10 = vadd.f32 %v1467_v51, %v651_v5 }
  0xcf   : > { %v817_v11 = vmax.f32 %v752_v7, 0.0  ;;  %v722_v12 = vadd.f32 %v1471_v54, %v652_v8 }
  0xd0   : > { %v887_v13 = vsel %vm843_vm2, %v816_v9, %v751_v3  ;;  %v786_v14 = vmax.f32 %v721_v10, 0.0 }
  0xd1   : > { %v888_v15 = vsel %vm844_vm3, %v817_v11, %v752_v7  ;;  %v787_v16 = vmax.f32 %v722_v12, 0.0  ;;  %v517_v17 = vpop.f32.mrf.mxu2 }
  0xd2   : > { %v930_v18 = vpack.c.bf16 %v888_v15, %v887_v13  ;;  %v857_v19 = vsel %vm843_vm2, %v786_v14, %v721_v10  ;;  %v683_v20 = vmul.f32 %v1463_v48, %v517_v17  ;;  %v606_v21 = vpop.f32.mrf.mxu3 }
  0xd3   : > { %v858_v22 = vsel %vm844_vm3, %v787_v16, %v722_v12  ;;  %v684_v23 = vmul.f32 %v1465_v50, %v606_v21  ;;  %v479_v24 = vpop.f32.mrf.mxu0 }
  0xd4   : > { %965 = vst.msk [vmem:[%s1488_s7 + $0xa8] sm:$0xff] %vm1492_vm6, %v930_v18  ;;  %v915_v25 = vpack.c.bf16 %v858_v22, %v857_v19  ;;  %v753_v26 = vadd.f32 %v1467_v51, %v683_v20  ;;  %v653_v27 = vmul.f32 %v1463_v48, %v479_v24  ;;  %v568_v28 = vpop.f32.mrf.mxu1 }
  0xd5   : > { %v754_v29 = vadd.f32 %v1471_v54, %v684_v23  ;;  %v654_v30 = vmul.f32 %v1465_v50, %v568_v28 }
  0xd6   : > { %950 = vst.msk [vmem:[%s1488_s7 + $0x30] sm:$0xff] %vm1492_vm6, %v915_v25  ;;  %v818_v31 = vmax.f32 %v753_v26, 0.0  ;;  %v723_v32 = vadd.f32 %v1467_v51, %v653_v27 }
  0xd7   : > { %v819_v33 = vmax.f32 %v754_v29, 0.0  ;;  %v724_v34 = vadd.f32 %v1471_v54, %v654_v30 }
  0xd8   : > { %v889_v35 = vsel %vm843_vm2, %v818_v31, %v753_v26  ;;  %v788_v36 = vmax.f32 %v723_v32, 0.0 }
  0xd9   : > { %v890_v37 = vsel %vm844_vm3, %v819_v33, %v754_v29  ;;  %v789_v38 = vmax.f32 %v724_v34, 0.0  ;;  %v519_v39 = vpop.f32.mrf.mxu2 }
  0xda   : > { %v931_v40 = vpack.c.bf16 %v890_v37, %v889_v35  ;;  %v859_v41 = vsel %vm843_vm2, %v788_v36, %v723_v32  ;;  %v685_v42 = vmul.f32 %v1463_v48, %v519_v39  ;;  %v608_v43 = vpop.f32.mrf.mxu3 }
  0xdb   : > { %v860_v44 = vsel %vm844_vm3, %v789_v38, %v724_v34  ;;  %v686_v45 = vmul.f32 %v1465_v50, %v608_v43  ;;  %v482_v46 = vpop.f32.mrf.mxu0 }
  0xdc   : > { %966 = vst.msk [vmem:[%s1488_s7 + $0xb0] sm:$0xff] %vm1492_vm6, %v931_v40  ;;  %v916_v47 = vpack.c.bf16 %v860_v44, %v859_v41  ;;  %v755_v49 = vadd.f32 %v1467_v51, %v685_v42  ;;  %v655_v52 = vmul.f32 %v1463_v48, %v482_v46  ;;  %v571_v55 = vpop.f32.mrf.mxu1 }
  0xdd   : > { %v756_v56 = vadd.f32 %v1471_v54, %v686_v45  ;;  %v656_v58 = vmul.f32 %v1465_v50, %v571_v55 }
  0xde   : > { %951 = vst.msk [vmem:[%s1488_s7 + $0x38] sm:$0xff] %vm1492_vm6, %v916_v47  ;;  %v820_v59 = vmax.f32 %v755_v49, 0.0  ;;  %v725_v60 = vadd.f32 %v1467_v51, %v655_v52 }
  0xdf   : > { %v821_v61 = vmax.f32 %v756_v56, 0.0  ;;  %v726_v62 = vadd.f32 %v1471_v54, %v656_v58 }
  0xe0   : > { %v891_v63 = vsel %vm843_vm2, %v820_v59, %v755_v49  ;;  %v790_v0 = vmax.f32 %v725_v60, 0.0 }
  0xe1   : > { %v892_v1 = vsel %vm844_vm3, %v821_v61, %v756_v56  ;;  %v791_v2 = vmax.f32 %v726_v62, 0.0  ;;  %v522_v3 = vpop.f32.mrf.mxu2 }
  0xe2   : > { %v932_v5 = vpack.c.bf16 %v892_v1, %v891_v63  ;;  %v861_v6 = vsel %vm843_vm2, %v790_v0, %v725_v60  ;;  %v687_v7 = vmul.f32 %v1463_v48, %v522_v3  ;;  %v611_v8 = vpop.f32.mrf.mxu3 }
  0xe3   : > { %v862_v9 = vsel %vm844_vm3, %v791_v2, %v726_v62  ;;  %v688_v10 = vmul.f32 %v1465_v50, %v611_v8  ;;  %v484_v11 = vpop.f32.mrf.mxu0 }
  0xe4   : > { %967 = vst.msk [vmem:[%s1488_s7 + $0xb8] sm:$0xff] %vm1492_vm6, %v932_v5  ;;  %v917_v12 = vpack.c.bf16 %v862_v9, %v861_v6  ;;  %v757_v13 = vadd.f32 %v1467_v51, %v687_v7  ;;  %v657_v14 = vmul.f32 %v1463_v48, %v484_v11  ;;  %v573_v15 = vpop.f32.mrf.mxu1 }
  0xe5   : > { %v758_v16 = vadd.f32 %v1471_v54, %v688_v10  ;;  %v658_v17 = vmul.f32 %v1465_v50, %v573_v15 }
  0xe6   : > { %952 = vst.msk [vmem:[%s1488_s7 + $0x40] sm:$0xff] %vm1492_vm6, %v917_v12  ;;  %v822_v18 = vmax.f32 %v757_v13, 0.0  ;;  %v727_v19 = vadd.f32 %v1467_v51, %v657_v14 }
  0xe7   : > { %v823_v20 = vmax.f32 %v758_v16, 0.0  ;;  %v728_v21 = vadd.f32 %v1471_v54, %v658_v17 }
  0xe8   : > { %v893_v22 = vsel %vm843_vm2, %v822_v18, %v757_v13  ;;  %v792_v23 = vmax.f32 %v727_v19, 0.0 }
  0xe9   : > { %v894_v24 = vsel %vm844_vm3, %v823_v20, %v758_v16  ;;  %v793_v25 = vmax.f32 %v728_v21, 0.0  ;;  %v524_v26 = vpop.f32.mrf.mxu2 }
  0xea   : > { %v933_v27 = vpack.c.bf16 %v894_v24, %v893_v22  ;;  %v863_v28 = vsel %vm843_vm2, %v792_v23, %v727_v19  ;;  %v689_v29 = vmul.f32 %v1463_v48, %v524_v26  ;;  %v613_v30 = vpop.f32.mrf.mxu3 }
  0xeb   : > { %v864_v31 = vsel %vm844_vm3, %v793_v25, %v728_v21  ;;  %v690_v32 = vmul.f32 %v1465_v50, %v613_v30  ;;  %v487_v33 = vpop.f32.mrf.mxu0 }
  0xec   : > { %968 = vst.msk [vmem:[%s1488_s7 + $0xc0] sm:$0xff] %vm1492_vm6, %v933_v27  ;;  %v918_v34 = vpack.c.bf16 %v864_v31, %v863_v28  ;;  %v759_v35 = vadd.f32 %v1467_v51, %v689_v29  ;;  %v659_v36 = vmul.f32 %v1463_v48, %v487_v33  ;;  %v576_v37 = vpop.f32.mrf.mxu1 }
  0xed   : > { %v760_v38 = vadd.f32 %v1471_v54, %v690_v32  ;;  %v660_v39 = vmul.f32 %v1465_v50, %v576_v37 }
  0xee   : > { %953 = vst.msk [vmem:[%s1488_s7 + $0x48] sm:$0xff] %vm1492_vm6, %v918_v34  ;;  %v824_v40 = vmax.f32 %v759_v35, 0.0  ;;  %v729_v41 = vadd.f32 %v1467_v51, %v659_v36 }
  0xef   : > { %v825_v42 = vmax.f32 %v760_v38, 0.0  ;;  %v730_v43 = vadd.f32 %v1471_v54, %v660_v39 }
  0xf0   : > { %v895_v44 = vsel %vm843_vm2, %v824_v40, %v759_v35  ;;  %v794_v45 = vmax.f32 %v729_v41, 0.0 }
  0xf1   : > { %v896_v46 = vsel %vm844_vm3, %v825_v42, %v760_v38  ;;  %v795_v47 = vmax.f32 %v730_v43, 0.0  ;;  %v527_v49 = vpop.f32.mrf.mxu2 }
  0xf2   : > { %v934_v52 = vpack.c.bf16 %v896_v46, %v895_v44  ;;  %v865_v55 = vsel %vm843_vm2, %v794_v45, %v729_v41  ;;  %v691_v56 = vmul.f32 %v1463_v48, %v527_v49  ;;  %v616_v58 = vpop.f32.mrf.mxu3 }
  0xf3   : > { %v866_v59 = vsel %vm844_vm3, %v795_v47, %v730_v43  ;;  %v692_v60 = vmul.f32 %v1465_v50, %v616_v58  ;;  %v489_v61 = vpop.f32.mrf.mxu0 }
  0xf4   : > { %969 = vst.msk [vmem:[%s1488_s7 + $0xc8] sm:$0xff] %vm1492_vm6, %v934_v52  ;;  %v919_v62 = vpack.c.bf16 %v866_v59, %v865_v55  ;;  %v761_v63 = vadd.f32 %v1467_v51, %v691_v56  ;;  %v661_v0 = vmul.f32 %v1463_v48, %v489_v61  ;;  %v578_v1 = vpop.f32.mrf.mxu1 }
  0xf5   : > { %v762_v2 = vadd.f32 %v1471_v54, %v692_v60  ;;  %v662_v3 = vmul.f32 %v1465_v50, %v578_v1 }
  0xf6   : > { %954 = vst.msk [vmem:[%s1488_s7 + $0x50] sm:$0xff] %vm1492_vm6, %v919_v62  ;;  %v826_v5 = vmax.f32 %v761_v63, 0.0  ;;  %v731_v6 = vadd.f32 %v1467_v51, %v661_v0 }
  0xf7   : > { %v827_v7 = vmax.f32 %v762_v2, 0.0  ;;  %v732_v8 = vadd.f32 %v1471_v54, %v662_v3 }
  0xf8   : > { %v897_v9 = vsel %vm843_vm2, %v826_v5, %v761_v63  ;;  %v796_v10 = vmax.f32 %v731_v6, 0.0 }
  0xf9   : > { %v898_v11 = vsel %vm844_vm3, %v827_v7, %v762_v2  ;;  %v797_v12 = vmax.f32 %v732_v8, 0.0  ;;  %v529_v13 = vpop.f32.mrf.mxu2 }
  0xfa   : > { %v935_v14 = vpack.c.bf16 %v898_v11, %v897_v9  ;;  %v867_v15 = vsel %vm843_vm2, %v796_v10, %v731_v6  ;;  %v693_v16 = vmul.f32 %v1463_v48, %v529_v13  ;;  %v618_v17 = vpop.f32.mrf.mxu3 }
  0xfb   : > { %v868_v18 = vsel %vm844_vm3, %v797_v12, %v732_v8  ;;  %v694_v19 = vmul.f32 %v1465_v50, %v618_v17  ;;  %v492_v20 = vpop.f32.mrf.mxu0 }
  0xfc   : > { %970 = vst.msk [vmem:[%s1488_s7 + $0xd0] sm:$0xff] %vm1492_vm6, %v935_v14  ;;  %v920_v21 = vpack.c.bf16 %v868_v18, %v867_v15  ;;  %v763_v22 = vadd.f32 %v1467_v51, %v693_v16  ;;  %v663_v23 = vmul.f32 %v1463_v48, %v492_v20  ;;  %v581_v24 = vpop.f32.mrf.mxu1 }
  0xfd   : > { %v764_v25 = vadd.f32 %v1471_v54, %v694_v19  ;;  %v664_v26 = vmul.f32 %v1465_v50, %v581_v24 }
  0xfe   : > { %955 = vst.msk [vmem:[%s1488_s7 + $0x58] sm:$0xff] %vm1492_vm6, %v920_v21  ;;  %v828_v27 = vmax.f32 %v763_v22, 0.0  ;;  %v733_v28 = vadd.f32 %v1467_v51, %v663_v23 }
  0xff   : > { %v829_v29 = vmax.f32 %v764_v25, 0.0  ;;  %v734_v30 = vadd.f32 %v1471_v54, %v664_v26 }
 0x100   : > { %v899_v31 = vsel %vm843_vm2, %v828_v27, %v763_v22  ;;  %v798_v32 = vmax.f32 %v733_v28, 0.0 }
 0x101   : > { %v900_v33 = vsel %vm844_vm3, %v829_v29, %v764_v25  ;;  %v799_v34 = vmax.f32 %v734_v30, 0.0  ;;  %v532_v35 = vpop.f32.mrf.mxu2 }
 0x102   : > { %v936_v36 = vpack.c.bf16 %v900_v33, %v899_v31  ;;  %v869_v37 = vsel %vm843_vm2, %v798_v32, %v733_v28  ;;  %v695_v38 = vmul.f32 %v1463_v48, %v532_v35  ;;  %v621_v39 = vpop.f32.mrf.mxu3 }
 0x103   : > { %v870_v40 = vsel %vm844_vm3, %v799_v34, %v734_v30  ;;  %v696_v41 = vmul.f32 %v1465_v50, %v621_v39  ;;  %v494_v42 = vpop.f32.mrf.mxu0 }
 0x104   : > { %971 = vst.msk [vmem:[%s1488_s7 + $0xd8] sm:$0xff] %vm1492_vm6, %v936_v36  ;;  %v921_v43 = vpack.c.bf16 %v870_v40, %v869_v37  ;;  %v765_v44 = vadd.f32 %v1467_v51, %v695_v38  ;;  %v665_v45 = vmul.f32 %v1463_v48, %v494_v42  ;;  %v583_v46 = vpop.f32.mrf.mxu1 }
 0x105   : > { %v766_v47 = vadd.f32 %v1471_v54, %v696_v41  ;;  %v666_v49 = vmul.f32 %v1465_v50, %v583_v46 }
 0x106   : > { %956 = vst.msk [vmem:[%s1488_s7 + $0x60] sm:$0xff] %vm1492_vm6, %v921_v43  ;;  %v830_v52 = vmax.f32 %v765_v44, 0.0  ;;  %v735_v55 = vadd.f32 %v1467_v51, %v665_v45 }
 0x107   : > { %v831_v56 = vmax.f32 %v766_v47, 0.0  ;;  %v736_v58 = vadd.f32 %v1471_v54, %v666_v49 }
 0x108   : > { %v901_v59 = vsel %vm843_vm2, %v830_v52, %v765_v44  ;;  %v800_v60 = vmax.f32 %v735_v55, 0.0 }
 0x109   : > { %v902_v61 = vsel %vm844_vm3, %v831_v56, %v766_v47  ;;  %v801_v62 = vmax.f32 %v736_v58, 0.0  ;;  %v534_v63 = vpop.f32.mrf.mxu2 }
 0x10a   : > { %v937_v0 = vpack.c.bf16 %v902_v61, %v901_v59  ;;  %v871_v1 = vsel %vm843_vm2, %v800_v60, %v735_v55  ;;  %v697_v2 = vmul.f32 %v1463_v48, %v534_v63  ;;  %v623_v3 = vpop.f32.mrf.mxu3 }
 0x10b   : > { %v872_v5 = vsel %vm844_vm3, %v801_v62, %v736_v58  ;;  %v698_v6 = vmul.f32 %v1465_v50, %v623_v3  ;;  %v497_v7 = vpop.f32.mrf.mxu0 }
 0x10c   : > { %972 = vst.msk [vmem:[%s1488_s7 + $0xe0] sm:$0xff] %vm1492_vm6, %v937_v0  ;;  %v922_v8 = vpack.c.bf16 %v872_v5, %v871_v1  ;;  %v767_v9 = vadd.f32 %v1467_v51, %v697_v2  ;;  %v667_v10 = vmul.f32 %v1463_v48, %v497_v7  ;;  %v586_v11 = vpop.f32.mrf.mxu1 }
 0x10d   : > { %v768_v12 = vadd.f32 %v1471_v54, %v698_v6  ;;  %v668_v13 = vmul.f32 %v1465_v50, %v586_v11 }
 0x10e   : > { %957 = vst.msk [vmem:[%s1488_s7 + $0x68] sm:$0xff] %vm1492_vm6, %v922_v8  ;;  %v832_v14 = vmax.f32 %v767_v9, 0.0  ;;  %v737_v15 = vadd.f32 %v1467_v51, %v667_v10 }
 0x10f   : > { %v833_v16 = vmax.f32 %v768_v12, 0.0  ;;  %v738_v17 = vadd.f32 %v1471_v54, %v668_v13 }
 0x110   : > { %v903_v18 = vsel %vm843_vm2, %v832_v14, %v767_v9  ;;  %v802_v19 = vmax.f32 %v737_v15, 0.0 }
 0x111   : > { %v904_v20 = vsel %vm844_vm3, %v833_v16, %v768_v12  ;;  %v803_v21 = vmax.f32 %v738_v17, 0.0  ;;  %v537_v22 = vpop.f32.mrf.mxu2 }
 0x112   : > { %v938_v23 = vpack.c.bf16 %v904_v20, %v903_v18  ;;  %v873_v24 = vsel %vm843_vm2, %v802_v19, %v737_v15  ;;  %v699_v25 = vmul.f32 %v1463_v48, %v537_v22  ;;  %v626_v26 = vpop.f32.mrf.mxu3 }
 0x113   : > { %v874_v27 = vsel %vm844_vm3, %v803_v21, %v738_v17  ;;  %v700_v28 = vmul.f32 %v1465_v50, %v626_v26  ;;  %v499_v29 = vpop.f32.mrf.mxu0 }
 0x114   : > { %973 = vst.msk [vmem:[%s1488_s7 + $0xe8] sm:$0xff] %vm1492_vm6, %v938_v23  ;;  %v923_v30 = vpack.c.bf16 %v874_v27, %v873_v24  ;;  %v769_v31 = vadd.f32 %v1467_v51, %v699_v25  ;;  %v669_v32 = vmul.f32 %v1463_v48, %v499_v29  ;;  %v588_v33 = vpop.f32.mrf.mxu1 }
 0x115   : > { %v770_v34 = vadd.f32 %v1471_v54, %v700_v28  ;;  %v670_v35 = vmul.f32 %v1465_v50, %v588_v33 }
 0x116   : > { %958 = vst.msk [vmem:[%s1488_s7 + $0x70] sm:$0xff] %vm1492_vm6, %v923_v30  ;;  %v834_v36 = vmax.f32 %v769_v31, 0.0  ;;  %v739_v37 = vadd.f32 %v1467_v51, %v669_v32 }
 0x117   : > { %v835_v38 = vmax.f32 %v770_v34, 0.0  ;;  %v740_v39 = vadd.f32 %v1471_v54, %v670_v35 }
 0x118   : > { %v905_v40 = vsel %vm843_vm2, %v834_v36, %v769_v31  ;;  %v804_v41 = vmax.f32 %v739_v37, 0.0 }
 0x119   : > { %v906_v42 = vsel %vm844_vm3, %v835_v38, %v770_v34  ;;  %v805_v43 = vmax.f32 %v740_v39, 0.0  ;;  %v539_v44 = vpop.f32.mrf.mxu2 }
 0x11a   : > { %v939_v45 = vpack.c.bf16 %v906_v42, %v905_v40  ;;  %v875_v46 = vsel %vm843_vm2, %v804_v41, %v739_v37  ;;  %v701_v47 = vmul.f32 %v1463_v48, %v539_v44  ;;  %v628_v49 = vpop.f32.mrf.mxu3 }
 0x11b   : > { %v876_v52 = vsel %vm844_vm3, %v805_v43, %v740_v39  ;;  %v702_v55 = vmul.f32 %v1465_v50, %v628_v49 }
 0x11c   : > { %974 = vst.msk [vmem:[%s1488_s7 + $0xf0] sm:$0xff] %vm1492_vm6, %v939_v45  ;;  %v924_v56 = vpack.c.bf16 %v876_v52, %v875_v46  ;;  %v771_v58 = vadd.f32 %v1467_v51, %v701_v47 }
 0x11d   : > { %v772_v59 = vadd.f32 %v1471_v54, %v702_v55 }
 0x11e   : > { %959 = vst.msk [vmem:[%s1488_s7 + $0x78] sm:$0xff] %vm1492_vm6, %v924_v56  ;;  %v836_v60 = vmax.f32 %v771_v58, 0.0 }
 0x11f   : > { %v837_v61 = vmax.f32 %v772_v59, 0.0 }
 0x120   : > { %v907_v48 = vsel %vm843_vm2, %v836_v60, %v771_v58 }
 0x121   : > { %v908_v62 = vsel %vm844_vm3, %v837_v61, %v772_v59 }
 0x122   : > { %v940_v50 = vpack.c.bf16 %v908_v62, %v907_v48 }
 0x124   : > { %975 = vst.msk [vmem:[%s1488_s7 + $0xf8] sm:$0xff] %vm1492_vm6, %v940_v50 }
 0x125 PF: > { %s13_s14 = sadd.s32 1, %s1312_s14   ;;  %s1854_s12 = smov %s1308_s13 }
 0x126   : > { %p10_p5 = scmp.ge.s32.totalorder %s13_s14, 4   ;;  %s1855_s13 = smov %s1857_s15 }
 0x128   :  { %12 = sbr.rel (!%p10_p5) target bundleno = 2 (0x2), region = 68 }

// kernel: _lambda_.21
= control target key start
LH: loop header
LB: loop body
LE: loop exit
PB: predicated region body
PF: predicated region fallthrough
CT: control target
= control target key end

     0   :  { %s1198_s15 = smov 0   ;;  %s1200_s16 = smov 0   ;;  %s1461_s0 = inlined_call_operand.vmem [shape: bf16[512,16], index: 0, kind: input, shape index: {}]   ;;  %s1462_s1 = inlined_call_operand.vmem [shape: bf16[16,64], index: 1, kind: input, shape index: {}]   ;;  %s1463_s2 = inlined_call_operand.vmem [shape: f32[2,64], index: 2, kind: input, shape index: {}]   ;;  %s1464_s3 = inlined_call_operand.vmem [shape: bf16[512,64], index: 3, kind: input, shape index: {}]   ;;  %s1465_s4 = inlined_call_operand.vmem [shape: bf16[512,64], index: 4, kind: output, shape index: {}]  }
   0x1   :  { %s1202_s17 = smov 0  }
   0x2 LB: > { %s26_s18 = sadd.s32 1, %s1167_s16  ;;  %p933_p0 = scmp.ge.s32.totalorder %s1171_s17, 1  ;;  %s1171_s17 = sphi %s1202_s17, %s14_s17   ;;  %s1167_s16 = sphi %s1200_s16, %s1467_s16   ;;  %s1163_s15 = sphi %s1198_s15, %s1466_s15  }
   0x3   : > { %p28_p1 = scmp.ge.s32.totalorder %s26_s18, 2  ;;  %p211_p2 = scmp.lt.s32.totalorder %s1171_s17, 3 }
   0x5   : > { %s1469_s18 = smov (%p28_p1, %s26_s18), 0  ;;  %p212_p3 = pnand %p933_p0, %p211_p2 }
   0x6   : > { %s934_s21 = sshll.u32 (!%p212_p3), %s1163_s15, 5 }
   0x7   : > { %215 = sbr.rel (%p212_p3) target bundleno = 218 (0xda), region = 36  ;;  %p257_p4 = scmp.lt.s32.totalorder (!%p212_p3), %s934_s21, 63 }
   0xc   : > { %v1042_v0 = vld [vmem:[%s1462_s1] sm:$0xff]  ;;  %s1471_s21 = smov (!%p257_p4, %s934_s21), 63  ;;  %vm409_vm0 = vcmask 130048   ;;  %vm774_vm1 = vcmask 519168  }
   0xd   : > { %465 = vmatpush.bf16.msra.mxu0 %v1042_v0  ;;  %1122 = vmatpush.bf16.msra.mxu1 %v1042_v0  ;;  %s1219_s22 = sshll.u32 %s1471_s21, 2  ;;  %v547_v17 = vld [vmem:[%s1463_s2] sm:$0x3] }
   0xe   : > { %1123 = vmatpush.bf16.msra.mxu2 %v1042_v0  ;;  %1124 = vmatpush.bf16.msra.mxu3 %v1042_v0  ;;  %s260_s25 = scalar_lea.vmem %s1461_s0, %s1219_s22  ;;  %s1248_s30 = scalar_lea.vmem %s1464_s3, %s1219_s22  ;;  %v1250_v18 = vperm.slane %v547_v17, 0  ;;  %v1254_v21 = vperm.slane %v547_v17, 1 }
   0xf   : > { %v1026_v1 = vld [vmem:[%s260_s25] sm:$0xff]  ;;  %v1027_v5 = vld [vmem:[%s260_s25 + $0x8] sm:$0xff]  ;;  %v1028_v9 = vld [vmem:[%s260_s25 + $0x10] sm:$0xff]  ;;  %s1272_s7 = scalar_lea.vmem %s1465_s4, %s1219_s22 }
  0x10   : > { %v1030_v2 = vld [vmem:[%s260_s25 + $0x20] sm:$0xff]  ;;  %1008 = vmatmul.msk.bf16.vlgmr.msra.gmra.mxu0 %vm409_vm0, %v1026_v1  ;;  %v1031_v6 = vld [vmem:[%s260_s25 + $0x28] sm:$0xff]  ;;  %v1032_v10 = vld [vmem:[%s260_s25 + $0x30] sm:$0xff] }
  0x11   : > { %v1034_v3 = vld [vmem:[%s260_s25 + $0x40] sm:$0xff]  ;;  %1012 = vmatmul.msk.bf16.vlgmr.msra.gmra.mxu1 %vm409_vm0, %v1030_v2  ;;  %v1035_v7 = vld [vmem:[%s260_s25 + $0x48] sm:$0xff]  ;;  %v1036_v11 = vld [vmem:[%s260_s25 + $0x50] sm:$0xff] }
  0x12   : > { %v1038_v4 = vld [vmem:[%s260_s25 + $0x60] sm:$0xff]  ;;  %1016 = vmatmul.msk.bf16.vlgmr.msra.gmra.mxu2 %vm409_vm0, %v1034_v3  ;;  %v1039_v8 = vld [vmem:[%s260_s25 + $0x68] sm:$0xff]  ;;  %v1040_v12 = vld [vmem:[%s260_s25 + $0x70] sm:$0xff] }
  0x13   : > { %1020 = vmatmul.msk.bf16.vlgmr.msra.gmra.mxu3 %vm409_vm0, %v1038_v4  ;;  %v1029_v13 = vld [vmem:[%s260_s25 + $0x18] sm:$0xff]  ;;  %v1044_v19 = vld [vmem:[%s1248_s30] sm:$0xff]   ;;  %v1287_v56 = vld [vmem:[%s1248_s30 + $0x8] sm:$0xff]  }
  0x14   : > { %v1033_v14 = vld [vmem:[%s260_s25 + $0x38] sm:$0xff]  ;;  %v1110_v20 = vld [vmem:[%s1248_s30 + $0x20] sm:$0xff]   ;;  %v1045_v24 = vunpack.c.l.bf16 %v1044_v19  ;;  %v1046_v43 = vunpack.c.h.bf16 %v1044_v19  ;;  %v1290_v57 = vld [vmem:[%s1248_s30 + $0x28] sm:$0xff]   ;;  %v1049_v4 = vunpack.c.l.bf16 %v1287_v56 }
  0x15   : > { %v1037_v15 = vld [vmem:[%s260_s25 + $0x58] sm:$0xff]  ;;  %v1061_v26 = vunpack.c.l.bf16 %v1110_v20  ;;  %v1261_v30 = vld [vmem:[%s1248_s30 + $0x40] sm:$0xff]   ;;  %v1062_v45 = vunpack.c.h.bf16 %v1110_v20 }
  0x16   : > { %v1041_v16 = vld [vmem:[%s260_s25 + $0x78] sm:$0xff]  ;;  %v1264_v31 = vld [vmem:[%s1248_s30 + $0x60] sm:$0xff]   ;;  %v1077_v37 = vunpack.c.l.bf16 %v1261_v30  ;;  %v1078_v62 = vunpack.c.h.bf16 %v1261_v30 }
  0x17   : > { %v1093_v39 = vunpack.c.l.bf16 %v1264_v31  ;;  %v1094_v63 = vunpack.c.h.bf16 %v1264_v31 }
  0x20   : > { %1009 = vmatmul.msk.bf16.gmra.mxu0 %vm409_vm0, %v1027_v5  ;;  %v1065_v5 = vunpack.c.l.bf16 %v1290_v57 }
  0x21   : > { %1013 = vmatmul.msk.bf16.gmra.mxu1 %vm409_vm0, %v1031_v6 }
  0x22   : > { %1017 = vmatmul.msk.bf16.gmra.mxu2 %vm409_vm0, %v1035_v7 }
  0x23   : > { %1021 = vmatmul.msk.bf16.gmra.mxu3 %vm409_vm0, %v1039_v8 }
  0x30   : > { %1010 = vmatmul.msk.bf16.gmra.mxu0 %vm409_vm0, %v1028_v9 }
  0x31   : > { %1014 = vmatmul.msk.bf16.gmra.mxu1 %vm409_vm0, %v1032_v10 }
  0x32   : > { %1018 = vmatmul.msk.bf16.gmra.mxu2 %vm409_vm0, %v1036_v11 }
  0x33   : > { %1022 = vmatmul.msk.bf16.gmra.mxu3 %vm409_vm0, %v1040_v12 }
  0x40   : > { %1011 = vmatmul.msk.bf16.gmra.mxu0 %vm409_vm0, %v1029_v13 }
  0x41   : > { %1015 = vmatmul.msk.bf16.gmra.mxu1 %vm409_vm0, %v1033_v14 }
  0x42   : > { %1019 = vmatmul.msk.bf16.gmra.mxu2 %vm409_vm0, %v1037_v15 }
  0x43   : > { %1023 = vmatmul.msk.bf16.gmra.mxu3 %vm409_vm0, %v1041_v16 }
  0x8d   : > { %v467_v22 = vpop.f32.mrf.mxu0 }
  0x8e   : > { %v487_v23 = vpop.f32.mrf.mxu1  ;;  %v581_v25 = vmul.f32 %v1250_v18, %v467_v22  ;;  %v1309_v22 = vld [vmem:[%s1248_s30 + $0x48] sm:$0xff]  }
  0x8f   : > { %v589_v27 = vmul.f32 %v1250_v18, %v487_v23  ;;  %v1312_v23 = vld [vmem:[%s1248_s30 + $0x68] sm:$0xff]   ;;  %v1081_v30 = vunpack.c.l.bf16 %v1309_v22 }
  0x90   : > { %v614_v28 = vadd.f32 %v1254_v21, %v581_v25  ;;  %v1097_v31 = vunpack.c.l.bf16 %v1312_v23 }
  0x91   : > { %v622_v29 = vadd.f32 %v1254_v21, %v589_v27 }
  0x92   : > { %v678_v32 = vadd.f32 %v1045_v24, %v614_v28 }
  0x93   : > { %v686_v33 = vadd.f32 %v1061_v26, %v622_v29 }
  0x94   : > { %v710_v34 = vmax.f32 %v678_v32, 0.0 }
  0x95   : > { %v718_v35 = vmax.f32 %v686_v33, 0.0  ;;  %v507_v36 = vpop.f32.mrf.mxu2  ;;  %v469_v42 = vpop.f32.mrf.mxu0 }
  0x96   : > { %v527_v38 = vpop.f32.mrf.mxu3  ;;  %v597_v40 = vmul.f32 %v1250_v18, %v507_v36  ;;  %v489_v44 = vpop.f32.mrf.mxu1  ;;  %v742_v46 = vpack.c.bf16 %v710_v34, %v710_v34  ;;  %v582_v48 = vmul.f32 %v1250_v18, %v469_v42  ;;  %v1050_v36 = vunpack.c.h.bf16 %v1287_v56 }
  0x97   : > { %v605_v41 = vmul.f32 %v1250_v18, %v527_v38  ;;  %v750_v47 = vpack.c.bf16 %v718_v35, %v718_v35  ;;  %v590_v49 = vmul.f32 %v1250_v18, %v489_v44 }
  0x98   : > { %v630_v50 = vadd.f32 %v1254_v21, %v597_v40  ;;  %775 = vst.msk [vmem:[%s1272_s7] sm:$0xf] %vm774_vm1, %v742_v46  ;;  %v615_v52 = vadd.f32 %v1254_v21, %v582_v48 }
  0x99   : > { %v638_v51 = vadd.f32 %v1254_v21, %v605_v41  ;;  %v623_v53 = vadd.f32 %v1254_v21, %v590_v49  ;;  %783 = vst.msk [vmem:[%s1272_s7 + $0x20] sm:$0xf] %vm774_vm1, %v750_v47 }
  0x9a   : > { %v694_v54 = vadd.f32 %v1077_v37, %v630_v50  ;;  %v679_v58 = vadd.f32 %v1046_v43, %v615_v52  ;;  %v1066_v37 = vunpack.c.h.bf16 %v1290_v57 }
  0x9b   : > { %v702_v55 = vadd.f32 %v1093_v39, %v638_v51  ;;  %v687_v59 = vadd.f32 %v1062_v45, %v623_v53 }
  0x9c   : > { %v726_v60 = vmax.f32 %v694_v54, 0.0  ;;  %v711_v0 = vmax.f32 %v679_v58, 0.0  ;;  %v1337_v54 = vld [vmem:[%s1248_s30 + $0x10] sm:$0xff]  }
  0x9d   : > { %v734_v61 = vmax.f32 %v702_v55, 0.0  ;;  %v719_v1 = vmax.f32 %v687_v59, 0.0  ;;  %v509_v2 = vpop.f32.mrf.mxu2  ;;  %v472_v10 = vpop.f32.mrf.mxu0  ;;  %v1340_v55 = vld [vmem:[%s1248_s30 + $0x30] sm:$0xff]  }
  0x9e   : > { %v529_v3 = vpop.f32.mrf.mxu3  ;;  %v758_v6 = vpack.c.bf16 %v726_v60, %v726_v60  ;;  %v598_v8 = vmul.f32 %v1250_v18, %v509_v2  ;;  %v492_v11 = vpop.f32.mrf.mxu1  ;;  %v743_v12 = vpack.c.bf16 %v711_v0, %v711_v0  ;;  %v583_v14 = vmul.f32 %v1250_v18, %v472_v10 }
  0x9f   : > { %v766_v7 = vpack.c.bf16 %v734_v61, %v734_v61  ;;  %v606_v9 = vmul.f32 %v1250_v18, %v529_v3  ;;  %v751_v13 = vpack.c.bf16 %v719_v1, %v719_v1  ;;  %v591_v15 = vmul.f32 %v1250_v18, %v492_v11 }
  0xa0   : > { %791 = vst.msk [vmem:[%s1272_s7 + $0x40] sm:$0xf] %vm774_vm1, %v758_v6  ;;  %v631_v16 = vadd.f32 %v1254_v21, %v598_v8  ;;  %v616_v19 = vadd.f32 %v1254_v21, %v583_v14  ;;  %v1082_v60 = vunpack.c.h.bf16 %v1309_v22  ;;  %v1098_v61 = vunpack.c.h.bf16 %v1312_v23 }
  0xa1   : > { %v639_v17 = vadd.f32 %v1254_v21, %v606_v9  ;;  %799 = vst.msk [vmem:[%s1272_s7 + $0x60] sm:$0xf] %vm774_vm1, %v766_v7  ;;  %v624_v20 = vadd.f32 %v1254_v21, %v591_v15  ;;  %v1053_v2 = vunpack.c.l.bf16 %v1337_v54  ;;  %v1069_v3 = vunpack.c.l.bf16 %v1340_v55 }
  0xa2   : > { %776 = vst.msk [vmem:[%s1272_s7 + $0x4] sm:$0xf] %vm774_vm1, %v743_v12  ;;  %v695_v24 = vadd.f32 %v1078_v62, %v631_v16  ;;  %v680_v26 = vadd.f32 %v1049_v4, %v616_v19  ;;  %v1361_v19 = vld [vmem:[%s1248_s30 + $0x50] sm:$0xff]  }
  0xa3   : > { %v703_v25 = vadd.f32 %v1094_v63, %v639_v17  ;;  %784 = vst.msk [vmem:[%s1272_s7 + $0x24] sm:$0xf] %vm774_vm1, %v751_v13  ;;  %v688_v27 = vadd.f32 %v1065_v5, %v624_v20  ;;  %v1364_v20 = vld [vmem:[%s1248_s30 + $0x70] sm:$0xff]  }
  0xa4   : > { %v727_v28 = vmax.f32 %v695_v24, 0.0  ;;  %v712_v32 = vmax.f32 %v680_v26, 0.0 }
  0xa5   : > { %v735_v29 = vmax.f32 %v703_v25, 0.0  ;;  %v720_v33 = vmax.f32 %v688_v27, 0.0  ;;  %v512_v34 = vpop.f32.mrf.mxu2  ;;  %v474_v42 = vpop.f32.mrf.mxu0 }
  0xa6   : > { %v532_v35 = vpop.f32.mrf.mxu3  ;;  %v759_v38 = vpack.c.bf16 %v727_v28, %v727_v28  ;;  %v599_v40 = vmul.f32 %v1250_v18, %v512_v34  ;;  %v494_v43 = vpop.f32.mrf.mxu1  ;;  %v744_v44 = vpack.c.bf16 %v712_v32, %v712_v32  ;;  %v584_v46 = vmul.f32 %v1250_v18, %v474_v42 }
  0xa7   : > { %v767_v39 = vpack.c.bf16 %v735_v29, %v735_v29  ;;  %v607_v41 = vmul.f32 %v1250_v18, %v532_v35  ;;  %v752_v45 = vpack.c.bf16 %v720_v33, %v720_v33  ;;  %v592_v47 = vmul.f32 %v1250_v18, %v494_v43 }
  0xa8   : > { %792 = vst.msk [vmem:[%s1272_s7 + $0x44] sm:$0xf] %vm774_vm1, %v759_v38  ;;  %v632_v48 = vadd.f32 %v1254_v21, %v599_v40  ;;  %v617_v50 = vadd.f32 %v1254_v21, %v584_v46  ;;  %v1085_v28 = vunpack.c.l.bf16 %v1361_v19  ;;  %v1101_v29 = vunpack.c.l.bf16 %v1364_v20 }
  0xa9   : > { %v640_v49 = vadd.f32 %v1254_v21, %v607_v41  ;;  %800 = vst.msk [vmem:[%s1272_s7 + $0x64] sm:$0xf] %vm774_vm1, %v767_v39  ;;  %v625_v51 = vadd.f32 %v1254_v21, %v592_v47  ;;  %v1054_v34 = vunpack.c.h.bf16 %v1337_v54  ;;  %v1070_v35 = vunpack.c.h.bf16 %v1340_v55 }
  0xaa   : > { %777 = vst.msk [vmem:[%s1272_s7 + $0x8] sm:$0xf] %vm774_vm1, %v744_v44  ;;  %v696_v52 = vadd.f32 %v1081_v30, %v632_v48  ;;  %v681_v56 = vadd.f32 %v1050_v36, %v617_v50 }
  0xab   : > { %v704_v53 = vadd.f32 %v1097_v31, %v640_v49  ;;  %785 = vst.msk [vmem:[%s1272_s7 + $0x28] sm:$0xf] %vm774_vm1, %v752_v45  ;;  %v689_v57 = vadd.f32 %v1066_v37, %v625_v51 }
  0xac   : > { %v728_v58 = vmax.f32 %v696_v52, 0.0  ;;  %v713_v62 = vmax.f32 %v681_v56, 0.0  ;;  %v1389_v52 = vld [vmem:[%s1248_s30 + $0x18] sm:$0xff]  }
  0xad   : > { %v736_v59 = vmax.f32 %v704_v53, 0.0  ;;  %v721_v63 = vmax.f32 %v689_v57, 0.0  ;;  %v514_v0 = vpop.f32.mrf.mxu2  ;;  %v477_v8 = vpop.f32.mrf.mxu0  ;;  %v1392_v53 = vld [vmem:[%s1248_s30 + $0x38] sm:$0xff]  }
  0xae   : > { %v534_v1 = vpop.f32.mrf.mxu3  ;;  %v760_v4 = vpack.c.bf16 %v728_v58, %v728_v58  ;;  %v600_v6 = vmul.f32 %v1250_v18, %v514_v0  ;;  %v497_v9 = vpop.f32.mrf.mxu1  ;;  %v745_v10 = vpack.c.bf16 %v713_v62, %v713_v62  ;;  %v585_v12 = vmul.f32 %v1250_v18, %v477_v8 }
  0xaf   : > { %v768_v5 = vpack.c.bf16 %v736_v59, %v736_v59  ;;  %v608_v7 = vmul.f32 %v1250_v18, %v534_v1  ;;  %v753_v11 = vpack.c.bf16 %v721_v63, %v721_v63  ;;  %v593_v13 = vmul.f32 %v1250_v18, %v497_v9 }
  0xb0   : > { %793 = vst.msk [vmem:[%s1272_s7 + $0x48] sm:$0xf] %vm774_vm1, %v760_v4  ;;  %v633_v14 = vadd.f32 %v1254_v21, %v600_v6  ;;  %v618_v16 = vadd.f32 %v1254_v21, %v585_v12  ;;  %v1086_v58 = vunpack.c.h.bf16 %v1361_v19  ;;  %v1102_v59 = vunpack.c.h.bf16 %v1364_v20 }
  0xb1   : > { %v641_v15 = vadd.f32 %v1254_v21, %v608_v7  ;;  %801 = vst.msk [vmem:[%s1272_s7 + $0x68] sm:$0xf] %vm774_vm1, %v768_v5  ;;  %v626_v17 = vadd.f32 %v1254_v21, %v593_v13  ;;  %v1057_v0 = vunpack.c.l.bf16 %v1389_v52  ;;  %v1073_v1 = vunpack.c.l.bf16 %v1392_v53 }
  0xb2   : > { %778 = vst.msk [vmem:[%s1272_s7 + $0xc] sm:$0xf] %vm774_vm1, %v745_v10  ;;  %v697_v22 = vadd.f32 %v1082_v60, %v633_v14  ;;  %v682_v24 = vadd.f32 %v1053_v2, %v618_v16  ;;  %v1117_v16 = vld [vmem:[%s1248_s30 + $0x58] sm:$0xff]  }
  0xb3   : > { %v705_v23 = vadd.f32 %v1098_v61, %v641_v15  ;;  %786 = vst.msk [vmem:[%s1272_s7 + $0x2c] sm:$0xf] %vm774_vm1, %v753_v11  ;;  %v690_v25 = vadd.f32 %v1069_v3, %v626_v17  ;;  %v1121_v17 = vld [vmem:[%s1248_s30 + $0x78] sm:$0xff]  }
  0xb4   : > { %v729_v26 = vmax.f32 %v697_v22, 0.0  ;;  %v714_v30 = vmax.f32 %v682_v24, 0.0 }
  0xb5   : > { %v737_v27 = vmax.f32 %v705_v23, 0.0  ;;  %v722_v31 = vmax.f32 %v690_v25, 0.0  ;;  %v517_v32 = vpop.f32.mrf.mxu2  ;;  %v479_v40 = vpop.f32.mrf.mxu0 }
  0xb6   : > { %v537_v33 = vpop.f32.mrf.mxu3  ;;  %v761_v36 = vpack.c.bf16 %v729_v26, %v729_v26  ;;  %v601_v38 = vmul.f32 %v1250_v18, %v517_v32  ;;  %v499_v41 = vpop.f32.mrf.mxu1  ;;  %v746_v42 = vpack.c.bf16 %v714_v30, %v714_v30  ;;  %v586_v44 = vmul.f32 %v1250_v18, %v479_v40 }
  0xb7   : > { %v769_v37 = vpack.c.bf16 %v737_v27, %v737_v27  ;;  %v609_v39 = vmul.f32 %v1250_v18, %v537_v33  ;;  %v754_v43 = vpack.c.bf16 %v722_v31, %v722_v31  ;;  %v594_v45 = vmul.f32 %v1250_v18, %v499_v41 }
  0xb8   : > { %794 = vst.msk [vmem:[%s1272_s7 + $0x4c] sm:$0xf] %vm774_vm1, %v761_v36  ;;  %v634_v46 = vadd.f32 %v1254_v21, %v601_v38  ;;  %v619_v48 = vadd.f32 %v1254_v21, %v586_v44  ;;  %v1089_v26 = vunpack.c.l.bf16 %v1117_v16  ;;  %v1105_v27 = vunpack.c.l.bf16 %v1121_v17 }
  0xb9   : > { %v642_v47 = vadd.f32 %v1254_v21, %v609_v39  ;;  %802 = vst.msk [vmem:[%s1272_s7 + $0x6c] sm:$0xf] %vm774_vm1, %v769_v37  ;;  %v627_v49 = vadd.f32 %v1254_v21, %v594_v45  ;;  %v1058_v32 = vunpack.c.h.bf16 %v1389_v52  ;;  %v1074_v33 = vunpack.c.h.bf16 %v1392_v53 }
  0xba   : > { %779 = vst.msk [vmem:[%s1272_s7 + $0x10] sm:$0xf] %vm774_vm1, %v746_v42  ;;  %v698_v50 = vadd.f32 %v1085_v28, %v634_v46  ;;  %v683_v54 = vadd.f32 %v1054_v34, %v619_v48 }
  0xbb   : > { %v706_v51 = vadd.f32 %v1101_v29, %v642_v47  ;;  %787 = vst.msk [vmem:[%s1272_s7 + $0x30] sm:$0xf] %vm774_vm1, %v754_v43  ;;  %v691_v55 = vadd.f32 %v1070_v35, %v627_v49 }
  0xbc   : > { %v730_v56 = vmax.f32 %v698_v50, 0.0  ;;  %v715_v60 = vmax.f32 %v683_v54, 0.0 }
  0xbd   : > { %v738_v57 = vmax.f32 %v706_v51, 0.0  ;;  %v723_v61 = vmax.f32 %v691_v55, 0.0  ;;  %v519_v62 = vpop.f32.mrf.mxu2  ;;  %v482_v6 = vpop.f32.mrf.mxu0 }
  0xbe   : > { %v539_v63 = vpop.f32.mrf.mxu3  ;;  %v762_v2 = vpack.c.bf16 %v730_v56, %v730_v56  ;;  %v602_v4 = vmul.f32 %v1250_v18, %v519_v62  ;;  %v502_v7 = vpop.f32.mrf.mxu1  ;;  %v747_v8 = vpack.c.bf16 %v715_v60, %v715_v60  ;;  %v587_v10 = vmul.f32 %v1250_v18, %v482_v6 }
  0xbf   : > { %v770_v3 = vpack.c.bf16 %v738_v57, %v738_v57  ;;  %v610_v5 = vmul.f32 %v1250_v18, %v539_v63  ;;  %v755_v9 = vpack.c.bf16 %v723_v61, %v723_v61  ;;  %v595_v11 = vmul.f32 %v1250_v18, %v502_v7 }
  0xc0   : > { %795 = vst.msk [vmem:[%s1272_s7 + $0x50] sm:$0xf] %vm774_vm1, %v762_v2  ;;  %v635_v12 = vadd.f32 %v1254_v21, %v602_v4  ;;  %v620_v14 = vadd.f32 %v1254_v21, %v587_v10  ;;  %v1090_v57 = vunpack.c.h.bf16 %v1117_v16 }
  0xc1   : > { %v643_v13 = vadd.f32 %v1254_v21, %v610_v5  ;;  %803 = vst.msk [vmem:[%s1272_s7 + $0x70] sm:$0xf] %vm774_vm1, %v770_v3  ;;  %v628_v15 = vadd.f32 %v1254_v21, %v595_v11 }
  0xc2   : > { %780 = vst.msk [vmem:[%s1272_s7 + $0x14] sm:$0xf] %vm774_vm1, %v747_v8  ;;  %v699_v19 = vadd.f32 %v1086_v58, %v635_v12  ;;  %v684_v22 = vadd.f32 %v1057_v0, %v620_v14 }
  0xc3   : > { %v707_v20 = vadd.f32 %v1102_v59, %v643_v13  ;;  %788 = vst.msk [vmem:[%s1272_s7 + $0x34] sm:$0xf] %vm774_vm1, %v755_v9  ;;  %v692_v23 = vadd.f32 %v1073_v1, %v628_v15  ;;  %v1106_v59 = vunpack.c.h.bf16 %v1121_v17 }
  0xc4   : > { %v731_v24 = vmax.f32 %v699_v19, 0.0  ;;  %v716_v28 = vmax.f32 %v684_v22, 0.0 }
  0xc5   : > { %v739_v25 = vmax.f32 %v707_v20, 0.0  ;;  %v724_v29 = vmax.f32 %v692_v23, 0.0  ;;  %v522_v30 = vpop.f32.mrf.mxu2  ;;  %v484_v38 = vpop.f32.mrf.mxu0 }
  0xc6   : > { %v542_v31 = vpop.f32.mrf.mxu3  ;;  %v763_v34 = vpack.c.bf16 %v731_v24, %v731_v24  ;;  %v603_v36 = vmul.f32 %v1250_v18, %v522_v30  ;;  %v504_v39 = vpop.f32.mrf.mxu1  ;;  %v748_v40 = vpack.c.bf16 %v716_v28, %v716_v28  ;;  %v588_v42 = vmul.f32 %v1250_v18, %v484_v38 }
  0xc7   : > { %v771_v35 = vpack.c.bf16 %v739_v25, %v739_v25  ;;  %v611_v37 = vmul.f32 %v1250_v18, %v542_v31  ;;  %v756_v41 = vpack.c.bf16 %v724_v29, %v724_v29  ;;  %v596_v43 = vmul.f32 %v1250_v18, %v504_v39 }
  0xc8   : > { %796 = vst.msk [vmem:[%s1272_s7 + $0x54] sm:$0xf] %vm774_vm1, %v763_v34  ;;  %v636_v44 = vadd.f32 %v1254_v21, %v603_v36  ;;  %v621_v46 = vadd.f32 %v1254_v21, %v588_v42 }
  0xc9   : > { %v644_v45 = vadd.f32 %v1254_v21, %v611_v37  ;;  %804 = vst.msk [vmem:[%s1272_s7 + $0x74] sm:$0xf] %vm774_vm1, %v771_v35  ;;  %v629_v47 = vadd.f32 %v1254_v21, %v596_v43 }
  0xca   : > { %781 = vst.msk [vmem:[%s1272_s7 + $0x18] sm:$0xf] %vm774_vm1, %v748_v40  ;;  %v700_v48 = vadd.f32 %v1089_v26, %v636_v44  ;;  %v685_v50 = vadd.f32 %v1058_v32, %v621_v46 }
  0xcb   : > { %v708_v49 = vadd.f32 %v1105_v27, %v644_v45  ;;  %789 = vst.msk [vmem:[%s1272_s7 + $0x38] sm:$0xf] %vm774_vm1, %v756_v41  ;;  %v693_v51 = vadd.f32 %v1074_v33, %v629_v47 }
  0xcc   : > { %v732_v52 = vmax.f32 %v700_v48, 0.0  ;;  %v717_v54 = vmax.f32 %v685_v50, 0.0 }
  0xcd   : > { %v740_v53 = vmax.f32 %v708_v49, 0.0  ;;  %v725_v55 = vmax.f32 %v693_v51, 0.0  ;;  %v524_v56 = vpop.f32.mrf.mxu2 }
  0xce   : > { %v544_v58 = vpop.f32.mrf.mxu3  ;;  %v764_v60 = vpack.c.bf16 %v732_v52, %v732_v52  ;;  %v604_v62 = vmul.f32 %v1250_v18, %v524_v56  ;;  %v749_v0 = vpack.c.bf16 %v717_v54, %v717_v54 }
  0xcf   : > { %v772_v61 = vpack.c.bf16 %v740_v53, %v740_v53  ;;  %v612_v63 = vmul.f32 %v1250_v18, %v544_v58  ;;  %v757_v1 = vpack.c.bf16 %v725_v55, %v725_v55 }
  0xd0   : > { %797 = vst.msk [vmem:[%s1272_s7 + $0x58] sm:$0xf] %vm774_vm1, %v764_v60  ;;  %v637_v2 = vadd.f32 %v1254_v21, %v604_v62 }
  0xd1   : > { %v645_v3 = vadd.f32 %v1254_v21, %v612_v63  ;;  %805 = vst.msk [vmem:[%s1272_s7 + $0x78] sm:$0xf] %vm774_vm1, %v772_v61 }
  0xd2   : > { %782 = vst.msk [vmem:[%s1272_s7 + $0x1c] sm:$0xf] %vm774_vm1, %v749_v0  ;;  %v701_v4 = vadd.f32 %v1090_v57, %v637_v2 }
  0xd3   : > { %v709_v5 = vadd.f32 %v1106_v59, %v645_v3  ;;  %790 = vst.msk [vmem:[%s1272_s7 + $0x3c] sm:$0xf] %vm774_vm1, %v757_v1 }
  0xd4   : > { %v733_v6 = vmax.f32 %v701_v4, 0.0 }
  0xd5   : > { %v741_v7 = vmax.f32 %v709_v5, 0.0 }
  0xd6   : > { %v765_v18 = vpack.c.bf16 %v733_v6, %v733_v6 }
  0xd7   : > { %v773_v8 = vpack.c.bf16 %v741_v7, %v741_v7 }
  0xd8   : > { %798 = vst.msk [vmem:[%s1272_s7 + $0x5c] sm:$0xf] %vm774_vm1, %v765_v18 }
  0xd9   : > { %806 = vst.msk [vmem:[%s1272_s7 + $0x7c] sm:$0xf] %vm774_vm1, %v773_v8 }
  0xda PF: > { %s14_s17 = sadd.s32 1, %s1171_s17   ;;  %s1466_s15 = smov %s1167_s16 }
  0xdb   : > { %p11_p5 = scmp.ge.s32.totalorder %s14_s17, 4   ;;  %s1467_s16 = smov %s1469_s18 }
  0xdd   :  { %13 = sbr.rel (!%p11_p5) target bundleno = 2 (0x2), region = 75 }

// kernel: _lambda_.23
= control target key start
LH: loop header
LB: loop body
LE: loop exit
PB: predicated region body
PF: predicated region fallthrough
CT: control target
= control target key end

     0   :  { %vm311_vm0 = vcmask 261120   ;;  %vm550_vm1 = vcmask 257024   ;;  %s1146_s1 = inlined_call_operand.vmem [shape: bf16[288,32], index: 1, kind: input, shape index: {}]   ;;  %s1147_s0 = inlined_call_operand.vmem [shape: bf16[128,288], index: 0, kind: input, shape index: {}]   ;;  %s1148_s2 = inlined_call_operand.vmem [shape: f32[2,32], index: 2, kind: input, shape index: {}]   ;;  %s1149_s3 = inlined_call_operand.vmem [shape: bf16[128,32], index: 3, kind: output, shape index: {}]  }
   0x1   :  { %v778_v0 = vld [vmem:[%s1146_s1 + $0x38] sm:$0xff]  ;;  %v788_v2 = vld [vmem:[%s1146_s1 + $0x88] sm:$0xff]  ;;  %v777_v3 = vld [vmem:[%s1146_s1 + $0x30] sm:$0xff] }
   0x2   :  { %v786_v1 = vld [vmem:[%s1146_s1 + $0x78] sm:$0xff]  ;;  %336 = vmatpush.bf16.msra.mxu0 %v778_v0  ;;  %789 = vmatpush.bf16.msra.mxu3 %v778_v0  ;;  %v785_v4 = vld [vmem:[%s1146_s1 + $0x70] sm:$0xff]  ;;  %v787_v5 = vld [vmem:[%s1146_s1 + $0x80] sm:$0xff] }
   0x3   :  { %385 = vmatpush.bf16.msra.mxu1 %v786_v1  ;;  %440 = vmatpush.bf16.msra.mxu2 %v788_v2  ;;  %v581_v6 = vld [vmem:[%s1147_s0 + $0x8] sm:$0xf]  ;;  %v749_v7 = vld [vmem:[%s1147_s0 + $0x10] sm:$0xf0]  ;;  %v775_v11 = vld [vmem:[%s1146_s1 + $0x20] sm:$0xff] }
   0x4   :  { %v582_v8 = vor.u32 %v749_v7, %v581_v6  ;;  %v776_v9 = vld [vmem:[%s1146_s1 + $0x28] sm:$0xff]  ;;  %v783_v12 = vld [vmem:[%s1146_s1 + $0x60] sm:$0xff]  ;;  %v774_v13 = vld [vmem:[%s1146_s1 + $0x18] sm:$0xff] }
   0x5   :  { %v784_v10 = vld [vmem:[%s1146_s1 + $0x68] sm:$0xff]  ;;  %v782_v14 = vld [vmem:[%s1146_s1 + $0x58] sm:$0xff]  ;;  %v773_v15 = vld [vmem:[%s1146_s1 + $0x10] sm:$0xff] }
   0x6   :  { %337 = vmatpush.bf16.msra.mxu0 %v777_v3  ;;  %790 = vmatpush.bf16.msra.mxu3 %v777_v3  ;;  %v781_v16 = vld [vmem:[%s1146_s1 + $0x50] sm:$0xff]  ;;  %v593_v17 = vld [vmem:[%s1147_s0 + $0x20] sm:$0xf]  ;;  %v752_v18 = vld [vmem:[%s1147_s0 + $0x28] sm:$0xf0] }
   0x7   :  { %386 = vmatpush.bf16.msra.mxu1 %v785_v4  ;;  %441 = vmatpush.bf16.msra.mxu2 %v787_v5  ;;  %v594_v19 = vor.u32 %v752_v18, %v593_v17  ;;  %v772_v20 = vld [vmem:[%s1146_s1 + $0x8] sm:$0xff]  ;;  %v771_v22 = vld [vmem:[%s1146_s1] sm:$0xff]  ;;  %v645_v26 = vld [vmem:[%s1147_s0 + $0x90] sm:$0xf] }
   0x8   :  { %v780_v21 = vld [vmem:[%s1146_s1 + $0x48] sm:$0xff]  ;;  %v779_v23 = vld [vmem:[%s1146_s1 + $0x40] sm:$0xff]  ;;  %v766_v27 = vld [vmem:[%s1147_s0 + $0x98] sm:$0xf0] }
   0x9   :  { %v573_v24 = vld [vmem:[%s1147_s0] sm:$0xf]  ;;  %v748_v25 = vld [vmem:[%s1147_s0 + $0x8] sm:$0xf0]  ;;  %v747_v28 = vld [vmem:[%s1147_s0 + $0x4] sm:$0xf]  ;;  %v646_v31 = vor.u32 %v766_v27, %v645_v26 }
   0xa   :  { %739 = vmatmul.msk.bf16.vlgmr.msra.gmra.mxu2 %vm311_vm0, %v582_v8  ;;  %338 = vmatpush.bf16.msra.mxu0 %v776_v9  ;;  %v575_v29 = vld [vmem:[%s1147_s0 + $0xc] sm:$0xf0]  ;;  %v574_v30 = vor.u32 %v748_v25, %v573_v24  ;;  %v605_v33 = vld [vmem:[%s1147_s0 + $0x38] sm:$0xf]  ;;  %v755_v34 = vld [vmem:[%s1147_s0 + $0x40] sm:$0xf0] }
   0xb   :  { %791 = vmatpush.bf16.msra.mxu3 %v776_v9  ;;  %387 = vmatpush.bf16.msra.mxu1 %v784_v10  ;;  %v578_v32 = vor.u32 %v747_v28, %v575_v29  ;;  %v606_v35 = vor.u32 %v755_v34, %v605_v33  ;;  %v585_v36 = vld [vmem:[%s1147_s0 + $0x18] sm:$0xf]  ;;  %v751_v37 = vld [vmem:[%s1147_s0 + $0x20] sm:$0xf0]  ;;  %v657_v38 = vld [vmem:[%s1147_s0 + $0xa8] sm:$0xf] }
   0xc   :  { %v769_v39 = vld [vmem:[%s1147_s0 + $0xb0] sm:$0xf0]  ;;  %v750_v40 = vld [vmem:[%s1147_s0 + $0x1c] sm:$0xf]  ;;  %v587_v41 = vld [vmem:[%s1147_s0 + $0x24] sm:$0xf0]  ;;  %v586_v42 = vor.u32 %v751_v37, %v585_v36 }
   0xd   :  { %v658_v43 = vor.u32 %v769_v39, %v657_v38  ;;  %v590_v44 = vor.u32 %v750_v40, %v587_v41  ;;  %v617_v45 = vld [vmem:[%s1147_s0 + $0x50] sm:$0xf]  ;;  %v758_v46 = vld [vmem:[%s1147_s0 + $0x58] sm:$0xf0]  ;;  %v753_v50 = vld [vmem:[%s1147_s0 + $0x34] sm:$0xf] }
   0xe   :  { %339 = vmatpush.bf16.msra.mxu0 %v775_v11  ;;  %v618_v47 = vor.u32 %v758_v46, %v617_v45  ;;  %v597_v48 = vld [vmem:[%s1147_s0 + $0x30] sm:$0xf]  ;;  %v754_v49 = vld [vmem:[%s1147_s0 + $0x38] sm:$0xf0]  ;;  %v599_v51 = vld [vmem:[%s1147_s0 + $0x3c] sm:$0xf0] }
   0xf   :  { %792 = vmatpush.bf16.msra.mxu3 %v775_v11  ;;  %388 = vmatpush.bf16.msra.mxu1 %v783_v12  ;;  %v765_v52 = vld [vmem:[%s1147_s0 + $0x94] sm:$0xf]  ;;  %v647_v53 = vld [vmem:[%s1147_s0 + $0x9c] sm:$0xf0]  ;;  %v598_v54 = vor.u32 %v754_v49, %v597_v48  ;;  %v602_v55 = vor.u32 %v753_v50, %v599_v51  ;;  %v629_v57 = vld [vmem:[%s1147_s0 + $0x68] sm:$0xf] }
  0x10   :  { %v650_v56 = vor.u32 %v765_v52, %v647_v53  ;;  %v761_v58 = vld [vmem:[%s1147_s0 + $0x70] sm:$0xf0]  ;;  %v609_v60 = vld [vmem:[%s1147_s0 + $0x48] sm:$0xf]  ;;  %v756_v62 = vld [vmem:[%s1147_s0 + $0x4c] sm:$0xf] }
  0x11   :  { %v630_v59 = vor.u32 %v761_v58, %v629_v57  ;;  %v757_v61 = vld [vmem:[%s1147_s0 + $0x50] sm:$0xf0]  ;;  %v611_v63 = vld [vmem:[%s1147_s0 + $0x54] sm:$0xf0]  ;;  %v768_v0 = vld [vmem:[%s1147_s0 + $0xac] sm:$0xf] }
  0x12   :  { %340 = vmatpush.bf16.msra.mxu0 %v774_v13  ;;  %v610_v2 = vor.u32 %v757_v61, %v609_v60  ;;  %v614_v3 = vor.u32 %v756_v62, %v611_v63  ;;  %v641_v5 = vld [vmem:[%s1147_s0 + $0x80] sm:$0xf]  ;;  %v764_v6 = vld [vmem:[%s1147_s0 + $0x88] sm:$0xf0]  ;;  %v623_v11 = vld [vmem:[%s1147_s0 + $0x6c] sm:$0xf0] }
  0x13   :  { %793 = vmatpush.bf16.msra.mxu3 %v774_v13  ;;  %389 = vmatpush.bf16.msra.mxu1 %v782_v14  ;;  %v642_v7 = vor.u32 %v764_v6, %v641_v5  ;;  %v621_v8 = vld [vmem:[%s1147_s0 + $0x60] sm:$0xf]  ;;  %v760_v9 = vld [vmem:[%s1147_s0 + $0x68] sm:$0xf0]  ;;  %v633_v17 = vld [vmem:[%s1147_s0 + $0x78] sm:$0xf] }
  0x14   :  { %v763_v18 = vld [vmem:[%s1147_s0 + $0x80] sm:$0xf0]  ;;  %v770_v24 = vld [vmem:[%s1147_s0 + $0xb8] sm:$0xf0]  ;;  %v483_v29 = vld [vmem:[%s1148_s2] sm:$0x3] }
  0x15   :  { %v1034_v33 = vperm.slane %v483_v29, 0 }
  0x16   :  { %341 = vmatpush.bf16.msra.mxu0 %v773_v15 }
  0x17   :  { %794 = vmatpush.bf16.msra.mxu3 %v773_v15  ;;  %390 = vmatpush.bf16.msra.mxu1 %v781_v16  ;;  %v767_v15 = vld [vmem:[%s1147_s0 + $0xa0] sm:$0xf0] }
  0x1a   :  { %740 = vmatmul.msk.bf16.gmra.mxu2 %vm311_vm0, %v594_v19  ;;  %342 = vmatpush.bf16.msra.mxu0 %v772_v20  ;;  %v762_v19 = vld [vmem:[%s1147_s0 + $0x7c] sm:$0xf] }
  0x1b   :  { %795 = vmatpush.bf16.msra.mxu3 %v772_v20  ;;  %391 = vmatpush.bf16.msra.mxu1 %v780_v21  ;;  %v635_v20 = vld [vmem:[%s1147_s0 + $0x84] sm:$0xf0] }
  0x1e   :  { %343 = vmatpush.bf16.msra.mxu0 %v771_v22 }
  0x1f   :  { %796 = vmatpush.bf16.msra.mxu3 %v771_v22  ;;  %392 = vmatpush.bf16.msra.mxu1 %v779_v23  ;;  %v638_v22 = vor.u32 %v762_v19, %v635_v20 }
  0x21   :  { %344 = vmatmul.bf16.vlgmr.msra.gmra.mxu0 %v574_v30 }
  0x22   :  { %374 = vmatmul.bf16.vlgmr.msra.gmra.mxu3 %v646_v31  ;;  %393 = vmatmul.bf16.vlgmr.msra.gmra.mxu1 %v578_v32 }
  0x23   :  { %797 = vmatpush.bf16.msrb.mxu3 %v786_v1  ;;  %v659_v1 = vld [vmem:[%s1147_s0 + $0xb4] sm:$0xf0] }
  0x27   :  { %798 = vmatpush.bf16.msrb.mxu3 %v785_v4  ;;  %v662_v4 = vor.u32 %v768_v0, %v659_v1 }
  0x2a   :  { %741 = vmatmul.msk.bf16.gmra.mxu2 %vm311_vm0, %v606_v35  ;;  %v1036_v35 = vperm.slane %v483_v29, 1 }
  0x2b   :  { %799 = vmatpush.bf16.msrb.mxu3 %v784_v10  ;;  %v759_v10 = vld [vmem:[%s1147_s0 + $0x64] sm:$0xf] }
  0x2c   :  { %v626_v13 = vor.u32 %v759_v10, %v623_v11 }
  0x2f   :  { %800 = vmatpush.bf16.msrb.mxu3 %v783_v12  ;;  %v622_v12 = vor.u32 %v760_v9, %v621_v8 }
  0x31   :  { %349 = vmatmul.bf16.gmra.mxu0 %v586_v42 }
  0x32   :  { %379 = vmatmul.bf16.gmra.mxu3 %v658_v43  ;;  %398 = vmatmul.bf16.gmra.mxu1 %v590_v44 }
  0x33   :  { %801 = vmatpush.bf16.msrb.mxu3 %v782_v14  ;;  %v653_v14 = vld [vmem:[%s1147_s0 + $0x98] sm:$0xf] }
  0x37   :  { %802 = vmatpush.bf16.msrb.mxu3 %v781_v16  ;;  %v654_v16 = vor.u32 %v767_v15, %v653_v14 }
  0x3a   :  { %742 = vmatmul.msk.bf16.gmra.mxu2 %vm311_vm0, %v618_v47 }
  0x3b   :  { %803 = vmatpush.bf16.msrb.mxu3 %v780_v21  ;;  %v634_v21 = vor.u32 %v763_v18, %v633_v17 }
  0x3f   :  { %804 = vmatpush.bf16.msrb.mxu3 %v779_v23  ;;  %v665_v23 = vld [vmem:[%s1147_s0 + $0xb0] sm:$0xf] }
  0x40   :  { %v666_v25 = vor.u32 %v770_v24, %v665_v23 }
  0x41   :  { %354 = vmatmul.bf16.gmra.mxu0 %v598_v54 }
  0x42   :  { %403 = vmatmul.bf16.gmra.mxu1 %v602_v55  ;;  %423 = vmatmul.bf16.vlgmr.msrb.gmra.mxu3 %v650_v56 }
  0x4a   :  { %743 = vmatmul.msk.bf16.gmra.mxu2 %vm311_vm0, %v630_v59 }
  0x51   :  { %359 = vmatmul.bf16.gmra.mxu0 %v610_v2 }
  0x52   :  { %408 = vmatmul.bf16.gmra.mxu1 %v614_v3  ;;  %428 = vmatmul.bf16.gmra.mxu3 %v662_v4 }
  0x5a   :  { %744 = vmatmul.msk.bf16.gmra.mxu2 %vm311_vm0, %v642_v7 }
  0x61   :  { %364 = vmatmul.bf16.gmra.mxu0 %v622_v12 }
  0x62   :  { %413 = vmatmul.bf16.gmra.mxu1 %v626_v13 }
  0x6a   :  { %745 = vmatmul.msk.bf16.gmra.mxu2 %vm311_vm0, %v654_v16 }
  0x71   :  { %369 = vmatmul.bf16.gmra.mxu0 %v634_v21 }
  0x72   :  { %418 = vmatmul.bf16.gmra.mxu1 %v638_v22 }
  0x7a   :  { %746 = vmatmul.msk.bf16.gmra.mxu2 %vm311_vm0, %v666_v25 }
  0x8d   :  { %v443_v26 = vpop.f32.mrf.mxu2 }
  0x95   :  { %v445_v27 = vpop.f32.mrf.mxu2 }
  0x9d   :  { %v448_v28 = vpop.f32.mrf.mxu2 }
  0x9e   :  { %v345_v30 = vpop.f32.mrf.mxu0 }
  0x9f   :  { %v394_v31 = vpop.f32.mrf.mxu1 }
  0xa0   :  { %v395_v32 = vadd.f32 %v394_v31, %v345_v30 }
  0xa2   :  { %v444_v34 = vadd.f32 %v443_v26, %v395_v32 }
  0xa4   :  { %v485_v36 = vmul.f32 %v1034_v33, %v444_v34 }
  0xa5   :  { %v450_v37 = vpop.f32.mrf.mxu2  ;;  %v1052_v63 = vpop.f32.mrf.mxu3 }
  0xa6   :  { %v502_v38 = vadd.f32 %v1036_v35, %v485_v36  ;;  %v347_v39 = vpop.f32.mrf.mxu0 }
  0xa7   :  { %v396_v40 = vpop.f32.mrf.mxu1 }
  0xa8   :  { %v518_v41 = vmax.f32 %v502_v38, 0.0  ;;  %v397_v42 = vadd.f32 %v396_v40, %v347_v39 }
  0xaa   :  { %v534_v43 = vpack.c.bf16 %v518_v41, %v518_v41  ;;  %v446_v44 = vadd.f32 %v445_v27, %v397_v42 }
  0xac   :  { %551 = vst.msk [vmem:[%s1149_s3] sm:$0xf] %vm550_vm1, %v534_v43  ;;  %v486_v45 = vmul.f32 %v1034_v33, %v446_v44 }
  0xad   :  { %v453_v46 = vpop.f32.mrf.mxu2  ;;  %v1065_v10 = vpop.f32.mrf.mxu3 }
  0xae   :  { %v503_v47 = vadd.f32 %v1036_v35, %v486_v45  ;;  %v350_v48 = vpop.f32.mrf.mxu0 }
  0xaf   :  { %v399_v49 = vpop.f32.mrf.mxu1 }
  0xb0   :  { %v519_v50 = vmax.f32 %v503_v47, 0.0  ;;  %v400_v51 = vadd.f32 %v399_v49, %v350_v48 }
  0xb2   :  { %v535_v52 = vpack.c.bf16 %v519_v50, %v519_v50  ;;  %v449_v53 = vadd.f32 %v448_v28, %v400_v51 }
  0xb4   :  { %552 = vst.msk [vmem:[%s1149_s3 + $0x4] sm:$0xf] %vm550_vm1, %v535_v52  ;;  %v487_v54 = vmul.f32 %v1034_v33, %v449_v53 }
  0xb5   :  { %v455_v55 = vpop.f32.mrf.mxu2  ;;  %v1074_v23 = vpop.f32.mrf.mxu3 }
  0xb6   :  { %v504_v56 = vadd.f32 %v1036_v35, %v487_v54  ;;  %v352_v57 = vpop.f32.mrf.mxu0 }
  0xb7   :  { %v401_v58 = vpop.f32.mrf.mxu1 }
  0xb8   :  { %v520_v59 = vmax.f32 %v504_v56, 0.0  ;;  %v402_v60 = vadd.f32 %v401_v58, %v352_v57 }
  0xba   :  { %v536_v61 = vpack.c.bf16 %v520_v59, %v520_v59  ;;  %v451_v62 = vadd.f32 %v450_v37, %v402_v60 }
  0xbc   :  { %553 = vst.msk [vmem:[%s1149_s3 + $0x8] sm:$0xf] %vm550_vm1, %v536_v61  ;;  %v488_v0 = vmul.f32 %v1034_v33, %v451_v62 }
  0xbd   :  { %v458_v1 = vpop.f32.mrf.mxu2  ;;  %v1082_v38 = vpop.f32.mrf.mxu3 }
  0xbe   :  { %v505_v2 = vadd.f32 %v1036_v35, %v488_v0  ;;  %v355_v3 = vpop.f32.mrf.mxu0 }
  0xbf   :  { %v404_v4 = vpop.f32.mrf.mxu1 }
  0xc0   :  { %v521_v5 = vmax.f32 %v505_v2, 0.0  ;;  %v405_v6 = vadd.f32 %v404_v4, %v355_v3 }
  0xc2   :  { %v537_v7 = vpack.c.bf16 %v521_v5, %v521_v5  ;;  %v454_v8 = vadd.f32 %v453_v46, %v405_v6 }
  0xc4   :  { %554 = vst.msk [vmem:[%s1149_s3 + $0xc] sm:$0xf] %vm550_vm1, %v537_v7  ;;  %v489_v9 = vmul.f32 %v1034_v33, %v454_v8 }
  0xc5   :  { %v460_v11 = vpop.f32.mrf.mxu2  ;;  %v424_v50 = vpop.f32.mrf.mxu3 }
  0xc6   :  { %v506_v12 = vadd.f32 %v1036_v35, %v489_v9  ;;  %v357_v13 = vpop.f32.mrf.mxu0  ;;  %v425_v60 = vadd.f32 %v424_v50, %v1052_v63 }
  0xc7   :  { %v406_v14 = vpop.f32.mrf.mxu1 }
  0xc8   :  { %v522_v15 = vmax.f32 %v506_v12, 0.0  ;;  %v407_v16 = vadd.f32 %v406_v14, %v357_v13 }
  0xca   :  { %v538_v17 = vpack.c.bf16 %v522_v15, %v522_v15  ;;  %v456_v18 = vadd.f32 %v455_v55, %v407_v16 }
  0xcc   :  { %555 = vst.msk [vmem:[%s1149_s3 + $0x10] sm:$0xf] %vm550_vm1, %v538_v17  ;;  %v490_v19 = vmul.f32 %v1034_v33, %v456_v18 }
  0xcd   :  { %v463_v20 = vpop.f32.mrf.mxu2  ;;  %v426_v62 = vpop.f32.mrf.mxu3 }
  0xce   :  { %v507_v21 = vadd.f32 %v1036_v35, %v490_v19  ;;  %v360_v22 = vpop.f32.mrf.mxu0 }
  0xcf   :  { %v409_v24 = vpop.f32.mrf.mxu1 }
  0xd0   :  { %v523_v25 = vmax.f32 %v507_v21, 0.0  ;;  %v410_v26 = vadd.f32 %v409_v24, %v360_v22 }
  0xd2   :  { %v539_v27 = vpack.c.bf16 %v523_v25, %v523_v25  ;;  %v459_v28 = vadd.f32 %v458_v1, %v410_v26 }
  0xd4   :  { %556 = vst.msk [vmem:[%s1149_s3 + $0x14] sm:$0xf] %vm550_vm1, %v539_v27  ;;  %v491_v29 = vmul.f32 %v1034_v33, %v459_v28 }
  0xd5   :  { %v465_v30 = vpop.f32.mrf.mxu2  ;;  %v429_v19 = vpop.f32.mrf.mxu3 }
  0xd6   :  { %v508_v31 = vadd.f32 %v1036_v35, %v491_v29  ;;  %v362_v32 = vpop.f32.mrf.mxu0  ;;  %v430_v27 = vadd.f32 %v429_v19, %v1074_v23 }
  0xd7   :  { %v411_v34 = vpop.f32.mrf.mxu1 }
  0xd8   :  { %v524_v36 = vmax.f32 %v508_v31, 0.0  ;;  %v412_v37 = vadd.f32 %v411_v34, %v362_v32 }
  0xda   :  { %v540_v39 = vpack.c.bf16 %v524_v36, %v524_v36  ;;  %v461_v40 = vadd.f32 %v460_v11, %v412_v37  ;;  %v427_v11 = vadd.f32 %v426_v62, %v1065_v10 }
  0xdc   :  { %557 = vst.msk [vmem:[%s1149_s3 + $0x18] sm:$0xf] %vm550_vm1, %v540_v39  ;;  %v492_v41 = vmul.f32 %v1034_v33, %v461_v40 }
  0xdd   :  { %v468_v42 = vpop.f32.mrf.mxu2  ;;  %v431_v37 = vpop.f32.mrf.mxu3 }
  0xde   :  { %v509_v43 = vadd.f32 %v1036_v35, %v492_v41  ;;  %v365_v44 = vpop.f32.mrf.mxu0  ;;  %v432_v41 = vadd.f32 %v431_v37, %v1082_v38 }
  0xdf   :  { %v414_v45 = vpop.f32.mrf.mxu1 }
  0xe0   :  { %v525_v46 = vmax.f32 %v509_v43, 0.0  ;;  %v415_v47 = vadd.f32 %v414_v45, %v365_v44 }
  0xe2   :  { %v541_v48 = vpack.c.bf16 %v525_v46, %v525_v46  ;;  %v464_v49 = vadd.f32 %v463_v20, %v415_v47 }
  0xe4   :  { %558 = vst.msk [vmem:[%s1149_s3 + $0x1c] sm:$0xf] %vm550_vm1, %v541_v48  ;;  %v493_v51 = vmul.f32 %v1034_v33, %v464_v49 }
  0xe5   :  { %v470_v52 = vpop.f32.mrf.mxu2 }
  0xe6   :  { %v510_v53 = vadd.f32 %v1036_v35, %v493_v51  ;;  %v367_v54 = vpop.f32.mrf.mxu0 }
  0xe7   :  { %v416_v55 = vpop.f32.mrf.mxu1 }
  0xe8   :  { %v526_v56 = vmax.f32 %v510_v53, 0.0  ;;  %v417_v57 = vadd.f32 %v416_v55, %v367_v54 }
  0xea   :  { %v542_v58 = vpack.c.bf16 %v526_v56, %v526_v56  ;;  %v466_v59 = vadd.f32 %v465_v30, %v417_v57 }
  0xec   :  { %559 = vst.msk [vmem:[%s1149_s3 + $0x20] sm:$0xf] %vm550_vm1, %v542_v58  ;;  %v494_v61 = vmul.f32 %v1034_v33, %v466_v59 }
  0xed   :  { %v473_v0 = vpop.f32.mrf.mxu2 }
  0xee   :  { %v511_v1 = vadd.f32 %v1036_v35, %v494_v61  ;;  %v474_v2 = vadd.f32 %v473_v0, %v425_v60  ;;  %v370_v3 = vpop.f32.mrf.mxu0 }
  0xef   :  { %v419_v4 = vpop.f32.mrf.mxu1 }
  0xf0   :  { %v527_v5 = vmax.f32 %v511_v1, 0.0  ;;  %v497_v6 = vmul.f32 %v1034_v33, %v474_v2  ;;  %v420_v7 = vadd.f32 %v419_v4, %v370_v3 }
  0xf2   :  { %v543_v8 = vpack.c.bf16 %v527_v5, %v527_v5  ;;  %v514_v63 = vadd.f32 %v1036_v35, %v497_v6  ;;  %v469_v9 = vadd.f32 %v468_v42, %v420_v7 }
  0xf4   :  { %560 = vst.msk [vmem:[%s1149_s3 + $0x24] sm:$0xf] %vm550_vm1, %v543_v8  ;;  %v530_v12 = vmax.f32 %v514_v63, 0.0  ;;  %v495_v13 = vmul.f32 %v1034_v33, %v469_v9 }
  0xf5   :  { %v475_v14 = vpop.f32.mrf.mxu2 }
  0xf6   :  { %v546_v15 = vpack.c.bf16 %v530_v12, %v530_v12  ;;  %v512_v16 = vadd.f32 %v1036_v35, %v495_v13  ;;  %v476_v17 = vadd.f32 %v475_v14, %v427_v11  ;;  %v372_v18 = vpop.f32.mrf.mxu0 }
  0xf7   :  { %v421_v20 = vpop.f32.mrf.mxu1 }
  0xf8   :  { %563 = vst.msk [vmem:[%s1149_s3 + $0x30] sm:$0xf] %vm550_vm1, %v546_v15  ;;  %v528_v10 = vmax.f32 %v512_v16, 0.0  ;;  %v498_v21 = vmul.f32 %v1034_v33, %v476_v17  ;;  %v422_v22 = vadd.f32 %v421_v20, %v372_v18 }
  0xfa   :  { %v544_v24 = vpack.c.bf16 %v528_v10, %v528_v10  ;;  %v515_v25 = vadd.f32 %v1036_v35, %v498_v21  ;;  %v471_v26 = vadd.f32 %v470_v52, %v422_v22 }
  0xfc   :  { %561 = vst.msk [vmem:[%s1149_s3 + $0x28] sm:$0xf] %vm550_vm1, %v544_v24  ;;  %v531_v28 = vmax.f32 %v515_v25, 0.0  ;;  %v496_v29 = vmul.f32 %v1034_v33, %v471_v26 }
  0xfd   :  { %v478_v30 = vpop.f32.mrf.mxu2 }
  0xfe   :  { %v547_v31 = vpack.c.bf16 %v531_v28, %v531_v28  ;;  %v513_v32 = vadd.f32 %v1036_v35, %v496_v29  ;;  %v479_v34 = vadd.f32 %v478_v30, %v430_v27 }
 0x100   :  { %564 = vst.msk [vmem:[%s1149_s3 + $0x34] sm:$0xf] %vm550_vm1, %v547_v31  ;;  %v529_v36 = vmax.f32 %v513_v32, 0.0  ;;  %v499_v23 = vmul.f32 %v1034_v33, %v479_v34 }
 0x102   :  { %v545_v39 = vpack.c.bf16 %v529_v36, %v529_v36  ;;  %v516_v40 = vadd.f32 %v1036_v35, %v499_v23 }
 0x104   :  { %562 = vst.msk [vmem:[%s1149_s3 + $0x2c] sm:$0xf] %vm550_vm1, %v545_v39  ;;  %v532_v42 = vmax.f32 %v516_v40, 0.0 }
 0x105   :  { %v480_v43 = vpop.f32.mrf.mxu2 }
 0x106   :  { %v548_v44 = vpack.c.bf16 %v532_v42, %v532_v42  ;;  %v481_v45 = vadd.f32 %v480_v43, %v432_v41 }
 0x108   :  { %565 = vst.msk [vmem:[%s1149_s3 + $0x38] sm:$0xf] %vm550_vm1, %v548_v44  ;;  %v500_v46 = vmul.f32 %v1034_v33, %v481_v45 }
 0x10a   :  { %v517_v47 = vadd.f32 %v1036_v35, %v500_v46 }
 0x10c   :  { %v533_v48 = vmax.f32 %v517_v47, 0.0 }
 0x10e   :  { %v549_v38 = vpack.c.bf16 %v533_v48, %v533_v48 }
 0x110   :  { %566 = vst.msk [vmem:[%s1149_s3 + $0x3c] sm:$0xf] %vm550_vm1, %v549_v38 }

// kernel: _lambda_.24
= control target key start
LH: loop header
LB: loop body
LE: loop exit
PB: predicated region body
PF: predicated region fallthrough
CT: control target
= control target key end

     0   :  { %vm90_vm0 = vcmask 261120   ;;  %s599_s1 = inlined_call_operand.vmem [shape: bf16[32,128], index: 1, kind: input, shape index: {}]   ;;  %s600_s0 = inlined_call_operand.vmem [shape: bf16[128,32], index: 0, kind: input, shape index: {}]   ;;  %s601_s2 = inlined_call_operand.vmem [shape: f32[2,128], index: 2, kind: input, shape index: {}]   ;;  %s602_s3 = inlined_call_operand.vmem [shape: bf16[128,128], index: 3, kind: input, shape index: {}]   ;;  %s603_s4 = inlined_call_operand.vmem [shape: bf16[128,128], index: 4, kind: output, shape index: {}]  }
   0x1   :  { %v356_v0 = vld [vmem:[%s599_s1 + $0x8] sm:$0xff]  ;;  %v355_v1 = vld [vmem:[%s599_s1] sm:$0xff]  ;;  %v349_v3 = vld [vmem:[%s600_s0 + $0x10] sm:$0xff] }
   0x2   :  { %121 = vmatpush.bf16.msra.mxu0 %v356_v0  ;;  %443 = vmatpush.bf16.msra.mxu1 %v356_v0  ;;  %v347_v2 = vld [vmem:[%s600_s0] sm:$0xff]  ;;  %v353_v5 = vld [vmem:[%s600_s0 + $0x30] sm:$0xff]  ;;  %v348_v6 = vld [vmem:[%s600_s0 + $0x8] sm:$0xff] }
   0x3   :  { %444 = vmatpush.bf16.msra.mxu2 %v356_v0  ;;  %445 = vmatpush.bf16.msra.mxu3 %v356_v0  ;;  %v351_v4 = vld [vmem:[%s600_s0 + $0x20] sm:$0xff]  ;;  %v350_v7 = vld [vmem:[%s600_s0 + $0x18] sm:$0xff]  ;;  %v352_v8 = vld [vmem:[%s600_s0 + $0x28] sm:$0xff] }
   0x4   :  { %v354_v9 = vld [vmem:[%s600_s0 + $0x38] sm:$0xff]  ;;  %v164_v10 = vld [vmem:[%s601_s2] sm:$0x3]  ;;  %v430_v18 = vld [vmem:[%s602_s3 + $0x10] sm:$0xff]  }
   0x5   :  { %v515_v11 = vperm.slane %v164_v10, 0  ;;  %v518_v15 = vperm.slane %v164_v10, 1  ;;  %v358_v17 = vld [vmem:[%s602_s3] sm:$0xff]   ;;  %v367_v21 = vunpack.c.l.bf16 %v430_v18  ;;  %v368_v29 = vunpack.c.h.bf16 %v430_v18  ;;  %v434_v36 = vld [vmem:[%s602_s3 + $0x30] sm:$0xff]  }
   0x6   :  { %122 = vmatpush.bf16.msra.mxu0 %v355_v1  ;;  %446 = vmatpush.bf16.msra.mxu1 %v355_v1  ;;  %v359_v19 = vunpack.c.l.bf16 %v358_v17  ;;  %v360_v27 = vunpack.c.h.bf16 %v358_v17  ;;  %v432_v35 = vld [vmem:[%s602_s3 + $0x20] sm:$0xff]   ;;  %v383_v43 = vunpack.c.l.bf16 %v434_v36  ;;  %v384_v53 = vunpack.c.h.bf16 %v434_v36 }
   0x7   :  { %447 = vmatpush.bf16.msra.mxu2 %v355_v1  ;;  %448 = vmatpush.bf16.msra.mxu3 %v355_v1  ;;  %v375_v41 = vunpack.c.l.bf16 %v432_v35  ;;  %v376_v51 = vunpack.c.h.bf16 %v432_v35 }
   0x9   :  { %339 = vmatmul.msk.bf16.vlgmr.msra.gmra.mxu0 %vm90_vm0, %v347_v2  ;;  %341 = vmatmul.msk.bf16.vlgmr.msra.gmra.mxu1 %vm90_vm0, %v349_v3  ;;  %v429_v3 = vld [vmem:[%s602_s3 + $0x8] sm:$0xff]  }
   0xa   :  { %343 = vmatmul.msk.bf16.vlgmr.msra.gmra.mxu2 %vm90_vm0, %v351_v4  ;;  %345 = vmatmul.msk.bf16.vlgmr.msra.gmra.mxu3 %vm90_vm0, %v353_v5  ;;  %v431_v4 = vld [vmem:[%s602_s3 + $0x18] sm:$0xff]  }
  0x19   :  { %340 = vmatmul.msk.bf16.gmra.mxu0 %vm90_vm0, %v348_v6  ;;  %342 = vmatmul.msk.bf16.gmra.mxu1 %vm90_vm0, %v350_v7 }
  0x1a   :  { %344 = vmatmul.msk.bf16.gmra.mxu2 %vm90_vm0, %v352_v8  ;;  %346 = vmatmul.msk.bf16.gmra.mxu3 %vm90_vm0, %v354_v9  ;;  %v363_v9 = vunpack.c.l.bf16 %v429_v3 }
  0x86   :  { %v124_v12 = vpop.f32.mrf.mxu0  ;;  %v134_v13 = vpop.f32.mrf.mxu1 }
  0x87   :  { %v182_v14 = vmul.f32 %v515_v11, %v124_v12  ;;  %v186_v16 = vmul.f32 %v515_v11, %v134_v13  ;;  %v371_v12 = vunpack.c.l.bf16 %v431_v4 }
  0x89   :  { %v199_v20 = vadd.f32 %v518_v15, %v182_v14  ;;  %v203_v22 = vadd.f32 %v518_v15, %v186_v16 }
  0x8b   :  { %v231_v33 = vadd.f32 %v359_v19, %v199_v20  ;;  %v235_v34 = vadd.f32 %v367_v21, %v203_v22  ;;  %v364_v21 = vunpack.c.h.bf16 %v429_v3 }
  0x8d   :  { %v144_v23 = vpop.f32.mrf.mxu2  ;;  %v154_v24 = vpop.f32.mrf.mxu3  ;;  %v247_v45 = vmax.f32 %v231_v33, 0.0  ;;  %v251_v46 = vmax.f32 %v235_v34, 0.0 }
  0x8e   :  { %v126_v25 = vpop.f32.mrf.mxu0  ;;  %v136_v26 = vpop.f32.mrf.mxu1  ;;  %v190_v31 = vmul.f32 %v515_v11, %v144_v23  ;;  %v194_v32 = vmul.f32 %v515_v11, %v154_v24  ;;  %v372_v23 = vunpack.c.h.bf16 %v431_v4 }
  0x8f   :  { %v183_v28 = vmul.f32 %v515_v11, %v126_v25  ;;  %v187_v30 = vmul.f32 %v515_v11, %v136_v26 }
  0x90   :  { %v207_v42 = vadd.f32 %v518_v15, %v190_v31  ;;  %v211_v44 = vadd.f32 %v518_v15, %v194_v32 }
  0x91   :  { %v200_v37 = vadd.f32 %v518_v15, %v183_v28  ;;  %v204_v38 = vadd.f32 %v518_v15, %v187_v30  ;;  %v435_v30 = vld [vmem:[%s602_s3 + $0x38] sm:$0xff]  }
  0x92   :  { %v239_v59 = vadd.f32 %v375_v41, %v207_v42  ;;  %v243_v60 = vadd.f32 %v383_v43, %v211_v44 }
  0x93   :  { %v232_v39 = vadd.f32 %v360_v27, %v200_v37  ;;  %v236_v40 = vadd.f32 %v368_v29, %v204_v38  ;;  %v433_v29 = vld [vmem:[%s602_s3 + $0x28] sm:$0xff]   ;;  %v387_v37 = vunpack.c.l.bf16 %v435_v30 }
  0x94   :  { %v255_v5 = vmax.f32 %v239_v59, 0.0  ;;  %v259_v6 = vmax.f32 %v243_v60, 0.0  ;;  %v379_v35 = vunpack.c.l.bf16 %v433_v29 }
  0x95   :  { %v248_v47 = vmax.f32 %v232_v39, 0.0  ;;  %v252_v48 = vmax.f32 %v236_v40, 0.0  ;;  %v146_v49 = vpop.f32.mrf.mxu2  ;;  %v156_v50 = vpop.f32.mrf.mxu3 }
  0x96   :  { %v191_v52 = vmul.f32 %v515_v11, %v146_v49  ;;  %v195_v54 = vmul.f32 %v515_v11, %v156_v50  ;;  %v129_v55 = vpop.f32.mrf.mxu0  ;;  %v139_v56 = vpop.f32.mrf.mxu1 }
  0x97   :  { %v392_v57 = vpack.c.bf16 %v248_v47, %v247_v45  ;;  %v402_v58 = vpack.c.bf16 %v252_v48, %v251_v46  ;;  %v184_v63 = vmul.f32 %v515_v11, %v129_v55  ;;  %v188_v0 = vmul.f32 %v515_v11, %v139_v56 }
  0x98   :  { %v208_v61 = vadd.f32 %v518_v15, %v191_v52  ;;  %v212_v62 = vadd.f32 %v518_v15, %v195_v54  ;;  %v380_v45 = vunpack.c.h.bf16 %v433_v29  ;;  %v388_v47 = vunpack.c.h.bf16 %v435_v30 }
  0x99   :  { %393 = vst [vmem:[%s603_s4] sm:$0xff] %v392_v57   ;;  %v201_v10 = vadd.f32 %v518_v15, %v184_v63  ;;  %v205_v13 = vadd.f32 %v518_v15, %v188_v0 }
  0x9a   :  { %437 = vst [vmem:[%s603_s4 + $0x10] sm:$0xff] %v402_v58   ;;  %v240_v1 = vadd.f32 %v376_v51, %v208_v61  ;;  %v244_v2 = vadd.f32 %v384_v53, %v212_v62 }
  0x9b   :  { %v233_v27 = vadd.f32 %v363_v9, %v201_v10  ;;  %v237_v28 = vadd.f32 %v371_v12, %v205_v13 }
  0x9c   :  { %v256_v7 = vmax.f32 %v240_v1, 0.0  ;;  %v260_v8 = vmax.f32 %v244_v2, 0.0 }
  0x9d   :  { %v149_v14 = vpop.f32.mrf.mxu2  ;;  %v159_v16 = vpop.f32.mrf.mxu3  ;;  %v249_v39 = vmax.f32 %v233_v27, 0.0  ;;  %v253_v40 = vmax.f32 %v237_v28, 0.0 }
  0x9e   :  { %v412_v17 = vpack.c.bf16 %v256_v7, %v255_v5  ;;  %v422_v18 = vpack.c.bf16 %v260_v8, %v259_v6  ;;  %v131_v19 = vpop.f32.mrf.mxu0  ;;  %v141_v20 = vpop.f32.mrf.mxu1  ;;  %v192_v25 = vmul.f32 %v515_v11, %v149_v14  ;;  %v196_v26 = vmul.f32 %v515_v11, %v159_v16 }
  0x9f   :  { %v185_v22 = vmul.f32 %v515_v11, %v131_v19  ;;  %v189_v24 = vmul.f32 %v515_v11, %v141_v20 }
  0xa0   :  { %439 = vst [vmem:[%s603_s4 + $0x20] sm:$0xff] %v412_v17   ;;  %v209_v36 = vadd.f32 %v518_v15, %v192_v25  ;;  %v213_v38 = vadd.f32 %v518_v15, %v196_v26 }
  0xa1   :  { %441 = vst [vmem:[%s603_s4 + $0x30] sm:$0xff] %v422_v18   ;;  %v202_v31 = vadd.f32 %v518_v15, %v185_v22  ;;  %v206_v32 = vadd.f32 %v518_v15, %v189_v24 }
  0xa2   :  { %v241_v51 = vadd.f32 %v379_v35, %v209_v36  ;;  %v245_v52 = vadd.f32 %v387_v37, %v213_v38 }
  0xa3   :  { %v234_v33 = vadd.f32 %v364_v21, %v202_v31  ;;  %v238_v34 = vadd.f32 %v372_v23, %v206_v32 }
  0xa4   :  { %v257_v57 = vmax.f32 %v241_v51, 0.0 }
  0xa5   :  { %v250_v41 = vmax.f32 %v234_v33, 0.0  ;;  %v254_v42 = vmax.f32 %v238_v34, 0.0  ;;  %v151_v43 = vpop.f32.mrf.mxu2  ;;  %v161_v44 = vpop.f32.mrf.mxu3 }
  0xa6   :  { %v193_v46 = vmul.f32 %v515_v11, %v151_v43  ;;  %v197_v48 = vmul.f32 %v515_v11, %v161_v44  ;;  %v261_v11 = vmax.f32 %v245_v52, 0.0 }
  0xa7   :  { %v397_v49 = vpack.c.bf16 %v250_v41, %v249_v39  ;;  %v407_v50 = vpack.c.bf16 %v254_v42, %v253_v40 }
  0xa8   :  { %v210_v53 = vadd.f32 %v518_v15, %v193_v46  ;;  %v214_v54 = vadd.f32 %v518_v15, %v197_v48 }
  0xa9   :  { %436 = vst [vmem:[%s603_s4 + $0x8] sm:$0xff] %v397_v49  }
  0xaa   :  { %438 = vst [vmem:[%s603_s4 + $0x18] sm:$0xff] %v407_v50   ;;  %v242_v55 = vadd.f32 %v380_v45, %v210_v53  ;;  %v246_v56 = vadd.f32 %v388_v47, %v214_v54 }
  0xac   :  { %v258_v58 = vmax.f32 %v242_v55, 0.0  ;;  %v262_v59 = vmax.f32 %v246_v56, 0.0 }
  0xae   :  { %v417_v60 = vpack.c.bf16 %v258_v58, %v257_v57  ;;  %v427_v61 = vpack.c.bf16 %v262_v59, %v261_v11 }
  0xb0   :  { %440 = vst [vmem:[%s603_s4 + $0x28] sm:$0xff] %v417_v60  }
  0xb1   :  { %442 = vst [vmem:[%s603_s4 + $0x38] sm:$0xff] %v427_v61  }

// kernel: _lambda_.25
= control target key start
LH: loop header
LB: loop body
LE: loop exit
PB: predicated region body
PF: predicated region fallthrough
CT: control target
= control target key end

     0   :  { %vm645_vm5 = vcmask 519168   ;;  %s1438_s1 = inlined_call_operand.vmem [shape: bf16[128,320], index: 1, kind: input, shape index: {}]   ;;  %s1439_s0 = inlined_call_operand.vmem [shape: bf16[128,128], index: 0, kind: input, shape index: {}]   ;;  %s1440_s2 = inlined_call_operand.vmem [shape: f32[3,320], index: 2, kind: input, shape index: {}]   ;;  %s1441_s3 = inlined_call_operand.vmem [shape: bf16[128,320], index: 3, kind: output, shape index: {}]  }
   0x1   :  { %v799_v0 = vld [vmem:[%s1438_s1 + $0xa8] sm:$0xf]  ;;  %v839_v1 = vld [vmem:[%s1438_s1 + $0xb0] sm:$0xf0]  ;;  %v838_v2 = vld [vmem:[%s1438_s1 + $0xac] sm:$0xf] }
   0x2   :  { %v800_v3 = vor.u32 %v839_v1, %v799_v0  ;;  %v801_v4 = vld [vmem:[%s1438_s1 + $0xb4] sm:$0xf0]  ;;  %v807_v5 = vld [vmem:[%s1438_s1 + $0xb0] sm:$0xf]  ;;  %v840_v6 = vld [vmem:[%s1438_s1 + $0xb8] sm:$0xf0] }
   0x3   :  { %v905_v7 = vor.u32 %v838_v2, %v801_v4  ;;  %v907_v8 = vor.u32 %v840_v6, %v807_v5  ;;  %v787_v9 = vld [vmem:[%s1438_s1 + $0x90] sm:$0xf]  ;;  %v836_v10 = vld [vmem:[%s1438_s1 + $0x98] sm:$0xf0]  ;;  %v835_v11 = vld [vmem:[%s1438_s1 + $0x94] sm:$0xf] }
   0x4   :  { %238 = vmatpush.bf16.msra.mxu0 %v800_v3  ;;  %841 = vmatpush.bf16.msra.mxu3 %v800_v3  ;;  %v788_v12 = vor.u32 %v836_v10, %v787_v9  ;;  %v789_v13 = vld [vmem:[%s1438_s1 + $0x9c] sm:$0xf0]  ;;  %v795_v14 = vld [vmem:[%s1438_s1 + $0x98] sm:$0xf]  ;;  %v837_v15 = vld [vmem:[%s1438_s1 + $0xa0] sm:$0xf0] }
   0x5   :  { %287 = vmatpush.bf16.msra.mxu1 %v905_v7  ;;  %336 = vmatpush.bf16.msra.mxu2 %v907_v8  ;;  %v929_v16 = vor.u32 %v835_v11, %v789_v13  ;;  %v931_v17 = vor.u32 %v837_v15, %v795_v14  ;;  %v775_v18 = vld [vmem:[%s1438_s1 + $0x78] sm:$0xf]  ;;  %v833_v19 = vld [vmem:[%s1438_s1 + $0x80] sm:$0xf0]  ;;  %v832_v20 = vld [vmem:[%s1438_s1 + $0x7c] sm:$0xf] }
   0x6   :  { %v777_v21 = vld [vmem:[%s1438_s1 + $0x84] sm:$0xf0]  ;;  %v783_v22 = vld [vmem:[%s1438_s1 + $0x80] sm:$0xf]  ;;  %v834_v23 = vld [vmem:[%s1438_s1 + $0x88] sm:$0xf0]  ;;  %v776_v24 = vor.u32 %v833_v19, %v775_v18 }
   0x7   :  { %v953_v25 = vor.u32 %v832_v20, %v777_v21  ;;  %v955_v26 = vor.u32 %v834_v23, %v783_v22  ;;  %v763_v27 = vld [vmem:[%s1438_s1 + $0x60] sm:$0xf]  ;;  %v830_v28 = vld [vmem:[%s1438_s1 + $0x68] sm:$0xf0]  ;;  %v829_v29 = vld [vmem:[%s1438_s1 + $0x64] sm:$0xf] }
   0x8   :  { %239 = vmatpush.bf16.msra.mxu0 %v788_v12  ;;  %842 = vmatpush.bf16.msra.mxu3 %v788_v12  ;;  %v765_v30 = vld [vmem:[%s1438_s1 + $0x6c] sm:$0xf0]  ;;  %v771_v31 = vld [vmem:[%s1438_s1 + $0x68] sm:$0xf]  ;;  %v831_v32 = vld [vmem:[%s1438_s1 + $0x70] sm:$0xf0]  ;;  %v764_v33 = vor.u32 %v830_v28, %v763_v27 }
   0x9   :  { %288 = vmatpush.bf16.msra.mxu1 %v929_v16  ;;  %337 = vmatpush.bf16.msra.mxu2 %v931_v17  ;;  %v977_v34 = vor.u32 %v829_v29, %v765_v30  ;;  %v979_v35 = vor.u32 %v831_v32, %v771_v31  ;;  %v751_v36 = vld [vmem:[%s1438_s1 + $0x48] sm:$0xf]  ;;  %v827_v37 = vld [vmem:[%s1438_s1 + $0x50] sm:$0xf0]  ;;  %v826_v38 = vld [vmem:[%s1438_s1 + $0x4c] sm:$0xf] }
   0xa   :  { %v753_v39 = vld [vmem:[%s1438_s1 + $0x54] sm:$0xf0]  ;;  %v759_v40 = vld [vmem:[%s1438_s1 + $0x50] sm:$0xf]  ;;  %v828_v41 = vld [vmem:[%s1438_s1 + $0x58] sm:$0xf0]  ;;  %v752_v42 = vor.u32 %v827_v37, %v751_v36 }
   0xb   :  { %v756_v43 = vor.u32 %v826_v38, %v753_v39  ;;  %v1001_v44 = vor.u32 %v828_v41, %v759_v40  ;;  %v739_v45 = vld [vmem:[%s1438_s1 + $0x30] sm:$0xf]  ;;  %v824_v46 = vld [vmem:[%s1438_s1 + $0x38] sm:$0xf0]  ;;  %v823_v47 = vld [vmem:[%s1438_s1 + $0x34] sm:$0xf] }
   0xc   :  { %240 = vmatpush.bf16.msra.mxu0 %v776_v24  ;;  %843 = vmatpush.bf16.msra.mxu3 %v776_v24  ;;  %v741_v48 = vld [vmem:[%s1438_s1 + $0x3c] sm:$0xf0]  ;;  %v747_v49 = vld [vmem:[%s1438_s1 + $0x38] sm:$0xf]  ;;  %v825_v50 = vld [vmem:[%s1438_s1 + $0x40] sm:$0xf0]  ;;  %v740_v51 = vor.u32 %v824_v46, %v739_v45 }
   0xd   :  { %289 = vmatpush.bf16.msra.mxu1 %v953_v25  ;;  %338 = vmatpush.bf16.msra.mxu2 %v955_v26  ;;  %v744_v52 = vor.u32 %v823_v47, %v741_v48  ;;  %v1022_v53 = vor.u32 %v825_v50, %v747_v49  ;;  %v727_v54 = vld [vmem:[%s1438_s1 + $0x18] sm:$0xf]  ;;  %v821_v55 = vld [vmem:[%s1438_s1 + $0x20] sm:$0xf0]  ;;  %v820_v56 = vld [vmem:[%s1438_s1 + $0x1c] sm:$0xf] }
   0xe   :  { %v729_v57 = vld [vmem:[%s1438_s1 + $0x24] sm:$0xf0]  ;;  %v735_v58 = vld [vmem:[%s1438_s1 + $0x20] sm:$0xf]  ;;  %v822_v59 = vld [vmem:[%s1438_s1 + $0x28] sm:$0xf0]  ;;  %v728_v60 = vor.u32 %v821_v55, %v727_v54 }
   0xf   :  { %v732_v61 = vor.u32 %v820_v56, %v729_v57  ;;  %v736_v62 = vor.u32 %v822_v59, %v735_v58  ;;  %v715_v63 = vld [vmem:[%s1438_s1] sm:$0xf]  ;;  %v818_v0 = vld [vmem:[%s1438_s1 + $0x8] sm:$0xf0]  ;;  %v817_v1 = vld [vmem:[%s1438_s1 + $0x4] sm:$0xf] }
  0x10   :  { %241 = vmatpush.bf16.msra.mxu0 %v764_v33  ;;  %844 = vmatpush.bf16.msra.mxu3 %v764_v33  ;;  %v717_v2 = vld [vmem:[%s1438_s1 + $0xc] sm:$0xf0]  ;;  %v723_v3 = vld [vmem:[%s1438_s1 + $0x8] sm:$0xf]  ;;  %v819_v4 = vld [vmem:[%s1438_s1 + $0x10] sm:$0xf0]  ;;  %v716_v5 = vor.u32 %v818_v0, %v715_v63 }
  0x11   :  { %290 = vmatpush.bf16.msra.mxu1 %v977_v34  ;;  %339 = vmatpush.bf16.msra.mxu2 %v979_v35  ;;  %v720_v6 = vor.u32 %v817_v1, %v717_v2  ;;  %v724_v9 = vor.u32 %v819_v4, %v723_v3  ;;  %v809_v10 = vld [vmem:[%s1439_s0] sm:$0xff]  ;;  %v815_v11 = vld [vmem:[%s1439_s0 + $0x30] sm:$0xff]  ;;  %v810_v12 = vld [vmem:[%s1439_s0 + $0x8] sm:$0xff]  ;;  %v866_v18 = vmov 0  }
  0x12   :  { %v816_v13 = vld [vmem:[%s1439_s0 + $0x38] sm:$0xff]  ;;  %v814_v15 = vld [vmem:[%s1439_s0 + $0x28] sm:$0xff] }
  0x13   :  { %v812_v14 = vld [vmem:[%s1439_s0 + $0x18] sm:$0xff]  ;;  %v386_v24 = vld [vmem:[%s1440_s2 + $0x8] sm:$0x7] }
  0x14   :  { %242 = vmatpush.bf16.msra.mxu0 %v752_v42  ;;  %845 = vmatpush.bf16.msra.mxu3 %v752_v42  ;;  %vm504_vm1 = vcmp.gt.f32.partialorder %v386_v24, 0.0  ;;  %v391_v32 = vperm.slane %v386_v24, 0  ;;  %v448_v38 = vperm.slane %v386_v24, 1 }
  0x15   :  { %291 = vmatpush.bf16.msra.mxu1 %v756_v43  ;;  %340 = vmatpush.bf16.msra.mxu2 %v1001_v44  ;;  %v554_v33 = vsel %vm504_vm1, 1, %v866_v18 }
  0x16   :  { %v557_v40 = vperm.slane %v554_v33, 2  ;;  %v1118_v42 = vperm.slane %v391_v32, 0  ;;  %v1123_v46 = vperm.slane %v448_v38, 1 }
  0x18   :  { %243 = vmatpush.bf16.msra.mxu0 %v740_v51  ;;  %846 = vmatpush.bf16.msra.mxu3 %v740_v51  ;;  %v1127_v49 = vperm.slane %v557_v40, 2 }
  0x19   :  { %292 = vmatpush.bf16.msra.mxu1 %v744_v52  ;;  %341 = vmatpush.bf16.msra.mxu2 %v1022_v53 }
  0x1a   :  { %vm563_vm4 = vcmp.eq.s32.totalorder %v1127_v49, 1 }
  0x1c   :  { %244 = vmatpush.bf16.msra.mxu0 %v728_v60  ;;  %847 = vmatpush.bf16.msra.mxu3 %v728_v60 }
  0x1d   :  { %293 = vmatpush.bf16.msra.mxu1 %v732_v61  ;;  %342 = vmatpush.bf16.msra.mxu2 %v736_v62 }
  0x20   :  { %245 = vmatpush.bf16.msra.mxu0 %v716_v5  ;;  %848 = vmatpush.bf16.msra.mxu3 %v716_v5 }
  0x21   :  { %294 = vmatpush.bf16.msra.mxu1 %v720_v6  ;;  %343 = vmatpush.bf16.msra.mxu2 %v724_v9 }
  0x23   :  { %246 = vmatmul.bf16.vlgmr.msra.gmra.mxu0 %v809_v10  ;;  %276 = vmatmul.bf16.vlgmr.msra.gmra.mxu3 %v815_v11 }
  0x24   :  { %849 = vmatpush.bf16.msrb.mxu3 %v905_v7  ;;  %295 = vmatmul.bf16.vlgmr.msra.gmra.mxu1 %v809_v10  ;;  %v811_v7 = vld [vmem:[%s1439_s0 + $0x10] sm:$0xff] }
  0x25   :  { %344 = vmatmul.bf16.vlgmr.msra.gmra.mxu2 %v809_v10 }
  0x28   :  { %850 = vmatpush.bf16.msrb.mxu3 %v929_v16  ;;  %v385_v16 = vld [vmem:[%s1440_s2] sm:$0x77] }
  0x29   :  { %vm503_vm0 = vcmp.gt.f32.partialorder %v385_v16, 0.0  ;;  %v390_v20 = vperm.slane %v385_v16, 4  ;;  %v446_v21 = vperm.slane %v385_v16, 1  ;;  %v447_v23 = vperm.slane %v385_v16, 5 }
  0x2a   :  { %v553_v19 = vsel %vm503_vm0, 1, %v866_v18 }
  0x2b   :  { %v555_v22 = vperm.slane %v553_v19, 2  ;;  %v1103_v27 = vperm.slane %v390_v20, 0  ;;  %v1105_v28 = vperm.slane %v446_v21, 1  ;;  %v1109_v31 = vperm.slane %v447_v23, 1 }
  0x2c   :  { %851 = vmatpush.bf16.msrb.mxu3 %v953_v25 }
  0x2d   :  { %v1107_v30 = vperm.slane %v555_v22, 2 }
  0x2f   :  { %vm561_vm2 = vcmp.eq.s32.totalorder %v1107_v30, 1 }
  0x30   :  { %852 = vmatpush.bf16.msrb.mxu3 %v977_v34 }
  0x33   :  { %251 = vmatmul.bf16.gmra.mxu0 %v810_v12  ;;  %281 = vmatmul.bf16.gmra.mxu3 %v816_v13 }
  0x34   :  { %853 = vmatpush.bf16.msrb.mxu3 %v756_v43  ;;  %300 = vmatmul.bf16.gmra.mxu1 %v810_v12 }
  0x35   :  { %349 = vmatmul.bf16.gmra.mxu2 %v810_v12 }
  0x38   :  { %854 = vmatpush.bf16.msrb.mxu3 %v744_v52 }
  0x3c   :  { %855 = vmatpush.bf16.msrb.mxu3 %v732_v61 }
  0x40   :  { %856 = vmatpush.bf16.msrb.mxu3 %v720_v6 }
  0x43   :  { %256 = vmatmul.bf16.gmra.mxu0 %v811_v7  ;;  %325 = vmatmul.bf16.vlgmr.msrb.gmra.mxu3 %v815_v11 }
  0x44   :  { %857 = vmatpush.bf16.msra.mxu3 %v907_v8  ;;  %305 = vmatmul.bf16.gmra.mxu1 %v811_v7  ;;  %v813_v8 = vld [vmem:[%s1439_s0 + $0x20] sm:$0xff] }
  0x45   :  { %354 = vmatmul.bf16.gmra.mxu2 %v811_v7 }
  0x48   :  { %858 = vmatpush.bf16.msra.mxu3 %v931_v17  ;;  %v389_v17 = vperm.slane %v385_v16, 0 }
  0x4a   :  { %v1101_v25 = vperm.slane %v389_v17, 0 }
  0x4c   :  { %859 = vmatpush.bf16.msra.mxu3 %v955_v26  ;;  %v556_v26 = vperm.slane %v553_v19, 6 }
  0x4e   :  { %v1112_v36 = vperm.slane %v556_v26, 2 }
  0x50   :  { %860 = vmatpush.bf16.msra.mxu3 %v979_v35  ;;  %vm562_vm3 = vcmp.eq.s32.totalorder %v1112_v36, 1 }
  0x53   :  { %261 = vmatmul.bf16.gmra.mxu0 %v812_v14  ;;  %330 = vmatmul.bf16.gmra.mxu3 %v816_v13 }
  0x54   :  { %861 = vmatpush.bf16.msra.mxu3 %v1001_v44  ;;  %310 = vmatmul.bf16.gmra.mxu1 %v812_v14 }
  0x55   :  { %359 = vmatmul.bf16.gmra.mxu2 %v812_v14 }
  0x58   :  { %862 = vmatpush.bf16.msra.mxu3 %v1022_v53 }
  0x5c   :  { %863 = vmatpush.bf16.msra.mxu3 %v736_v62 }
  0x60   :  { %864 = vmatpush.bf16.msra.mxu3 %v724_v9 }
  0x63   :  { %266 = vmatmul.bf16.gmra.mxu0 %v813_v8  ;;  %374 = vmatmul.bf16.vlgmr.msra.gmra.mxu3 %v815_v11 }
  0x64   :  { %315 = vmatmul.bf16.gmra.mxu1 %v813_v8 }
  0x65   :  { %364 = vmatmul.bf16.gmra.mxu2 %v813_v8 }
  0x73   :  { %271 = vmatmul.bf16.gmra.mxu0 %v814_v15  ;;  %379 = vmatmul.bf16.gmra.mxu3 %v816_v13 }
  0x74   :  { %320 = vmatmul.bf16.gmra.mxu1 %v814_v15 }
  0x75   :  { %369 = vmatmul.bf16.gmra.mxu2 %v814_v15 }
  0xa0   :  { %v247_v29 = vpop.f32.mrf.mxu0 }
  0xa1   :  { %v398_v34 = vmul.f32 %v1101_v25, %v247_v29  ;;  %v296_v35 = vpop.f32.mrf.mxu1 }
  0xa2   :  { %v399_v37 = vmul.f32 %v1103_v27, %v296_v35 }
  0xa3   :  { %v455_v39 = vadd.f32 %v1105_v28, %v398_v34 }
  0xa4   :  { %v456_v41 = vadd.f32 %v1109_v31, %v399_v37 }
  0xa5   :  { %v505_v43 = vmax.f32 %v455_v39, 0.0 }
  0xa6   :  { %v506_v44 = vmax.f32 %v456_v41, 0.0  ;;  %v1121_v45 = vpop.f32.mrf.mxu3 }
  0xa7   :  { %v564_v47 = vsel %vm561_vm2, %v505_v43, %v455_v39 }
  0xa8   :  { %v345_v48 = vpop.f32.mrf.mxu2  ;;  %v565_v50 = vsel %vm562_vm3, %v506_v44, %v456_v41  ;;  %v249_v52 = vpop.f32.mrf.mxu0 }
  0xa9   :  { %v400_v51 = vmul.f32 %v1118_v42, %v345_v48  ;;  %v612_v53 = vpack.c.bf16 %v565_v50, %v564_v47  ;;  %v401_v54 = vmul.f32 %v1101_v25, %v249_v52  ;;  %v298_v55 = vpop.f32.mrf.mxu1  ;;  %v434_v50 = vmul.f32 %v1101_v25, %v1121_v45 }
  0xaa   :  { %v402_v57 = vmul.f32 %v1103_v27, %v298_v55 }
  0xab   :  { %v457_v56 = vadd.f32 %v1123_v46, %v400_v51  ;;  %644 = vst [vmem:[%s1441_s3] sm:$0xff] %v612_v53  ;;  %v458_v58 = vadd.f32 %v1105_v28, %v401_v54 }
  0xac   :  { %v459_v60 = vadd.f32 %v1109_v31, %v402_v57 }
  0xad   :  { %v507_v59 = vmax.f32 %v457_v56, 0.0  ;;  %v508_v61 = vmax.f32 %v458_v58, 0.0 }
  0xae   :  { %v509_v63 = vmax.f32 %v459_v60, 0.0  ;;  %v1143_v0 = vpop.f32.mrf.mxu3 }
  0xaf   :  { %v566_v62 = vsel %vm563_vm4, %v507_v59, %v457_v56  ;;  %v567_v2 = vsel %vm561_vm2, %v508_v61, %v458_v58  ;;  %v491_v59 = vadd.f32 %v1105_v28, %v434_v50 }
  0xb0   :  { %v613_v1 = vpack.c.bf16 %v566_v62, %v566_v62  ;;  %v347_v3 = vpop.f32.mrf.mxu2  ;;  %v568_v4 = vsel %vm562_vm3, %v509_v63, %v459_v60  ;;  %v252_v6 = vpop.f32.mrf.mxu0 }
  0xb1   :  { %v403_v5 = vmul.f32 %v1118_v42, %v347_v3  ;;  %v614_v9 = vpack.c.bf16 %v568_v4, %v567_v2  ;;  %v404_v10 = vmul.f32 %v1101_v25, %v252_v6  ;;  %v301_v11 = vpop.f32.mrf.mxu1 }
  0xb2   :  { %646 = vst.msk [vmem:[%s1441_s3 + $0x8] sm:$0xf] %vm645_vm5, %v613_v1  ;;  %v405_v13 = vmul.f32 %v1103_v27, %v301_v11 }
  0xb3   :  { %v460_v12 = vadd.f32 %v1123_v46, %v403_v5  ;;  %647 = vst [vmem:[%s1441_s3 + $0xc] sm:$0xff] %v614_v9  ;;  %v461_v7 = vadd.f32 %v1105_v28, %v404_v10  ;;  %v541_v9 = vmax.f32 %v491_v59, 0.0 }
  0xb4   :  { %v462_v8 = vadd.f32 %v1109_v31, %v405_v13  ;;  %v437_v13 = vmul.f32 %v1101_v25, %v1143_v0 }
  0xb5   :  { %v510_v14 = vmax.f32 %v460_v12, 0.0  ;;  %v511_v15 = vmax.f32 %v461_v7, 0.0 }
  0xb6   :  { %v512_v17 = vmax.f32 %v462_v8, 0.0  ;;  %v1164_v18 = vpop.f32.mrf.mxu3 }
  0xb7   :  { %v569_v16 = vsel %vm563_vm4, %v510_v14, %v460_v12  ;;  %v570_v20 = vsel %vm561_vm2, %v511_v15, %v461_v7 }
  0xb8   :  { %v615_v19 = vpack.c.bf16 %v569_v16, %v569_v16  ;;  %v350_v21 = vpop.f32.mrf.mxu2  ;;  %v571_v22 = vsel %vm562_vm3, %v512_v17, %v462_v8  ;;  %v254_v24 = vpop.f32.mrf.mxu0 }
  0xb9   :  { %v406_v23 = vmul.f32 %v1118_v42, %v350_v21  ;;  %v616_v26 = vpack.c.bf16 %v571_v22, %v570_v20  ;;  %v407_v29 = vmul.f32 %v1101_v25, %v254_v24  ;;  %v303_v32 = vpop.f32.mrf.mxu1  ;;  %v600_v22 = vsel %vm561_vm2, %v541_v9, %v491_v59 }
  0xba   :  { %648 = vst.msk [vmem:[%s1441_s3 + $0x14] sm:$0xf] %vm645_vm5, %v615_v19  ;;  %v408_v34 = vmul.f32 %v1103_v27, %v303_v32 }
  0xbb   :  { %v463_v33 = vadd.f32 %v1123_v46, %v406_v23  ;;  %649 = vst [vmem:[%s1441_s3 + $0x18] sm:$0xff] %v616_v26  ;;  %v464_v35 = vadd.f32 %v1105_v28, %v407_v29  ;;  %v494_v23 = vadd.f32 %v1105_v28, %v437_v13 }
  0xbc   :  { %v465_v38 = vadd.f32 %v1109_v31, %v408_v34 }
  0xbd   :  { %v513_v37 = vmax.f32 %v463_v33, 0.0  ;;  %v514_v39 = vmax.f32 %v464_v35, 0.0 }
  0xbe   :  { %v515_v41 = vmax.f32 %v465_v38, 0.0  ;;  %v1185_v43 = vpop.f32.mrf.mxu3 }
  0xbf   :  { %v572_v40 = vsel %vm563_vm4, %v513_v37, %v463_v33  ;;  %v573_v47 = vsel %vm561_vm2, %v514_v39, %v464_v35  ;;  %v443_v13 = vmul.f32 %v1101_v25, %v1185_v43 }
  0xc0   :  { %v617_v44 = vpack.c.bf16 %v572_v40, %v572_v40  ;;  %v352_v48 = vpop.f32.mrf.mxu2  ;;  %v574_v51 = vsel %vm562_vm3, %v515_v41, %v465_v38  ;;  %v257_v53 = vpop.f32.mrf.mxu0  ;;  %v440_v40 = vmul.f32 %v1101_v25, %v1164_v18 }
  0xc1   :  { %v409_v52 = vmul.f32 %v1118_v42, %v352_v48  ;;  %v618_v54 = vpack.c.bf16 %v574_v51, %v573_v47  ;;  %v410_v55 = vmul.f32 %v1101_v25, %v257_v53  ;;  %v306_v56 = vpop.f32.mrf.mxu1  ;;  %v544_v48 = vmax.f32 %v494_v23, 0.0 }
  0xc2   :  { %650 = vst.msk [vmem:[%s1441_s3 + $0x20] sm:$0xf] %vm645_vm5, %v617_v44  ;;  %v411_v58 = vmul.f32 %v1103_v27, %v306_v56 }
  0xc3   :  { %v466_v57 = vadd.f32 %v1123_v46, %v409_v52  ;;  %651 = vst [vmem:[%s1441_s3 + $0x24] sm:$0xff] %v618_v54  ;;  %v467_v45 = vadd.f32 %v1105_v28, %v410_v55  ;;  %v603_v59 = vsel %vm561_vm2, %v544_v48, %v494_v23 }
  0xc4   :  { %v468_v61 = vadd.f32 %v1109_v31, %v411_v58 }
  0xc5   :  { %v516_v60 = vmax.f32 %v466_v57, 0.0  ;;  %v517_v62 = vmax.f32 %v467_v45, 0.0 }
  0xc6   :  { %v518_v1 = vmax.f32 %v468_v61, 0.0  ;;  %v326_v2 = vpop.f32.mrf.mxu3 }
  0xc7   :  { %v575_v63 = vsel %vm563_vm4, %v516_v60, %v466_v57  ;;  %v576_v4 = vsel %vm561_vm2, %v517_v62, %v467_v45  ;;  %v435_v5 = vmul.f32 %v1103_v27, %v326_v2  ;;  %v497_v57 = vadd.f32 %v1105_v28, %v440_v40 }
  0xc8   :  { %v619_v3 = vpack.c.bf16 %v575_v63, %v575_v63  ;;  %v355_v6 = vpop.f32.mrf.mxu2  ;;  %v577_v10 = vsel %vm562_vm3, %v518_v1, %v468_v61  ;;  %v259_v12 = vpop.f32.mrf.mxu0 }
  0xc9   :  { %v412_v11 = vmul.f32 %v1118_v42, %v355_v6  ;;  %v620_v7 = vpack.c.bf16 %v577_v10, %v576_v4  ;;  %v492_v14 = vadd.f32 %v1109_v31, %v435_v5  ;;  %v413_v8 = vmul.f32 %v1101_v25, %v259_v12  ;;  %v308_v15 = vpop.f32.mrf.mxu1 }
  0xca   :  { %652 = vst.msk [vmem:[%s1441_s3 + $0x2c] sm:$0xf] %vm645_vm5, %v619_v3  ;;  %v414_v17 = vmul.f32 %v1103_v27, %v308_v15  ;;  %v547_v9 = vmax.f32 %v497_v57, 0.0 }
  0xcb   :  { %v469_v16 = vadd.f32 %v1123_v46, %v412_v11  ;;  %653 = vst [vmem:[%s1441_s3 + $0x30] sm:$0xff] %v620_v7  ;;  %v542_v0 = vmax.f32 %v492_v14, 0.0  ;;  %v470_v19 = vadd.f32 %v1105_v28, %v413_v8 }
  0xcc   :  { %v471_v21 = vadd.f32 %v1109_v31, %v414_v17 }
  0xcd   :  { %v519_v20 = vmax.f32 %v469_v16, 0.0  ;;  %v601_v24 = vsel %vm562_vm3, %v542_v0, %v492_v14  ;;  %v520_v26 = vmax.f32 %v470_v19, 0.0 }
  0xce   :  { %v636_v29 = vpack.c.bf16 %v601_v24, %v600_v22  ;;  %v521_v33 = vmax.f32 %v471_v21, 0.0  ;;  %v328_v34 = vpop.f32.mrf.mxu3  ;;  %v500_v22 = vadd.f32 %v1105_v28, %v443_v13 }
  0xcf   :  { %v578_v32 = vsel %vm563_vm4, %v519_v20, %v469_v16  ;;  %v579_v37 = vsel %vm561_vm2, %v520_v26, %v470_v19  ;;  %v438_v38 = vmul.f32 %v1103_v27, %v328_v34 }
  0xd0   :  { %v621_v35 = vpack.c.bf16 %v578_v32, %v578_v32  ;;  %v357_v39 = vpop.f32.mrf.mxu2  ;;  %669 = vst [vmem:[%s1441_s3 + $0x90] sm:$0xff] %v636_v29  ;;  %v580_v41 = vsel %vm562_vm3, %v521_v33, %v471_v21  ;;  %v262_v47 = vpop.f32.mrf.mxu0  ;;  %v606_v21 = vsel %vm561_vm2, %v547_v9, %v497_v57 }
  0xd1   :  { %v415_v44 = vmul.f32 %v1118_v42, %v357_v39  ;;  %v622_v50 = vpack.c.bf16 %v580_v41, %v579_v37  ;;  %v495_v51 = vadd.f32 %v1109_v31, %v438_v38  ;;  %v416_v18 = vmul.f32 %v1101_v25, %v262_v47  ;;  %v311_v52 = vpop.f32.mrf.mxu1 }
  0xd2   :  { %654 = vst.msk [vmem:[%s1441_s3 + $0x38] sm:$0xf] %vm645_vm5, %v621_v35  ;;  %v417_v54 = vmul.f32 %v1103_v27, %v311_v52 }
  0xd3   :  { %v472_v53 = vadd.f32 %v1123_v46, %v415_v44  ;;  %655 = vst [vmem:[%s1441_s3 + $0x3c] sm:$0xff] %v622_v50  ;;  %v545_v55 = vmax.f32 %v495_v51, 0.0  ;;  %v473_v56 = vadd.f32 %v1105_v28, %v416_v18  ;;  %v550_v44 = vmax.f32 %v500_v22, 0.0 }
  0xd4   :  { %v474_v45 = vadd.f32 %v1109_v31, %v417_v54 }
  0xd5   :  { %v522_v58 = vmax.f32 %v472_v53, 0.0  ;;  %v604_v60 = vsel %vm562_vm3, %v545_v55, %v495_v51  ;;  %v523_v61 = vmax.f32 %v473_v56, 0.0  ;;  %v609_v57 = vsel %vm561_vm2, %v550_v44, %v500_v22 }
  0xd6   :  { %v638_v62 = vpack.c.bf16 %v604_v60, %v603_v59  ;;  %v524_v1 = vmax.f32 %v474_v45, 0.0  ;;  %v331_v2 = vpop.f32.mrf.mxu3 }
  0xd7   :  { %v581_v63 = vsel %vm563_vm4, %v522_v58, %v472_v53  ;;  %v582_v4 = vsel %vm561_vm2, %v523_v61, %v473_v56  ;;  %v441_v5 = vmul.f32 %v1103_v27, %v331_v2 }
  0xd8   :  { %v623_v3 = vpack.c.bf16 %v581_v63, %v581_v63  ;;  %v360_v6 = vpop.f32.mrf.mxu2  ;;  %671 = vst [vmem:[%s1441_s3 + $0x9c] sm:$0xff] %v638_v62  ;;  %v583_v10 = vsel %vm562_vm3, %v524_v1, %v474_v45  ;;  %v264_v12 = vpop.f32.mrf.mxu0 }
  0xd9   :  { %v418_v11 = vmul.f32 %v1118_v42, %v360_v6  ;;  %v624_v7 = vpack.c.bf16 %v583_v10, %v582_v4  ;;  %v498_v14 = vadd.f32 %v1109_v31, %v441_v5  ;;  %v419_v8 = vmul.f32 %v1101_v25, %v264_v12  ;;  %v313_v15 = vpop.f32.mrf.mxu1 }
  0xda   :  { %656 = vst.msk [vmem:[%s1441_s3 + $0x44] sm:$0xf] %vm645_vm5, %v623_v3  ;;  %v420_v17 = vmul.f32 %v1103_v27, %v313_v15 }
  0xdb   :  { %v475_v16 = vadd.f32 %v1123_v46, %v418_v11  ;;  %657 = vst [vmem:[%s1441_s3 + $0x48] sm:$0xff] %v624_v7  ;;  %v548_v43 = vmax.f32 %v498_v14, 0.0  ;;  %v476_v0 = vadd.f32 %v1105_v28, %v419_v8 }
  0xdc   :  { %v477_v20 = vadd.f32 %v1109_v31, %v420_v17 }
  0xdd   :  { %v525_v19 = vmax.f32 %v475_v16, 0.0  ;;  %v607_v23 = vsel %vm562_vm3, %v548_v43, %v498_v14  ;;  %v526_v24 = vmax.f32 %v476_v0, 0.0 }
  0xde   :  { %v640_v26 = vpack.c.bf16 %v607_v23, %v606_v21  ;;  %v527_v32 = vmax.f32 %v477_v20, 0.0  ;;  %v333_v33 = vpop.f32.mrf.mxu3 }
  0xdf   :  { %v584_v29 = vsel %vm563_vm4, %v525_v19, %v475_v16  ;;  %v585_v35 = vsel %vm561_vm2, %v526_v24, %v476_v0  ;;  %v444_v37 = vmul.f32 %v1103_v27, %v333_v33 }
  0xe0   :  { %v625_v34 = vpack.c.bf16 %v584_v29, %v584_v29  ;;  %v362_v38 = vpop.f32.mrf.mxu2  ;;  %673 = vst [vmem:[%s1441_s3 + $0xa8] sm:$0xff] %v640_v26  ;;  %v586_v39 = vsel %vm562_vm3, %v527_v32, %v477_v20  ;;  %v267_v41 = vpop.f32.mrf.mxu0 }
  0xe1   :  { %v421_v40 = vmul.f32 %v1118_v42, %v362_v38  ;;  %v626_v47 = vpack.c.bf16 %v586_v39, %v585_v35  ;;  %v501_v48 = vadd.f32 %v1109_v31, %v444_v37  ;;  %v422_v50 = vmul.f32 %v1101_v25, %v267_v41  ;;  %v316_v51 = vpop.f32.mrf.mxu1 }
  0xe2   :  { %658 = vst.msk [vmem:[%s1441_s3 + $0x50] sm:$0xf] %vm645_vm5, %v625_v34  ;;  %v423_v52 = vmul.f32 %v1103_v27, %v316_v51 }
  0xe3   :  { %v478_v18 = vadd.f32 %v1123_v46, %v421_v40  ;;  %659 = vst [vmem:[%s1441_s3 + $0x54] sm:$0xff] %v626_v47  ;;  %v551_v53 = vmax.f32 %v501_v48, 0.0  ;;  %v479_v54 = vadd.f32 %v1105_v28, %v422_v50 }
  0xe4   :  { %v480_v56 = vadd.f32 %v1109_v31, %v423_v52 }
  0xe5   :  { %v528_v55 = vmax.f32 %v478_v18, 0.0  ;;  %v610_v58 = vsel %vm562_vm3, %v551_v53, %v501_v48  ;;  %v529_v45 = vmax.f32 %v479_v54, 0.0 }
  0xe6   :  { %v642_v59 = vpack.c.bf16 %v610_v58, %v609_v57  ;;  %v530_v61 = vmax.f32 %v480_v56, 0.0  ;;  %v375_v62 = vpop.f32.mrf.mxu3 }
  0xe7   :  { %v587_v60 = vsel %vm563_vm4, %v528_v55, %v478_v18  ;;  %v588_v1 = vsel %vm561_vm2, %v529_v45, %v479_v54  ;;  %v436_v3 = vmul.f32 %v1118_v42, %v375_v62 }
  0xe8   :  { %v627_v63 = vpack.c.bf16 %v587_v60, %v587_v60  ;;  %v365_v2 = vpop.f32.mrf.mxu2  ;;  %675 = vst [vmem:[%s1441_s3 + $0xb4] sm:$0xff] %v642_v59  ;;  %v589_v4 = vsel %vm562_vm3, %v530_v61, %v480_v56  ;;  %v269_v6 = vpop.f32.mrf.mxu0 }
  0xe9   :  { %v424_v5 = vmul.f32 %v1118_v42, %v365_v2  ;;  %v628_v9 = vpack.c.bf16 %v589_v4, %v588_v1  ;;  %v493_v10 = vadd.f32 %v1123_v46, %v436_v3  ;;  %v425_v11 = vmul.f32 %v1101_v25, %v269_v6  ;;  %v318_v12 = vpop.f32.mrf.mxu1 }
  0xea   :  { %660 = vst.msk [vmem:[%s1441_s3 + $0x5c] sm:$0xf] %vm645_vm5, %v627_v63  ;;  %v426_v7 = vmul.f32 %v1103_v27, %v318_v12 }
  0xeb   :  { %v481_v13 = vadd.f32 %v1123_v46, %v424_v5  ;;  %661 = vst [vmem:[%s1441_s3 + $0x60] sm:$0xff] %v628_v9  ;;  %v543_v14 = vmax.f32 %v493_v10, 0.0  ;;  %v482_v8 = vadd.f32 %v1105_v28, %v425_v11 }
  0xec   :  { %v483_v16 = vadd.f32 %v1109_v31, %v426_v7 }
  0xed   :  { %v531_v15 = vmax.f32 %v481_v13, 0.0  ;;  %v602_v17 = vsel %vm563_vm4, %v543_v14, %v493_v10  ;;  %v532_v43 = vmax.f32 %v482_v8, 0.0 }
  0xee   :  { %v637_v19 = vpack.c.bf16 %v602_v17, %v602_v17  ;;  %v533_v20 = vmax.f32 %v483_v16, 0.0  ;;  %v377_v21 = vpop.f32.mrf.mxu3 }
  0xef   :  { %v590_v0 = vsel %vm563_vm4, %v531_v15, %v481_v13  ;;  %v591_v23 = vsel %vm561_vm2, %v532_v43, %v482_v8  ;;  %v439_v26 = vmul.f32 %v1118_v42, %v377_v21 }
  0xf0   :  { %v629_v22 = vpack.c.bf16 %v590_v0, %v590_v0  ;;  %v367_v24 = vpop.f32.mrf.mxu2  ;;  %670 = vst.msk [vmem:[%s1441_s3 + $0x98] sm:$0xf] %vm645_vm5, %v637_v19  ;;  %v592_v29 = vsel %vm562_vm3, %v533_v20, %v483_v16  ;;  %v272_v33 = vpop.f32.mrf.mxu0 }
  0xf1   :  { %v427_v32 = vmul.f32 %v1118_v42, %v367_v24  ;;  %v630_v34 = vpack.c.bf16 %v592_v29, %v591_v23  ;;  %v496_v35 = vadd.f32 %v1123_v46, %v439_v26  ;;  %v428_v37 = vmul.f32 %v1101_v25, %v272_v33  ;;  %v321_v38 = vpop.f32.mrf.mxu1 }
  0xf2   :  { %662 = vst.msk [vmem:[%s1441_s3 + $0x68] sm:$0xf] %vm645_vm5, %v629_v22  ;;  %v429_v40 = vmul.f32 %v1103_v27, %v321_v38 }
  0xf3   :  { %v484_v39 = vadd.f32 %v1123_v46, %v427_v32  ;;  %663 = vst [vmem:[%s1441_s3 + $0x6c] sm:$0xff] %v630_v34  ;;  %v546_v41 = vmax.f32 %v496_v35, 0.0  ;;  %v485_v44 = vadd.f32 %v1105_v28, %v428_v37 }
  0xf4   :  { %v486_v48 = vadd.f32 %v1109_v31, %v429_v40 }
  0xf5   :  { %v534_v47 = vmax.f32 %v484_v39, 0.0  ;;  %v605_v50 = vsel %vm563_vm4, %v546_v41, %v496_v35  ;;  %v535_v51 = vmax.f32 %v485_v44, 0.0 }
  0xf6   :  { %v639_v52 = vpack.c.bf16 %v605_v50, %v605_v50  ;;  %v536_v53 = vmax.f32 %v486_v48, 0.0  ;;  %v380_v54 = vpop.f32.mrf.mxu3 }
  0xf7   :  { %v593_v18 = vsel %vm563_vm4, %v534_v47, %v484_v39  ;;  %v594_v56 = vsel %vm561_vm2, %v535_v51, %v485_v44  ;;  %v442_v58 = vmul.f32 %v1118_v42, %v380_v54 }
  0xf8   :  { %v631_v55 = vpack.c.bf16 %v593_v18, %v593_v18  ;;  %v370_v57 = vpop.f32.mrf.mxu2  ;;  %672 = vst.msk [vmem:[%s1441_s3 + $0xa4] sm:$0xf] %vm645_vm5, %v639_v52  ;;  %v595_v45 = vsel %vm562_vm3, %v536_v53, %v486_v48  ;;  %v274_v60 = vpop.f32.mrf.mxu0 }
  0xf9   :  { %v430_v59 = vmul.f32 %v1118_v42, %v370_v57  ;;  %v632_v61 = vpack.c.bf16 %v595_v45, %v594_v56  ;;  %v499_v62 = vadd.f32 %v1123_v46, %v442_v58  ;;  %v431_v63 = vmul.f32 %v1101_v25, %v274_v60  ;;  %v323_v1 = vpop.f32.mrf.mxu1 }
  0xfa   :  { %664 = vst.msk [vmem:[%s1441_s3 + $0x74] sm:$0xf] %vm645_vm5, %v631_v55  ;;  %v432_v3 = vmul.f32 %v1103_v27, %v323_v1 }
  0xfb   :  { %v487_v2 = vadd.f32 %v1123_v46, %v430_v59  ;;  %665 = vst [vmem:[%s1441_s3 + $0x78] sm:$0xff] %v632_v61  ;;  %v549_v4 = vmax.f32 %v499_v62, 0.0  ;;  %v488_v5 = vadd.f32 %v1105_v28, %v431_v63 }
  0xfc   :  { %v489_v9 = vadd.f32 %v1109_v31, %v432_v3 }
  0xfd   :  { %v537_v6 = vmax.f32 %v487_v2, 0.0  ;;  %v608_v10 = vsel %vm563_vm4, %v549_v4, %v499_v62  ;;  %v538_v11 = vmax.f32 %v488_v5, 0.0 }
  0xfe   :  { %v641_v12 = vpack.c.bf16 %v608_v10, %v608_v10  ;;  %v539_v13 = vmax.f32 %v489_v9, 0.0  ;;  %v382_v27 = vpop.f32.mrf.mxu3 }
  0xff   :  { %v596_v25 = vsel %vm563_vm4, %v537_v6, %v487_v2  ;;  %v597_v14 = vsel %vm561_vm2, %v538_v11, %v488_v5  ;;  %v445_v28 = vmul.f32 %v1118_v42, %v382_v27 }
 0x100   :  { %v633_v7 = vpack.c.bf16 %v596_v25, %v596_v25  ;;  %v372_v8 = vpop.f32.mrf.mxu2  ;;  %674 = vst.msk [vmem:[%s1441_s3 + $0xb0] sm:$0xf] %vm645_vm5, %v641_v12  ;;  %v598_v31 = vsel %vm562_vm3, %v539_v13, %v489_v9 }
 0x101   :  { %v433_v15 = vmul.f32 %v1118_v42, %v372_v8  ;;  %v634_v30 = vpack.c.bf16 %v598_v31, %v597_v14  ;;  %v502_v16 = vadd.f32 %v1123_v46, %v445_v28 }
 0x102   :  { %666 = vst.msk [vmem:[%s1441_s3 + $0x80] sm:$0xf] %vm645_vm5, %v633_v7 }
 0x103   :  { %v490_v17 = vadd.f32 %v1123_v46, %v433_v15  ;;  %667 = vst [vmem:[%s1441_s3 + $0x84] sm:$0xff] %v634_v30  ;;  %v552_v43 = vmax.f32 %v502_v16, 0.0 }
 0x105   :  { %v540_v0 = vmax.f32 %v490_v17, 0.0  ;;  %v611_v36 = vsel %vm563_vm4, %v552_v43, %v502_v16 }
 0x106   :  { %v643_v19 = vpack.c.bf16 %v611_v36, %v611_v36 }
 0x107   :  { %v599_v42 = vsel %vm563_vm4, %v540_v0, %v490_v17 }
 0x108   :  { %v635_v20 = vpack.c.bf16 %v599_v42, %v599_v42  ;;  %676 = vst.msk [vmem:[%s1441_s3 + $0xbc] sm:$0xf] %vm645_vm5, %v643_v19 }
 0x10a   :  { %668 = vst.msk [vmem:[%s1441_s3 + $0x8c] sm:$0xf] %vm645_vm5, %v635_v20 }

// kernel: _lambda_.27
= control target key start
LH: loop header
LB: loop body
LE: loop exit
PB: predicated region body
PF: predicated region fallthrough
CT: control target
= control target key end

     0   :  { %vm80_vm0 = vcmask 523264   ;;  %s363_s1 = inlined_call_operand.vmem [shape: bf16[64,256], index: 1, kind: input, shape index: {}]   ;;  %s364_s0 = inlined_call_operand.vmem [shape: bf16[32,64], index: 0, kind: input, shape index: {}]   ;;  %s365_s2 = inlined_call_operand.vmem [shape: f32[2,256], index: 2, kind: input, shape index: {}]   ;;  %s366_s3 = inlined_call_operand.vmem [shape: bf16[32,256], index: 3, kind: input, shape index: {}]   ;;  %s367_s4 = inlined_call_operand.vmem [shape: bf16[32,256], index: 4, kind: output, shape index: {}]  }
   0x1   :  { %v229_v0 = vld [vmem:[%s363_s1 + $0x30] sm:$0xf]  ;;  %v248_v1 = vld [vmem:[%s363_s1 + $0x34] sm:$0xf0]  ;;  %v247_v2 = vld [vmem:[%s363_s1 + $0x34] sm:$0xf] }
   0x2   :  { %v230_v3 = vor.u32 %v248_v1, %v229_v0  ;;  %v231_v4 = vld [vmem:[%s363_s1 + $0x38] sm:$0xf0]  ;;  %v221_v5 = vld [vmem:[%s363_s1 + $0x20] sm:$0xf]  ;;  %v246_v6 = vld [vmem:[%s363_s1 + $0x24] sm:$0xf0] }
   0x3   :  { %v234_v7 = vor.u32 %v247_v2, %v231_v4  ;;  %v245_v8 = vld [vmem:[%s363_s1 + $0x24] sm:$0xf]  ;;  %v223_v9 = vld [vmem:[%s363_s1 + $0x28] sm:$0xf0]  ;;  %v222_v10 = vor.u32 %v246_v6, %v221_v5  ;;  %v213_v12 = vld [vmem:[%s363_s1 + $0x10] sm:$0xf] }
   0x4   :  { %91 = vmatpush.bf16.msra.mxu0 %v230_v3  ;;  %249 = vmatpush.bf16.msra.mxu2 %v230_v3  ;;  %v226_v11 = vor.u32 %v245_v8, %v223_v9  ;;  %v244_v13 = vld [vmem:[%s363_s1 + $0x14] sm:$0xf0]  ;;  %v243_v14 = vld [vmem:[%s363_s1 + $0x14] sm:$0xf]  ;;  %v215_v15 = vld [vmem:[%s363_s1 + $0x18] sm:$0xf0] }
   0x5   :  { %110 = vmatpush.bf16.msra.mxu1 %v234_v7  ;;  %253 = vmatpush.bf16.msra.mxu3 %v234_v7  ;;  %v214_v16 = vor.u32 %v244_v13, %v213_v12  ;;  %v218_v17 = vor.u32 %v243_v14, %v215_v15  ;;  %v205_v18 = vld [vmem:[%s363_s1] sm:$0xf]  ;;  %v242_v19 = vld [vmem:[%s363_s1 + $0x4] sm:$0xf0]  ;;  %v241_v20 = vld [vmem:[%s363_s1 + $0x4] sm:$0xf] }
   0x6   :  { %v207_v21 = vld [vmem:[%s363_s1 + $0x8] sm:$0xf0]  ;;  %v206_v22 = vor.u32 %v242_v19, %v205_v18  ;;  %v239_v24 = vld [vmem:[%s364_s0] sm:$0xff]  ;;  %v128_v44 = vld [vmem:[%s366_s3 + $0x10] sm:$0xff] }
   0x7   :  { %v210_v23 = vor.u32 %v241_v20, %v207_v21  ;;  %v240_v25 = vld [vmem:[%s364_s0 + $0x8] sm:$0xff]  ;;  %v125_v26 = vld [vmem:[%s365_s2] sm:$0xf]  ;;  %v163_v51 = vunpack.c.l.bf16 %v128_v44  ;;  %v164_v55 = vunpack.c.h.bf16 %v128_v44  ;;  %v129_v5 = vld [vmem:[%s366_s3 + $0x18] sm:$0xff] }
   0x8   :  { %92 = vmatpush.bf16.msra.mxu0 %v222_v10  ;;  %250 = vmatpush.bf16.msra.mxu2 %v222_v10  ;;  %v131_v27 = vperm.slane %v125_v26, 0  ;;  %v132_v28 = vperm.slane %v125_v26, 2  ;;  %v145_v29 = vperm.slane %v125_v26, 1  ;;  %v146_v30 = vperm.slane %v125_v26, 3  ;;  %v126_v32 = vld [vmem:[%s366_s3] sm:$0xff]  ;;  %v127_v48 = vld [vmem:[%s366_s3 + $0x8] sm:$0xff] }
   0x9   :  { %111 = vmatpush.bf16.msra.mxu1 %v226_v11  ;;  %254 = vmatpush.bf16.msra.mxu3 %v226_v11  ;;  %v159_v38 = vunpack.c.l.bf16 %v126_v32  ;;  %v160_v41 = vunpack.c.h.bf16 %v126_v32  ;;  %v161_v59 = vunpack.c.l.bf16 %v127_v48  ;;  %v162_v0 = vunpack.c.h.bf16 %v127_v48 }
   0xa   :  { %v135_v31 = vperm.slane %v131_v27, 0  ;;  %v136_v33 = vperm.slane %v132_v28, 0  ;;  %v149_v34 = vperm.slane %v145_v29, 1  ;;  %v150_v36 = vperm.slane %v146_v30, 1 }
   0xb   :  { %v165_v13 = vunpack.c.l.bf16 %v129_v5  ;;  %v166_v18 = vunpack.c.h.bf16 %v129_v5 }
   0xc   :  { %93 = vmatpush.bf16.msra.mxu0 %v214_v16  ;;  %251 = vmatpush.bf16.msra.mxu2 %v214_v16 }
   0xd   :  { %112 = vmatpush.bf16.msra.mxu1 %v218_v17  ;;  %255 = vmatpush.bf16.msra.mxu3 %v218_v17 }
  0x10   :  { %94 = vmatpush.bf16.msra.mxu0 %v206_v22  ;;  %252 = vmatpush.bf16.msra.mxu2 %v206_v22 }
  0x11   :  { %113 = vmatpush.bf16.msra.mxu1 %v210_v23  ;;  %256 = vmatpush.bf16.msra.mxu3 %v210_v23 }
  0x13   :  { %235 = vmatmul.msk.bf16.vlgmr.msra.gmra.mxu0 %vm80_vm0, %v239_v24  ;;  %236 = vmatmul.msk.bf16.vlgmr.msra.gmra.mxu2 %vm80_vm0, %v240_v25 }
  0x14   :  { %237 = vmatmul.msk.bf16.vlgmr.msra.gmra.mxu1 %vm80_vm0, %v239_v24  ;;  %238 = vmatmul.msk.bf16.vlgmr.msra.gmra.mxu3 %vm80_vm0, %v240_v25 }
  0x90   :  { %v96_v35 = vpop.f32.mrf.mxu0 }
  0x91   :  { %v137_v37 = vmul.f32 %v135_v31, %v96_v35  ;;  %v115_v39 = vpop.f32.mrf.mxu1 }
  0x92   :  { %v138_v40 = vmul.f32 %v136_v33, %v115_v39 }
  0x93   :  { %v151_v42 = vadd.f32 %v149_v34, %v137_v37 }
  0x94   :  { %v152_v43 = vadd.f32 %v150_v36, %v138_v40 }
  0x95   :  { %v167_v45 = vadd.f32 %v159_v38, %v151_v42 }
  0x96   :  { %v168_v46 = vadd.f32 %v160_v41, %v152_v43  ;;  %v101_v47 = vpop.f32.mrf.mxu2 }
  0x97   :  { %v175_v49 = vmax.f32 %v167_v45, 0.0  ;;  %v141_v50 = vmul.f32 %v135_v31, %v101_v47  ;;  %v120_v52 = vpop.f32.mrf.mxu3 }
  0x98   :  { %v176_v53 = vmax.f32 %v168_v46, 0.0  ;;  %v142_v54 = vmul.f32 %v136_v33, %v120_v52  ;;  %v98_v56 = vpop.f32.mrf.mxu0 }
  0x99   :  { %v155_v57 = vadd.f32 %v149_v34, %v141_v50  ;;  %v139_v58 = vmul.f32 %v135_v31, %v98_v56  ;;  %v117_v60 = vpop.f32.mrf.mxu1 }
  0x9a   :  { %v183_v61 = vpack.c.bf16 %v176_v53, %v175_v49  ;;  %v156_v62 = vadd.f32 %v150_v36, %v142_v54  ;;  %v140_v63 = vmul.f32 %v136_v33, %v117_v60 }
  0x9b   :  { %v171_v1 = vadd.f32 %v163_v51, %v155_v57  ;;  %v153_v2 = vadd.f32 %v149_v34, %v139_v58 }
  0x9c   :  { %187 = vst [vmem:[%s367_s4] sm:$0xff] %v183_v61  ;;  %v172_v3 = vadd.f32 %v164_v55, %v156_v62  ;;  %v154_v4 = vadd.f32 %v150_v36, %v140_v63 }
  0x9d   :  { %v179_v6 = vmax.f32 %v171_v1, 0.0  ;;  %v169_v7 = vadd.f32 %v161_v59, %v153_v2 }
  0x9e   :  { %v180_v8 = vmax.f32 %v172_v3, 0.0  ;;  %v170_v9 = vadd.f32 %v162_v0, %v154_v4  ;;  %v103_v10 = vpop.f32.mrf.mxu2 }
  0x9f   :  { %v177_v11 = vmax.f32 %v169_v7, 0.0  ;;  %v143_v12 = vmul.f32 %v135_v31, %v103_v10  ;;  %v122_v14 = vpop.f32.mrf.mxu3 }
  0xa0   :  { %v185_v15 = vpack.c.bf16 %v180_v8, %v179_v6  ;;  %v178_v16 = vmax.f32 %v170_v9, 0.0  ;;  %v144_v17 = vmul.f32 %v136_v33, %v122_v14 }
  0xa1   :  { %v157_v19 = vadd.f32 %v149_v34, %v143_v12 }
  0xa2   :  { %189 = vst [vmem:[%s367_s4 + $0x10] sm:$0xff] %v185_v15  ;;  %v184_v20 = vpack.c.bf16 %v178_v16, %v177_v11  ;;  %v158_v21 = vadd.f32 %v150_v36, %v144_v17 }
  0xa3   :  { %v173_v22 = vadd.f32 %v165_v13, %v157_v19 }
  0xa4   :  { %188 = vst [vmem:[%s367_s4 + $0x8] sm:$0xff] %v184_v20  ;;  %v174_v23 = vadd.f32 %v166_v18, %v158_v21 }
  0xa5   :  { %v181_v24 = vmax.f32 %v173_v22, 0.0 }
  0xa6   :  { %v182_v25 = vmax.f32 %v174_v23, 0.0 }
  0xa8   :  { %v186_v26 = vpack.c.bf16 %v182_v25, %v181_v24 }
  0xaa   :  { %190 = vst [vmem:[%s367_s4 + $0x18] sm:$0xff] %v186_v26 }

// kernel: _lambda_.26
= control target key start
LH: loop header
LB: loop body
LE: loop exit
PB: predicated region body
PF: predicated region fallthrough
CT: control target
= control target key end

     0   :  { %vm365_vm0 = vcmask 523264   ;;  %vm486_vm1 = vcmask 519168   ;;  %s938_s1 = inlined_call_operand.vmem [shape: bf16[576,64], index: 1, kind: input, shape index: {}]   ;;  %s939_s0 = inlined_call_operand.vmem [shape: bf16[32,576], index: 0, kind: input, shape index: {}]   ;;  %s940_s2 = inlined_call_operand.vmem [shape: f32[2,64], index: 2, kind: input, shape index: {}]   ;;  %s941_s3 = inlined_call_operand.vmem [shape: bf16[32,64], index: 3, kind: output, shape index: {}]  }
   0x1   :  { %v698_v0 = vld [vmem:[%s938_s1 + $0x38] sm:$0xff]  ;;  %v697_v4 = vld [vmem:[%s938_s1 + $0x30] sm:$0xff]  ;;  %v696_v8 = vld [vmem:[%s938_s1 + $0x28] sm:$0xff] }
   0x2   :  { %v706_v1 = vld [vmem:[%s938_s1 + $0x78] sm:$0xff]  ;;  %372 = vmatpush.bf16.msra.mxu0 %v698_v0  ;;  %v705_v5 = vld [vmem:[%s938_s1 + $0x70] sm:$0xff]  ;;  %v704_v9 = vld [vmem:[%s938_s1 + $0x68] sm:$0xff] }
   0x3   :  { %v714_v2 = vld [vmem:[%s938_s1 + $0xb8] sm:$0xff]  ;;  %391 = vmatpush.bf16.msra.mxu1 %v706_v1  ;;  %v713_v6 = vld [vmem:[%s938_s1 + $0xb0] sm:$0xff]  ;;  %v712_v10 = vld [vmem:[%s938_s1 + $0xa8] sm:$0xff] }
   0x4   :  { %v722_v3 = vld [vmem:[%s938_s1 + $0xf8] sm:$0xff]  ;;  %410 = vmatpush.bf16.msra.mxu2 %v714_v2  ;;  %v721_v7 = vld [vmem:[%s938_s1 + $0xf0] sm:$0xff]  ;;  %v720_v11 = vld [vmem:[%s938_s1 + $0xe8] sm:$0xff] }
   0x5   :  { %429 = vmatpush.bf16.msra.mxu3 %v722_v3  ;;  %v695_v12 = vld [vmem:[%s938_s1 + $0x20] sm:$0xff]  ;;  %v694_v16 = vld [vmem:[%s938_s1 + $0x18] sm:$0xff]  ;;  %v693_v20 = vld [vmem:[%s938_s1 + $0x10] sm:$0xff] }
   0x6   :  { %373 = vmatpush.bf16.msra.mxu0 %v697_v4  ;;  %v703_v13 = vld [vmem:[%s938_s1 + $0x60] sm:$0xff]  ;;  %v702_v17 = vld [vmem:[%s938_s1 + $0x58] sm:$0xff]  ;;  %v701_v21 = vld [vmem:[%s938_s1 + $0x50] sm:$0xff] }
   0x7   :  { %392 = vmatpush.bf16.msra.mxu1 %v705_v5  ;;  %v711_v14 = vld [vmem:[%s938_s1 + $0xa0] sm:$0xff]  ;;  %v710_v18 = vld [vmem:[%s938_s1 + $0x98] sm:$0xff]  ;;  %v709_v22 = vld [vmem:[%s938_s1 + $0x90] sm:$0xff] }
   0x8   :  { %411 = vmatpush.bf16.msra.mxu2 %v713_v6  ;;  %v719_v15 = vld [vmem:[%s938_s1 + $0xe0] sm:$0xff]  ;;  %v718_v19 = vld [vmem:[%s938_s1 + $0xd8] sm:$0xff]  ;;  %v717_v23 = vld [vmem:[%s938_s1 + $0xd0] sm:$0xff] }
   0x9   :  { %430 = vmatpush.bf16.msra.mxu3 %v721_v7  ;;  %v692_v24 = vld [vmem:[%s938_s1 + $0x8] sm:$0xff]  ;;  %v691_v28 = vld [vmem:[%s938_s1] sm:$0xff]  ;;  %v683_v33 = vld [vmem:[%s939_s0 + $0x10] sm:$0xf0] }
   0xa   :  { %374 = vmatpush.bf16.msra.mxu0 %v696_v8  ;;  %v700_v25 = vld [vmem:[%s938_s1 + $0x48] sm:$0xff]  ;;  %v699_v29 = vld [vmem:[%s938_s1 + $0x40] sm:$0xff]  ;;  %v499_v35 = vld [vmem:[%s939_s0 + $0x14] sm:$0xf0] }
   0xb   :  { %393 = vmatpush.bf16.msra.mxu1 %v704_v9  ;;  %v708_v26 = vld [vmem:[%s938_s1 + $0x88] sm:$0xff]  ;;  %v707_v30 = vld [vmem:[%s938_s1 + $0x80] sm:$0xff]  ;;  %v684_v37 = vld [vmem:[%s939_s0 + $0x18] sm:$0xf0] }
   0xc   :  { %412 = vmatpush.bf16.msra.mxu2 %v712_v10  ;;  %v716_v27 = vld [vmem:[%s938_s1 + $0xc8] sm:$0xff]  ;;  %v715_v31 = vld [vmem:[%s938_s1 + $0xc0] sm:$0xff]  ;;  %v726_v40 = vld [vmem:[%s938_s1 + $0x118] sm:$0xff] }
   0xd   :  { %431 = vmatpush.bf16.msra.mxu3 %v720_v11  ;;  %v497_v32 = vld [vmem:[%s939_s0] sm:$0xf]  ;;  %v681_v34 = vld [vmem:[%s939_s0 + $0x4] sm:$0xf]  ;;  %v505_v36 = vld [vmem:[%s939_s0 + $0x8] sm:$0xf] }
   0xe   :  { %375 = vmatpush.bf16.msra.mxu0 %v695_v12  ;;  %v682_v38 = vld [vmem:[%s939_s0 + $0xc] sm:$0xf]  ;;  %v507_v39 = vld [vmem:[%s939_s0 + $0x1c] sm:$0xf0]  ;;  %v498_v41 = vor.u32 %v683_v33, %v497_v32  ;;  %v502_v42 = vor.u32 %v681_v34, %v499_v35  ;;  %v506_v43 = vor.u32 %v684_v37, %v505_v36  ;;  %v725_v45 = vld [vmem:[%s938_s1 + $0x110] sm:$0xff] }
   0xf   :  { %394 = vmatpush.bf16.msra.mxu1 %v703_v13  ;;  %v510_v44 = vor.u32 %v682_v38, %v507_v39  ;;  %v724_v46 = vld [vmem:[%s938_s1 + $0x108] sm:$0xff]  ;;  %v723_v47 = vld [vmem:[%s938_s1 + $0x100] sm:$0xff]  ;;  %v688_v49 = vld [vmem:[%s939_s0 + $0x38] sm:$0xf0] }
  0x10   :  { %413 = vmatpush.bf16.msra.mxu2 %v711_v14  ;;  %v517_v48 = vld [vmem:[%s939_s0 + $0x28] sm:$0xf]  ;;  %v686_v50 = vld [vmem:[%s939_s0 + $0x2c] sm:$0xf]  ;;  %v519_v51 = vld [vmem:[%s939_s0 + $0x3c] sm:$0xf0] }
  0x11   :  { %432 = vmatpush.bf16.msra.mxu3 %v719_v15  ;;  %v525_v52 = vld [vmem:[%s939_s0 + $0x30] sm:$0xf]  ;;  %v689_v53 = vld [vmem:[%s939_s0 + $0x40] sm:$0xf0]  ;;  %v687_v54 = vld [vmem:[%s939_s0 + $0x34] sm:$0xf]  ;;  %v518_v56 = vor.u32 %v688_v49, %v517_v48  ;;  %v522_v57 = vor.u32 %v686_v50, %v519_v51 }
  0x12   :  { %376 = vmatpush.bf16.msra.mxu0 %v694_v16  ;;  %v527_v55 = vld [vmem:[%s939_s0 + $0x44] sm:$0xf0]  ;;  %v526_v58 = vor.u32 %v689_v53, %v525_v52  ;;  %v513_v60 = vld [vmem:[%s939_s0 + $0x10] sm:$0xf]  ;;  %v685_v61 = vld [vmem:[%s939_s0 + $0x20] sm:$0xf0] }
  0x13   :  { %395 = vmatpush.bf16.msra.mxu1 %v702_v17  ;;  %v530_v59 = vor.u32 %v687_v54, %v527_v55  ;;  %v533_v62 = vld [vmem:[%s939_s0 + $0x38] sm:$0xf]  ;;  %v690_v63 = vld [vmem:[%s939_s0 + $0x48] sm:$0xf0]  ;;  %v514_v0 = vor.u32 %v685_v61, %v513_v60 }
  0x14   :  { %414 = vmatpush.bf16.msra.mxu2 %v710_v18  ;;  %v534_v1 = vor.u32 %v690_v63, %v533_v62 }
  0x15   :  { %433 = vmatpush.bf16.msra.mxu3 %v718_v19 }
  0x16   :  { %377 = vmatpush.bf16.msra.mxu0 %v693_v20  ;;  %v467_v20 = vld [vmem:[%s940_s2] sm:$0x3] }
  0x17   :  { %396 = vmatpush.bf16.msra.mxu1 %v701_v21 }
  0x18   :  { %415 = vmatpush.bf16.msra.mxu2 %v709_v22 }
  0x19   :  { %434 = vmatpush.bf16.msra.mxu3 %v717_v23 }
  0x1a   :  { %378 = vmatpush.bf16.msra.mxu0 %v692_v24  ;;  %v468_v24 = vperm.slane %v467_v20, 0 }
  0x1b   :  { %397 = vmatpush.bf16.msra.mxu1 %v700_v25 }
  0x1c   :  { %416 = vmatpush.bf16.msra.mxu2 %v708_v26  ;;  %v473_v26 = vperm.slane %v467_v20, 1 }
  0x1d   :  { %435 = vmatpush.bf16.msra.mxu3 %v716_v27 }
  0x1e   :  { %379 = vmatpush.bf16.msra.mxu0 %v691_v28 }
  0x1f   :  { %398 = vmatpush.bf16.msra.mxu1 %v699_v29 }
  0x20   :  { %417 = vmatpush.bf16.msra.mxu2 %v707_v30 }
  0x21   :  { %436 = vmatpush.bf16.msra.mxu3 %v715_v31  ;;  %380 = vmatmul.bf16.vlgmr.msra.gmra.mxu0 %v498_v41 }
  0x22   :  { %452 = vmatpush.bf16.msrb.mxu0 %v726_v40  ;;  %399 = vmatmul.bf16.vlgmr.msra.gmra.mxu1 %v502_v42 }
  0x23   :  { %727 = vmatpush.bf16.msrb.mxu1 %v726_v40  ;;  %418 = vmatmul.bf16.vlgmr.msra.gmra.mxu2 %v506_v43 }
  0x24   :  { %437 = vmatmul.bf16.vlgmr.msra.gmra.mxu3 %v510_v44 }
  0x26   :  { %453 = vmatpush.bf16.msrb.mxu0 %v725_v45 }
  0x27   :  { %728 = vmatpush.bf16.msrb.mxu1 %v725_v45 }
  0x2a   :  { %454 = vmatpush.bf16.msrb.mxu0 %v724_v46 }
  0x2b   :  { %729 = vmatpush.bf16.msrb.mxu1 %v724_v46 }
  0x2e   :  { %455 = vmatpush.bf16.msrb.mxu0 %v723_v47 }
  0x2f   :  { %730 = vmatpush.bf16.msrb.mxu1 %v723_v47 }
  0x31   :  { %385 = vmatmul.bf16.gmra.mxu0 %v518_v56 }
  0x32   :  { %404 = vmatmul.bf16.gmra.mxu1 %v522_v57 }
  0x33   :  { %423 = vmatmul.bf16.gmra.mxu2 %v526_v58 }
  0x34   :  { %442 = vmatmul.bf16.gmra.mxu3 %v530_v59 }
  0x41   :  { %679 = vmatmul.msk.bf16.vlgmr.msrb.gmra.mxu0 %vm365_vm0, %v514_v0 }
  0x42   :  { %680 = vmatmul.msk.bf16.vlgmr.msrb.gmra.mxu1 %vm365_vm0, %v534_v1 }
  0x9e   :  { %v381_v2 = vpop.f32.mrf.mxu0 }
  0x9f   :  { %v400_v3 = vpop.f32.mrf.mxu1 }
  0xa0   :  { %v401_v15 = vadd.f32 %v400_v3, %v381_v2 }
  0xa6   :  { %v419_v4 = vpop.f32.mrf.mxu2  ;;  %v383_v6 = vpop.f32.mrf.mxu0 }
  0xa7   :  { %v438_v5 = vpop.f32.mrf.mxu3  ;;  %v402_v7 = vpop.f32.mrf.mxu1  ;;  %v420_v17 = vadd.f32 %v419_v4, %v401_v15 }
  0xa8   :  { %v403_v28 = vadd.f32 %v402_v7, %v383_v6 }
  0xa9   :  { %v439_v21 = vadd.f32 %v438_v5, %v420_v17 }
  0xae   :  { %v421_v8 = vpop.f32.mrf.mxu2  ;;  %v386_v9 = vpop.f32.mrf.mxu0 }
  0xaf   :  { %v405_v10 = vpop.f32.mrf.mxu1  ;;  %v440_v11 = vpop.f32.mrf.mxu3  ;;  %v422_v32 = vadd.f32 %v421_v8, %v403_v28 }
  0xb0   :  { %v406_v16 = vadd.f32 %v405_v10, %v386_v9 }
  0xb1   :  { %v441_v39 = vadd.f32 %v440_v11, %v422_v32 }
  0xb6   :  { %v424_v12 = vpop.f32.mrf.mxu2  ;;  %v388_v13 = vpop.f32.mrf.mxu0 }
  0xb7   :  { %v407_v14 = vpop.f32.mrf.mxu1  ;;  %v425_v18 = vadd.f32 %v424_v12, %v406_v16  ;;  %v443_v19 = vpop.f32.mrf.mxu3 }
  0xb8   :  { %v408_v29 = vadd.f32 %v407_v14, %v388_v13 }
  0xb9   :  { %v444_v22 = vadd.f32 %v443_v19, %v425_v18 }
  0xbe   :  { %v426_v23 = vpop.f32.mrf.mxu2  ;;  %v457_v25 = vpop.f32.mrf.mxu0 }
  0xbf   :  { %v462_v27 = vpop.f32.mrf.mxu1  ;;  %v458_v30 = vadd.f32 %v457_v25, %v439_v21  ;;  %v427_v33 = vadd.f32 %v426_v23, %v408_v29  ;;  %v445_v38 = vpop.f32.mrf.mxu3 }
  0xc0   :  { %v463_v31 = vadd.f32 %v462_v27, %v444_v22 }
  0xc1   :  { %v469_v34 = vmul.f32 %v468_v24, %v458_v30  ;;  %v446_v40 = vadd.f32 %v445_v38, %v427_v33 }
  0xc2   :  { %v471_v35 = vmul.f32 %v468_v24, %v463_v31 }
  0xc3   :  { %v474_v36 = vadd.f32 %v473_v26, %v469_v34 }
  0xc4   :  { %v476_v37 = vadd.f32 %v473_v26, %v471_v35 }
  0xc5   :  { %v478_v41 = vmax.f32 %v474_v36, 0.0 }
  0xc6   :  { %v480_v42 = vmax.f32 %v476_v37, 0.0  ;;  %v459_v43 = vpop.f32.mrf.mxu0 }
  0xc7   :  { %v464_v44 = vpop.f32.mrf.mxu1  ;;  %v482_v45 = vpack.c.bf16 %v478_v41, %v478_v41  ;;  %v460_v47 = vadd.f32 %v459_v43, %v441_v39 }
  0xc8   :  { %v484_v46 = vpack.c.bf16 %v480_v42, %v480_v42  ;;  %v465_v48 = vadd.f32 %v464_v44, %v446_v40 }
  0xc9   :  { %487 = vst.msk [vmem:[%s941_s3] sm:$0xf] %vm486_vm1, %v482_v45  ;;  %v470_v49 = vmul.f32 %v468_v24, %v460_v47 }
  0xca   :  { %v472_v50 = vmul.f32 %v468_v24, %v465_v48  ;;  %489 = vst.msk [vmem:[%s941_s3 + $0x8] sm:$0xf] %vm486_vm1, %v484_v46 }
  0xcb   :  { %v475_v51 = vadd.f32 %v473_v26, %v470_v49 }
  0xcc   :  { %v477_v52 = vadd.f32 %v473_v26, %v472_v50 }
  0xcd   :  { %v479_v53 = vmax.f32 %v475_v51, 0.0 }
  0xce   :  { %v481_v54 = vmax.f32 %v477_v52, 0.0 }
  0xcf   :  { %v483_v55 = vpack.c.bf16 %v479_v53, %v479_v53 }
  0xd0   :  { %v485_v56 = vpack.c.bf16 %v481_v54, %v481_v54 }
  0xd1   :  { %488 = vst.msk [vmem:[%s941_s3 + $0x4] sm:$0xf] %vm486_vm1, %v483_v55 }
  0xd2   :  { %490 = vst.msk [vmem:[%s941_s3 + $0xc] sm:$0xf] %vm486_vm1, %v485_v56 }

// kernel: _lambda_.28
= control target key start
LH: loop header
LB: loop body
LE: loop exit
PB: predicated region body
PF: predicated region fallthrough
CT: control target
= control target key end

     0   :  { %s2527_s1 = inlined_call_operand.vmem [shape: bf16[1024,256], index: 1, kind: input, shape index: {}]   ;;  %s2528_s0 = inlined_call_operand.vmem [shape: bf16[8,1024], index: 0, kind: input, shape index: {}]   ;;  %s2529_s2 = inlined_call_operand.vmem [shape: f32[2,256], index: 2, kind: input, shape index: {}]   ;;  %s2530_s3 = inlined_call_operand.vmem [shape: f32[8,256], index: 3, kind: output, shape index: {}]  }
   0x1   :  { %v1104_v0 = vld [vmem:[%s2527_s1 + $0x70] sm:$0xf]  ;;  %v1573_v1 = vld [vmem:[%s2527_s1 + $0x74] sm:$0xf0]  ;;  %v1096_v11 = vld [vmem:[%s2527_s1 + $0x60] sm:$0xf] }
   0x2   :  { %v1168_v2 = vld [vmem:[%s2527_s1 + $0xf0] sm:$0xf]  ;;  %v1105_v3 = vor.u32 %v1573_v1, %v1104_v0  ;;  %v1589_v4 = vld [vmem:[%s2527_s1 + $0xf4] sm:$0xf0]  ;;  %v1571_v13 = vld [vmem:[%s2527_s1 + $0x64] sm:$0xf0] }
   0x3   :  { %v1232_v5 = vld [vmem:[%s2527_s1 + $0x170] sm:$0xf]  ;;  %v1605_v6 = vld [vmem:[%s2527_s1 + $0x174] sm:$0xf0]  ;;  %v1169_v7 = vor.u32 %v1589_v4, %v1168_v2  ;;  %v1160_v14 = vld [vmem:[%s2527_s1 + $0xe0] sm:$0xf]  ;;  %v1097_v16 = vor.u32 %v1571_v13, %v1096_v11 }
   0x4   :  { %v1233_v8 = vor.u32 %v1605_v6, %v1232_v5  ;;  %v1296_v9 = vld [vmem:[%s2527_s1 + $0x1f0] sm:$0xf]  ;;  %v1621_v10 = vld [vmem:[%s2527_s1 + $0x1f4] sm:$0xf0]  ;;  %814 = vmatpush.bf16.msra.mxu0 %v1105_v3  ;;  %v1587_v15 = vld [vmem:[%s2527_s1 + $0xe4] sm:$0xf0] }
   0x5   :  { %v1297_v12 = vor.u32 %v1621_v10, %v1296_v9  ;;  %827 = vmatpush.bf16.msra.mxu1 %v1169_v7  ;;  %v1161_v17 = vor.u32 %v1587_v15, %v1160_v14  ;;  %v1224_v18 = vld [vmem:[%s2527_s1 + $0x160] sm:$0xf]  ;;  %v1603_v19 = vld [vmem:[%s2527_s1 + $0x164] sm:$0xf0]  ;;  %v1088_v23 = vld [vmem:[%s2527_s1 + $0x50] sm:$0xf] }
   0x6   :  { %840 = vmatpush.bf16.msra.mxu2 %v1233_v8  ;;  %v1288_v20 = vld [vmem:[%s2527_s1 + $0x1e0] sm:$0xf]  ;;  %v1225_v21 = vor.u32 %v1603_v19, %v1224_v18  ;;  %v1619_v22 = vld [vmem:[%s2527_s1 + $0x1e4] sm:$0xf0]  ;;  %v1569_v24 = vld [vmem:[%s2527_s1 + $0x54] sm:$0xf0] }
   0x7   :  { %853 = vmatpush.bf16.msra.mxu3 %v1297_v12  ;;  %v1289_v25 = vor.u32 %v1619_v22, %v1288_v20  ;;  %v1152_v26 = vld [vmem:[%s2527_s1 + $0xd0] sm:$0xf]  ;;  %v1585_v27 = vld [vmem:[%s2527_s1 + $0xd4] sm:$0xf0]  ;;  %v1089_v29 = vor.u32 %v1569_v24, %v1088_v23  ;;  %v1080_v35 = vld [vmem:[%s2527_s1 + $0x40] sm:$0xf] }
   0x8   :  { %v1216_v28 = vld [vmem:[%s2527_s1 + $0x150] sm:$0xf]  ;;  %815 = vmatpush.bf16.msra.mxu0 %v1097_v16  ;;  %v1601_v30 = vld [vmem:[%s2527_s1 + $0x154] sm:$0xf0]  ;;  %v1153_v33 = vor.u32 %v1585_v27, %v1152_v26  ;;  %v1567_v36 = vld [vmem:[%s2527_s1 + $0x44] sm:$0xf0] }
   0x9   :  { %v1280_v31 = vld [vmem:[%s2527_s1 + $0x1d0] sm:$0xf]  ;;  %v1617_v32 = vld [vmem:[%s2527_s1 + $0x1d4] sm:$0xf0]  ;;  %828 = vmatpush.bf16.msra.mxu1 %v1161_v17  ;;  %v1217_v34 = vor.u32 %v1601_v30, %v1216_v28  ;;  %v1144_v37 = vld [vmem:[%s2527_s1 + $0xc0] sm:$0xf]  ;;  %v1081_v44 = vor.u32 %v1567_v36, %v1080_v35 }
   0xa   :  { %841 = vmatpush.bf16.msra.mxu2 %v1225_v21  ;;  %v1281_v38 = vor.u32 %v1617_v32, %v1280_v31  ;;  %v1583_v39 = vld [vmem:[%s2527_s1 + $0xc4] sm:$0xf0]  ;;  %v1208_v40 = vld [vmem:[%s2527_s1 + $0x140] sm:$0xf]  ;;  %v1072_v47 = vld [vmem:[%s2527_s1 + $0x30] sm:$0xf] }
   0xb   :  { %854 = vmatpush.bf16.msra.mxu3 %v1289_v25  ;;  %v1599_v41 = vld [vmem:[%s2527_s1 + $0x144] sm:$0xf0]  ;;  %v1272_v42 = vld [vmem:[%s2527_s1 + $0x1c0] sm:$0xf]  ;;  %v1145_v45 = vor.u32 %v1583_v39, %v1144_v37  ;;  %v1565_v48 = vld [vmem:[%s2527_s1 + $0x34] sm:$0xf0] }
   0xc   :  { %v1615_v43 = vld [vmem:[%s2527_s1 + $0x1c4] sm:$0xf0]  ;;  %816 = vmatpush.bf16.msra.mxu0 %v1089_v29  ;;  %v1209_v46 = vor.u32 %v1599_v41, %v1208_v40  ;;  %v1136_v49 = vld [vmem:[%s2527_s1 + $0xb0] sm:$0xf]  ;;  %v1581_v51 = vld [vmem:[%s2527_s1 + $0xb4] sm:$0xf0]  ;;  %v1073_v56 = vor.u32 %v1565_v48, %v1072_v47 }
   0xd   :  { %829 = vmatpush.bf16.msra.mxu1 %v1153_v33  ;;  %v1273_v50 = vor.u32 %v1615_v43, %v1272_v42  ;;  %v1200_v52 = vld [vmem:[%s2527_s1 + $0x130] sm:$0xf]  ;;  %v1597_v53 = vld [vmem:[%s2527_s1 + $0x134] sm:$0xf0]  ;;  %v1137_v57 = vor.u32 %v1581_v51, %v1136_v49  ;;  %v1064_v59 = vld [vmem:[%s2527_s1 + $0x20] sm:$0xf] }
   0xe   :  { %842 = vmatpush.bf16.msra.mxu2 %v1217_v34  ;;  %v1264_v54 = vld [vmem:[%s2527_s1 + $0x1b0] sm:$0xf]  ;;  %v1613_v55 = vld [vmem:[%s2527_s1 + $0x1b4] sm:$0xf0]  ;;  %v1201_v58 = vor.u32 %v1597_v53, %v1200_v52  ;;  %v1563_v60 = vld [vmem:[%s2527_s1 + $0x24] sm:$0xf0] }
   0xf   :  { %855 = vmatpush.bf16.msra.mxu3 %v1281_v38  ;;  %v1128_v61 = vld [vmem:[%s2527_s1 + $0xa0] sm:$0xf]  ;;  %v1265_v62 = vor.u32 %v1613_v55, %v1264_v54  ;;  %v1579_v63 = vld [vmem:[%s2527_s1 + $0xa4] sm:$0xf0]  ;;  %v1065_v4 = vor.u32 %v1563_v60, %v1064_v59  ;;  %v1056_v7 = vld [vmem:[%s2527_s1 + $0x10] sm:$0xf] }
  0x10   :  { %817 = vmatpush.bf16.msra.mxu0 %v1081_v44  ;;  %v1192_v0 = vld [vmem:[%s2527_s1 + $0x120] sm:$0xf]  ;;  %v1595_v1 = vld [vmem:[%s2527_s1 + $0x124] sm:$0xf0]  ;;  %v1129_v5 = vor.u32 %v1579_v63, %v1128_v61  ;;  %v1561_v8 = vld [vmem:[%s2527_s1 + $0x14] sm:$0xf0] }
  0x11   :  { %830 = vmatpush.bf16.msra.mxu1 %v1145_v45  ;;  %v1256_v2 = vld [vmem:[%s2527_s1 + $0x1a0] sm:$0xf]  ;;  %v1611_v3 = vld [vmem:[%s2527_s1 + $0x1a4] sm:$0xf0]  ;;  %v1193_v6 = vor.u32 %v1595_v1, %v1192_v0  ;;  %v1120_v9 = vld [vmem:[%s2527_s1 + $0x90] sm:$0xf]  ;;  %v1057_v16 = vor.u32 %v1561_v8, %v1056_v7 }
  0x12   :  { %843 = vmatpush.bf16.msra.mxu2 %v1209_v46  ;;  %v1257_v10 = vor.u32 %v1611_v3, %v1256_v2  ;;  %v1577_v11 = vld [vmem:[%s2527_s1 + $0x94] sm:$0xf0]  ;;  %v1184_v12 = vld [vmem:[%s2527_s1 + $0x110] sm:$0xf]  ;;  %v1048_v17 = vld [vmem:[%s2527_s1] sm:$0xf] }
  0x13   :  { %856 = vmatpush.bf16.msra.mxu3 %v1273_v50  ;;  %v1593_v13 = vld [vmem:[%s2527_s1 + $0x114] sm:$0xf0]  ;;  %v1248_v14 = vld [vmem:[%s2527_s1 + $0x190] sm:$0xf]  ;;  %v1559_v18 = vld [vmem:[%s2527_s1 + $0x4] sm:$0xf0]  ;;  %v1121_v19 = vor.u32 %v1577_v11, %v1120_v9 }
  0x14   :  { %818 = vmatpush.bf16.msra.mxu0 %v1073_v56  ;;  %v1609_v15 = vld [vmem:[%s2527_s1 + $0x194] sm:$0xf0]  ;;  %v1185_v20 = vor.u32 %v1593_v13, %v1184_v12  ;;  %v1112_v21 = vld [vmem:[%s2527_s1 + $0x80] sm:$0xf]  ;;  %v1575_v22 = vld [vmem:[%s2527_s1 + $0x84] sm:$0xf0]  ;;  %v1049_v31 = vor.u32 %v1559_v18, %v1048_v17 }
  0x15   :  { %831 = vmatpush.bf16.msra.mxu1 %v1137_v57  ;;  %v1176_v23 = vld [vmem:[%s2527_s1 + $0x100] sm:$0xf]  ;;  %v1249_v24 = vor.u32 %v1609_v15, %v1248_v14  ;;  %v1591_v25 = vld [vmem:[%s2527_s1 + $0x104] sm:$0xf0]  ;;  %v1360_v28 = vld [vmem:[%s2527_s1 + $0x270] sm:$0xf]  ;;  %v1113_v35 = vor.u32 %v1575_v22, %v1112_v21 }
  0x16   :  { %844 = vmatpush.bf16.msra.mxu2 %v1201_v58  ;;  %v1240_v26 = vld [vmem:[%s2527_s1 + $0x180] sm:$0xf]  ;;  %v1607_v27 = vld [vmem:[%s2527_s1 + $0x184] sm:$0xf0]  ;;  %v1637_v29 = vld [vmem:[%s2527_s1 + $0x274] sm:$0xf0]  ;;  %v1177_v36 = vor.u32 %v1591_v25, %v1176_v23 }
  0x17   :  { %857 = vmatpush.bf16.msra.mxu3 %v1265_v62  ;;  %v1424_v30 = vld [vmem:[%s2527_s1 + $0x2f0] sm:$0xf]  ;;  %v1653_v32 = vld [vmem:[%s2527_s1 + $0x2f4] sm:$0xf0]  ;;  %v1241_v39 = vor.u32 %v1607_v27, %v1240_v26  ;;  %v1361_v40 = vor.u32 %v1637_v29, %v1360_v28  ;;  %v1352_v43 = vld [vmem:[%s2527_s1 + $0x260] sm:$0xf] }
  0x18   :  { %819 = vmatpush.bf16.msra.mxu0 %v1065_v4  ;;  %v1488_v33 = vld [vmem:[%s2527_s1 + $0x370] sm:$0xf]  ;;  %v1669_v34 = vld [vmem:[%s2527_s1 + $0x374] sm:$0xf0]  ;;  %v1425_v41 = vor.u32 %v1653_v32, %v1424_v30  ;;  %v1635_v44 = vld [vmem:[%s2527_s1 + $0x264] sm:$0xf0] }
  0x19   :  { %832 = vmatpush.bf16.msra.mxu1 %v1129_v5  ;;  %v1552_v37 = vld [vmem:[%s2527_s1 + $0x3f0] sm:$0xf]  ;;  %v1685_v38 = vld [vmem:[%s2527_s1 + $0x3f4] sm:$0xf0]  ;;  %v1489_v42 = vor.u32 %v1669_v34, %v1488_v33  ;;  %v1416_v45 = vld [vmem:[%s2527_s1 + $0x2e0] sm:$0xf]  ;;  %v1353_v52 = vor.u32 %v1635_v44, %v1352_v43 }
  0x1a   :  { %845 = vmatpush.bf16.msra.mxu2 %v1193_v6  ;;  %v1553_v46 = vor.u32 %v1685_v38, %v1552_v37  ;;  %v1651_v47 = vld [vmem:[%s2527_s1 + $0x2e4] sm:$0xf0]  ;;  %v1480_v48 = vld [vmem:[%s2527_s1 + $0x360] sm:$0xf]  ;;  %v1344_v53 = vld [vmem:[%s2527_s1 + $0x250] sm:$0xf] }
  0x1b   :  { %858 = vmatpush.bf16.msra.mxu3 %v1257_v10  ;;  %v1667_v49 = vld [vmem:[%s2527_s1 + $0x364] sm:$0xf0]  ;;  %v1544_v50 = vld [vmem:[%s2527_s1 + $0x3e0] sm:$0xf]  ;;  %v1417_v54 = vor.u32 %v1651_v47, %v1416_v45  ;;  %v1633_v56 = vld [vmem:[%s2527_s1 + $0x254] sm:$0xf0] }
  0x1c   :  { %820 = vmatpush.bf16.msra.mxu0 %v1057_v16  ;;  %v1683_v51 = vld [vmem:[%s2527_s1 + $0x3e4] sm:$0xf0]  ;;  %v1481_v55 = vor.u32 %v1667_v49, %v1480_v48  ;;  %v1408_v57 = vld [vmem:[%s2527_s1 + $0x2d0] sm:$0xf]  ;;  %v1649_v60 = vld [vmem:[%s2527_s1 + $0x2d4] sm:$0xf0]  ;;  %v1345_v3 = vor.u32 %v1633_v56, %v1344_v53 }
  0x1d   :  { %833 = vmatpush.bf16.msra.mxu1 %v1121_v19  ;;  %v15_v58 = vld [vmem:[%s2528_s0 + $0x8] sm:$0xff]  ;;  %v1545_v59 = vor.u32 %v1683_v51, %v1544_v50  ;;  %v1472_v61 = vld [vmem:[%s2527_s1 + $0x350] sm:$0xf]  ;;  %v1665_v62 = vld [vmem:[%s2527_s1 + $0x354] sm:$0xf0]  ;;  %v1409_v7 = vor.u32 %v1649_v60, %v1408_v57 }
  0x1e   :  { %846 = vmatpush.bf16.msra.mxu2 %v1185_v20  ;;  %v152_v63 = vunpack.c.l.b16 %v15_v58  ;;  %v153_v0 = vunpack.c.h.b16 %v15_v58  ;;  %v1536_v1 = vld [vmem:[%s2527_s1 + $0x3d0] sm:$0xf]  ;;  %v1681_v2 = vld [vmem:[%s2527_s1 + $0x3d4] sm:$0xf0]  ;;  %v14_v5 = vld [vmem:[%s2528_s0] sm:$0xff]  ;;  %v1473_v8 = vor.u32 %v1665_v62, %v1472_v61 }
  0x1f   :  { %859 = vmatpush.bf16.msra.mxu3 %v1249_v24  ;;  %v1336_v9 = vld [vmem:[%s2527_s1 + $0x240] sm:$0xf]  ;;  %v1631_v10 = vld [vmem:[%s2527_s1 + $0x244] sm:$0xf0]  ;;  %v150_v12 = vunpack.c.l.b16 %v14_v5  ;;  %v151_v13 = vunpack.c.h.b16 %v14_v5  ;;  %v1537_v14 = vor.u32 %v1681_v2, %v1536_v1  ;;  %v1328_v25 = vld [vmem:[%s2527_s1 + $0x230] sm:$0xf] }
  0x20   :  { %821 = vmatpush.bf16.msra.mxu0 %v1049_v31  ;;  %v1973_v4 = vpack.c.b16 %v152_v63, %v152_v63  ;;  %v1978_v6 = vpack.c.b16 %v153_v0, %v153_v0  ;;  %v1400_v11 = vld [vmem:[%s2527_s1 + $0x2c0] sm:$0xf]  ;;  %v1647_v15 = vld [vmem:[%s2527_s1 + $0x2c4] sm:$0xf0]  ;;  %v1337_v22 = vor.u32 %v1631_v10, %v1336_v9  ;;  %v1629_v26 = vld [vmem:[%s2527_s1 + $0x234] sm:$0xf0] }
  0x21   :  { %834 = vmatpush.bf16.msra.mxu1 %v1113_v35  ;;  %v1464_v16 = vld [vmem:[%s2527_s1 + $0x340] sm:$0xf]  ;;  %v1663_v17 = vld [vmem:[%s2527_s1 + $0x344] sm:$0xf0]  ;;  %v2005_v20 = vpack.c.b16 %v150_v12, %v150_v12  ;;  %v2008_v21 = vpack.c.b16 %v151_v13, %v151_v13  ;;  %v1401_v23 = vor.u32 %v1647_v15, %v1400_v11  ;;  %v1392_v27 = vld [vmem:[%s2527_s1 + $0x2b0] sm:$0xf]  ;;  %v1329_v34 = vor.u32 %v1629_v26, %v1328_v25 }
  0x22   :  { %847 = vmatpush.bf16.msra.mxu2 %v1177_v36  ;;  %v1528_v18 = vld [vmem:[%s2527_s1 + $0x3c0] sm:$0xf]  ;;  %v1679_v19 = vld [vmem:[%s2527_s1 + $0x3c4] sm:$0xf0]  ;;  %v1465_v24 = vor.u32 %v1663_v17, %v1464_v16  ;;  %v1645_v29 = vld [vmem:[%s2527_s1 + $0x2b4] sm:$0xf0] }
  0x23   :  { %860 = vmatpush.bf16.msra.mxu3 %v1241_v39  ;;  %v1529_v28 = vor.u32 %v1679_v19, %v1528_v18  ;;  %v1456_v30 = vld [vmem:[%s2527_s1 + $0x330] sm:$0xf]  ;;  %v1661_v31 = vld [vmem:[%s2527_s1 + $0x334] sm:$0xf0]  ;;  %822 = vmatmul.bf16.vlgmr.msra.gmra.mxu0 %v2005_v20  ;;  %v1393_v35 = vor.u32 %v1645_v29, %v1392_v27  ;;  %v1320_v37 = vld [vmem:[%s2527_s1 + $0x220] sm:$0xf] }
  0x24   :  { %866 = vmatpush.bf16.msrb.mxu0 %v1361_v40  ;;  %v1520_v32 = vld [vmem:[%s2527_s1 + $0x3b0] sm:$0xf]  ;;  %v1677_v33 = vld [vmem:[%s2527_s1 + $0x3b4] sm:$0xf0]  ;;  %835 = vmatmul.bf16.vlgmr.msra.gmra.mxu1 %v2008_v21  ;;  %v1457_v36 = vor.u32 %v1661_v31, %v1456_v30  ;;  %v1627_v38 = vld [vmem:[%s2527_s1 + $0x224] sm:$0xf0] }
  0x25   :  { %879 = vmatpush.bf16.msrb.mxu1 %v1425_v41  ;;  %848 = vmatmul.bf16.vlgmr.msra.gmra.mxu2 %v1973_v4  ;;  %v1384_v39 = vld [vmem:[%s2527_s1 + $0x2a0] sm:$0xf]  ;;  %v1521_v40 = vor.u32 %v1677_v33, %v1520_v32  ;;  %v1643_v41 = vld [vmem:[%s2527_s1 + $0x2a4] sm:$0xf0]  ;;  %v1312_v49 = vld [vmem:[%s2527_s1 + $0x210] sm:$0xf] }
  0x26   :  { %892 = vmatpush.bf16.msrb.mxu2 %v1489_v42  ;;  %861 = vmatmul.bf16.vlgmr.msra.gmra.mxu3 %v1978_v6  ;;  %v1448_v42 = vld [vmem:[%s2527_s1 + $0x320] sm:$0xf]  ;;  %v1659_v43 = vld [vmem:[%s2527_s1 + $0x324] sm:$0xf0]  ;;  %v1385_v47 = vor.u32 %v1643_v41, %v1384_v39  ;;  %v1625_v50 = vld [vmem:[%s2527_s1 + $0x214] sm:$0xf0] }
  0x27   :  { %905 = vmatpush.bf16.msrb.mxu3 %v1553_v46  ;;  %v1512_v44 = vld [vmem:[%s2527_s1 + $0x3a0] sm:$0xf]  ;;  %v1675_v45 = vld [vmem:[%s2527_s1 + $0x3a4] sm:$0xf0]  ;;  %v1321_v46 = vor.u32 %v1627_v38, %v1320_v37  ;;  %v1449_v48 = vor.u32 %v1659_v43, %v1448_v42  ;;  %v1376_v51 = vld [vmem:[%s2527_s1 + $0x290] sm:$0xf] }
  0x28   :  { %867 = vmatpush.bf16.msrb.mxu0 %v1353_v52  ;;  %v1513_v52 = vor.u32 %v1675_v45, %v1512_v44  ;;  %v1641_v53 = vld [vmem:[%s2527_s1 + $0x294] sm:$0xf0]  ;;  %v1504_v56 = vld [vmem:[%s2527_s1 + $0x390] sm:$0xf]  ;;  %v1304_v58 = vld [vmem:[%s2527_s1 + $0x200] sm:$0xf] }
  0x29   :  { %880 = vmatpush.bf16.msrb.mxu1 %v1417_v54  ;;  %v1440_v54 = vld [vmem:[%s2527_s1 + $0x310] sm:$0xf]  ;;  %v1673_v57 = vld [vmem:[%s2527_s1 + $0x394] sm:$0xf0]  ;;  %v1623_v60 = vld [vmem:[%s2527_s1 + $0x204] sm:$0xf0]  ;;  %v1377_v63 = vor.u32 %v1641_v53, %v1376_v51 }
  0x2a   :  { %893 = vmatpush.bf16.msrb.mxu2 %v1481_v55  ;;  %v1657_v55 = vld [vmem:[%s2527_s1 + $0x314] sm:$0xf0]  ;;  %v1368_v61 = vld [vmem:[%s2527_s1 + $0x280] sm:$0xf]  ;;  %v1639_v62 = vld [vmem:[%s2527_s1 + $0x284] sm:$0xf0]  ;;  %v1505_v5 = vor.u32 %v1673_v57, %v1504_v56  ;;  %v1305_v13 = vor.u32 %v1623_v60, %v1304_v58 }
  0x2b   :  { %906 = vmatpush.bf16.msrb.mxu3 %v1545_v59  ;;  %v1313_v59 = vor.u32 %v1625_v50, %v1312_v49  ;;  %v1441_v0 = vor.u32 %v1657_v55, %v1440_v54  ;;  %v1432_v1 = vld [vmem:[%s2527_s1 + $0x300] sm:$0xf]  ;;  %v1655_v2 = vld [vmem:[%s2527_s1 + $0x304] sm:$0xf0]  ;;  %v16_v9 = vld [vmem:[%s2528_s0 + $0x10] sm:$0xff]  ;;  %v1369_v18 = vor.u32 %v1639_v62, %v1368_v61 }
  0x2c   :  { %868 = vmatpush.bf16.msrb.mxu0 %v1345_v3  ;;  %v17_v3 = vld [vmem:[%s2528_s0 + $0x18] sm:$0xff]  ;;  %v1572_v10 = vld [vmem:[%s2527_s1 + $0x74] sm:$0xf]  ;;  %v1433_v19 = vor.u32 %v1655_v2, %v1432_v1  ;;  %v1570_v31 = vld [vmem:[%s2527_s1 + $0x64] sm:$0xf] }
  0x2d   :  { %881 = vmatpush.bf16.msrb.mxu1 %v1409_v7  ;;  %v1496_v7 = vld [vmem:[%s2527_s1 + $0x380] sm:$0xf]  ;;  %v1106_v11 = vld [vmem:[%s2527_s1 + $0x78] sm:$0xf0]  ;;  %v1588_v12 = vld [vmem:[%s2527_s1 + $0xf4] sm:$0xf]  ;;  %v156_v17 = vunpack.c.l.b16 %v17_v3  ;;  %v157_v25 = vunpack.c.h.b16 %v17_v3 }
  0x2e   :  { %894 = vmatpush.bf16.msrb.mxu2 %v1473_v8  ;;  %v1671_v8 = vld [vmem:[%s2527_s1 + $0x384] sm:$0xf0]  ;;  %v1604_v15 = vld [vmem:[%s2527_s1 + $0x174] sm:$0xf]  ;;  %v1234_v16 = vld [vmem:[%s2527_s1 + $0x178] sm:$0xf0]  ;;  %v1109_v27 = vor.u32 %v1572_v10, %v1106_v11 }
  0x2f   :  { %907 = vmatpush.bf16.msrb.mxu3 %v1537_v14  ;;  %v1170_v14 = vld [vmem:[%s2527_s1 + $0xf8] sm:$0xf0]  ;;  %v1497_v26 = vor.u32 %v1671_v8, %v1496_v7  ;;  %v1237_v30 = vor.u32 %v1604_v15, %v1234_v16  ;;  %v1098_v32 = vld [vmem:[%s2527_s1 + $0x68] sm:$0xf0]  ;;  %v1586_v33 = vld [vmem:[%s2527_s1 + $0xe4] sm:$0xf]  ;;  %v2156_v38 = vpack.c.b16 %v156_v17, %v156_v17  ;;  %v2166_v42 = vpack.c.b16 %v157_v25, %v157_v25 }
  0x30   :  { %869 = vmatpush.bf16.msrb.mxu0 %v1337_v22  ;;  %v1620_v22 = vld [vmem:[%s2527_s1 + $0x1f4] sm:$0xf]  ;;  %v1173_v29 = vor.u32 %v1588_v12, %v1170_v14  ;;  %v1226_v37 = vld [vmem:[%s2527_s1 + $0x168] sm:$0xf0]  ;;  %v1618_v39 = vld [vmem:[%s2527_s1 + $0x1e4] sm:$0xf]  ;;  %v1101_v43 = vor.u32 %v1570_v31, %v1098_v32 }
  0x31   :  { %882 = vmatpush.bf16.msrb.mxu1 %v1401_v23  ;;  %v1298_v23 = vld [vmem:[%s2527_s1 + $0x1f8] sm:$0xf0]  ;;  %v1584_v49 = vld [vmem:[%s2527_s1 + $0xd4] sm:$0xf]  ;;  %v1082_v60 = vld [vmem:[%s2527_s1 + $0x48] sm:$0xf0] }
  0x32   :  { %895 = vmatpush.bf16.msrb.mxu2 %v1465_v24  ;;  %v154_v24 = vunpack.c.l.b16 %v16_v9  ;;  %v1154_v51 = vld [vmem:[%s2527_s1 + $0xd8] sm:$0xf0]  ;;  %v1616_v54 = vld [vmem:[%s2527_s1 + $0x1d4] sm:$0xf]  ;;  %v1582_v61 = vld [vmem:[%s2527_s1 + $0xc4] sm:$0xf] }
  0x33   :  { %908 = vmatpush.bf16.msrb.mxu3 %v1529_v28  ;;  %v155_v28 = vunpack.c.h.b16 %v16_v9  ;;  %v1218_v53 = vld [vmem:[%s2527_s1 + $0x158] sm:$0xf0]  ;;  %v1157_v57 = vor.u32 %v1584_v49, %v1154_v51  ;;  %v1210_v1 = vld [vmem:[%s2527_s1 + $0x148] sm:$0xf0]  ;;  %v1614_v2 = vld [vmem:[%s2527_s1 + $0x1c4] sm:$0xf] }
  0x34   :  { %870 = vmatpush.bf16.msrb.mxu0 %v1329_v34  ;;  %v1301_v34 = vor.u32 %v1620_v22, %v1298_v23  ;;  %v2164_v41 = vpack.c.b16 %v154_v24, %v154_v24  ;;  %v1282_v55 = vld [vmem:[%s2527_s1 + $0x1d8] sm:$0xf0]  ;;  %v1274_v3 = vld [vmem:[%s2527_s1 + $0x1c8] sm:$0xf0]  ;;  %v1564_v9 = vld [vmem:[%s2527_s1 + $0x34] sm:$0xf] }
  0x35   :  { %883 = vmatpush.bf16.msrb.mxu1 %v1393_v35  ;;  %v1162_v35 = vld [vmem:[%s2527_s1 + $0xe8] sm:$0xf0]  ;;  %v2168_v44 = vpack.c.b16 %v155_v28, %v155_v28  ;;  %v1285_v62 = vor.u32 %v1616_v54, %v1282_v55  ;;  %v1074_v10 = vld [vmem:[%s2527_s1 + $0x38] sm:$0xf0]  ;;  %v1580_v11 = vld [vmem:[%s2527_s1 + $0xb4] sm:$0xf]  ;;  %v1277_v12 = vor.u32 %v1614_v2, %v1274_v3 }
  0x36   :  { %896 = vmatpush.bf16.msrb.mxu2 %v1457_v36  ;;  %v1602_v36 = vld [vmem:[%s2527_s1 + $0x164] sm:$0xf]  ;;  %v1165_v45 = vor.u32 %v1586_v33, %v1162_v35  ;;  %v1596_v14 = vld [vmem:[%s2527_s1 + $0x134] sm:$0xf]  ;;  %v1202_v15 = vld [vmem:[%s2527_s1 + $0x138] sm:$0xf0] }
  0x37   :  { %909 = vmatpush.bf16.msrb.mxu3 %v1521_v40  ;;  %v1290_v40 = vld [vmem:[%s2527_s1 + $0x1e8] sm:$0xf0]  ;;  %v1612_v16 = vld [vmem:[%s2527_s1 + $0x1b4] sm:$0xf]  ;;  %v1266_v17 = vld [vmem:[%s2527_s1 + $0x1b8] sm:$0xf0]  ;;  %v1205_v22 = vor.u32 %v1596_v14, %v1202_v15 }
  0x38   :  { %871 = vmatpush.bf16.msrb.mxu0 %v1321_v46  ;;  %v1229_v46 = vor.u32 %v1602_v36, %v1226_v37  ;;  %v1293_v50 = vor.u32 %v1618_v39, %v1290_v40  ;;  %v1562_v23 = vld [vmem:[%s2527_s1 + $0x24] sm:$0xf]  ;;  %v1066_v24 = vld [vmem:[%s2527_s1 + $0x28] sm:$0xf0]  ;;  %v1560_v35 = vld [vmem:[%s2527_s1 + $0x14] sm:$0xf] }
  0x39   :  { %884 = vmatpush.bf16.msrb.mxu1 %v1385_v47  ;;  %v1568_v47 = vld [vmem:[%s2527_s1 + $0x54] sm:$0xf]  ;;  %v1578_v25 = vld [vmem:[%s2527_s1 + $0xa4] sm:$0xf]  ;;  %v1258_v31 = vld [vmem:[%s2527_s1 + $0x1a8] sm:$0xf0]  ;;  %v1069_v32 = vor.u32 %v1562_v23, %v1066_v24 }
  0x3a   :  { %897 = vmatpush.bf16.msrb.mxu2 %v1449_v48  ;;  %v1090_v48 = vld [vmem:[%s2527_s1 + $0x58] sm:$0xf0]  ;;  %v1594_v28 = vld [vmem:[%s2527_s1 + $0x124] sm:$0xf]  ;;  %v1576_v37 = vld [vmem:[%s2527_s1 + $0x94] sm:$0xf] }
  0x3b   :  { %910 = vmatpush.bf16.msrb.mxu3 %v1513_v52  ;;  %v1600_v52 = vld [vmem:[%s2527_s1 + $0x154] sm:$0xf]  ;;  %v1093_v56 = vor.u32 %v1568_v47, %v1090_v48  ;;  %v1058_v36 = vld [vmem:[%s2527_s1 + $0x18] sm:$0xf0]  ;;  %v1558_v49 = vld [vmem:[%s2527_s1 + $0x4] sm:$0xf] }
  0x3c   :  { %872 = vmatpush.bf16.msrb.mxu0 %v1313_v59  ;;  %v1221_v58 = vor.u32 %v1600_v52, %v1218_v53  ;;  %v1566_v59 = vld [vmem:[%s2527_s1 + $0x44] sm:$0xf]  ;;  %v1122_v40 = vld [vmem:[%s2527_s1 + $0x98] sm:$0xf0]  ;;  %v1061_v48 = vor.u32 %v1560_v35, %v1058_v36  ;;  %v1114_v54 = vld [vmem:[%s2527_s1 + $0x88] sm:$0xf0] }
  0x3d   :  { %885 = vmatpush.bf16.msrb.mxu1 %v1377_v63  ;;  %v1146_v63 = vld [vmem:[%s2527_s1 + $0xc8] sm:$0xf0]  ;;  %v1250_v47 = vld [vmem:[%s2527_s1 + $0x198] sm:$0xf0]  ;;  %v1125_v51 = vor.u32 %v1576_v37, %v1122_v40  ;;  %v1574_v53 = vld [vmem:[%s2527_s1 + $0x84] sm:$0xf] }
  0x3e   :  { %898 = vmatpush.bf16.msrb.mxu2 %v1441_v0  ;;  %v1598_v0 = vld [vmem:[%s2527_s1 + $0x144] sm:$0xf]  ;;  %v1149_v7 = vor.u32 %v1582_v61, %v1146_v63  ;;  %v1362_v61 = vld [vmem:[%s2527_s1 + $0x278] sm:$0xf0]  ;;  %v1117_v3 = vor.u32 %v1574_v53, %v1114_v54  ;;  %v1354_v14 = vld [vmem:[%s2527_s1 + $0x268] sm:$0xf0] }
  0x3f   :  { %911 = vmatpush.bf16.msrb.mxu3 %v1505_v5  ;;  %v1085_v5 = vor.u32 %v1566_v59, %v1082_v60  ;;  %v1213_v8 = vor.u32 %v1598_v0, %v1210_v1  ;;  %v1590_v55 = vld [vmem:[%s2527_s1 + $0x104] sm:$0xf]  ;;  %v1242_v59 = vld [vmem:[%s2527_s1 + $0x188] sm:$0xf0]  ;;  %v1636_v60 = vld [vmem:[%s2527_s1 + $0x274] sm:$0xf] }
  0x40   :  { %873 = vmatpush.bf16.msrb.mxu0 %v1305_v13  ;;  %v1138_v13 = vld [vmem:[%s2527_s1 + $0xb8] sm:$0xf0]  ;;  %v1668_v1 = vld [vmem:[%s2527_s1 + $0x374] sm:$0xf]  ;;  %v1650_v15 = vld [vmem:[%s2527_s1 + $0x2e4] sm:$0xf] }
  0x41   :  { %886 = vmatpush.bf16.msrb.mxu1 %v1369_v18  ;;  %v1077_v18 = vor.u32 %v1564_v9, %v1074_v10  ;;  %v1426_v0 = vld [vmem:[%s2527_s1 + $0x2f8] sm:$0xf0]  ;;  %v1365_v10 = vor.u32 %v1636_v60, %v1362_v61  ;;  %v1546_v23 = vld [vmem:[%s2527_s1 + $0x3e8] sm:$0xf0]  ;;  %v1644_v53 = vld [vmem:[%s2527_s1 + $0x2b4] sm:$0xf] }
  0x42   :  { %899 = vmatpush.bf16.msrb.mxu2 %v1433_v19  ;;  %v1141_v19 = vor.u32 %v1580_v11, %v1138_v13  ;;  %v1490_v2 = vld [vmem:[%s2527_s1 + $0x378] sm:$0xf0]  ;;  %v1634_v13 = vld [vmem:[%s2527_s1 + $0x264] sm:$0xf] }
  0x43   :  { %912 = vmatpush.bf16.msrb.mxu3 %v1497_v26  ;;  %874 = vmatmul.bf16.vlgmr.msrb.gmra.mxu0 %v2164_v41  ;;  %v1269_v26 = vor.u32 %v1612_v16, %v1266_v17  ;;  %v1418_v17 = vld [vmem:[%s2527_s1 + $0x2e8] sm:$0xf0]  ;;  %v1357_v24 = vor.u32 %v1634_v13, %v1354_v14  ;;  %v1624_v13 = vld [vmem:[%s2527_s1 + $0x214] sm:$0xf]  ;;  %v1314_v14 = vld [vmem:[%s2527_s1 + $0x218] sm:$0xf0] }
  0x44   :  { %918 = vmatpush.bf16.msra.mxu0 %v1109_v27  ;;  %887 = vmatmul.bf16.vlgmr.msrb.gmra.mxu1 %v2168_v44  ;;  %v1130_v27 = vld [vmem:[%s2527_s1 + $0xa8] sm:$0xf0] }
  0x45   :  { %931 = vmatpush.bf16.msra.mxu1 %v1173_v29  ;;  %900 = vmatmul.bf16.vlgmr.msrb.gmra.mxu2 %v2156_v38  ;;  %v1194_v29 = vld [vmem:[%s2527_s1 + $0x128] sm:$0xf0]  ;;  %v1133_v33 = vor.u32 %v1578_v25, %v1130_v27  ;;  %v1421_v25 = vor.u32 %v1650_v15, %v1418_v17  ;;  %v1632_v27 = vld [vmem:[%s2527_s1 + $0x254] sm:$0xf]  ;;  %v1378_v17 = vld [vmem:[%s2527_s1 + $0x298] sm:$0xf0] }
  0x46   :  { %944 = vmatpush.bf16.msra.mxu2 %v1237_v30  ;;  %913 = vmatmul.bf16.vlgmr.msrb.gmra.mxu3 %v2166_v42  ;;  %v1610_v30 = vld [vmem:[%s2527_s1 + $0x1a4] sm:$0xf]  ;;  %v1640_v15 = vld [vmem:[%s2527_s1 + $0x294] sm:$0xf] }
  0x47   :  { %957 = vmatpush.bf16.msra.mxu3 %v1301_v34  ;;  %v1197_v34 = vor.u32 %v1594_v28, %v1194_v29  ;;  %v1261_v39 = vor.u32 %v1610_v30, %v1258_v31  ;;  %v1346_v28 = vld [vmem:[%s2527_s1 + $0x258] sm:$0xf0]  ;;  %v1648_v29 = vld [vmem:[%s2527_s1 + $0x2d4] sm:$0xf] }
  0x48   :  { %919 = vmatpush.bf16.msra.mxu0 %v1101_v43  ;;  %v1592_v43 = vld [vmem:[%s2527_s1 + $0x114] sm:$0xf]  ;;  %v1410_v31 = vld [vmem:[%s2527_s1 + $0x2d8] sm:$0xf0]  ;;  %v1349_v35 = vor.u32 %v1632_v27, %v1346_v28  ;;  %v1622_v27 = vld [vmem:[%s2527_s1 + $0x204] sm:$0xf] }
  0x49   :  { %932 = vmatpush.bf16.msra.mxu1 %v1165_v45  ;;  %v1186_v45 = vld [vmem:[%s2527_s1 + $0x118] sm:$0xf0]  ;;  %v1413_v36 = vor.u32 %v1648_v29, %v1410_v31  ;;  %v1306_v28 = vld [vmem:[%s2527_s1 + $0x208] sm:$0xf0]  ;;  %v1638_v29 = vld [vmem:[%s2527_s1 + $0x284] sm:$0xf] }
  0x4a   :  { %945 = vmatpush.bf16.msra.mxu2 %v1229_v46  ;;  %v1608_v46 = vld [vmem:[%s2527_s1 + $0x194] sm:$0xf]  ;;  %v1189_v52 = vor.u32 %v1592_v43, %v1186_v45  ;;  %v1662_v43 = vld [vmem:[%s2527_s1 + $0x344] sm:$0xf]  ;;  %v1466_v45 = vld [vmem:[%s2527_s1 + $0x348] sm:$0xf0] }
  0x4b   :  { %958 = vmatpush.bf16.msra.mxu3 %v1293_v50  ;;  %v1050_v50 = vld [vmem:[%s2527_s1 + $0x8] sm:$0xf0] }
  0x4c   :  { %920 = vmatpush.bf16.msra.mxu0 %v1093_v56  ;;  %v1253_v56 = vor.u32 %v1608_v46, %v1250_v47  ;;  %v1053_v63 = vor.u32 %v1558_v49, %v1050_v50  ;;  %v1678_v46 = vld [vmem:[%s2527_s1 + $0x3c4] sm:$0xf]  ;;  %v1530_v47 = vld [vmem:[%s2527_s1 + $0x3c8] sm:$0xf0]  ;;  %v1469_v50 = vor.u32 %v1662_v43, %v1466_v45 }
  0x4d   :  { %933 = vmatpush.bf16.msra.mxu1 %v1157_v57  ;;  %v1178_v57 = vld [vmem:[%s2527_s1 + $0x108] sm:$0xf0]  ;;  %v1533_v54 = vor.u32 %v1678_v46, %v1530_v47 }
  0x4e   :  { %946 = vmatpush.bf16.msra.mxu2 %v1221_v58  ;;  %v1606_v58 = vld [vmem:[%s2527_s1 + $0x184] sm:$0xf]  ;;  %v1370_v31 = vld [vmem:[%s2527_s1 + $0x288] sm:$0xf0] }
  0x4f   :  { %959 = vmatpush.bf16.msra.mxu3 %v1285_v62  ;;  %v1652_v62 = vld [vmem:[%s2527_s1 + $0x2f4] sm:$0xf]  ;;  %v1245_v9 = vor.u32 %v1606_v58, %v1242_v59  ;;  %v1522_v59 = vld [vmem:[%s2527_s1 + $0x3b8] sm:$0xf0] }
  0x50   :  { %921 = vmatpush.bf16.msra.mxu0 %v1085_v5  ;;  %v1181_v5 = vor.u32 %v1590_v55, %v1178_v57  ;;  %v1429_v11 = vor.u32 %v1652_v62, %v1426_v0  ;;  %v1394_v55 = vld [vmem:[%s2527_s1 + $0x2b8] sm:$0xf0]  ;;  %v1676_v58 = vld [vmem:[%s2527_s1 + $0x3b4] sm:$0xf]  ;;  %v1322_v0 = vld [vmem:[%s2527_s1 + $0x228] sm:$0xf0] }
  0x51   :  { %934 = vmatpush.bf16.msra.mxu1 %v1149_v7  ;;  %v1684_v7 = vld [vmem:[%s2527_s1 + $0x3f4] sm:$0xf]  ;;  %v1458_v57 = vld [vmem:[%s2527_s1 + $0x338] sm:$0xf0]  ;;  %v1397_v61 = vor.u32 %v1644_v53, %v1394_v55 }
  0x52   :  { %947 = vmatpush.bf16.msra.mxu2 %v1213_v8  ;;  %v1554_v8 = vld [vmem:[%s2527_s1 + $0x3f8] sm:$0xf0] }
  0x53   :  { %960 = vmatpush.bf16.msra.mxu3 %v1277_v12  ;;  %v1493_v12 = vor.u32 %v1668_v1, %v1490_v2  ;;  %v1557_v16 = vor.u32 %v1684_v7, %v1554_v8  ;;  %v1642_v1 = vld [vmem:[%s2527_s1 + $0x2a4] sm:$0xf]  ;;  %v1525_v2 = vor.u32 %v1676_v58, %v1522_v59  ;;  %v1450_v7 = vld [vmem:[%s2527_s1 + $0x328] sm:$0xf0] }
  0x54   :  { %922 = vmatpush.bf16.msra.mxu0 %v1077_v18  ;;  %v1666_v18 = vld [vmem:[%s2527_s1 + $0x364] sm:$0xf] }
  0x55   :  { %935 = vmatpush.bf16.msra.mxu1 %v1141_v19  ;;  %v1482_v19 = vld [vmem:[%s2527_s1 + $0x368] sm:$0xf0]  ;;  %v1674_v8 = vld [vmem:[%s2527_s1 + $0x3a4] sm:$0xf] }
  0x56   :  { %948 = vmatpush.bf16.msra.mxu2 %v1205_v22  ;;  %v1682_v22 = vld [vmem:[%s2527_s1 + $0x3e4] sm:$0xf] }
  0x57   :  { %961 = vmatpush.bf16.msra.mxu3 %v1269_v26  ;;  %v1485_v26 = vor.u32 %v1666_v18, %v1482_v19  ;;  %v1549_v30 = vor.u32 %v1682_v22, %v1546_v23  ;;  %v1656_v18 = vld [vmem:[%s2527_s1 + $0x314] sm:$0xf]  ;;  %v1442_v19 = vld [vmem:[%s2527_s1 + $0x318] sm:$0xf0] }
  0x58   :  { %923 = vmatpush.bf16.msra.mxu0 %v1069_v32  ;;  %v1664_v32 = vld [vmem:[%s2527_s1 + $0x354] sm:$0xf]  ;;  %v1506_v23 = vld [vmem:[%s2527_s1 + $0x398] sm:$0xf0] }
  0x59   :  { %936 = vmatpush.bf16.msra.mxu1 %v1133_v33  ;;  %v1474_v33 = vld [vmem:[%s2527_s1 + $0x358] sm:$0xf0]  ;;  %v1672_v22 = vld [vmem:[%s2527_s1 + $0x394] sm:$0xf] }
  0x5a   :  { %949 = vmatpush.bf16.msra.mxu2 %v1197_v34  ;;  %v1680_v34 = vld [vmem:[%s2527_s1 + $0x3d4] sm:$0xf]  ;;  %v1477_v37 = vor.u32 %v1664_v32, %v1474_v33  ;;  %v1654_v32 = vld [vmem:[%s2527_s1 + $0x304] sm:$0xf]  ;;  %v1434_v33 = vld [vmem:[%s2527_s1 + $0x308] sm:$0xf0] }
  0x5b   :  { %962 = vmatpush.bf16.msra.mxu3 %v1261_v39  ;;  %v1338_v39 = vld [vmem:[%s2527_s1 + $0x248] sm:$0xf0] }
  0x5c   :  { %924 = vmatpush.bf16.msra.mxu0 %v1061_v48 }
  0x5d   :  { %937 = vmatpush.bf16.msra.mxu1 %v1125_v51  ;;  %v1628_v51 = vld [vmem:[%s2527_s1 + $0x234] sm:$0xf] }
  0x5e   :  { %950 = vmatpush.bf16.msra.mxu2 %v1189_v52  ;;  %v1330_v52 = vld [vmem:[%s2527_s1 + $0x238] sm:$0xf0] }
  0x5f   :  { %963 = vmatpush.bf16.msra.mxu3 %v1253_v56  ;;  %v1660_v56 = vld [vmem:[%s2527_s1 + $0x334] sm:$0xf]  ;;  %v1333_v60 = vor.u32 %v1628_v51, %v1330_v52 }
  0x60   :  { %925 = vmatpush.bf16.msra.mxu0 %v1053_v63  ;;  %v1461_v62 = vor.u32 %v1660_v56, %v1458_v57  ;;  %v1626_v63 = vld [vmem:[%s2527_s1 + $0x224] sm:$0xf] }
  0x61   :  { %938 = vmatpush.bf16.msra.mxu1 %v1117_v3  ;;  %v1386_v3 = vld [vmem:[%s2527_s1 + $0x2a8] sm:$0xf0] }
  0x62   :  { %951 = vmatpush.bf16.msra.mxu2 %v1181_v5  ;;  %v1658_v5 = vld [vmem:[%s2527_s1 + $0x324] sm:$0xf] }
  0x63   :  { %964 = vmatpush.bf16.msra.mxu3 %v1245_v9  ;;  %926 = vmatmul.bf16.vlgmr.msra.gmra.mxu0 %v2005_v20  ;;  %v1646_v20 = vld [vmem:[%s2527_s1 + $0x2c4] sm:$0xf]  ;;  %v1514_v9 = vld [vmem:[%s2527_s1 + $0x3a8] sm:$0xf0] }
  0x64   :  { %970 = vmatpush.bf16.msrb.mxu0 %v1365_v10  ;;  %939 = vmatmul.bf16.vlgmr.msra.gmra.mxu1 %v2008_v21  ;;  %v1402_v21 = vld [vmem:[%s2527_s1 + $0x2c8] sm:$0xf0]  ;;  %v1325_v10 = vor.u32 %v1626_v63, %v1322_v0 }
  0x65   :  { %983 = vmatpush.bf16.msrb.mxu1 %v1429_v11  ;;  %952 = vmatmul.bf16.vlgmr.msra.gmra.mxu2 %v1973_v4  ;;  %v1538_v4 = vld [vmem:[%s2527_s1 + $0x3d8] sm:$0xf0]  ;;  %v1405_v49 = vor.u32 %v1646_v20, %v1402_v21  ;;  %v1389_v11 = vor.u32 %v1642_v1, %v1386_v3 }
  0x66   :  { %996 = vmatpush.bf16.msrb.mxu2 %v1493_v12  ;;  %965 = vmatmul.bf16.vlgmr.msra.gmra.mxu3 %v1978_v6  ;;  %v1630_v6 = vld [vmem:[%s2527_s1 + $0x244] sm:$0xf]  ;;  %v1541_v40 = vor.u32 %v1680_v34, %v1538_v4  ;;  %v1453_v12 = vor.u32 %v1658_v5, %v1450_v7  ;;  %v1498_v4 = vld [vmem:[%s2527_s1 + $0x388] sm:$0xf0] }
  0x67   :  { %1009 = vmatpush.bf16.msrb.mxu3 %v1557_v16  ;;  %v1341_v48 = vor.u32 %v1630_v6, %v1338_v39  ;;  %v1517_v16 = vor.u32 %v1674_v8, %v1514_v9  ;;  %v1670_v34 = vld [vmem:[%s2527_s1 + $0x384] sm:$0xf] }
  0x68   :  { %971 = vmatpush.bf16.msrb.mxu0 %v1357_v24  ;;  %v1317_v24 = vor.u32 %v1624_v13, %v1314_v14  ;;  %v1501_v6 = vor.u32 %v1670_v34, %v1498_v4 }
  0x69   :  { %984 = vmatpush.bf16.msrb.mxu1 %v1421_v25  ;;  %v1381_v25 = vor.u32 %v1640_v15, %v1378_v17 }
  0x6a   :  { %997 = vmatpush.bf16.msrb.mxu2 %v1485_v26  ;;  %v1445_v26 = vor.u32 %v1656_v18, %v1442_v19 }
  0x6b   :  { %1010 = vmatpush.bf16.msrb.mxu3 %v1549_v30  ;;  %v1509_v30 = vor.u32 %v1672_v22, %v1506_v23 }
  0x6c   :  { %972 = vmatpush.bf16.msrb.mxu0 %v1349_v35  ;;  %v1309_v35 = vor.u32 %v1622_v27, %v1306_v28 }
  0x6d   :  { %985 = vmatpush.bf16.msrb.mxu1 %v1413_v36  ;;  %v1373_v36 = vor.u32 %v1638_v29, %v1370_v31 }
  0x6e   :  { %998 = vmatpush.bf16.msrb.mxu2 %v1477_v37  ;;  %v1437_v37 = vor.u32 %v1654_v32, %v1434_v33 }
  0x6f   :  { %1011 = vmatpush.bf16.msrb.mxu3 %v1541_v40 }
  0x70   :  { %973 = vmatpush.bf16.msrb.mxu0 %v1341_v48 }
  0x71   :  { %986 = vmatpush.bf16.msrb.mxu1 %v1405_v49 }
  0x72   :  { %999 = vmatpush.bf16.msrb.mxu2 %v1469_v50 }
  0x73   :  { %1012 = vmatpush.bf16.msrb.mxu3 %v1533_v54 }
  0x74   :  { %974 = vmatpush.bf16.msrb.mxu0 %v1333_v60 }
  0x75   :  { %987 = vmatpush.bf16.msrb.mxu1 %v1397_v61 }
  0x76   :  { %1000 = vmatpush.bf16.msrb.mxu2 %v1461_v62 }
  0x77   :  { %1013 = vmatpush.bf16.msrb.mxu3 %v1525_v2 }
  0x78   :  { %975 = vmatpush.bf16.msrb.mxu0 %v1325_v10 }
  0x79   :  { %988 = vmatpush.bf16.msrb.mxu1 %v1389_v11 }
  0x7a   :  { %1001 = vmatpush.bf16.msrb.mxu2 %v1453_v12 }
  0x7b   :  { %1014 = vmatpush.bf16.msrb.mxu3 %v1517_v16 }
  0x7c   :  { %976 = vmatpush.bf16.msrb.mxu0 %v1317_v24 }
  0x7d   :  { %989 = vmatpush.bf16.msrb.mxu1 %v1381_v25 }
  0x7e   :  { %1002 = vmatpush.bf16.msrb.mxu2 %v1445_v26 }
  0x7f   :  { %1015 = vmatpush.bf16.msrb.mxu3 %v1509_v30 }
  0x80   :  { %977 = vmatpush.bf16.msrb.mxu0 %v1309_v35 }
  0x81   :  { %990 = vmatpush.bf16.msrb.mxu1 %v1373_v36 }
  0x82   :  { %1003 = vmatpush.bf16.msrb.mxu2 %v1437_v37 }
  0x83   :  { %1016 = vmatpush.bf16.msrb.mxu3 %v1501_v6  ;;  %978 = vmatmul.bf16.vlgmr.msrb.gmra.mxu0 %v2164_v41  ;;  %v1022_v41 = vld [vmem:[%s2529_s2] sm:$0xf] }
  0x84   :  { %991 = vmatmul.bf16.vlgmr.msrb.gmra.mxu1 %v2168_v44  ;;  %v1024_v52 = vperm.slane %v1022_v41, 0  ;;  %v1032_v53 = vperm.slane %v1022_v41, 1  ;;  %v1025_v18 = vperm.slane %v1022_v41, 2  ;;  %v1033_v22 = vperm.slane %v1022_v41, 3 }
  0x85   :  { %1004 = vmatmul.bf16.vlgmr.msrb.gmra.mxu2 %v2156_v38 }
  0x86   :  { %1017 = vmatmul.bf16.vlgmr.msrb.gmra.mxu3 %v2166_v42  ;;  %v1028_v57 = vperm.slane %v1024_v52, 0  ;;  %v1036_v59 = vperm.slane %v1032_v53, 1  ;;  %v1029_v26 = vperm.slane %v1025_v18, 0  ;;  %v1037_v30 = vperm.slane %v1033_v22, 1 }
  0xa0   :  { %v823_v39 = vpop.f32.mrf.mxu0 }
  0xa1   :  { %v836_v20 = vpop.f32.mrf.mxu1 }
  0xa2   :  { %v837_v48 = vadd.f32 %v836_v20, %v823_v39 }
  0xa8   :  { %v849_v40 = vpop.f32.mrf.mxu2  ;;  %v825_v43 = vpop.f32.mrf.mxu0 }
  0xa9   :  { %v862_v21 = vpop.f32.mrf.mxu3  ;;  %v838_v45 = vpop.f32.mrf.mxu1  ;;  %v850_v49 = vadd.f32 %v849_v40, %v837_v48 }
  0xab   :  { %v863_v50 = vadd.f32 %v862_v21, %v850_v49 }
  0xb0   :  { %v851_v46 = vpop.f32.mrf.mxu2 }
  0xb1   :  { %v864_v47 = vpop.f32.mrf.mxu3 }
  0xc0   :  { %v875_v44 = vpop.f32.mrf.mxu0 }
  0xc1   :  { %v876_v51 = vadd.f32 %v875_v44, %v863_v50  ;;  %v888_v38 = vpop.f32.mrf.mxu1 }
  0xc3   :  { %v889_v42 = vadd.f32 %v888_v38, %v876_v51 }
  0xc8   :  { %v901_v54 = vpop.f32.mrf.mxu2  ;;  %v877_v60 = vpop.f32.mrf.mxu0 }
  0xc9   :  { %v902_v55 = vadd.f32 %v901_v54, %v889_v42  ;;  %v914_v56 = vpop.f32.mrf.mxu3  ;;  %v890_v61 = vpop.f32.mrf.mxu1 }
  0xcb   :  { %v915_v58 = vadd.f32 %v914_v56, %v902_v55 }
  0xcd   :  { %v1030_v62 = vmul.f32 %v1028_v57, %v915_v58 }
  0xcf   :  { %v1038_v63 = vadd.f32 %v1036_v59, %v1030_v62 }
  0xd0   :  { %v903_v0 = vpop.f32.mrf.mxu2 }
  0xd1   :  { %1040 = vst [vmem:[%s2530_s3] sm:$0xff] %v1038_v63  ;;  %v916_v1 = vpop.f32.mrf.mxu3 }
  0xe0   :  { %v927_v2 = vpop.f32.mrf.mxu0 }
  0xe1   :  { %v940_v3 = vpop.f32.mrf.mxu1 }
  0xe2   :  { %v941_v12 = vadd.f32 %v940_v3, %v927_v2 }
  0xe8   :  { %v953_v5 = vpop.f32.mrf.mxu2  ;;  %v929_v8 = vpop.f32.mrf.mxu0 }
  0xe9   :  { %v966_v7 = vpop.f32.mrf.mxu3  ;;  %v942_v9 = vpop.f32.mrf.mxu1  ;;  %v954_v13 = vadd.f32 %v953_v5, %v941_v12 }
  0xeb   :  { %v967_v14 = vadd.f32 %v966_v7, %v954_v13 }
  0xf0   :  { %v955_v10 = vpop.f32.mrf.mxu2 }
  0xf1   :  { %v968_v11 = vpop.f32.mrf.mxu3 }
 0x100   :  { %v979_v15 = vpop.f32.mrf.mxu0 }
 0x101   :  { %v992_v16 = vpop.f32.mrf.mxu1  ;;  %v980_v17 = vadd.f32 %v979_v15, %v967_v14 }
 0x103   :  { %v993_v19 = vadd.f32 %v992_v16, %v980_v17 }
 0x108   :  { %v1005_v23 = vpop.f32.mrf.mxu2  ;;  %v981_v27 = vpop.f32.mrf.mxu0 }
 0x109   :  { %v1006_v24 = vadd.f32 %v1005_v23, %v993_v19  ;;  %v1018_v25 = vpop.f32.mrf.mxu3  ;;  %v994_v28 = vpop.f32.mrf.mxu1 }
 0x10b   :  { %v1019_v29 = vadd.f32 %v1018_v25, %v1006_v24 }
 0x10d   :  { %v1031_v31 = vmul.f32 %v1029_v26, %v1019_v29 }
 0x10f   :  { %v1039_v32 = vadd.f32 %v1037_v30, %v1031_v31 }
 0x110   :  { %v1007_v33 = vpop.f32.mrf.mxu2 }
 0x111   :  { %1041 = vst [vmem:[%s2530_s3 + $0x8] sm:$0xff] %v1039_v32  ;;  %v1020_v34 = vpop.f32.mrf.mxu3 }

// kernel: _lambda_.29
= control target key start
LH: loop header
LB: loop body
LE: loop exit
PB: predicated region body
PF: predicated region fallthrough
CT: control target
= control target key end

     0   :  { %s560_s0 = inlined_call_operand.vmem [shape: f32[4,2,256], index: 0, kind: input, shape index: {}]   ;;  %s561_s1 = inlined_call_operand.vmem [shape: bf16[64,256], index: 1, kind: input, shape index: {}]   ;;  %s562_s2 = inlined_call_operand.hbm [shape: f32[2,64], index: 2, kind: output, shape index: {}]  }
   0x1   :  { %v373_v0 = vld [vmem:[%s561_s1 + $0x30] sm:$0xf]  ;;  %v395_v1 = vld [vmem:[%s561_s1 + $0x34] sm:$0xf0]  ;;  %v394_v2 = vld [vmem:[%s561_s1 + $0x34] sm:$0xf] }
   0x2   :  { %v374_v3 = vor.u32 %v395_v1, %v373_v0  ;;  %v375_v4 = vld [vmem:[%s561_s1 + $0x38] sm:$0xf0]  ;;  %v365_v5 = vld [vmem:[%s561_s1 + $0x20] sm:$0xf]  ;;  %v393_v6 = vld [vmem:[%s561_s1 + $0x24] sm:$0xf0] }
   0x3   :  { %v378_v7 = vor.u32 %v394_v2, %v375_v4  ;;  %v392_v8 = vld [vmem:[%s561_s1 + $0x24] sm:$0xf]  ;;  %v367_v9 = vld [vmem:[%s561_s1 + $0x28] sm:$0xf0]  ;;  %v366_v10 = vor.u32 %v393_v6, %v365_v5  ;;  %v357_v12 = vld [vmem:[%s561_s1 + $0x10] sm:$0xf] }
   0x4   :  { %70 = vmatpush.bf16.msra.mxu0 %v374_v3  ;;  %138 = vmatpush.bf16.msra.mxu2 %v374_v3  ;;  %v370_v11 = vor.u32 %v392_v8, %v367_v9  ;;  %v391_v13 = vld [vmem:[%s561_s1 + $0x14] sm:$0xf0]  ;;  %v390_v14 = vld [vmem:[%s561_s1 + $0x14] sm:$0xf]  ;;  %v359_v15 = vld [vmem:[%s561_s1 + $0x18] sm:$0xf0] }
   0x5   :  { %83 = vmatpush.bf16.msra.mxu1 %v378_v7  ;;  %151 = vmatpush.bf16.msra.mxu3 %v378_v7 }
   0x6   :  { %7 = vsyncpa [#allocation3], 0  ;;  %v358_v16 = vor.u32 %v391_v13, %v357_v12  ;;  %v362_v17 = vor.u32 %v390_v14, %v359_v15  ;;  %v349_v18 = vld [vmem:[%s561_s1] sm:$0xf]  ;;  %v389_v19 = vld [vmem:[%s561_s1 + $0x4] sm:$0xf0] }
   0x7   :  { %v388_v20 = vld [vmem:[%s561_s1 + $0x4] sm:$0xf]  ;;  %v351_v21 = vld [vmem:[%s561_s1 + $0x8] sm:$0xf0]  ;;  %v350_v22 = vor.u32 %v389_v19, %v349_v18  ;;  %v457_v24 = vmov 0   ;;  %vm95_vm0 = vcmask 1041408  }
   0x8   :  { %71 = vmatpush.bf16.msra.mxu0 %v366_v10  ;;  %139 = vmatpush.bf16.msra.mxu2 %v366_v10  ;;  %v354_v23 = vor.u32 %v388_v20, %v351_v21  ;;  %v13_v27 = vld [vmem:[%s560_s0] sm:$0xf]  ;;  %s458_s14 = smov 64   ;;  %vm62_vm1 = vcmask 523264   ;;  %v379_v56 = vld [vmem:[%s560_s0 + $0x4] sm:$0xf] }
   0x9   :  { %84 = vmatpush.bf16.msra.mxu1 %v370_v11  ;;  %152 = vmatpush.bf16.msra.mxu3 %v370_v11  ;;  %v382_v20 = vld [vmem:[%s560_s0 + $0x8] sm:$0xf]  ;;  %s338_s24 = sshll.u32 %s562_s2, 4  ;;  %vm329_vm2 = vcmask 517120   ;;  %s339_s24 = int_to_ptr.hbm [resolvable:$true] %s338_s24 }
   0xc   :  { %72 = vmatpush.bf16.msra.mxu0 %v358_v16  ;;  %140 = vmatpush.bf16.msra.mxu2 %v358_v16 }
   0xd   :  { %85 = vmatpush.bf16.msra.mxu1 %v362_v17  ;;  %153 = vmatpush.bf16.msra.mxu3 %v362_v17 }
  0x10   :  { %73 = vmatpush.bf16.msra.mxu0 %v350_v22  ;;  %141 = vmatpush.bf16.msra.mxu2 %v350_v22 }
  0x11   :  { %86 = vmatpush.bf16.msra.mxu1 %v354_v23  ;;  %154 = vmatpush.bf16.msra.mxu3 %v354_v23 }
  0x13   :  { %74 = vmatmul.bf16.vlgmr.msra.gmra.mxu0 %v457_v24 }
  0x14   :  { %205 = vmatpush.bf16.msrb.mxu0 %v374_v3  ;;  %87 = vmatmul.bf16.vlgmr.msra.gmra.mxu1 %v457_v24 }
  0x15   :  { %218 = vmatpush.bf16.msrb.mxu1 %v378_v7  ;;  %285 = vmatpush.bf16.msrb.mxu3 %v378_v7 }
  0x16   :  { %272 = vmatpush.bf16.msrb.mxu2 %v374_v3 }
  0x18   :  { %206 = vmatpush.bf16.msrb.mxu0 %v366_v10 }
  0x19   :  { %219 = vmatpush.bf16.msrb.mxu1 %v370_v11  ;;  %286 = vmatpush.bf16.msrb.mxu3 %v370_v11 }
  0x1a   :  { %273 = vmatpush.bf16.msrb.mxu2 %v366_v10 }
  0x1c   :  { %207 = vmatpush.bf16.msrb.mxu0 %v358_v16 }
  0x1d   :  { %220 = vmatpush.bf16.msrb.mxu1 %v362_v17  ;;  %287 = vmatpush.bf16.msrb.mxu3 %v362_v17 }
  0x1e   :  { %274 = vmatpush.bf16.msrb.mxu2 %v358_v16 }
  0x20   :  { %208 = vmatpush.bf16.msrb.mxu0 %v350_v22 }
  0x21   :  { %221 = vmatpush.bf16.msrb.mxu1 %v354_v23  ;;  %288 = vmatpush.bf16.msrb.mxu3 %v354_v23 }
  0x22   :  { %275 = vmatpush.bf16.msrb.mxu2 %v350_v22 }
  0x90   :  { %v75_v25 = vpop.f32.mrf.mxu0 }
  0x91   :  { %v88_v26 = vpop.f32.mrf.mxu1 }
  0x92   :  { %v94_v28 = vrot.slane %v88_v26, 6 }
  0x94   :  { %v96_v29 = vsel %vm95_vm0, %v75_v25, %v94_v28 }
  0x95   :  { %v98_v30 = vadd.f32 %v96_v29, %v13_v27 }
  0x97   :  { %v99_v31 = vmul.f32 0.5, %v98_v30  ;;  %v104_v34 = vrot.slane %v98_v30, 2 }
  0x98   :  { %v77_v32 = vpop.f32.mrf.mxu0 }
  0x99   :  { %v90_v33 = vpop.f32.mrf.mxu1  ;;  %399 = vtanh.f32 %v99_v31 }
  0x9a   :  { %401 = vtanh.f32 %v104_v34 }
  0x9f   :  { %v400_v35 = vpop.eup %399 }
  0xa0   :  { %v101_v36 = vadd.f32 1.0, %v400_v35  ;;  %v402_v38 = vpop.eup %401 }
  0xa2   :  { %v102_v37 = vmul.f32 0.5, %v101_v36 }
  0xa4   :  { %v116_v39 = vmul.f32 %v402_v38, %v102_v37  ;;  %v115_v40 = vmul.f32 0.0, %v102_v37 }
  0xa6   :  { %118 = vrot.lane.b32.xlu0 %v116_v39, %s458_s14 }
  0xae   :  { %107 = vrot.lane.b32.xlu0 %v98_v30, %s458_s14 }
 0x118   :  { %v119_v41 = vpop.permute.xlu0 %118 }
 0x119   :  { %v121_v42 = vadd.f32 %v119_v41, %v115_v40 }
 0x11b   :  { %403 = vtanh.f32 %v121_v42 }
 0x120   :  { %v108_v44 = vpop.permute.xlu0 %107 }
 0x121   :  { %v404_v43 = vpop.eup %403  ;;  %v109_v45 = vrot.slane %v108_v44, 2 }
 0x122   :  { %124 = vrot.lane.b32.xlu1 %v404_v43, %s458_s14 }
 0x123   :  { %v111_v46 = vmul.f32 0.5, %v109_v45 }
 0x125   :  { %405 = vtanh.f32 %v111_v46 }
 0x12b   :  { %v406_v47 = vpop.eup %405 }
 0x12c   :  { %v113_v48 = vadd.f32 1.0, %v406_v47 }
 0x12e   :  { %v114_v49 = vmul.f32 0.5, %v113_v48  ;;  %v385_v48 = vld [vmem:[%s560_s0 + $0xc] sm:$0xf]  ;;  %s459_s0 = smov [#allocation2]  }
 0x12f   :  { %s336_s21 = sshll.u32 %s459_s0, 4  ;;  %s337_s21 = int_to_ptr.vmem [resolvable:$true] %s336_s21 }
 0x194   :  { %v125_v50 = vpop.permute.xlu1 %124 }
 0x195   :  { %v127_v51 = vmul.f32 %v125_v50, %v114_v49 }
 0x197   :  { %v130_v52 = vpack.c.bf16 %v127_v51, %v127_v51 }
 0x199   :  { %380 = vmatmul.msk.bf16.vlgmr.msra.gmra.mxu2 %vm62_vm1, %v130_v52  ;;  %381 = vmatmul.msk.bf16.vlgmr.msra.gmra.mxu3 %vm62_vm1, %v130_v52 }
 0x21c   :  { %v143_v53 = vpop.f32.mrf.mxu2  ;;  %v156_v54 = vpop.f32.mrf.mxu3 }
 0x21d   :  { %v162_v55 = vrot.slane %v156_v54, 6 }
 0x21f   :  { %v163_v57 = vsel %vm95_vm0, %v143_v53, %v162_v55 }
 0x220   :  { %v165_v58 = vadd.f32 %v379_v56, %v163_v57 }
 0x222   :  { %174 = vrot.lane.b32.xlu2 %v165_v58, %s458_s14  ;;  %v166_v59 = vmul.f32 0.5, %v165_v58  ;;  %v171_v62 = vrot.slane %v165_v58, 2 }
 0x224   :  { %v145_v60 = vpop.f32.mrf.mxu2  ;;  %v158_v61 = vpop.f32.mrf.mxu3  ;;  %407 = vtanh.f32 %v166_v59 }
 0x225   :  { %409 = vtanh.f32 %v171_v62 }
 0x22a   :  { %v408_v63 = vpop.eup %407 }
 0x22b   :  { %v168_v0 = vadd.f32 1.0, %v408_v63  ;;  %v410_v2 = vpop.eup %409 }
 0x22d   :  { %v169_v1 = vmul.f32 0.5, %v168_v0 }
 0x22f   :  { %v183_v3 = vmul.f32 %v410_v2, %v169_v1  ;;  %v182_v4 = vmul.f32 %v169_v1, %v121_v42 }
 0x231   :  { %185 = vrot.lane.b32.xlu1 %v183_v3, %s458_s14 }
 0x27c   :  { %v175_v8 = vpop.permute.xlu2 %174 }
 0x27d   :  { %v176_v9 = vrot.slane %v175_v8, 2 }
 0x27f   :  { %v178_v10 = vmul.f32 0.5, %v176_v9 }
 0x2a3   :  { %v186_v5 = vpop.permute.xlu1 %185 }
 0x2a4   :  { %v188_v6 = vadd.f32 %v186_v5, %v182_v4 }
 0x2a6   :  { %411 = vtanh.f32 %v188_v6 }
 0x2a7   :  { %413 = vtanh.f32 %v178_v10 }
 0x2ac   :  { %v412_v7 = vpop.eup %411 }
 0x2ad   :  { %191 = vrot.lane.b32.xlu2 %v412_v7, %s458_s14  ;;  %v414_v11 = vpop.eup %413 }
 0x2ae   :  { %v180_v12 = vadd.f32 1.0, %v414_v11 }
 0x2b0   :  { %v181_v13 = vmul.f32 0.5, %v180_v12 }
 0x307   :  { %v192_v14 = vpop.permute.xlu2 %191 }
 0x308   :  { %v194_v15 = vmul.f32 %v192_v14, %v181_v13 }
 0x30a   :  { %v197_v16 = vpack.c.bf16 %v194_v15, %v194_v15 }
 0x30c   :  { %383 = vmatmul.msk.bf16.vlgmr.msrb.gmra.mxu0 %vm62_vm1, %v197_v16  ;;  %384 = vmatmul.msk.bf16.vlgmr.msrb.gmra.mxu1 %vm62_vm1, %v197_v16 }
 0x389   :  { %v210_v17 = vpop.f32.mrf.mxu0  ;;  %v223_v18 = vpop.f32.mrf.mxu1 }
 0x38a   :  { %v229_v19 = vrot.slane %v223_v18, 6 }
 0x38c   :  { %v230_v21 = vsel %vm95_vm0, %v210_v17, %v229_v19 }
 0x38d   :  { %v232_v22 = vadd.f32 %v382_v20, %v230_v21 }
 0x38f   :  { %241 = vrot.lane.b32.xlu1 %v232_v22, %s458_s14  ;;  %v233_v23 = vmul.f32 0.5, %v232_v22  ;;  %v238_v26 = vrot.slane %v232_v22, 2 }
 0x391   :  { %v212_v24 = vpop.f32.mrf.mxu0  ;;  %v225_v25 = vpop.f32.mrf.mxu1  ;;  %415 = vtanh.f32 %v233_v23 }
 0x392   :  { %417 = vtanh.f32 %v238_v26 }
 0x397   :  { %v416_v27 = vpop.eup %415 }
 0x398   :  { %v235_v28 = vadd.f32 1.0, %v416_v27  ;;  %v418_v30 = vpop.eup %417 }
 0x39a   :  { %v236_v29 = vmul.f32 0.5, %v235_v28 }
 0x39c   :  { %v250_v31 = vmul.f32 %v418_v30, %v236_v29  ;;  %v249_v32 = vmul.f32 %v236_v29, %v188_v6 }
 0x39e   :  { %252 = vrot.lane.b32.xlu0 %v250_v31, %s458_s14 }
 0x401   :  { %v242_v36 = vpop.permute.xlu1 %241 }
 0x402   :  { %v243_v37 = vrot.slane %v242_v36, 2 }
 0x404   :  { %v245_v38 = vmul.f32 0.5, %v243_v37 }
 0x410   :  { %v253_v33 = vpop.permute.xlu0 %252 }
 0x411   :  { %v255_v34 = vadd.f32 %v253_v33, %v249_v32 }
 0x413   :  { %419 = vtanh.f32 %v255_v34 }
 0x414   :  { %421 = vtanh.f32 %v245_v38 }
 0x419   :  { %v420_v35 = vpop.eup %419 }
 0x41a   :  { %258 = vrot.lane.b32.xlu2 %v420_v35, %s458_s14  ;;  %v422_v39 = vpop.eup %421 }
 0x41b   :  { %v247_v40 = vadd.f32 1.0, %v422_v39 }
 0x41d   :  { %v248_v41 = vmul.f32 0.5, %v247_v40 }
 0x474   :  { %v259_v42 = vpop.permute.xlu2 %258 }
 0x475   :  { %v261_v43 = vmul.f32 %v259_v42, %v248_v41 }
 0x477   :  { %v264_v44 = vpack.c.bf16 %v261_v43, %v261_v43 }
 0x479   :  { %386 = vmatmul.msk.bf16.vlgmr.msrb.gmra.mxu2 %vm62_vm1, %v264_v44  ;;  %387 = vmatmul.msk.bf16.vlgmr.msrb.gmra.mxu3 %vm62_vm1, %v264_v44 }
 0x4fc   :  { %v277_v45 = vpop.f32.mrf.mxu2  ;;  %v290_v46 = vpop.f32.mrf.mxu3 }
 0x4fd   :  { %v296_v47 = vrot.slane %v290_v46, 6 }
 0x4ff   :  { %v297_v49 = vsel %vm95_vm0, %v277_v45, %v296_v47 }
 0x500   :  { %v299_v50 = vadd.f32 %v385_v48, %v297_v49 }
 0x502   :  { %308 = vrot.lane.b32.xlu1 %v299_v50, %s458_s14  ;;  %v300_v51 = vmul.f32 0.5, %v299_v50  ;;  %v305_v54 = vrot.slane %v299_v50, 2 }
 0x504   :  { %v279_v52 = vpop.f32.mrf.mxu2  ;;  %v292_v53 = vpop.f32.mrf.mxu3  ;;  %423 = vtanh.f32 %v300_v51 }
 0x505   :  { %425 = vtanh.f32 %v305_v54 }
 0x50a   :  { %v424_v55 = vpop.eup %423 }
 0x50b   :  { %v302_v56 = vadd.f32 1.0, %v424_v55  ;;  %v426_v58 = vpop.eup %425 }
 0x50d   :  { %v303_v57 = vmul.f32 0.5, %v302_v56 }
 0x50f   :  { %v317_v59 = vmul.f32 %v426_v58, %v303_v57  ;;  %v316_v60 = vmul.f32 %v303_v57, %v255_v34 }
 0x511   :  { %319 = vrot.lane.b32.xlu0 %v317_v59, %s458_s14 }
 0x574   :  { %v309_v0 = vpop.permute.xlu1 %308 }
 0x575   :  { %v310_v1 = vrot.slane %v309_v0, 2 }
 0x577   :  { %v312_v2 = vmul.f32 0.5, %v310_v1 }
 0x583   :  { %v320_v61 = vpop.permute.xlu0 %319 }
 0x584   :  { %v322_v62 = vadd.f32 %v320_v61, %v316_v60 }
 0x586   :  { %427 = vtanh.f32 %v322_v62 }
 0x587   :  { %429 = vtanh.f32 %v312_v2 }
 0x58c   :  { %v428_v63 = vpop.eup %427 }
 0x58d   :  { %325 = vrot.lane.b32.xlu2 %v428_v63, %s458_s14  ;;  %v430_v3 = vpop.eup %429 }
 0x58e   :  { %v314_v4 = vadd.f32 1.0, %v430_v3 }
 0x590   :  { %v315_v5 = vmul.f32 0.5, %v314_v4 }
 0x5e7   :  { %v326_v6 = vpop.permute.xlu2 %325 }
 0x5e8   :  { %v328_v7 = vmul.f32 %v326_v6, %v315_v5 }
 0x5ea   :  { %330 = vst.msk [vmem:[#allocation2] sm:$0x3] %vm329_vm2, %v328_v7 }
 0x5eb   :  { %341 = dma.vmem_to_hbm [thread:$0]  %s337_s21, 32, %s339_s24, [#allocation3]  }
 0x5ec   :  { %455 = dma.done.wait [#allocation3], 32  }
 0x5ed   :  { %456 = vsyncadd [#allocation3], 4294967264 }
 0x5ee   :  { %346 = vsyncpa [#allocation3], 1 }

</bundles_post_ra>
